<compile_context>
chip_gen: v6e
topology: v6e:2x2x1
jax: 0.10.0
libtpu: 0.0.40
codegen_flags: <defaults>
</compile_context>

<pallas_src>
import math

import jax
import jax.numpy as jnp
from jax.experimental import pallas as pl
from jax.experimental.pallas import tpu as pltpu

# ----------------------------- configuration -------------------------------
DIM = 32
DEPTH = 2
NUM_HEADS = 4
HEAD_DIM = DIM // NUM_HEADS
WINDOW = 4
HIDDEN_DIM = 64            # config.HIDDEN_DIM
MLP_RATIO = 4
B, H, W = 2, 8, 8
L = H * W                  # tokens per image
T = WINDOW * WINDOW        # tokens per window
OUT_DIM = 2 * DIM          # encoder spatial_change output channels
P = (H // 2) * (W // 2)    # output spatial positions of the stride-2 conv
EPS = 1e-5
SCALE = HEAD_DIM ** -0.5
NEG_INF = -1e9             # exact-zero probability after exp underflow


def _gelu(x):
    # exact GELU (torch.nn.GELU default, erf-based)
    return 0.5 * x * (1.0 + jax.lax.erf(x * 0.7071067811865476))


# ------------------------------- fused kernel -------------------------------
def make_stage_kernel(nb):
    """nb = images processed per grid step (1 on v7x, B on v5e/v6e)."""

    def stage_kernel(x_ref, temb_ref, tw_ref, tb_ref,
                     ln1g_ref, ln1b_ref, wqkv_ref, bqkv_ref, abias_ref,
                     pw_ref, pb_ref, ln2g_ref, ln2b_ref,
                     w1_ref, b1_ref, w2_ref, b2_ref,
                     sel_ref, dw_ref, db_ref, o_ref):
        # ---- time embedding: x + GELU(t_emb @ Wt + bt), broadcast over L ----
        t = jnp.concatenate(
            [_gelu(jnp.dot(temb_ref[n], tw_ref[...],
                           preferred_element_type=jnp.float32) + tb_ref[...])
             for n in range(nb)], axis=0)                     # (nb, C)
        x = (x_ref[...] + t[:, None, :]).reshape(nb * L, DIM)  # (nb*L, C)

        # ---- DEPTH Swin blocks via fori_loop (bounds vreg live ranges) -----
        def swin_block(i, x):
            # LayerNorm 1
            mu = jnp.mean(x, axis=-1, keepdims=True)
            var = jnp.mean(jnp.square(x - mu), axis=-1, keepdims=True)
            xn = (x - mu) * jax.lax.rsqrt(var + EPS) * ln1g_ref[i] + ln1b_ref[i]

            # fused QKV: ONE (nb*L, C) @ (C, 3C) MXU matmul
            qkv = jnp.dot(xn, wqkv_ref[i],
                          preferred_element_type=jnp.float32) + bqkv_ref[i]

            bias_i = abias_ref[i]                             # (nH, L, L)
            ctx_heads = []
            for h in range(NUM_HEADS):                        # static unroll
                q = qkv[:, h * HEAD_DIM:(h + 1) * HEAD_DIM].reshape(nb, L, HEAD_DIM)
                k = qkv[:, DIM + h * HEAD_DIM:
                        DIM + (h + 1) * HEAD_DIM].reshape(nb, L, HEAD_DIM)
                v = qkv[:, 2 * DIM + h * HEAD_DIM:
                        2 * DIM + (h + 1) * HEAD_DIM].reshape(nb, L, HEAD_DIM)
                # full-token attention; window locality + shift mask +
                # relative-position bias folded into the additive bias.
                s = jnp.einsum('nqd,nkd->nqk', q * SCALE, k,
                               preferred_element_type=jnp.float32) + bias_i[h][None]
                s = s - jnp.max(s, axis=-1, keepdims=True)
                p = jnp.exp(s)
                p = p * pl.reciprocal(jnp.sum(p, axis=-1, keepdims=True),
                                      approx=True)
                ch = jnp.einsum('nqk,nkd->nqd', p, v,
                                preferred_element_type=jnp.float32)
                ctx_heads.append(ch.reshape(nb * L, HEAD_DIM))
            ctx = jnp.concatenate(ctx_heads, axis=-1)         # (nb*L, C)

            # fused output projection: ONE (nb*L, C) @ (C, C) matmul
            x = x + jnp.dot(ctx, pw_ref[i],
                            preferred_element_type=jnp.float32) + pb_ref[i]

            # LayerNorm 2 + MLP
            mu = jnp.mean(x, axis=-1, keepdims=True)
            var = jnp.mean(jnp.square(x - mu), axis=-1, keepdims=True)
            xn = (x - mu) * jax.lax.rsqrt(var + EPS) * ln2g_ref[i] + ln2b_ref[i]
            h1 = _gelu(jnp.dot(xn, w1_ref[i],
                               preferred_element_type=jnp.float32) + b1_ref[i])
            return x + jnp.dot(h1, w2_ref[i],
                               preferred_element_type=jnp.float32) + b2_ref[i]

        x = jax.lax.fori_loop(0, DEPTH, swin_block, x)

        # ---- stride-2 2x2 Conv2d: 4 tap-gather matmuls + ONE 128-deep matmul
        for n in range(nb):                                   # nb <= 2, static
            xi = x[n * L:(n + 1) * L, :]                      # (L, C)
            patches = jnp.concatenate(
                [jnp.dot(sel_ref[k], xi, preferred_element_type=jnp.float32)
                 for k in range(4)], axis=-1)                 # (P, 4C) = (16, 128)
            o_ref[n] = (jnp.dot(patches, dw_ref[...],
                                preferred_element_type=jnp.float32)
                        + db_ref[...])                        # (P, OUT_DIM)

    return stage_kernel


# ------------------------------ pallas wrapper -------------------------------
_WEIGHT_ORDER = ("time_w", "time_b", "ln1_g", "ln1_b", "wqkv", "bqkv",
                 "attn_bias", "proj_w", "proj_b", "ln2_g", "ln2_b",
                 "fc1_w", "fc1_b", "fc2_w", "fc2_b", "sel", "down_w", "down_b")


def _const_index_map(nd):
    return lambda b: (0,) * nd


def _kernel_batch(batch):
    """One image/step on v7x (2 TensorCores); fold the batch on 1-TC chips."""
    try:
        kind = jax.devices()[0].device_kind.lower()
    except Exception:
        kind = ""
    two_tc = ("v7" in kind) or ("7x" in kind)
    return 1 if two_tc else batch


def stage_block_forward(params, x_nchw, t_emb):
    bq, c, hq, wq = x_nchw.shape
    # channel_proj is None on the encoder branch (dim != 768)
    x_tok = x_nchw.transpose(0, 2, 3, 1).reshape(bq, hq * wq, c)
    temb = t_emb.reshape(bq, 1, HIDDEN_DIM)
    nb = _kernel_batch(bq)
    weights = [params[k] for k in _WEIGHT_ORDER]

    out = pl.pallas_call(
        make_stage_kernel(nb),
        out_shape=jax.ShapeDtypeStruct((bq, P, OUT_DIM), jnp.float32),
        grid=(bq // nb,),
        in_specs=[pl.BlockSpec((nb, hq * wq, c), lambda b: (b, 0, 0)),
                  pl.BlockSpec((nb, 1, HIDDEN_DIM), lambda b: (b, 0, 0))]
                 + [pl.BlockSpec(a.shape, _const_index_map(a.ndim))
                    for a in weights],
        out_specs=pl.BlockSpec((nb, P, OUT_DIM), lambda b: (b, 0, 0)),
        compiler_params=pltpu.CompilerParams(
            dimension_semantics=("parallel",)),
    )(x_tok, temb, *weights)

    # (B, P, O) -> (B, H/2, W/2, O) -> NCHW
    return out.reshape(bq, hq // 2, wq // 2, OUT_DIM).transpose(0, 3, 1, 2)


# ------------------------- host-side precomputation --------------------------
def relative_position_index(ws):
    coords = jnp.stack(
        jnp.meshgrid(jnp.arange(ws), jnp.arange(ws), indexing="ij"), axis=0)
    cf = coords.reshape(2, -1)
    rel = cf[:, :, None] - cf[:, None, :]
    rel = rel.transpose(1, 2, 0) + (ws - 1)
    return rel[..., 0] * (2 * ws - 1) + rel[..., 1]           # (T, T)


def build_attn_bias(bias_win, shift):
    """Fold window locality + shifted-window mask + relative-position bias
    into one additive (nH, L, L) tensor over the *unshifted* token grid so the
    kernel needs no roll / window partition / window reverse."""
    tok = jnp.arange(L)
    h, w = tok // W, tok % W
    hp, wp = (h - shift) % H, (w - shift) % W                 # rolled coords
    wid = (hp // WINDOW) * (W // WINDOW) + (wp // WINDOW)
    pos = (hp % WINDOW) * WINDOW + (wp % WINDOW)
    same_win = wid[:, None] == wid[None, :]
    if shift > 0:
        def reg(cc, size):
            r = jnp.where(cc >= size - WINDOW, 1, 0)
            return jnp.where(cc >= size - shift, 2, r)
        region = reg(hp, H) * 3 + reg(wp, W)
        inner = jnp.where(region[:, None] == region[None, :], 0.0, -100.0)
    else:
        inner = jnp.zeros((L, L), jnp.float32)
    mask = jnp.where(same_win, inner, NEG_INF).astype(jnp.float32)
    bias_full = bias_win[:, pos, :][:, :, pos]                # (nH, L, L)
    return bias_full + mask[None]


def init_params(key):
    ks = iter(jax.random.split(key, 64))

    def lin_w(fan_in, shape):
        bound = 1.0 / math.sqrt(fan_in)
        return jax.random.uniform(next(ks), shape, jnp.float32, -bound, bound)

    p = {}
    # time_proj = Linear(HIDDEN_DIM, DIM) -> GELU
    p["time_w"] = lin_w(HIDDEN_DIM, (HIDDEN_DIM, DIM))
    p["time_b"] = lin_w(HIDDEN_DIM, (1, DIM))

    rpi = relative_position_index(WINDOW)
    ln1_g, ln1_b, wqkv, bqkv, abias = [], [], [], [], []
    proj_w, proj_b, ln2_g, ln2_b = [], [], [], []
    fc1_w, fc1_b, fc2_w, fc2_b = [], [], [], []
    for i in range(DEPTH):
        shift = 0 if i % 2 == 0 else WINDOW // 2
        ln1_g.append(jnp.ones((1, DIM), jnp.float32))
        ln1_b.append(jnp.zeros((1, DIM), jnp.float32))
        # fused qkv weight, columns ordered [q | k | v], head-major inside each
        wqkv.append(lin_w(DIM, (DIM, 3 * DIM)))               # (C, 3C)
        bqkv.append(lin_w(DIM, (1, 3 * DIM)))
        table = 0.02 * jax.random.normal(
            next(ks), ((2 * WINDOW - 1) ** 2, NUM_HEADS), jnp.float32)
        bias_win = table[rpi].transpose(2, 0, 1)              # (nH, T, T)
        abias.append(build_attn_bias(bias_win, shift))        # (nH, L, L)
        proj_w.append(lin_w(DIM, (DIM, DIM)))                 # (C, C)
        proj_b.append(lin_w(DIM, (1, DIM)))
        ln2_g.append(jnp.ones((1, DIM), jnp.float32))
        ln2_b.append(jnp.zeros((1, DIM), jnp.float32))
        fc1_w.append(lin_w(DIM, (DIM, MLP_RATIO * DIM)))
        fc1_b.append(lin_w(DIM, (1, MLP_RATIO * DIM)))
        fc2_w.append(lin_w(MLP_RATIO * DIM, (MLP_RATIO * DIM, DIM)))
        fc2_b.append(lin_w(MLP_RATIO * DIM, (1, DIM)))

    p["ln1_g"] = jnp.stack(ln1_g); p["ln1_b"] = jnp.stack(ln1_b)
    p["wqkv"] = jnp.stack(wqkv)                               # (DEPTH, C, 3C)
    p["bqkv"] = jnp.stack(bqkv)                               # (DEPTH, 1, 3C)
    p["attn_bias"] = jnp.stack(abias)                         # (DEPTH, nH, L, L)
    p["proj_w"] = jnp.stack(proj_w); p["proj_b"] = jnp.stack(proj_b)
    p["ln2_g"] = jnp.stack(ln2_g); p["ln2_b"] = jnp.stack(ln2_b)
    p["fc1_w"] = jnp.stack(fc1_w); p["fc1_b"] = jnp.stack(fc1_b)
    p["fc2_w"] = jnp.stack(fc2_w); p["fc2_b"] = jnp.stack(fc2_b)

    # spatial_change = Conv2d(DIM, 2*DIM, kernel_size=2, stride=2)
    w_conv = lin_w(DIM * 4, (OUT_DIM, DIM, 2, 2))             # torch (O, I, kh, kw)
    # rows ordered k*DIM + c with k = kh*2 + kw  ->  (4*C, OUT_DIM) = (128, 64)
    p["down_w"] = w_conv.transpose(2, 3, 1, 0).reshape(4 * DIM, OUT_DIM)
    p["down_b"] = lin_w(DIM * 4, (1, OUT_DIM))

    # per-tap one-hot gather: sel[k, p] picks token (2i+kh)*W + (2j+kw)
    kh = jnp.arange(2).reshape(2, 1, 1, 1)
    kw = jnp.arange(2).reshape(1, 2, 1, 1)
    ii = jnp.arange(H // 2).reshape(1, 1, H // 2, 1)
    jj = jnp.arange(W // 2).reshape(1, 1, 1, W // 2)
    t_idx = (2 * ii + kh) * W + (2 * jj + kw)                 # (2,2,H/2,W/2)
    p["sel"] = jax.nn.one_hot(t_idx.reshape(4, P), L, dtype=jnp.float32)  # (4,P,L)
    return p


# --------------------------------- main --------------------------------------
if __name__ == "__main__":
    key = jax.random.PRNGKey(0)
    kp, kx, kt = jax.random.split(key, 3)
    params = init_params(kp)
    x = jax.random.normal(kx, (B, DIM, H, W), jnp.float32)    # NCHW, like torch
    t_emb = jax.random.normal(kt, (B, HIDDEN_DIM), jnp.float32)

    y = jax.jit(stage_block_forward)(params, x, t_emb)
    y = jax.block_until_ready(y)
    assert y.shape == (B, 2 * DIM, H // 2, W // 2), y.shape
    assert bool(jnp.all(jnp.isfinite(y)))
    print("KERNEL_OK")
</pallas_src>

<mosaic_0001>
module attributes {stable_mosaic.version = 11 : i64} {
  func.func @stage_kernel(%arg0: i32, %arg1: memref<2x64x32xf32, #tpu.memory_space<vmem>>, %arg2: memref<2x1x64xf32, #tpu.memory_space<vmem>>, %arg3: memref<64x32xf32, #tpu.memory_space<vmem>>, %arg4: memref<1x32xf32, #tpu.memory_space<vmem>>, %arg5: memref<2x1x32xf32, #tpu.memory_space<vmem>>, %arg6: memref<2x1x32xf32, #tpu.memory_space<vmem>>, %arg7: memref<2x32x96xf32, #tpu.memory_space<vmem>>, %arg8: memref<2x1x96xf32, #tpu.memory_space<vmem>>, %arg9: memref<2x4x64x64xf32, #tpu.memory_space<vmem>>, %arg10: memref<2x32x32xf32, #tpu.memory_space<vmem>>, %arg11: memref<2x1x32xf32, #tpu.memory_space<vmem>>, %arg12: memref<2x1x32xf32, #tpu.memory_space<vmem>>, %arg13: memref<2x1x32xf32, #tpu.memory_space<vmem>>, %arg14: memref<2x32x128xf32, #tpu.memory_space<vmem>>, %arg15: memref<2x1x128xf32, #tpu.memory_space<vmem>>, %arg16: memref<2x128x32xf32, #tpu.memory_space<vmem>>, %arg17: memref<2x1x32xf32, #tpu.memory_space<vmem>>, %arg18: memref<4x16x64xf32, #tpu.memory_space<vmem>>, %arg19: memref<128x64xf32, #tpu.memory_space<vmem>>, %arg20: memref<1x64xf32, #tpu.memory_space<vmem>>, %arg21: memref<2x16x64xf32, #tpu.memory_space<vmem>>) attributes {dimension_semantics = [#tpu.dimension_semantics<parallel>], iteration_bounds = array<i64: 1>, scalar_prefetch = 0 : i64, scratch_operands = 0 : i64, tpu.core_type = #tpu.core_type<tc>, window_params = [{transform_indices = @transform_0, window_bounds = array<i64: 2, 64, 32>}, {transform_indices = @transform_1, window_bounds = array<i64: 2, 1, 64>}, {pipeline_mode = #tpu.pipeline_mode<synchronous>, transform_indices = @transform_2, window_bounds = array<i64: 64, 32>}, {pipeline_mode = #tpu.pipeline_mode<synchronous>, transform_indices = @transform_3, window_bounds = array<i64: 1, 32>}, {pipeline_mode = #tpu.pipeline_mode<synchronous>, transform_indices = @transform_4, window_bounds = array<i64: 2, 1, 32>}, {pipeline_mode = #tpu.pipeline_mode<synchronous>, transform_indices = @transform_5, window_bounds = array<i64: 2, 1, 32>}, {pipeline_mode = #tpu.pipeline_mode<synchronous>, transform_indices = @transform_6, window_bounds = array<i64: 2, 32, 96>}, {pipeline_mode = #tpu.pipeline_mode<synchronous>, transform_indices = @transform_7, window_bounds = array<i64: 2, 1, 96>}, {pipeline_mode = #tpu.pipeline_mode<synchronous>, transform_indices = @transform_8, window_bounds = array<i64: 2, 4, 64, 64>}, {pipeline_mode = #tpu.pipeline_mode<synchronous>, transform_indices = @transform_9, window_bounds = array<i64: 2, 32, 32>}, {pipeline_mode = #tpu.pipeline_mode<synchronous>, transform_indices = @transform_10, window_bounds = array<i64: 2, 1, 32>}, {pipeline_mode = #tpu.pipeline_mode<synchronous>, transform_indices = @transform_11, window_bounds = array<i64: 2, 1, 32>}, {pipeline_mode = #tpu.pipeline_mode<synchronous>, transform_indices = @transform_12, window_bounds = array<i64: 2, 1, 32>}, {pipeline_mode = #tpu.pipeline_mode<synchronous>, transform_indices = @transform_13, window_bounds = array<i64: 2, 32, 128>}, {pipeline_mode = #tpu.pipeline_mode<synchronous>, transform_indices = @transform_14, window_bounds = array<i64: 2, 1, 128>}, {pipeline_mode = #tpu.pipeline_mode<synchronous>, transform_indices = @transform_15, window_bounds = array<i64: 2, 128, 32>}, {pipeline_mode = #tpu.pipeline_mode<synchronous>, transform_indices = @transform_16, window_bounds = array<i64: 2, 1, 32>}, {pipeline_mode = #tpu.pipeline_mode<synchronous>, transform_indices = @transform_17, window_bounds = array<i64: 4, 16, 64>}, {pipeline_mode = #tpu.pipeline_mode<synchronous>, transform_indices = @transform_18, window_bounds = array<i64: 128, 64>}, {pipeline_mode = #tpu.pipeline_mode<synchronous>, transform_indices = @transform_19, window_bounds = array<i64: 1, 64>}, {transform_indices = @transform_20, window_bounds = array<i64: 2, 16, 64>}]} {
    %c0 = arith.constant 0 : index
    %c0_0 = arith.constant 0 : index
    %c0_1 = arith.constant 0 : index
    %0 = vector.load %arg2[%c0, %c0_0, %c0_1] : memref<2x1x64xf32, #tpu.memory_space<vmem>>, vector<1x1x64xf32>
    %1 = vector.shape_cast %0 : vector<1x1x64xf32> to vector<1x64xf32>
    %c0_2 = arith.constant 0 : index
    %c0_3 = arith.constant 0 : index
    %2 = vector.load %arg3[%c0_2, %c0_3] : memref<64x32xf32, #tpu.memory_space<vmem>>, vector<64x32xf32>
    %cst = arith.constant dense<0.000000e+00> : vector<1x32xf32>
    %3 = tpu.matmul %1, %2, %cst {dimension_numbers = #tpu.dot_dimension_numbers<[1], [0], [0], [1], [0, 0, 1, 1], [], []>} : vector<1x64xf32>, vector<64x32xf32>, vector<1x32xf32> -> vector<1x32xf32>
    %c0_4 = arith.constant 0 : index
    %c0_5 = arith.constant 0 : index
    %4 = vector.load %arg4[%c0_4, %c0_5] : memref<1x32xf32, #tpu.memory_space<vmem>>, vector<1x32xf32>
    %5 = arith.addf %3, %4 : vector<1x32xf32>
    %cst_6 = arith.constant 5.000000e-01 : f32
    %6 = vector.broadcast %cst_6 : f32 to vector<1x32xf32>
    %7 = arith.mulf %6, %5 : vector<1x32xf32>
    %cst_7 = arith.constant 0.707106769 : f32
    %8 = vector.broadcast %cst_7 : f32 to vector<1x32xf32>
    %9 = arith.mulf %5, %8 : vector<1x32xf32>
    %10 = math.erf %9 : vector<1x32xf32>
    %cst_8 = arith.constant 1.000000e+00 : f32
    %11 = vector.broadcast %cst_8 : f32 to vector<1x32xf32>
    %12 = arith.addf %11, %10 : vector<1x32xf32>
    %13 = arith.mulf %7, %12 : vector<1x32xf32>
    %c1 = arith.constant 1 : index
    %c0_9 = arith.constant 0 : index
    %c0_10 = arith.constant 0 : index
    %14 = vector.load %arg2[%c1, %c0_9, %c0_10] : memref<2x1x64xf32, #tpu.memory_space<vmem>>, vector<1x1x64xf32>
    %15 = vector.shape_cast %14 : vector<1x1x64xf32> to vector<1x64xf32>
    %c0_11 = arith.constant 0 : index
    %c0_12 = arith.constant 0 : index
    %16 = vector.load %arg3[%c0_11, %c0_12] : memref<64x32xf32, #tpu.memory_space<vmem>>, vector<64x32xf32>
    %cst_13 = arith.constant dense<0.000000e+00> : vector<1x32xf32>
    %17 = tpu.matmul %15, %16, %cst_13 {dimension_numbers = #tpu.dot_dimension_numbers<[1], [0], [0], [1], [0, 0, 1, 1], [], []>} : vector<1x64xf32>, vector<64x32xf32>, vector<1x32xf32> -> vector<1x32xf32>
    %c0_14 = arith.constant 0 : index
    %c0_15 = arith.constant 0 : index
    %18 = vector.load %arg4[%c0_14, %c0_15] : memref<1x32xf32, #tpu.memory_space<vmem>>, vector<1x32xf32>
    %19 = arith.addf %17, %18 : vector<1x32xf32>
    %cst_16 = arith.constant 5.000000e-01 : f32
    %20 = vector.broadcast %cst_16 : f32 to vector<1x32xf32>
    %21 = arith.mulf %20, %19 : vector<1x32xf32>
    %cst_17 = arith.constant 0.707106769 : f32
    %22 = vector.broadcast %cst_17 : f32 to vector<1x32xf32>
    %23 = arith.mulf %19, %22 : vector<1x32xf32>
    %24 = math.erf %23 : vector<1x32xf32>
    %cst_18 = arith.constant 1.000000e+00 : f32
    %25 = vector.broadcast %cst_18 : f32 to vector<1x32xf32>
    %26 = arith.addf %25, %24 : vector<1x32xf32>
    %27 = arith.mulf %21, %26 : vector<1x32xf32>
    %28 = tpu.concatenate %13, %27 in 0 : vector<1x32xf32>, vector<1x32xf32> -> vector<2x32xf32>
    %c0_19 = arith.constant 0 : index
    %c0_20 = arith.constant 0 : index
    %c0_21 = arith.constant 0 : index
    %29 = vector.load %arg1[%c0_19, %c0_20, %c0_21] : memref<2x64x32xf32, #tpu.memory_space<vmem>>, vector<2x64x32xf32>
    %30 = vector.shape_cast %28 : vector<2x32xf32> to vector<2x1x32xf32>
    %31 = vector.broadcast %30 : vector<2x1x32xf32> to vector<2x64x32xf32>
    %32 = arith.addf %29, %31 : vector<2x64x32xf32>
    %33 = vector.shape_cast %32 : vector<2x64x32xf32> to vector<128x32xf32>
    %c0_i32 = arith.constant 0 : i32
    %c2_i32 = arith.constant 2 : i32
    %34 = arith.addi %c0_i32, %c2_i32 : i32
    %c1_i32 = arith.constant 1 : i32
    %35 = scf.for %arg22 = %c0_i32 to %34 step %c1_i32 iter_args(%arg23 = %33) -> (vector<128x32xf32>)  : i32 {
      %cst_69 = arith.constant dense<0.000000e+00> : vector<128xf32>
      %80 = vector.multi_reduction <add>, %arg23, %cst_69 [1] : vector<128x32xf32> to vector<128xf32>
      %81 = vector.shape_cast %80 : vector<128xf32> to vector<128x1xf32>
      %cst_70 = arith.constant 3.200000e+01 : f32
      %82 = vector.broadcast %cst_70 : f32 to vector<128x1xf32>
      %83 = arith.divf %81, %82 : vector<128x1xf32>
      %84 = vector.broadcast %83 : vector<128x1xf32> to vector<128x32xf32>
      %85 = arith.subf %arg23, %84 : vector<128x32xf32>
      %86 = arith.mulf %85, %85 : vector<128x32xf32>
      %cst_71 = arith.constant dense<0.000000e+00> : vector<128xf32>
      %87 = vector.multi_reduction <add>, %86, %cst_71 [1] : vector<128x32xf32> to vector<128xf32>
      %88 = vector.shape_cast %87 : vector<128xf32> to vector<128x1xf32>
      %cst_72 = arith.constant 3.200000e+01 : f32
      %89 = vector.broadcast %cst_72 : f32 to vector<128x1xf32>
      %90 = arith.divf %88, %89 : vector<128x1xf32>
      %91 = vector.broadcast %83 : vector<128x1xf32> to vector<128x32xf32>
      %92 = arith.subf %arg23, %91 : vector<128x32xf32>
      %cst_73 = arith.constant 9.99999974E-6 : f32
      %93 = vector.broadcast %cst_73 : f32 to vector<128x1xf32>
      %94 = arith.addf %90, %93 : vector<128x1xf32>
      %95 = math.rsqrt %94 : vector<128x1xf32>
      %96 = vector.broadcast %95 : vector<128x1xf32> to vector<128x32xf32>
      %97 = arith.mulf %92, %96 : vector<128x32xf32>
      %98 = arith.index_cast %arg22 : i32 to index
      %c0_74 = arith.constant 0 : index
      %c0_75 = arith.constant 0 : index
      %99 = vector.load %arg5[%98, %c0_74, %c0_75] : memref<2x1x32xf32, #tpu.memory_space<vmem>>, vector<1x1x32xf32>
      %100 = vector.shape_cast %99 : vector<1x1x32xf32> to vector<1x32xf32>
      %101 = vector.broadcast %100 : vector<1x32xf32> to vector<128x32xf32>
      %102 = arith.mulf %97, %101 : vector<128x32xf32>
      %103 = arith.index_cast %arg22 : i32 to index
      %c0_76 = arith.constant 0 : index
      %c0_77 = arith.constant 0 : index
      %104 = vector.load %arg6[%103, %c0_76, %c0_77] : memref<2x1x32xf32, #tpu.memory_space<vmem>>, vector<1x1x32xf32>
      %105 = vector.shape_cast %104 : vector<1x1x32xf32> to vector<1x32xf32>
      %106 = vector.broadcast %105 : vector<1x32xf32> to vector<128x32xf32>
      %107 = arith.addf %102, %106 : vector<128x32xf32>
      %108 = arith.index_cast %arg22 : i32 to index
      %c0_78 = arith.constant 0 : index
      %c0_79 = arith.constant 0 : index
      %109 = vector.load %arg7[%108, %c0_78, %c0_79] : memref<2x32x96xf32, #tpu.memory_space<vmem>>, vector<1x32x96xf32>
      %110 = vector.shape_cast %109 : vector<1x32x96xf32> to vector<32x96xf32>
      %cst_80 = arith.constant dense<0.000000e+00> : vector<128x96xf32>
      %111 = tpu.matmul %107, %110, %cst_80 {dimension_numbers = #tpu.dot_dimension_numbers<[1], [0], [0], [1], [0, 0, 1, 1], [], []>} : vector<128x32xf32>, vector<32x96xf32>, vector<128x96xf32> -> vector<128x96xf32>
      %112 = arith.index_cast %arg22 : i32 to index
      %c0_81 = arith.constant 0 : index
      %c0_82 = arith.constant 0 : index
      %113 = vector.load %arg8[%112, %c0_81, %c0_82] : memref<2x1x96xf32, #tpu.memory_space<vmem>>, vector<1x1x96xf32>
      %114 = vector.shape_cast %113 : vector<1x1x96xf32> to vector<1x96xf32>
      %115 = vector.broadcast %114 : vector<1x96xf32> to vector<128x96xf32>
      %116 = arith.addf %111, %115 : vector<128x96xf32>
      %117 = arith.index_cast %arg22 : i32 to index
      %c0_83 = arith.constant 0 : index
      %c0_84 = arith.constant 0 : index
      %c0_85 = arith.constant 0 : index
      %118 = vector.load %arg9[%117, %c0_83, %c0_84, %c0_85] : memref<2x4x64x64xf32, #tpu.memory_space<vmem>>, vector<1x4x64x64xf32>
      %119 = vector.shape_cast %118 : vector<1x4x64x64xf32> to vector<4x64x64xf32>
      %120 = vector.extract_strided_slice %116 {offsets = [0, 0], sizes = [128, 8], strides = [1, 1]} : vector<128x96xf32> to vector<128x8xf32>
      %121 = vector.shape_cast %120 : vector<128x8xf32> to vector<2x64x8xf32>
      %122 = vector.extract_strided_slice %116 {offsets = [0, 32], sizes = [128, 8], strides = [1, 1]} : vector<128x96xf32> to vector<128x8xf32>
      %123 = vector.shape_cast %122 : vector<128x8xf32> to vector<2x64x8xf32>
      %124 = vector.extract_strided_slice %116 {offsets = [0, 64], sizes = [128, 8], strides = [1, 1]} : vector<128x96xf32> to vector<128x8xf32>
      %125 = vector.shape_cast %124 : vector<128x8xf32> to vector<2x64x8xf32>
      %cst_86 = arith.constant 0.353553385 : f32
      %126 = vector.broadcast %cst_86 : f32 to vector<2x64x8xf32>
      %127 = arith.mulf %121, %126 : vector<2x64x8xf32>
      "tpu.trace_start"() <{level = 10 : i32, message = "nqd,nkd->nqk"}> : () -> ()
      %cst_87 = arith.constant dense<0.000000e+00> : vector<2x64x64xf32>
      %128 = tpu.matmul %127, %123, %cst_87 {dimension_numbers = #tpu.dot_dimension_numbers<[2], [2], [1], [1], [0, 0, 0, 1, 1, 1], [0], [0]>} : vector<2x64x8xf32>, vector<2x64x8xf32>, vector<2x64x64xf32> -> vector<2x64x64xf32>
      "tpu.trace_stop"() : () -> ()
      %129 = vector.extract_strided_slice %119 {offsets = [0, 0, 0], sizes = [1, 64, 64], strides = [1, 1, 1]} : vector<4x64x64xf32> to vector<1x64x64xf32>
      %130 = vector.shape_cast %129 : vector<1x64x64xf32> to vector<64x64xf32>
      %131 = vector.shape_cast %130 : vector<64x64xf32> to vector<1x64x64xf32>
      %132 = vector.broadcast %131 : vector<1x64x64xf32> to vector<2x64x64xf32>
      %133 = arith.addf %128, %132 : vector<2x64x64xf32>
      %cst_88 = arith.constant dense<0xFF800000> : vector<2x64xf32>
      %134 = vector.multi_reduction <maximumf>, %133, %cst_88 [2] : vector<2x64x64xf32> to vector<2x64xf32>
      %135 = vector.shape_cast %134 : vector<2x64xf32> to vector<2x64x1xf32>
      %136 = vector.broadcast %135 : vector<2x64x1xf32> to vector<2x64x64xf32>
      %137 = arith.subf %133, %136 : vector<2x64x64xf32>
      %138 = math.exp %137 : vector<2x64x64xf32>
      %cst_89 = arith.constant dense<0.000000e+00> : vector<2x64xf32>
      %139 = vector.multi_reduction <add>, %138, %cst_89 [2] : vector<2x64x64xf32> to vector<2x64xf32>
      %140 = vector.shape_cast %139 : vector<2x64xf32> to vector<2x64x1xf32>
      %141 = tpu.reciprocal %140 {approx = true} : vector<2x64x1xf32> -> vector<2x64x1xf32>
      %142 = vector.broadcast %141 : vector<2x64x1xf32> to vector<2x64x64xf32>
      %143 = arith.mulf %138, %142 : vector<2x64x64xf32>
      "tpu.trace_start"() <{level = 10 : i32, message = "nqk,nkd->nqd"}> : () -> ()
      %cst_90 = arith.constant dense<0.000000e+00> : vector<2x64x8xf32>
      %144 = tpu.matmul %143, %125, %cst_90 {dimension_numbers = #tpu.dot_dimension_numbers<[2], [1], [1], [2], [0, 0, 0, 1, 1, 2], [0], [0]>} : vector<2x64x64xf32>, vector<2x64x8xf32>, vector<2x64x8xf32> -> vector<2x64x8xf32>
      "tpu.trace_stop"() : () -> ()
      %145 = vector.shape_cast %144 : vector<2x64x8xf32> to vector<128x8xf32>
      %146 = vector.extract_strided_slice %116 {offsets = [0, 8], sizes = [128, 8], strides = [1, 1]} : vector<128x96xf32> to vector<128x8xf32>
      %147 = vector.shape_cast %146 : vector<128x8xf32> to vector<2x64x8xf32>
      %148 = vector.extract_strided_slice %116 {offsets = [0, 40], sizes = [128, 8], strides = [1, 1]} : vector<128x96xf32> to vector<128x8xf32>
      %149 = vector.shape_cast %148 : vector<128x8xf32> to vector<2x64x8xf32>
      %150 = vector.extract_strided_slice %116 {offsets = [0, 72], sizes = [128, 8], strides = [1, 1]} : vector<128x96xf32> to vector<128x8xf32>
      %151 = vector.shape_cast %150 : vector<128x8xf32> to vector<2x64x8xf32>
      %cst_91 = arith.constant 0.353553385 : f32
      %152 = vector.broadcast %cst_91 : f32 to vector<2x64x8xf32>
      %153 = arith.mulf %147, %152 : vector<2x64x8xf32>
      "tpu.trace_start"() <{level = 10 : i32, message = "nqd,nkd->nqk"}> : () -> ()
      %cst_92 = arith.constant dense<0.000000e+00> : vector<2x64x64xf32>
      %154 = tpu.matmul %153, %149, %cst_92 {dimension_numbers = #tpu.dot_dimension_numbers<[2], [2], [1], [1], [0, 0, 0, 1, 1, 1], [0], [0]>} : vector<2x64x8xf32>, vector<2x64x8xf32>, vector<2x64x64xf32> -> vector<2x64x64xf32>
      "tpu.trace_stop"() : () -> ()
      %155 = vector.extract_strided_slice %119 {offsets = [1, 0, 0], sizes = [1, 64, 64], strides = [1, 1, 1]} : vector<4x64x64xf32> to vector<1x64x64xf32>
      %156 = vector.shape_cast %155 : vector<1x64x64xf32> to vector<64x64xf32>
      %157 = vector.shape_cast %156 : vector<64x64xf32> to vector<1x64x64xf32>
      %158 = vector.broadcast %157 : vector<1x64x64xf32> to vector<2x64x64xf32>
      %159 = arith.addf %154, %158 : vector<2x64x64xf32>
      %cst_93 = arith.constant dense<0xFF800000> : vector<2x64xf32>
      %160 = vector.multi_reduction <maximumf>, %159, %cst_93 [2] : vector<2x64x64xf32> to vector<2x64xf32>
      %161 = vector.shape_cast %160 : vector<2x64xf32> to vector<2x64x1xf32>
      %162 = vector.broadcast %161 : vector<2x64x1xf32> to vector<2x64x64xf32>
      %163 = arith.subf %159, %162 : vector<2x64x64xf32>
      %164 = math.exp %163 : vector<2x64x64xf32>
      %cst_94 = arith.constant dense<0.000000e+00> : vector<2x64xf32>
      %165 = vector.multi_reduction <add>, %164, %cst_94 [2] : vector<2x64x64xf32> to vector<2x64xf32>
      %166 = vector.shape_cast %165 : vector<2x64xf32> to vector<2x64x1xf32>
      %167 = tpu.reciprocal %166 {approx = true} : vector<2x64x1xf32> -> vector<2x64x1xf32>
      %168 = vector.broadcast %167 : vector<2x64x1xf32> to vector<2x64x64xf32>
      %169 = arith.mulf %164, %168 : vector<2x64x64xf32>
      "tpu.trace_start"() <{level = 10 : i32, message = "nqk,nkd->nqd"}> : () -> ()
      %cst_95 = arith.constant dense<0.000000e+00> : vector<2x64x8xf32>
      %170 = tpu.matmul %169, %151, %cst_95 {dimension_numbers = #tpu.dot_dimension_numbers<[2], [1], [1], [2], [0, 0, 0, 1, 1, 2], [0], [0]>} : vector<2x64x64xf32>, vector<2x64x8xf32>, vector<2x64x8xf32> -> vector<2x64x8xf32>
      "tpu.trace_stop"() : () -> ()
      %171 = vector.shape_cast %170 : vector<2x64x8xf32> to vector<128x8xf32>
      %172 = vector.extract_strided_slice %116 {offsets = [0, 16], sizes = [128, 8], strides = [1, 1]} : vector<128x96xf32> to vector<128x8xf32>
      %173 = vector.shape_cast %172 : vector<128x8xf32> to vector<2x64x8xf32>
      %174 = vector.extract_strided_slice %116 {offsets = [0, 48], sizes = [128, 8], strides = [1, 1]} : vector<128x96xf32> to vector<128x8xf32>
      %175 = vector.shape_cast %174 : vector<128x8xf32> to vector<2x64x8xf32>
      %176 = vector.extract_strided_slice %116 {offsets = [0, 80], sizes = [128, 8], strides = [1, 1]} : vector<128x96xf32> to vector<128x8xf32>
      %177 = vector.shape_cast %176 : vector<128x8xf32> to vector<2x64x8xf32>
      %cst_96 = arith.constant 0.353553385 : f32
      %178 = vector.broadcast %cst_96 : f32 to vector<2x64x8xf32>
      %179 = arith.mulf %173, %178 : vector<2x64x8xf32>
      "tpu.trace_start"() <{level = 10 : i32, message = "nqd,nkd->nqk"}> : () -> ()
      %cst_97 = arith.constant dense<0.000000e+00> : vector<2x64x64xf32>
      %180 = tpu.matmul %179, %175, %cst_97 {dimension_numbers = #tpu.dot_dimension_numbers<[2], [2], [1], [1], [0, 0, 0, 1, 1, 1], [0], [0]>} : vector<2x64x8xf32>, vector<2x64x8xf32>, vector<2x64x64xf32> -> vector<2x64x64xf32>
      "tpu.trace_stop"() : () -> ()
      %181 = vector.extract_strided_slice %119 {offsets = [2, 0, 0], sizes = [1, 64, 64], strides = [1, 1, 1]} : vector<4x64x64xf32> to vector<1x64x64xf32>
      %182 = vector.shape_cast %181 : vector<1x64x64xf32> to vector<64x64xf32>
      %183 = vector.shape_cast %182 : vector<64x64xf32> to vector<1x64x64xf32>
      %184 = vector.broadcast %183 : vector<1x64x64xf32> to vector<2x64x64xf32>
      %185 = arith.addf %180, %184 : vector<2x64x64xf32>
      %cst_98 = arith.constant dense<0xFF800000> : vector<2x64xf32>
      %186 = vector.multi_reduction <maximumf>, %185, %cst_98 [2] : vector<2x64x64xf32> to vector<2x64xf32>
      %187 = vector.shape_cast %186 : vector<2x64xf32> to vector<2x64x1xf32>
      %188 = vector.broadcast %187 : vector<2x64x1xf32> to vector<2x64x64xf32>
      %189 = arith.subf %185, %188 : vector<2x64x64xf32>
      %190 = math.exp %189 : vector<2x64x64xf32>
      %cst_99 = arith.constant dense<0.000000e+00> : vector<2x64xf32>
      %191 = vector.multi_reduction <add>, %190, %cst_99 [2] : vector<2x64x64xf32> to vector<2x64xf32>
      %192 = vector.shape_cast %191 : vector<2x64xf32> to vector<2x64x1xf32>
      %193 = tpu.reciprocal %192 {approx = true} : vector<2x64x1xf32> -> vector<2x64x1xf32>
      %194 = vector.broadcast %193 : vector<2x64x1xf32> to vector<2x64x64xf32>
      %195 = arith.mulf %190, %194 : vector<2x64x64xf32>
      "tpu.trace_start"() <{level = 10 : i32, message = "nqk,nkd->nqd"}> : () -> ()
      %cst_100 = arith.constant dense<0.000000e+00> : vector<2x64x8xf32>
      %196 = tpu.matmul %195, %177, %cst_100 {dimension_numbers = #tpu.dot_dimension_numbers<[2], [1], [1], [2], [0, 0, 0, 1, 1, 2], [0], [0]>} : vector<2x64x64xf32>, vector<2x64x8xf32>, vector<2x64x8xf32> -> vector<2x64x8xf32>
      "tpu.trace_stop"() : () -> ()
      %197 = vector.shape_cast %196 : vector<2x64x8xf32> to vector<128x8xf32>
      %198 = vector.extract_strided_slice %116 {offsets = [0, 24], sizes = [128, 8], strides = [1, 1]} : vector<128x96xf32> to vector<128x8xf32>
      %199 = vector.shape_cast %198 : vector<128x8xf32> to vector<2x64x8xf32>
      %200 = vector.extract_strided_slice %116 {offsets = [0, 56], sizes = [128, 8], strides = [1, 1]} : vector<128x96xf32> to vector<128x8xf32>
      %201 = vector.shape_cast %200 : vector<128x8xf32> to vector<2x64x8xf32>
      %202 = vector.extract_strided_slice %116 {offsets = [0, 88], sizes = [128, 8], strides = [1, 1]} : vector<128x96xf32> to vector<128x8xf32>
      %203 = vector.shape_cast %202 : vector<128x8xf32> to vector<2x64x8xf32>
      %cst_101 = arith.constant 0.353553385 : f32
      %204 = vector.broadcast %cst_101 : f32 to vector<2x64x8xf32>
      %205 = arith.mulf %199, %204 : vector<2x64x8xf32>
      "tpu.trace_start"() <{level = 10 : i32, message = "nqd,nkd->nqk"}> : () -> ()
      %cst_102 = arith.constant dense<0.000000e+00> : vector<2x64x64xf32>
      %206 = tpu.matmul %205, %201, %cst_102 {dimension_numbers = #tpu.dot_dimension_numbers<[2], [2], [1], [1], [0, 0, 0, 1, 1, 1], [0], [0]>} : vector<2x64x8xf32>, vector<2x64x8xf32>, vector<2x64x64xf32> -> vector<2x64x64xf32>
      "tpu.trace_stop"() : () -> ()
      %207 = vector.extract_strided_slice %119 {offsets = [3, 0, 0], sizes = [1, 64, 64], strides = [1, 1, 1]} : vector<4x64x64xf32> to vector<1x64x64xf32>
      %208 = vector.shape_cast %207 : vector<1x64x64xf32> to vector<64x64xf32>
      %209 = vector.shape_cast %208 : vector<64x64xf32> to vector<1x64x64xf32>
      %210 = vector.broadcast %209 : vector<1x64x64xf32> to vector<2x64x64xf32>
      %211 = arith.addf %206, %210 : vector<2x64x64xf32>
      %cst_103 = arith.constant dense<0xFF800000> : vector<2x64xf32>
      %212 = vector.multi_reduction <maximumf>, %211, %cst_103 [2] : vector<2x64x64xf32> to vector<2x64xf32>
      %213 = vector.shape_cast %212 : vector<2x64xf32> to vector<2x64x1xf32>
      %214 = vector.broadcast %213 : vector<2x64x1xf32> to vector<2x64x64xf32>
      %215 = arith.subf %211, %214 : vector<2x64x64xf32>
      %216 = math.exp %215 : vector<2x64x64xf32>
      %cst_104 = arith.constant dense<0.000000e+00> : vector<2x64xf32>
      %217 = vector.multi_reduction <add>, %216, %cst_104 [2] : vector<2x64x64xf32> to vector<2x64xf32>
      %218 = vector.shape_cast %217 : vector<2x64xf32> to vector<2x64x1xf32>
      %219 = tpu.reciprocal %218 {approx = true} : vector<2x64x1xf32> -> vector<2x64x1xf32>
      %220 = vector.broadcast %219 : vector<2x64x1xf32> to vector<2x64x64xf32>
      %221 = arith.mulf %216, %220 : vector<2x64x64xf32>
      "tpu.trace_start"() <{level = 10 : i32, message = "nqk,nkd->nqd"}> : () -> ()
      %cst_105 = arith.constant dense<0.000000e+00> : vector<2x64x8xf32>
      %222 = tpu.matmul %221, %203, %cst_105 {dimension_numbers = #tpu.dot_dimension_numbers<[2], [1], [1], [2], [0, 0, 0, 1, 1, 2], [0], [0]>} : vector<2x64x64xf32>, vector<2x64x8xf32>, vector<2x64x8xf32> -> vector<2x64x8xf32>
      "tpu.trace_stop"() : () -> ()
      %223 = vector.shape_cast %222 : vector<2x64x8xf32> to vector<128x8xf32>
      %224 = tpu.concatenate %145, %171, %197, %223 in 1 : vector<128x8xf32>, vector<128x8xf32>, vector<128x8xf32>, vector<128x8xf32> -> vector<128x32xf32>
      %225 = arith.index_cast %arg22 : i32 to index
      %c0_106 = arith.constant 0 : index
      %c0_107 = arith.constant 0 : index
      %226 = vector.load %arg10[%225, %c0_106, %c0_107] : memref<2x32x32xf32, #tpu.memory_space<vmem>>, vector<1x32x32xf32>
      %227 = vector.shape_cast %226 : vector<1x32x32xf32> to vector<32x32xf32>
      %cst_108 = arith.constant dense<0.000000e+00> : vector<128x32xf32>
      %228 = tpu.matmul %224, %227, %cst_108 {dimension_numbers = #tpu.dot_dimension_numbers<[1], [0], [0], [1], [0, 0, 1, 1], [], []>} : vector<128x32xf32>, vector<32x32xf32>, vector<128x32xf32> -> vector<128x32xf32>
      %229 = arith.addf %arg23, %228 : vector<128x32xf32>
      %230 = arith.index_cast %arg22 : i32 to index
      %c0_109 = arith.constant 0 : index
      %c0_110 = arith.constant 0 : index
      %231 = vector.load %arg11[%230, %c0_109, %c0_110] : memref<2x1x32xf32, #tpu.memory_space<vmem>>, vector<1x1x32xf32>
      %232 = vector.shape_cast %231 : vector<1x1x32xf32> to vector<1x32xf32>
      %233 = vector.broadcast %232 : vector<1x32xf32> to vector<128x32xf32>
      %234 = arith.addf %229, %233 : vector<128x32xf32>
      %cst_111 = arith.constant dense<0.000000e+00> : vector<128xf32>
      %235 = vector.multi_reduction <add>, %234, %cst_111 [1] : vector<128x32xf32> to vector<128xf32>
      %236 = vector.shape_cast %235 : vector<128xf32> to vector<128x1xf32>
      %cst_112 = arith.constant 3.200000e+01 : f32
      %237 = vector.broadcast %cst_112 : f32 to vector<128x1xf32>
      %238 = arith.divf %236, %237 : vector<128x1xf32>
      %239 = vector.broadcast %238 : vector<128x1xf32> to vector<128x32xf32>
      %240 = arith.subf %234, %239 : vector<128x32xf32>
      %241 = arith.mulf %240, %240 : vector<128x32xf32>
      %cst_113 = arith.constant dense<0.000000e+00> : vector<128xf32>
      %242 = vector.multi_reduction <add>, %241, %cst_113 [1] : vector<128x32xf32> to vector<128xf32>
      %243 = vector.shape_cast %242 : vector<128xf32> to vector<128x1xf32>
      %cst_114 = arith.constant 3.200000e+01 : f32
      %244 = vector.broadcast %cst_114 : f32 to vector<128x1xf32>
      %245 = arith.divf %243, %244 : vector<128x1xf32>
      %246 = vector.broadcast %238 : vector<128x1xf32> to vector<128x32xf32>
      %247 = arith.subf %234, %246 : vector<128x32xf32>
      %cst_115 = arith.constant 9.99999974E-6 : f32
      %248 = vector.broadcast %cst_115 : f32 to vector<128x1xf32>
      %249 = arith.addf %245, %248 : vector<128x1xf32>
      %250 = math.rsqrt %249 : vector<128x1xf32>
      %251 = vector.broadcast %250 : vector<128x1xf32> to vector<128x32xf32>
      %252 = arith.mulf %247, %251 : vector<128x32xf32>
      %253 = arith.index_cast %arg22 : i32 to index
      %c0_116 = arith.constant 0 : index
      %c0_117 = arith.constant 0 : index
      %254 = vector.load %arg12[%253, %c0_116, %c0_117] : memref<2x1x32xf32, #tpu.memory_space<vmem>>, vector<1x1x32xf32>
      %255 = vector.shape_cast %254 : vector<1x1x32xf32> to vector<1x32xf32>
      %256 = vector.broadcast %255 : vector<1x32xf32> to vector<128x32xf32>
      %257 = arith.mulf %252, %256 : vector<128x32xf32>
      %258 = arith.index_cast %arg22 : i32 to index
      %c0_118 = arith.constant 0 : index
      %c0_119 = arith.constant 0 : index
      %259 = vector.load %arg13[%258, %c0_118, %c0_119] : memref<2x1x32xf32, #tpu.memory_space<vmem>>, vector<1x1x32xf32>
      %260 = vector.shape_cast %259 : vector<1x1x32xf32> to vector<1x32xf32>
      %261 = vector.broadcast %260 : vector<1x32xf32> to vector<128x32xf32>
      %262 = arith.addf %257, %261 : vector<128x32xf32>
      %263 = arith.index_cast %arg22 : i32 to index
      %c0_120 = arith.constant 0 : index
      %c0_121 = arith.constant 0 : index
      %264 = vector.load %arg14[%263, %c0_120, %c0_121] : memref<2x32x128xf32, #tpu.memory_space<vmem>>, vector<1x32x128xf32>
      %265 = vector.shape_cast %264 : vector<1x32x128xf32> to vector<32x128xf32>
      %cst_122 = arith.constant dense<0.000000e+00> : vector<128x128xf32>
      %266 = tpu.matmul %262, %265, %cst_122 {dimension_numbers = #tpu.dot_dimension_numbers<[1], [0], [0], [1], [0, 0, 1, 1], [], []>} : vector<128x32xf32>, vector<32x128xf32>, vector<128x128xf32> -> vector<128x128xf32>
      %267 = arith.index_cast %arg22 : i32 to index
      %c0_123 = arith.constant 0 : index
      %c0_124 = arith.constant 0 : index
      %268 = vector.load %arg15[%267, %c0_123, %c0_124] : memref<2x1x128xf32, #tpu.memory_space<vmem>>, vector<1x1x128xf32>
      %269 = vector.shape_cast %268 : vector<1x1x128xf32> to vector<1x128xf32>
      %270 = vector.broadcast %269 : vector<1x128xf32> to vector<128x128xf32>
      %271 = arith.addf %266, %270 : vector<128x128xf32>
      %cst_125 = arith.constant 5.000000e-01 : f32
      %272 = vector.broadcast %cst_125 : f32 to vector<128x128xf32>
      %273 = arith.mulf %272, %271 : vector<128x128xf32>
      %cst_126 = arith.constant 0.707106769 : f32
      %274 = vector.broadcast %cst_126 : f32 to vector<128x128xf32>
      %275 = arith.mulf %271, %274 : vector<128x128xf32>
      %276 = math.erf %275 : vector<128x128xf32>
      %cst_127 = arith.constant 1.000000e+00 : f32
      %277 = vector.broadcast %cst_127 : f32 to vector<128x128xf32>
      %278 = arith.addf %277, %276 : vector<128x128xf32>
      %279 = arith.mulf %273, %278 : vector<128x128xf32>
      %280 = arith.index_cast %arg22 : i32 to index
      %c0_128 = arith.constant 0 : index
      %c0_129 = arith.constant 0 : index
      %281 = vector.load %arg16[%280, %c0_128, %c0_129] : memref<2x128x32xf32, #tpu.memory_space<vmem>>, vector<1x128x32xf32>
      %282 = vector.shape_cast %281 : vector<1x128x32xf32> to vector<128x32xf32>
      %cst_130 = arith.constant dense<0.000000e+00> : vector<128x32xf32>
      %283 = tpu.matmul %279, %282, %cst_130 {dimension_numbers = #tpu.dot_dimension_numbers<[1], [0], [0], [1], [0, 0, 1, 1], [], []>} : vector<128x128xf32>, vector<128x32xf32>, vector<128x32xf32> -> vector<128x32xf32>
      %284 = arith.addf %234, %283 : vector<128x32xf32>
      %285 = arith.index_cast %arg22 : i32 to index
      %c0_131 = arith.constant 0 : index
      %c0_132 = arith.constant 0 : index
      %286 = vector.load %arg17[%285, %c0_131, %c0_132] : memref<2x1x32xf32, #tpu.memory_space<vmem>>, vector<1x1x32xf32>
      %287 = vector.shape_cast %286 : vector<1x1x32xf32> to vector<1x32xf32>
      %288 = vector.broadcast %287 : vector<1x32xf32> to vector<128x32xf32>
      %289 = arith.addf %284, %288 : vector<128x32xf32>
      scf.yield %289 : vector<128x32xf32>
    }
    %c2_i32_22 = arith.constant 2 : i32
    %36 = vector.extract_strided_slice %35 {offsets = [0, 0], sizes = [64, 32], strides = [1, 1]} : vector<128x32xf32> to vector<64x32xf32>
    %c0_23 = arith.constant 0 : index
    %c0_24 = arith.constant 0 : index
    %c0_25 = arith.constant 0 : index
    %37 = vector.load %arg18[%c0_23, %c0_24, %c0_25] : memref<4x16x64xf32, #tpu.memory_space<vmem>>, vector<1x16x64xf32>
    %38 = vector.shape_cast %37 : vector<1x16x64xf32> to vector<16x64xf32>
    %cst_26 = arith.constant dense<0.000000e+00> : vector<16x32xf32>
    %39 = tpu.matmul %38, %36, %cst_26 {dimension_numbers = #tpu.dot_dimension_numbers<[1], [0], [0], [1], [0, 0, 1, 1], [], []>} : vector<16x64xf32>, vector<64x32xf32>, vector<16x32xf32> -> vector<16x32xf32>
    %c1_27 = arith.constant 1 : index
    %c0_28 = arith.constant 0 : index
    %c0_29 = arith.constant 0 : index
    %40 = vector.load %arg18[%c1_27, %c0_28, %c0_29] : memref<4x16x64xf32, #tpu.memory_space<vmem>>, vector<1x16x64xf32>
    %41 = vector.shape_cast %40 : vector<1x16x64xf32> to vector<16x64xf32>
    %cst_30 = arith.constant dense<0.000000e+00> : vector<16x32xf32>
    %42 = tpu.matmul %41, %36, %cst_30 {dimension_numbers = #tpu.dot_dimension_numbers<[1], [0], [0], [1], [0, 0, 1, 1], [], []>} : vector<16x64xf32>, vector<64x32xf32>, vector<16x32xf32> -> vector<16x32xf32>
    %c2 = arith.constant 2 : index
    %c0_31 = arith.constant 0 : index
    %c0_32 = arith.constant 0 : index
    %43 = vector.load %arg18[%c2, %c0_31, %c0_32] : memref<4x16x64xf32, #tpu.memory_space<vmem>>, vector<1x16x64xf32>
    %44 = vector.shape_cast %43 : vector<1x16x64xf32> to vector<16x64xf32>
    %cst_33 = arith.constant dense<0.000000e+00> : vector<16x32xf32>
    %45 = tpu.matmul %44, %36, %cst_33 {dimension_numbers = #tpu.dot_dimension_numbers<[1], [0], [0], [1], [0, 0, 1, 1], [], []>} : vector<16x64xf32>, vector<64x32xf32>, vector<16x32xf32> -> vector<16x32xf32>
    %c3 = arith.constant 3 : index
    %c0_34 = arith.constant 0 : index
    %c0_35 = arith.constant 0 : index
    %46 = vector.load %arg18[%c3, %c0_34, %c0_35] : memref<4x16x64xf32, #tpu.memory_space<vmem>>, vector<1x16x64xf32>
    %47 = vector.shape_cast %46 : vector<1x16x64xf32> to vector<16x64xf32>
    %cst_36 = arith.constant dense<0.000000e+00> : vector<16x32xf32>
    %48 = tpu.matmul %47, %36, %cst_36 {dimension_numbers = #tpu.dot_dimension_numbers<[1], [0], [0], [1], [0, 0, 1, 1], [], []>} : vector<16x64xf32>, vector<64x32xf32>, vector<16x32xf32> -> vector<16x32xf32>
    %49 = tpu.concatenate %39, %42, %45, %48 in 1 : vector<16x32xf32>, vector<16x32xf32>, vector<16x32xf32>, vector<16x32xf32> -> vector<16x128xf32>
    %c0_37 = arith.constant 0 : index
    %c0_38 = arith.constant 0 : index
    %50 = vector.load %arg19[%c0_37, %c0_38] : memref<128x64xf32, #tpu.memory_space<vmem>>, vector<128x64xf32>
    %cst_39 = arith.constant dense<0.000000e+00> : vector<16x64xf32>
    %51 = tpu.matmul %49, %50, %cst_39 {dimension_numbers = #tpu.dot_dimension_numbers<[1], [0], [0], [1], [0, 0, 1, 1], [], []>} : vector<16x128xf32>, vector<128x64xf32>, vector<16x64xf32> -> vector<16x64xf32>
    %c0_40 = arith.constant 0 : index
    %c0_41 = arith.constant 0 : index
    %52 = vector.load %arg20[%c0_40, %c0_41] : memref<1x64xf32, #tpu.memory_space<vmem>>, vector<1x64xf32>
    %53 = vector.broadcast %52 : vector<1x64xf32> to vector<16x64xf32>
    %54 = arith.addf %51, %53 : vector<16x64xf32>
    %c0_42 = arith.constant 0 : index
    %c0_43 = arith.constant 0 : index
    %c0_44 = arith.constant 0 : index
    %55 = vector.load %arg21[%c0_42, %c0_43, %c0_44] : memref<2x16x64xf32, #tpu.memory_space<vmem>>, vector<1x16x64xf32>
    %56 = vector.shape_cast %55 : vector<1x16x64xf32> to vector<16x64xf32>
    %57 = vector.shape_cast %54 : vector<16x64xf32> to vector<1x16x64xf32>
    tpu.vector_store %arg21[%c0_42, %c0_43, %c0_44], %57 {strides = array<i32>} : memref<2x16x64xf32, #tpu.memory_space<vmem>>, vector<1x16x64xf32>,
    %58 = vector.extract_strided_slice %35 {offsets = [64, 0], sizes = [64, 32], strides = [1, 1]} : vector<128x32xf32> to vector<64x32xf32>
    %c0_45 = arith.constant 0 : index
    %c0_46 = arith.constant 0 : index
    %c0_47 = arith.constant 0 : index
    %59 = vector.load %arg18[%c0_45, %c0_46, %c0_47] : memref<4x16x64xf32, #tpu.memory_space<vmem>>, vector<1x16x64xf32>
    %60 = vector.shape_cast %59 : vector<1x16x64xf32> to vector<16x64xf32>
    %cst_48 = arith.constant dense<0.000000e+00> : vector<16x32xf32>
    %61 = tpu.matmul %60, %58, %cst_48 {dimension_numbers = #tpu.dot_dimension_numbers<[1], [0], [0], [1], [0, 0, 1, 1], [], []>} : vector<16x64xf32>, vector<64x32xf32>, vector<16x32xf32> -> vector<16x32xf32>
    %c1_49 = arith.constant 1 : index
    %c0_50 = arith.constant 0 : index
    %c0_51 = arith.constant 0 : index
    %62 = vector.load %arg18[%c1_49, %c0_50, %c0_51] : memref<4x16x64xf32, #tpu.memory_space<vmem>>, vector<1x16x64xf32>
    %63 = vector.shape_cast %62 : vector<1x16x64xf32> to vector<16x64xf32>
    %cst_52 = arith.constant dense<0.000000e+00> : vector<16x32xf32>
    %64 = tpu.matmul %63, %58, %cst_52 {dimension_numbers = #tpu.dot_dimension_numbers<[1], [0], [0], [1], [0, 0, 1, 1], [], []>} : vector<16x64xf32>, vector<64x32xf32>, vector<16x32xf32> -> vector<16x32xf32>
    %c2_53 = arith.constant 2 : index
    %c0_54 = arith.constant 0 : index
    %c0_55 = arith.constant 0 : index
    %65 = vector.load %arg18[%c2_53, %c0_54, %c0_55] : memref<4x16x64xf32, #tpu.memory_space<vmem>>, vector<1x16x64xf32>
    %66 = vector.shape_cast %65 : vector<1x16x64xf32> to vector<16x64xf32>
    %cst_56 = arith.constant dense<0.000000e+00> : vector<16x32xf32>
    %67 = tpu.matmul %66, %58, %cst_56 {dimension_numbers = #tpu.dot_dimension_numbers<[1], [0], [0], [1], [0, 0, 1, 1], [], []>} : vector<16x64xf32>, vector<64x32xf32>, vector<16x32xf32> -> vector<16x32xf32>
    %c3_57 = arith.constant 3 : index
    %c0_58 = arith.constant 0 : index
    %c0_59 = arith.constant 0 : index
    %68 = vector.load %arg18[%c3_57, %c0_58, %c0_59] : memref<4x16x64xf32, #tpu.memory_space<vmem>>, vector<1x16x64xf32>
    %69 = vector.shape_cast %68 : vector<1x16x64xf32> to vector<16x64xf32>
    %cst_60 = arith.constant dense<0.000000e+00> : vector<16x32xf32>
    %70 = tpu.matmul %69, %58, %cst_60 {dimension_numbers = #tpu.dot_dimension_numbers<[1], [0], [0], [1], [0, 0, 1, 1], [], []>} : vector<16x64xf32>, vector<64x32xf32>, vector<16x32xf32> -> vector<16x32xf32>
    %71 = tpu.concatenate %61, %64, %67, %70 in 1 : vector<16x32xf32>, vector<16x32xf32>, vector<16x32xf32>, vector<16x32xf32> -> vector<16x128xf32>
    %c0_61 = arith.constant 0 : index
    %c0_62 = arith.constant 0 : index
    %72 = vector.load %arg19[%c0_61, %c0_62] : memref<128x64xf32, #tpu.memory_space<vmem>>, vector<128x64xf32>
    %cst_63 = arith.constant dense<0.000000e+00> : vector<16x64xf32>
    %73 = tpu.matmul %71, %72, %cst_63 {dimension_numbers = #tpu.dot_dimension_numbers<[1], [0], [0], [1], [0, 0, 1, 1], [], []>} : vector<16x128xf32>, vector<128x64xf32>, vector<16x64xf32> -> vector<16x64xf32>
    %c0_64 = arith.constant 0 : index
    %c0_65 = arith.constant 0 : index
    %74 = vector.load %arg20[%c0_64, %c0_65] : memref<1x64xf32, #tpu.memory_space<vmem>>, vector<1x64xf32>
    %75 = vector.broadcast %74 : vector<1x64xf32> to vector<16x64xf32>
    %76 = arith.addf %73, %75 : vector<16x64xf32>
    %c1_66 = arith.constant 1 : index
    %c0_67 = arith.constant 0 : index
    %c0_68 = arith.constant 0 : index
    %77 = vector.load %arg21[%c1_66, %c0_67, %c0_68] : memref<2x16x64xf32, #tpu.memory_space<vmem>>, vector<1x16x64xf32>
    %78 = vector.shape_cast %77 : vector<1x16x64xf32> to vector<16x64xf32>
    %79 = vector.shape_cast %76 : vector<16x64xf32> to vector<1x16x64xf32>
    tpu.vector_store %arg21[%c1_66, %c0_67, %c0_68], %79 {strides = array<i32>} : memref<2x16x64xf32, #tpu.memory_space<vmem>>, vector<1x16x64xf32>,
    return
  }
  func.func @transform_0(%arg0: i32) -> (i32, i32, i32) {
    %c0_i32 = arith.constant 0 : i32
    %c0_i32_0 = arith.constant 0 : i32
    %c0_i32_1 = arith.constant 0 : i32
    return %arg0, %c0_i32, %c0_i32_0 : i32, i32, i32
  }
  func.func @transform_1(%arg0: i32) -> (i32, i32, i32) {
    %c0_i32 = arith.constant 0 : i32
    %c0_i32_0 = arith.constant 0 : i32
    %c0_i32_1 = arith.constant 0 : i32
    return %arg0, %c0_i32, %c0_i32_0 : i32, i32, i32
  }
  func.func @transform_2(%arg0: i32) -> (i32, i32) {
    %c0_i32 = arith.constant 0 : i32
    %c0_i32_0 = arith.constant 0 : i32
    %c0_i32_1 = arith.constant 0 : i32
    return %c0_i32, %c0_i32_0 : i32, i32
  }
  func.func @transform_3(%arg0: i32) -> (i32, i32) {
    %c0_i32 = arith.constant 0 : i32
    %c0_i32_0 = arith.constant 0 : i32
    %c0_i32_1 = arith.constant 0 : i32
    return %c0_i32, %c0_i32_0 : i32, i32
  }
  func.func @transform_4(%arg0: i32) -> (i32, i32, i32) {
    %c0_i32 = arith.constant 0 : i32
    %c0_i32_0 = arith.constant 0 : i32
    %c0_i32_1 = arith.constant 0 : i32
    %c0_i32_2 = arith.constant 0 : i32
    return %c0_i32, %c0_i32_0, %c0_i32_1 : i32, i32, i32
  }
  func.func @transform_5(%arg0: i32) -> (i32, i32, i32) {
    %c0_i32 = arith.constant 0 : i32
    %c0_i32_0 = arith.constant 0 : i32
    %c0_i32_1 = arith.constant 0 : i32
    %c0_i32_2 = arith.constant 0 : i32
    return %c0_i32, %c0_i32_0, %c0_i32_1 : i32, i32, i32
  }
  func.func @transform_6(%arg0: i32) -> (i32, i32, i32) {
    %c0_i32 = arith.constant 0 : i32
    %c0_i32_0 = arith.constant 0 : i32
    %c0_i32_1 = arith.constant 0 : i32
    %c0_i32_2 = arith.constant 0 : i32
    return %c0_i32, %c0_i32_0, %c0_i32_1 : i32, i32, i32
  }
  func.func @transform_7(%arg0: i32) -> (i32, i32, i32) {
    %c0_i32 = arith.constant 0 : i32
    %c0_i32_0 = arith.constant 0 : i32
    %c0_i32_1 = arith.constant 0 : i32
    %c0_i32_2 = arith.constant 0 : i32
    return %c0_i32, %c0_i32_0, %c0_i32_1 : i32, i32, i32
  }
  func.func @transform_8(%arg0: i32) -> (i32, i32, i32, i32) {
    %c0_i32 = arith.constant 0 : i32
    %c0_i32_0 = arith.constant 0 : i32
    %c0_i32_1 = arith.constant 0 : i32
    %c0_i32_2 = arith.constant 0 : i32
    %c0_i32_3 = arith.constant 0 : i32
    return %c0_i32, %c0_i32_0, %c0_i32_1, %c0_i32_2 : i32, i32, i32, i32
  }
  func.func @transform_9(%arg0: i32) -> (i32, i32, i32) {
    %c0_i32 = arith.constant 0 : i32
    %c0_i32_0 = arith.constant 0 : i32
    %c0_i32_1 = arith.constant 0 : i32
    %c0_i32_2 = arith.constant 0 : i32
    return %c0_i32, %c0_i32_0, %c0_i32_1 : i32, i32, i32
  }
  func.func @transform_10(%arg0: i32) -> (i32, i32, i32) {
    %c0_i32 = arith.constant 0 : i32
    %c0_i32_0 = arith.constant 0 : i32
    %c0_i32_1 = arith.constant 0 : i32
    %c0_i32_2 = arith.constant 0 : i32
    return %c0_i32, %c0_i32_0, %c0_i32_1 : i32, i32, i32
  }
  func.func @transform_11(%arg0: i32) -> (i32, i32, i32) {
    %c0_i32 = arith.constant 0 : i32
    %c0_i32_0 = arith.constant 0 : i32
    %c0_i32_1 = arith.constant 0 : i32
    %c0_i32_2 = arith.constant 0 : i32
    return %c0_i32, %c0_i32_0, %c0_i32_1 : i32, i32, i32
  }
  func.func @transform_12(%arg0: i32) -> (i32, i32, i32) {
    %c0_i32 = arith.constant 0 : i32
    %c0_i32_0 = arith.constant 0 : i32
    %c0_i32_1 = arith.constant 0 : i32
    %c0_i32_2 = arith.constant 0 : i32
    return %c0_i32, %c0_i32_0, %c0_i32_1 : i32, i32, i32
  }
  func.func @transform_13(%arg0: i32) -> (i32, i32, i32) {
    %c0_i32 = arith.constant 0 : i32
    %c0_i32_0 = arith.constant 0 : i32
    %c0_i32_1 = arith.constant 0 : i32
    %c0_i32_2 = arith.constant 0 : i32
    return %c0_i32, %c0_i32_0, %c0_i32_1 : i32, i32, i32
  }
  func.func @transform_14(%arg0: i32) -> (i32, i32, i32) {
    %c0_i32 = arith.constant 0 : i32
    %c0_i32_0 = arith.constant 0 : i32
    %c0_i32_1 = arith.constant 0 : i32
    %c0_i32_2 = arith.constant 0 : i32
    return %c0_i32, %c0_i32_0, %c0_i32_1 : i32, i32, i32
  }
  func.func @transform_15(%arg0: i32) -> (i32, i32, i32) {
    %c0_i32 = arith.constant 0 : i32
    %c0_i32_0 = arith.constant 0 : i32
    %c0_i32_1 = arith.constant 0 : i32
    %c0_i32_2 = arith.constant 0 : i32
    return %c0_i32, %c0_i32_0, %c0_i32_1 : i32, i32, i32
  }
  func.func @transform_16(%arg0: i32) -> (i32, i32, i32) {
    %c0_i32 = arith.constant 0 : i32
    %c0_i32_0 = arith.constant 0 : i32
    %c0_i32_1 = arith.constant 0 : i32
    %c0_i32_2 = arith.constant 0 : i32
    return %c0_i32, %c0_i32_0, %c0_i32_1 : i32, i32, i32
  }
  func.func @transform_17(%arg0: i32) -> (i32, i32, i32) {
    %c0_i32 = arith.constant 0 : i32
    %c0_i32_0 = arith.constant 0 : i32
    %c0_i32_1 = arith.constant 0 : i32
    %c0_i32_2 = arith.constant 0 : i32
    return %c0_i32, %c0_i32_0, %c0_i32_1 : i32, i32, i32
  }
  func.func @transform_18(%arg0: i32) -> (i32, i32) {
    %c0_i32 = arith.constant 0 : i32
    %c0_i32_0 = arith.constant 0 : i32
    %c0_i32_1 = arith.constant 0 : i32
    return %c0_i32, %c0_i32_0 : i32, i32
  }
  func.func @transform_19(%arg0: i32) -> (i32, i32) {
    %c0_i32 = arith.constant 0 : i32
    %c0_i32_0 = arith.constant 0 : i32
    %c0_i32_1 = arith.constant 0 : i32
    return %c0_i32, %c0_i32_0 : i32, i32
  }
  func.func @transform_20(%arg0: i32) -> (i32, i32, i32) {
    %c0_i32 = arith.constant 0 : i32
    %c0_i32_0 = arith.constant 0 : i32
    %c0_i32_1 = arith.constant 0 : i32
    return %arg0, %c0_i32, %c0_i32_0 : i32, i32, i32
  }
}

</mosaic_0001>

<bundles_post_ra>
// kernel: stage_block_forward.1
= control target key start
LH: loop header
LB: loop body
LE: loop exit
PB: predicated region body
PF: predicated region fallthrough
CT: control target
= control target key end

     0   :  { %s12424_s0 = inlined_call_operand.vmem [shape: f32[2,64,32], index: 0, kind: input, shape index: {}]   ;;  %s12425_s1 = inlined_call_operand.vmem [shape: f32[2,1,64], index: 1, kind: input, shape index: {}]   ;;  %s12426_s2 = inlined_call_operand.vmem [shape: f32[64,32], index: 2, kind: input, shape index: {}]   ;;  %s12427_s3 = inlined_call_operand.hbm [shape: f32[1,32], index: 3, kind: input, shape index: {}]   ;;  %s12428_s4 = inlined_call_operand.vmem [shape: f32[2,1,32], index: 4, kind: input, shape index: {}]   ;;  %s12429_s5 = inlined_call_operand.hbm [shape: f32[2,1,32], index: 5, kind: input, shape index: {}]   ;;  %s12430_s6 = inlined_call_operand.hbm [shape: f32[2,32,96], index: 6, kind: input, shape index: {}]   ;;  %s12431_s7 = inlined_call_operand.hbm [shape: f32[2,1,96], index: 7, kind: input, shape index: {}]   ;;  %s12432_s8 = inlined_call_operand.vmem [shape: f32[2,4,64,64], index: 8, kind: input, shape index: {}]   ;;  %s12433_s9 = inlined_call_operand.hbm [shape: f32[2,32,32], index: 9, kind: input, shape index: {}]   ;;  %s12434_s10 = inlined_call_operand.hbm [shape: f32[2,1,32], index: 10, kind: input, shape index: {}]   ;;  %s12435_s11 = inlined_call_operand.hbm [shape: f32[2,1,32], index: 11, kind: input, shape index: {}]   ;;  %s12436_s12 = inlined_call_operand.hbm [shape: f32[2,1,32], index: 12, kind: input, shape index: {}]   ;;  %s12437_s13 = inlined_call_operand.hbm [shape: f32[2,32,128], index: 13, kind: input, shape index: {}]   ;;  %s12438_s14 = inlined_call_operand.hbm [shape: f32[2,1,128], index: 14, kind: input, shape index: {}]   ;;  %s12439_s15 = inlined_call_operand.vmem [shape: f32[2,128,32], index: 15, kind: input, shape index: {}]   ;;  %s12440_s16 = inlined_call_operand.hbm [shape: f32[2,1,32], index: 16, kind: input, shape index: {}]   ;;  %s12441_s17 = inlined_call_operand.hbm [shape: f32[4,16,64], index: 17, kind: input, shape index: {}]   ;;  %s12442_s18 = inlined_call_operand.vmem [shape: f32[128,64], index: 18, kind: input, shape index: {}]   ;;  %s12443_s19 = inlined_call_operand.hbm [shape: f32[1,64], index: 19, kind: input, shape index: {}]   ;;  %s12444_s20 = inlined_call_operand.hbm [shape: f32[2,16,64], index: 20, kind: output, shape index: {}]  }
   0x1   :  { %12501 = sst [smem:[#allocation91_spill]] %s12424_s0 }
   0x2   :  { %12502 = sst [smem:[#allocation92_spill]] %s12425_s1 }
   0x3   :  { %12503 = sst [smem:[#allocation93_spill]] %s12426_s2 }
   0x4   :  { %12504 = sst [smem:[#allocation94_spill]] %s12427_s3 }
   0x5   :  { %12505 = sst [smem:[#allocation95_spill]] %s12428_s4 }
   0x6   :  { %25 = vsyncpa [#allocation3], 0 }
   0x7   :  { %26 = vsyncpa [#allocation6], 0 }
   0x8   :  { %27 = vsyncpa [#allocation9], 0 }
   0x9   :  { %28 = vsyncpa [#allocation12], 0 }
   0xa   :  { %29 = vsyncpa [#allocation15], 0 }
   0xb   :  { %30 = vsyncpa [#allocation18], 0 }
   0xc   :  { %31 = vsyncpa [#allocation21], 0 }
   0xd   :  { %32 = vsyncpa [#allocation4], 0  ;;  %s9182_s1 = smov [#allocation5]  }
   0xe   :  { %s56_s22 = sshll.u32 %s9182_s1, 4  ;;  %s57_s22 = int_to_ptr.vmem [resolvable:$true] %s56_s22 }
   0xf   :  { %s8758_s23 = scalar_lea.vmem %s57_s22, 32  ;;  %p8763_p1 = scmp.lt.s32.totalorder %s57_s22, %s57_s22 }
  0x10   :  { %p8759_p0 = scmp.ne.s32.totalorder %s57_s22, %s8758_s23  ;;  %p8764_p2 = scmp.lt.s32.totalorder %s8758_s23, %s8758_s23 }
  0x12   :  { %p8765_p3 = por %p8764_p2, %p8763_p1 }
  0x14   :  { %p8766_p4 = pnand %p8765_p3, %p8759_p0 }
  0x16   :  { %8769 = shalt.err (!%p8766_p4)
}
  0x17   :  { %s9183_s24 = smov 16   ;;  %s9184_s2 = smov 1  }
  0x18   :  { %62 = dma.hbm_to_vmem [thread:$0]  %s12429_s5, 32, %s57_s22, [#allocation6], %s9183_s24, %s9183_s24, %s9184_s2  }
  0x19   :  { %s9185_s26 = smov [#allocation8]   ;;  %s9186_s28 = smov [#allocation11]  }
  0x1a   :  { %s80_s27 = sshll.u32 %s9185_s26, 4  ;;  %s106_s4 = sshll.u32 %s9186_s28, 4  ;;  %s81_s27 = int_to_ptr.vmem [resolvable:$true] %s80_s27  ;;  %s107_s4 = int_to_ptr.vmem [resolvable:$true] %s106_s4 }
  0x1b   :  { %s8778_s29 = scalar_lea.vmem %s81_s27, 32  ;;  %p8783_p6 = scmp.lt.s32.totalorder %s81_s27, %s81_s27 }
  0x1c   :  { %p8779_p5 = scmp.ne.s32.totalorder %s81_s27, %s8778_s29  ;;  %p8784_p7 = scmp.lt.s32.totalorder %s8778_s29, %s8778_s29 }
  0x1e   :  { %p8785_p8 = por %p8784_p7, %p8783_p6 }
  0x20   :  { %p8786_p9 = pnand %p8785_p8, %p8779_p5 }
  0x22   :  { %8789 = shalt.err (!%p8786_p9)
}
  0x23   :  { %86 = dma.hbm_to_vmem [thread:$0]  %s12431_s7, 32, %s81_s27, [#allocation9], %s9183_s24, %s9183_s24, %s9184_s2  }
  0x24   :  { %s8798_s5 = scalar_lea.vmem %s107_s4, 32  ;;  %p8803_p11 = scmp.lt.s32.totalorder %s107_s4, %s107_s4 }
  0x25   :  { %p8799_p10 = scmp.ne.s32.totalorder %s107_s4, %s8798_s5  ;;  %p8804_p12 = scmp.lt.s32.totalorder %s8798_s5, %s8798_s5 }
  0x27   :  { %p8805_p13 = por %p8804_p12, %p8803_p11 }
  0x29   :  { %p8806_p0 = pnand %p8805_p13, %p8799_p10 }
  0x2b   :  { %8809 = shalt.err (!%p8806_p0)
}
  0x2c   :  { %112 = dma.hbm_to_vmem [thread:$0]  %s12434_s10, 32, %s107_s4, [#allocation12], %s9183_s24, %s9183_s24, %s9184_s2  }
  0x2d   :  { %s9187_s22 = smov [#allocation14]   ;;  %s9188_s25 = smov [#allocation17]  }
  0x2e   :  { %s130_s23 = sshll.u32 %s9187_s22, 4  ;;  %s154_s7 = sshll.u32 %s9188_s25, 4  ;;  %s131_s23 = int_to_ptr.vmem [resolvable:$true] %s130_s23  ;;  %s155_s7 = int_to_ptr.vmem [resolvable:$true] %s154_s7 }
  0x2f   :  { %s8818_s3 = scalar_lea.vmem %s131_s23, 32  ;;  %p8823_p2 = scmp.lt.s32.totalorder %s131_s23, %s131_s23 }
  0x30   :  { %p8819_p1 = scmp.ne.s32.totalorder %s131_s23, %s8818_s3  ;;  %p8824_p3 = scmp.lt.s32.totalorder %s8818_s3, %s8818_s3 }
  0x32   :  { %p8825_p4 = por %p8824_p3, %p8823_p2 }
  0x34   :  { %p8826_p5 = pnand %p8825_p4, %p8819_p1 }
  0x36   :  { %8829 = shalt.err (!%p8826_p5)
}
  0x37   :  { %136 = dma.hbm_to_vmem [thread:$0]  %s12436_s12, 32, %s131_s23, [#allocation15], %s9183_s24, %s9183_s24, %s9184_s2  }
  0x38   :  { %s8838_s10 = scalar_lea.vmem %s155_s7, 32  ;;  %p8843_p7 = scmp.lt.s32.totalorder %s155_s7, %s155_s7 }
  0x39   :  { %p8839_p6 = scmp.ne.s32.totalorder %s155_s7, %s8838_s10  ;;  %p8844_p8 = scmp.lt.s32.totalorder %s8838_s10, %s8838_s10 }
  0x3b   :  { %p8845_p9 = por %p8844_p8, %p8843_p7 }
  0x3d   :  { %p8846_p10 = pnand %p8845_p9, %p8839_p6 }
  0x3f   :  { %8849 = shalt.err (!%p8846_p10)
}
  0x40   :  { %160 = dma.hbm_to_vmem [thread:$0]  %s12438_s14, 32, %s155_s7, [#allocation18], %s9183_s24, %s9183_s24, %s9184_s2  }
  0x41   :  { %s9189_s29 = smov [#allocation20]   ;;  %s9190_s0 = smov [#allocation2]  }
  0x42   :  { %s180_s30 = sshll.u32 %s9189_s29, 4  ;;  %s45_s12 = sshll.u32 %s9190_s0, 4  ;;  %s181_s30 = int_to_ptr.vmem [resolvable:$true] %s180_s30  ;;  %s46_s12 = int_to_ptr.vmem [resolvable:$true] %s45_s12 }
  0x43   :  { %s8858_s5 = scalar_lea.vmem %s181_s30, 1024  ;;  %p8863_p12 = scmp.lt.s32.totalorder %s181_s30, %s181_s30 }
  0x44   :  { %p8859_p11 = scmp.ne.s32.totalorder %s181_s30, %s8858_s5  ;;  %p8864_p13 = scmp.lt.s32.totalorder %s8858_s5, %s8858_s5 }
  0x46   :  { %p8865_p0 = por %p8864_p13, %p8863_p12 }
  0x48   :  { %p8866_p1 = pnand %p8865_p0, %p8859_p11 }
  0x4a   :  { %8869 = shalt.err (!%p8866_p1)
}
  0x4b   :  { %s9191_s21 = smov 128   ;;  %s9192_s1 = smov 8  }
  0x4c   :  { %186 = dma.hbm_to_vmem [thread:$0]  %s12441_s17, 1024, %s181_s30, [#allocation21], %s9191_s21, %s9191_s21, %s9192_s1  }
  0x4d   :  { %s8878_s14 = scalar_lea.vmem %s46_s12, 16  ;;  %s8882_s25 = scalar_lea.vmem %s46_s12, 32 }
  0x4e   :  { %p8879_p2 = scmp.ne.s32.totalorder %s46_s12, %s8878_s14  ;;  %p8883_p3 = scmp.lt.s32.totalorder %s46_s12, %s46_s12 }
  0x4f   :  { %p8884_p4 = scmp.lt.s32.totalorder %s8882_s25, %s8878_s14 }
  0x51   :  { %p8885_p5 = por %p8884_p4, %p8883_p3 }
  0x53   :  { %p8886_p6 = pnand %p8885_p5, %p8879_p2 }
  0x55   :  { %8889 = shalt.err (!%p8886_p6)
}
  0x56   :  { %s12506_s26 = sld [smem:[#allocation94_spill]]  ;;  %s9193_s27 = smov [#allocation7]  }
  0x57   :  { %s68_s10 = sshll.u32 %s9193_s27, 4  ;;  %s9194_s28 = smov [#allocation10]   ;;  %s69_s10 = int_to_ptr.vmem [resolvable:$true] %s68_s10 }
  0x58   :  { %s94_s4 = sshll.u32 %s9194_s28, 4  ;;  %s8898_s29 = scalar_lea.vmem %s69_s10, 1024  ;;  %s95_s4 = int_to_ptr.vmem [resolvable:$true] %s94_s4 }
  0x59   :  { %p8899_p7 = scmp.ne.s32.totalorder %s69_s10, %s8898_s29  ;;  %p8903_p8 = scmp.lt.s32.totalorder %s69_s10, %s69_s10 }
  0x5a   :  { %p8904_p9 = scmp.lt.s32.totalorder %s8898_s29, %s8898_s29 }
  0x5c   :  { %48 = dma.hbm_to_vmem [thread:$0]  %s12506_s26, 16, %s46_s12, [#allocation3]  }
  0x5d   :  { %p8905_p10 = por %p8904_p9, %p8903_p8 }
  0x5f   :  { %p8906_p11 = pnand %p8905_p10, %p8899_p7 }
  0x61   :  { %8909 = shalt.err (!%p8906_p11)
}
  0x62   :  { %74 = dma.hbm_to_vmem [thread:$0]  %s12430_s6, 1024, %s69_s10, [#allocation6], %s9191_s21, %s9191_s21, %s9192_s1  }
  0x63   :  { %s8918_s0 = scalar_lea.vmem %s95_s4, 1024  ;;  %p8923_p13 = scmp.lt.s32.totalorder %s95_s4, %s95_s4 }
  0x64   :  { %p8919_p12 = scmp.ne.s32.totalorder %s95_s4, %s8918_s0  ;;  %p8924_p0 = scmp.lt.s32.totalorder %s8918_s0, %s8918_s0 }
  0x66   :  { %p8925_p1 = por %p8924_p0, %p8923_p13 }
  0x68   :  { %p8926_p2 = pnand %p8925_p1, %p8919_p12 }
  0x6a   :  { %8929 = shalt.err (!%p8926_p2)
}
  0x6b   :  { %100 = dma.hbm_to_vmem [thread:$0]  %s12433_s9, 1024, %s95_s4, [#allocation9], %s9191_s21, %s9191_s21, %s9192_s1  }
  0x6c   :  { %s9195_s22 = smov [#allocation13]   ;;  %s9196_s14 = smov [#allocation16]  }
  0x6d   :  { %s118_s23 = sshll.u32 %s9195_s22, 4  ;;  %s142_s6 = sshll.u32 %s9196_s14, 4  ;;  %s119_s23 = int_to_ptr.vmem [resolvable:$true] %s118_s23  ;;  %s143_s6 = int_to_ptr.vmem [resolvable:$true] %s142_s6 }
  0x6e   :  { %s8938_s25 = scalar_lea.vmem %s119_s23, 32  ;;  %p8943_p4 = scmp.lt.s32.totalorder %s119_s23, %s119_s23 }
  0x6f   :  { %p8939_p3 = scmp.ne.s32.totalorder %s119_s23, %s8938_s25  ;;  %p8944_p5 = scmp.lt.s32.totalorder %s8938_s25, %s8938_s25 }
  0x71   :  { %p8945_p6 = por %p8944_p5, %p8943_p4 }
  0x73   :  { %p8946_p7 = pnand %p8945_p6, %p8939_p3 }
  0x75   :  { %8949 = shalt.err (!%p8946_p7)
}
  0x76   :  { %124 = dma.hbm_to_vmem [thread:$0]  %s12435_s11, 32, %s119_s23, [#allocation12], %s9183_s24, %s9183_s24, %s9184_s2  }
  0x77   :  { %s8958_s9 = scalar_lea.vmem %s143_s6, 1024  ;;  %p8963_p9 = scmp.lt.s32.totalorder %s143_s6, %s143_s6 }
  0x78   :  { %p8959_p8 = scmp.ne.s32.totalorder %s143_s6, %s8958_s9  ;;  %p8964_p10 = scmp.lt.s32.totalorder %s8958_s9, %s8958_s9 }
  0x7a   :  { %p8965_p11 = por %p8964_p10, %p8963_p9 }
  0x7c   :  { %p8966_p12 = pnand %p8965_p11, %p8959_p8 }
  0x7e   :  { %8969 = shalt.err (!%p8966_p12)
}
  0x7f   :  { %148 = dma.hbm_to_vmem [thread:$0]  %s12437_s13, 1024, %s143_s6, [#allocation15], %s9191_s21, %s9191_s21, %s9192_s1  }
  0x80   :  { %s9197_s10 = smov [#allocation19]   ;;  %s9198_s4 = smov [#allocation22]  }
  0x81   :  { %s168_s28 = sshll.u32 %s9197_s10, 4  ;;  %s195_s11 = sshll.u32 %s9198_s4, 4  ;;  %s169_s28 = int_to_ptr.vmem [resolvable:$true] %s168_s28  ;;  %s196_s11 = int_to_ptr.vmem [resolvable:$true] %s195_s11 }
  0x82   :  { %s8978_s29 = scalar_lea.vmem %s169_s28, 32  ;;  %p8983_p0 = scmp.lt.s32.totalorder %s169_s28, %s169_s28 }
  0x83   :  { %p8979_p13 = scmp.ne.s32.totalorder %s169_s28, %s8978_s29  ;;  %p8984_p1 = scmp.lt.s32.totalorder %s8978_s29, %s8978_s29 }
  0x85   :  { %p8985_p2 = por %p8984_p1, %p8983_p0 }
  0x87   :  { %p8986_p3 = pnand %p8985_p2, %p8979_p13 }
  0x89   :  { %8989 = shalt.err (!%p8986_p3)
}
  0x8a   :  { %174 = dma.hbm_to_vmem [thread:$0]  %s12440_s16, 32, %s169_s28, [#allocation18], %s9183_s24, %s9183_s24, %s9184_s2  }
  0x8b   :  { %s8998_s13 = scalar_lea.vmem %s196_s11, 16  ;;  %s9002_s0 = scalar_lea.vmem %s196_s11, 32 }
  0x8c   :  { %p8999_p4 = scmp.ne.s32.totalorder %s196_s11, %s8998_s13  ;;  %p9003_p5 = scmp.lt.s32.totalorder %s196_s11, %s196_s11 }
  0x8d   :  { %p9004_p6 = scmp.lt.s32.totalorder %s9002_s0, %s8998_s13 }
  0x8f   :  { %p9005_p7 = por %p9004_p6, %p9003_p5 }
  0x91   :  { %p9006_p8 = pnand %p9005_p7, %p8999_p4 }
  0x93   :  { %9009 = shalt.err (!%p9006_p8)
}
  0x94   :  { %198 = dma.hbm_to_vmem [thread:$0]  %s12443_s19, 16, %s196_s11, [#allocation21]  }
  0x95   :  { %9098 = dma.done.wait [#allocation3], 16  }
  0x96   :  { %9099 = vsyncadd [#allocation3], 4294967280 }
  0x97   :  { %9100 = dma.done.wait [#allocation6], 1056  }
  0x98   :  { %9101 = vsyncadd [#allocation6], 4294966240 }
  0x99   :  { %9102 = dma.done.wait [#allocation9], 1056  }
  0x9a   :  { %9103 = vsyncadd [#allocation9], 4294966240 }
  0x9b   :  { %9104 = dma.done.wait [#allocation12], 64  }
  0x9c   :  { %9105 = vsyncadd [#allocation12], 4294967232 }
  0x9d   :  { %9106 = dma.done.wait [#allocation15], 1056  }
  0x9e   :  { %9107 = vsyncadd [#allocation15], 4294966240 }
  0x9f   :  { %9108 = dma.done.wait [#allocation18], 64  }
  0xa0   :  { %9109 = vsyncadd [#allocation18], 4294967232 }
  0xa1   :  { %9110 = dma.done.wait [#allocation21], 1040  }
  0xa2   :  { %9111 = vsyncadd [#allocation21], 4294966256  ;;  %v9199_v0 = vmov 0.0   ;;  %vm9200_vm0 = vmmov 0   ;;  %s12507_s24 = sld [smem:[#allocation93_spill]]  ;;  %vm248_vm1 = vcmask 523264   ;;  %v432_v22 = vlaneseq }
  0xa3   :  { %7298 = vmatprep.subr.mxu0 %v9199_v0  ;;  %7317 = vmatprep.subr.mxu1 %v9199_v0  ;;  %s12508_s17 = sld [smem:[#allocation92_spill]]  ;;  %v247_v11 = vld [vmem:[#allocation2] sm:$0x1]  ;;  %v9201_v20 = vmov 1966171168   ;;  %vm410_vm2 = vcmask 1040384  }
  0xa4   :  { %7314 = vmatprep.mubr.msk.f32.mxu0 %vm9200_vm0, %v9199_v0  ;;  %7333 = vmatprep.mubr.msk.f32.mxu1 %vm9200_vm0, %v9199_v0  ;;  %v430_v21 = vunpack.c.l.s4 %v9201_v20  ;;  %v433_v26 = vshrl.u32 %v432_v22, 7  ;;  %s12509_s5 = sld [smem:[#allocation91_spill]] }
  0xa6   :  { %v431_v25 = vunpack.c.0.s8 %v430_v21  ;;  %v453_v37 = vsub.s32 0, %v433_v26 }
  0xa8   :  { %v246_v1 = vld [vmem:[%s12507_s24 + $0x38] sm:$0xff]  ;;  %v245_v2 = vld [vmem:[%s12507_s24 + $0x30] sm:$0xff]  ;;  %v244_v3 = vld [vmem:[%s12507_s24 + $0x28] sm:$0xff]  ;;  %v434_v32 = vsub.s32 %v431_v25, %v433_v26 }
  0xa9   :  { %7299 = vmatpush3.msra.mxu0 %v246_v1  ;;  %7318 = vmatpush3.msra.mxu1 %v246_v1  ;;  %v243_v4 = vld [vmem:[%s12507_s24 + $0x20] sm:$0xff]  ;;  %v242_v5 = vld [vmem:[%s12507_s24 + $0x18] sm:$0xff]  ;;  %v241_v6 = vld [vmem:[%s12507_s24 + $0x10] sm:$0xff] }
  0xaa   :  { %7300 = vmatprep.subr.mxu0 %v9199_v0  ;;  %7319 = vmatprep.subr.mxu1 %v9199_v0  ;;  %v240_v7 = vld [vmem:[%s12507_s24 + $0x8] sm:$0xff]  ;;  %v239_v8 = vld [vmem:[%s12507_s24] sm:$0xff]  ;;  %v414_v40 = vld [vmem:[%s12509_s5 + $0x10] sm:$0xff] }
  0xab   :  { %7301 = vmatpush3.msra.mxu0 %v245_v2  ;;  %7320 = vmatpush3.msra.mxu1 %v245_v2  ;;  %v238_v9 = vld [vmem:[%s12508_s17] sm:$0x1]  ;;  %v6545_v10 = vld [vmem:[%s12508_s17 + $0x1] sm:$0x1]  ;;  %v413_v39 = vld [vmem:[%s12509_s5 + $0x8] sm:$0xff] }
  0xac   :  { %7302 = vmatprep.subr.mxu0 %v9199_v0  ;;  %7321 = vmatprep.subr.mxu1 %v9199_v0  ;;  %v412_v38 = vld [vmem:[%s12509_s5] sm:$0xff]  ;;  %v415_v43 = vld [vmem:[%s12509_s5 + $0x18] sm:$0xff]  ;;  %v417_v45 = vld [vmem:[%s12509_s5 + $0x28] sm:$0xff] }
  0xad   :  { %7303 = vmatpush3.msra.mxu0 %v244_v3  ;;  %7322 = vmatpush3.msra.mxu1 %v244_v3  ;;  %v416_v44 = vld [vmem:[%s12509_s5 + $0x20] sm:$0xff]  ;;  %v418_v46 = vld [vmem:[%s12509_s5 + $0x30] sm:$0xff]  ;;  %v419_v47 = vld [vmem:[%s12509_s5 + $0x38] sm:$0xff] }
  0xae   :  { %7304 = vmatprep.subr.mxu0 %v9199_v0  ;;  %7323 = vmatprep.subr.mxu1 %v9199_v0  ;;  %v420_v48 = vld [vmem:[%s12509_s5 + $0x40] sm:$0xff]  ;;  %v421_v51 = vld [vmem:[%s12509_s5 + $0x48] sm:$0xff]  ;;  %v422_v52 = vld [vmem:[%s12509_s5 + $0x50] sm:$0xff] }
  0xaf   :  { %7305 = vmatpush3.msra.mxu0 %v243_v4  ;;  %7324 = vmatpush3.msra.mxu1 %v243_v4  ;;  %v423_v53 = vld [vmem:[%s12509_s5 + $0x58] sm:$0xff]  ;;  %v424_v54 = vld [vmem:[%s12509_s5 + $0x60] sm:$0xff]  ;;  %v425_v55 = vld [vmem:[%s12509_s5 + $0x68] sm:$0xff] }
  0xb0   :  { %7306 = vmatprep.subr.mxu0 %v9199_v0  ;;  %7325 = vmatprep.subr.mxu1 %v9199_v0  ;;  %v426_v56 = vld [vmem:[%s12509_s5 + $0x70] sm:$0xff]  ;;  %v427_v61 = vld [vmem:[%s12509_s5 + $0x78] sm:$0xff]  ;;  %s9509_s5 = smov 0  }
  0xb1   :  { %7307 = vmatpush3.msra.mxu0 %v242_v5  ;;  %7326 = vmatpush3.msra.mxu1 %v242_v5 }
  0xb2   :  { %7308 = vmatprep.subr.mxu0 %v9199_v0  ;;  %7327 = vmatprep.subr.mxu1 %v9199_v0 }
  0xb3   :  { %7309 = vmatpush3.msra.mxu0 %v241_v6  ;;  %7328 = vmatpush3.msra.mxu1 %v241_v6 }
  0xb4   :  { %7310 = vmatprep.subr.mxu0 %v9199_v0  ;;  %7329 = vmatprep.subr.mxu1 %v9199_v0 }
  0xb5   :  { %7311 = vmatpush3.msra.mxu0 %v240_v7  ;;  %7330 = vmatpush3.msra.mxu1 %v240_v7 }
  0xb6   :  { %7312 = vmatprep.subr.mxu0 %v9199_v0  ;;  %7331 = vmatprep.subr.mxu1 %v9199_v0 }
  0xb7   :  { %7313 = vmatpush3.msra.mxu0 %v239_v8  ;;  %7332 = vmatpush3.msra.mxu1 %v239_v8 }
  0xb8   :  { %7315 = vmatmul.mubr.msk.f32.vlgmr.msra.gmra.mxu0 %vm248_vm1, %v238_v9  ;;  %7334 = vmatmul.mubr.msk.f32.vlgmr.msra.gmra.mxu1 %vm248_vm1, %v6545_v10 }
 0x178   :  { %v318_v12 = vpop.f32.mrf.mxu0  ;;  %v398_v13 = vpop.f32.mrf.mxu1 }
 0x179   :  { %v319_v14 = vadd.f32 %v318_v12, %v247_v11  ;;  %v399_v15 = vadd.f32 %v398_v13, %v247_v11 }
 0x17a   :  { %v7316_v16 = vpop.f32.mrf.mxu0  ;;  %v7335_v17 = vpop.f32.mrf.mxu1 }
 0x17b   :  { %v323_v18 = vmul.f32 0.70710677, %v319_v14  ;;  %v403_v19 = vmul.f32 0.70710677, %v399_v15  ;;  %v402_v28 = vmul.f32 0.5, %v399_v15  ;;  %v322_v30 = vmul.f32 0.5, %v319_v14 }
 0x17d   :  { %8364 = verf.f32 %v323_v18 }
 0x17e   :  { %8366 = verf.f32 %v403_v19 }
 0x18a   :  { %v8365_v23 = vpop.eup %8364 }
 0x18b   :  { %v8367_v24 = vpop.eup %8366  ;;  %v325_v27 = vadd.f32 1.0, %v8365_v23 }
 0x18c   :  { %v405_v29 = vadd.f32 1.0, %v8367_v24 }
 0x18d   :  { %v326_v33 = vmul.f32 %v325_v27, %v322_v30 }
 0x18e   :  { %v406_v31 = vmul.f32 %v405_v29, %v402_v28 }
 0x190   :  { %v408_v34 = vrot.slane %v406_v31, 7 }
 0x192   :  { %v411_v35 = vsel %vm410_vm2, %v326_v33, %v408_v34 }
 0x193   :  { %v435_v36 = vrot.slane %v411_v35, %v434_v32 }
 0x195   :  { %v436_v41 = vcombine.high %v435_v36, %v435_v36  ;;  %v443_v42 = vrot.slane %v435_v36, %v434_v32 }
 0x197   :  { %v450_v49 = vrot.slane %v436_v41, %v434_v32  ;;  %v454_v50 = vrot.slane %v443_v42, %v453_v37 }
 0x199   :  { %v458_v57 = vrot.slane %v450_v49, %v453_v37  ;;  %v461_v58 = vadd.f32 %v454_v50, %v412_v38   ;;  %v462_v59 = vadd.f32 %v454_v50, %v413_v39   ;;  %v463_v60 = vadd.f32 %v454_v50, %v414_v40  }
 0x19a   :  { %v464_v62 = vadd.f32 %v454_v50, %v415_v43   ;;  %v465_v63 = vadd.f32 %v454_v50, %v416_v44   ;;  %v466_v0 = vadd.f32 %v454_v50, %v417_v45   ;;  %v467_v1 = vadd.f32 %v454_v50, %v418_v46  }
 0x19b   :  { %v468_v2 = vadd.f32 %v454_v50, %v419_v47   ;;  %v469_v3 = vadd.f32 %v458_v57, %v420_v48   ;;  %v470_v4 = vadd.f32 %v458_v57, %v421_v51   ;;  %v471_v5 = vadd.f32 %v458_v57, %v422_v52  }
 0x19c   :  { %v472_v6 = vadd.f32 %v458_v57, %v423_v53   ;;  %v473_v7 = vadd.f32 %v458_v57, %v424_v54   ;;  %v474_v8 = vadd.f32 %v458_v57, %v425_v55   ;;  %v475_v9 = vadd.f32 %v458_v57, %v426_v56  }
 0x19d   :  { %v476_v10 = vadd.f32 %v458_v57, %v427_v61  }
 0x19e LB: > { %12510 = vst [vmem:[#allocation32_spill] sm:$0xff] %v9116_v10  ;;  %12511 = vst [vmem:[#allocation33_spill] sm:$0xff] %v9120_v9  ;;  %vm499_vm3 = vcmask 261120   ;;  %s9690_s14 = sshll.u32 %s9180_s5, 5  ;;  %s12526_s3 = sld [smem:[#allocation95_spill]]  ;;  %vm1038_vm4 = vcmask 64512   ;;  %s9180_s5 = sphi %s9509_s5, %s482_s5   ;;  %v9176_v58 = vphi %v461_v58, %v12713_v58   ;;  %v9172_v59 = vphi %v462_v59, %v12712_v59   ;;  %v9168_v60 = vphi %v463_v60, %v12711_v60   ;;  %v9164_v62 = vphi %v464_v62, %v12710_v62   ;;  %v9160_v63 = vphi %v465_v63, %v12709_v63   ;;  %v9156_v0 = vphi %v466_v0, %v12708_v0   ;;  %v9152_v1 = vphi %v467_v1, %v12707_v1   ;;  %v9148_v2 = vphi %v468_v2, %v12706_v2   ;;  %v9144_v3 = vphi %v469_v3, %v12705_v3   ;;  %v9140_v4 = vphi %v470_v4, %v12704_v4   ;;  %v9136_v5 = vphi %v471_v5, %v12703_v5   ;;  %v9132_v6 = vphi %v472_v6, %v12702_v6   ;;  %v9128_v7 = vphi %v473_v7, %v12701_v7   ;;  %v9124_v8 = vphi %v474_v8, %v12700_v8   ;;  %v9120_v9 = vphi %v475_v9, %v12699_v9   ;;  %v9116_v10 = vphi %v476_v10, %v12698_v10  }
 0x19f   : > { %12512 = vst [vmem:[#allocation34_spill] sm:$0xff] %v9124_v8  ;;  %12513 = vst [vmem:[#allocation35_spill] sm:$0xff] %v9128_v7  ;;  %v500_v11 = vsel %vm499_vm3, %v9176_v58, 0.0  ;;  %v506_v12 = vsel %vm499_vm3, %v9168_v60, 0.0  ;;  %v503_v13 = vsel %vm499_vm3, %v9172_v59, 0.0  ;;  %v509_v14 = vsel %vm499_vm3, %v9164_v62, 0.0 }
 0x1a0   : > { %12514 = vst [vmem:[#allocation36_spill] sm:$0xff] %v9132_v6  ;;  %12515 = vst [vmem:[#allocation37_spill] sm:$0xff] %v9136_v5  ;;  %501 = vadd.xlane.f32.xlu0 %v500_v11  ;;  %507 = vadd.xlane.f32.xlu1 %v506_v12  ;;  %v512_v15 = vsel %vm499_vm3, %v9160_v63, 0.0  ;;  %v515_v16 = vsel %vm499_vm3, %v9156_v0, 0.0  ;;  %v518_v17 = vsel %vm499_vm3, %v9152_v1, 0.0  ;;  %v521_v18 = vsel %vm499_vm3, %v9148_v2, 0.0 }
 0x1a1   : > { %12516 = vst [vmem:[#allocation38_spill] sm:$0xff] %v9140_v4  ;;  %12517 = vst [vmem:[#allocation39_spill] sm:$0xff] %v9144_v3  ;;  %v524_v19 = vsel %vm499_vm3, %v9144_v3, 0.0  ;;  %v527_v20 = vsel %vm499_vm3, %v9140_v4, 0.0  ;;  %v530_v21 = vsel %vm499_vm3, %v9136_v5, 0.0  ;;  %v533_v22 = vsel %vm499_vm3, %v9132_v6, 0.0 }
 0x1a2   : > { %12518 = vst [vmem:[#allocation40_spill] sm:$0xff] %v9148_v2  ;;  %12519 = vst [vmem:[#allocation41_spill] sm:$0xff] %v9152_v1  ;;  %v536_v23 = vsel %vm499_vm3, %v9128_v7, 0.0  ;;  %v539_v24 = vsel %vm499_vm3, %v9124_v8, 0.0  ;;  %v542_v25 = vsel %vm499_vm3, %v9120_v9, 0.0  ;;  %v545_v26 = vsel %vm499_vm3, %v9116_v10, 0.0 }
 0x1a3   : > { %12520 = vst [vmem:[#allocation42_spill] sm:$0xff] %v9156_v0  ;;  %12521 = vst [vmem:[#allocation43_spill] sm:$0xff] %v9160_v63  ;;  %s758_s6 = scalar_lea.vmem [#allocation7], %s9690_s14  ;;  %s733_s26 = scalar_lea.vmem [#allocation5], %s9180_s5  ;;  %vm4503_vm5 = vcmask 130048   ;;  %vm4520_vm6 = vcmask 195584  }
 0x1a4   : > { %12522 = vst [vmem:[#allocation44_spill] sm:$0xff] %v9164_v62  ;;  %12523 = vst [vmem:[#allocation45_spill] sm:$0xff] %v9168_v60  ;;  %504 = vadd.xlane.f32.xlu0 %v503_v13  ;;  %510 = vadd.xlane.f32.xlu1 %v509_v14  ;;  %s709_s9 = scalar_lea.vmem %s12526_s3, %s9180_s5  ;;  %s763_s27 = scalar_lea.vmem [#allocation8], %s9180_s5 }
 0x1a5   : > { %12524 = vst [vmem:[#allocation46_spill] sm:$0xff] %v9172_v59  ;;  %12525 = vst [vmem:[#allocation47_spill] sm:$0xff] %v9176_v58  ;;  %s9202_s10 = smov 96   ;;  %s9203_s28 = smov 64  }
 0x1a6   : > { %s9204_s4 = smov 88   ;;  %s9205_s11 = smov 120  }
 0x1a7   : > { %s6567_s29 = sshll.u32 %s9180_s5, 8  ;;  %s9206_s0 = smov 56  }
 0x1a8   : > { %513 = vadd.xlane.f32.xlu0 %v512_v15  ;;  %516 = vadd.xlane.f32.xlu1 %v515_v16  ;;  %s10028_s13 = scalar_lea.vmem %s12432_s8, %s6567_s29  ;;  %s9207_s12 = smov 80  }
 0x1a9   : > { %s9208_s16 = smov 112   ;;  %s9209_s19 = smov 48  }
 0x1aa   : > { %s9210_s24 = smov 72   ;;  %s9211_s2 = smov 104  }
 0x1ab   : > { %s9212_s22 = smov 40   ;;  %s9213_s23 = smov 8  }
 0x1ac   : > { %519 = vadd.xlane.f32.xlu0 %v518_v17  ;;  %522 = vadd.xlane.f32.xlu1 %v521_v18  ;;  %s4537_s25 = scalar_lea.vmem [#allocation10], %s9690_s14  ;;  %s9215_s7 = smov 24  }
 0x1ad   : > { %s4751_s3 = scalar_lea.vmem [#allocation11], %s9180_s5  ;;  %s5496_s29 = scalar_lea.vmem [#allocation19], %s9180_s5 }
 0x1b0   : > { %525 = vadd.xlane.f32.xlu0 %v524_v19  ;;  %528 = vadd.xlane.f32.xlu1 %v527_v20 }
 0x1b4   : > { %531 = vadd.xlane.f32.xlu0 %v530_v21  ;;  %534 = vadd.xlane.f32.xlu1 %v533_v22 }
 0x1b8   : > { %537 = vadd.xlane.f32.xlu0 %v536_v23  ;;  %540 = vadd.xlane.f32.xlu1 %v539_v24 }
 0x1bc   : > { %543 = vadd.xlane.f32.xlu0 %v542_v25  ;;  %546 = vadd.xlane.f32.xlu1 %v545_v26 }
 0x229   : > { %v502_v27 = vpop.xlane.xlu0 %501  ;;  %v508_v28 = vpop.xlane.xlu1 %507 }
 0x22a   : > { %v549_v29 = vmul.f32 0.03125, %v502_v27  ;;  %v551_v30 = vmul.f32 0.03125, %v508_v28 }
 0x22c   : > { %v9595_v31 = vsub.f32 %v9176_v58, %v549_v29  ;;  %v9598_v32 = vsub.f32 %v9168_v60, %v551_v30 }
 0x22d   : > { %v505_v33 = vpop.xlane.xlu0 %504  ;;  %v511_v34 = vpop.xlane.xlu1 %510 }
 0x22e   : > { %v550_v35 = vmul.f32 0.03125, %v505_v33  ;;  %v552_v36 = vmul.f32 0.03125, %v511_v34  ;;  %v581_v37 = vmul.f32 %v9595_v31, %v9595_v31  ;;  %v583_v38 = vmul.f32 %v9598_v32, %v9598_v32 }
 0x230   : > { %v9605_v39 = vsub.f32 %v9172_v59, %v550_v35  ;;  %v9608_v40 = vsub.f32 %v9164_v62, %v552_v36  ;;  %v597_v41 = vsel %vm499_vm3, %v581_v37, 0.0  ;;  %v603_v44 = vsel %vm499_vm3, %v583_v38, 0.0 }
 0x231   : > { %v514_v42 = vpop.xlane.xlu0 %513  ;;  %598 = vadd.xlane.f32.xlu0 %v597_v41  ;;  %v517_v43 = vpop.xlane.xlu1 %516 }
 0x232   : > { %v553_v45 = vmul.f32 0.03125, %v514_v42  ;;  %v554_v46 = vmul.f32 0.03125, %v517_v43  ;;  %v582_v47 = vmul.f32 %v9605_v39, %v9605_v39  ;;  %v584_v48 = vmul.f32 %v9608_v40, %v9608_v40 }
 0x234   : > { %v9617_v49 = vsub.f32 %v9160_v63, %v553_v45  ;;  %v9620_v50 = vsub.f32 %v9156_v0, %v554_v46  ;;  %v600_v51 = vsel %vm499_vm3, %v582_v47, 0.0  ;;  %v606_v54 = vsel %vm499_vm3, %v584_v48, 0.0  ;;  %v972_v0 = vld [vmem:[%s10028_s13 + $0x30] sm:$0xff] }
 0x235   : > { %v520_v52 = vpop.xlane.xlu0 %519  ;;  %604 = vadd.xlane.f32.xlu0 %v603_v44  ;;  %601 = vadd.xlane.f32.xlu1 %v600_v51  ;;  %v523_v53 = vpop.xlane.xlu1 %522 }
 0x236   : > { %v555_v55 = vmul.f32 0.03125, %v520_v52  ;;  %v556_v56 = vmul.f32 0.03125, %v523_v53  ;;  %v585_v57 = vmul.f32 %v9617_v49, %v9617_v49  ;;  %v586_v61 = vmul.f32 %v9620_v50, %v9620_v50 }
 0x238   : > { %v9629_v11 = vsub.f32 %v9152_v1, %v555_v55  ;;  %v9632_v12 = vsub.f32 %v9148_v2, %v556_v56  ;;  %v609_v13 = vsel %vm499_vm3, %v585_v57, 0.0  ;;  %v612_v16 = vsel %vm499_vm3, %v586_v61, 0.0 }
 0x239   : > { %v526_v14 = vpop.xlane.xlu0 %525  ;;  %610 = vadd.xlane.f32.xlu0 %v609_v13  ;;  %607 = vadd.xlane.f32.xlu1 %v606_v54  ;;  %v529_v15 = vpop.xlane.xlu1 %528 }
 0x23a   : > { %v557_v17 = vmul.f32 0.03125, %v526_v14  ;;  %v558_v18 = vmul.f32 0.03125, %v529_v15  ;;  %v587_v19 = vmul.f32 %v9629_v11, %v9629_v11  ;;  %v588_v20 = vmul.f32 %v9632_v12, %v9632_v12 }
 0x23c   : > { %v9641_v21 = vsub.f32 %v9144_v3, %v557_v17  ;;  %v9644_v22 = vsub.f32 %v9140_v4, %v558_v18  ;;  %v615_v23 = vsel %vm499_vm3, %v587_v19, 0.0  ;;  %v618_v26 = vsel %vm499_vm3, %v588_v20, 0.0  ;;  %v762_v19 = vld [vmem:[%s758_s6 + $0x18] sm:$0xff]  ;;  %v761_v20 = vld [vmem:[%s758_s6 + $0x10] sm:$0xff] }
 0x23d   : > { %v532_v24 = vpop.xlane.xlu0 %531  ;;  %616 = vadd.xlane.f32.xlu0 %v615_v23  ;;  %613 = vadd.xlane.f32.xlu1 %v612_v16  ;;  %v535_v25 = vpop.xlane.xlu1 %534  ;;  %v760_v23 = vld [vmem:[%s758_s6 + $0x8] sm:$0xff] }
 0x23e   : > { %v559_v27 = vmul.f32 0.03125, %v532_v24  ;;  %v560_v28 = vmul.f32 0.03125, %v535_v25  ;;  %v589_v29 = vmul.f32 %v9641_v21, %v9641_v21  ;;  %v590_v30 = vmul.f32 %v9644_v22, %v9644_v22  ;;  %7336 = vmatprep.subr.mxu0 %v762_v19  ;;  %v759_v24 = vld [vmem:[%s758_s6] sm:$0xff]  ;;  %s9214_s6 = smov 16  }
 0x23f   : > { %7337 = vmatpush3.msra.mxu0 %v762_v19 }
 0x240   : > { %v9653_v33 = vsub.f32 %v9136_v5, %v559_v27  ;;  %v9656_v34 = vsub.f32 %v9132_v6, %v560_v28  ;;  %v621_v35 = vsel %vm499_vm3, %v589_v29, 0.0  ;;  %v624_v38 = vsel %vm499_vm3, %v590_v30, 0.0  ;;  %7338 = vmatprep.subr.mxu0 %v761_v20 }
 0x241   : > { %v538_v36 = vpop.xlane.xlu0 %537  ;;  %622 = vadd.xlane.f32.xlu0 %v621_v35  ;;  %619 = vadd.xlane.f32.xlu1 %v618_v26  ;;  %v541_v37 = vpop.xlane.xlu1 %540 }
 0x242   : > { %v561_v41 = vmul.f32 0.03125, %v538_v36  ;;  %v562_v42 = vmul.f32 0.03125, %v541_v37  ;;  %v591_v43 = vmul.f32 %v9653_v33, %v9653_v33  ;;  %v592_v44 = vmul.f32 %v9656_v34, %v9656_v34  ;;  %7339 = vmatpush3.msra.mxu0 %v761_v20 }
 0x243   : > { %7340 = vmatprep.subr.mxu0 %v760_v23 }
 0x244   : > { %v9665_v45 = vsub.f32 %v9128_v7, %v561_v41  ;;  %v9668_v46 = vsub.f32 %v9124_v8, %v562_v42  ;;  %v627_v47 = vsel %vm499_vm3, %v591_v43, 0.0  ;;  %v630_v51 = vsel %vm499_vm3, %v592_v44, 0.0  ;;  %7341 = vmatpush3.msra.mxu0 %v760_v23 }
 0x245   : > { %628 = vadd.xlane.f32.xlu0 %v627_v47  ;;  %v544_v48 = vpop.xlane.xlu0 %543  ;;  %625 = vadd.xlane.f32.xlu1 %v624_v38  ;;  %v547_v52 = vpop.xlane.xlu1 %546 }
 0x246   : > { %v563_v53 = vmul.f32 0.03125, %v544_v48  ;;  %v593_v54 = vmul.f32 %v9665_v45, %v9665_v45  ;;  %v564_v55 = vmul.f32 0.03125, %v547_v52  ;;  %v594_v56 = vmul.f32 %v9668_v46, %v9668_v46  ;;  %7342 = vmatprep.subr.mxu0 %v759_v24 }
 0x247   : > { %7343 = vmatpush3.msra.mxu0 %v759_v24 }
 0x248   : > { %v9677_v57 = vsub.f32 %v9120_v9, %v563_v53  ;;  %v633_v61 = vsel %vm499_vm3, %v593_v54, 0.0  ;;  %v9681_v13 = vsub.f32 %v9116_v10, %v564_v55  ;;  %v636_v15 = vsel %vm499_vm3, %v594_v56, 0.0  ;;  %v968_v10 = vld [vmem:[%s10028_s13 + $0x10] sm:$0xff] }
 0x249   : > { %634 = vadd.xlane.f32.xlu0 %v633_v61  ;;  %631 = vadd.xlane.f32.xlu1 %v630_v51 }
 0x24a   : > { %v595_v14 = vmul.f32 %v9677_v57, %v9677_v57  ;;  %v596_v16 = vmul.f32 %v9681_v13, %v9681_v13 }
 0x24c   : > { %v639_v17 = vsel %vm499_vm3, %v595_v14, 0.0  ;;  %v642_v18 = vsel %vm499_vm3, %v596_v16, 0.0 }
 0x24d   : > { %640 = vadd.xlane.f32.xlu0 %v639_v17  ;;  %637 = vadd.xlane.f32.xlu1 %v636_v15  ;;  %v9698_v17 = vld [vmem:[%s709_s9] ss:$0 sm:$0xff]  ;;  %s5031_s9 = scalar_lea.vmem [#allocation16], %s9690_s14  ;;  %s6796_s14 = sshll.u32 %s9180_s5, 7 }
 0x251   : > { %643 = vadd.xlane.f32.xlu1 %v642_v18 }
 0x2ba   : > { %v599_v25 = vpop.xlane.xlu0 %598 }
 0x2bb   : > { %v645_v26 = vmul.f32 0.03125, %v599_v25  ;;  %v9702_v25 = vld [vmem:[%s733_s26] ss:$0 sm:$0xff] }
 0x2bd   : > { %v661_v27 = vadd.f32 1e-05, %v645_v26 }
 0x2be   : > { %v605_v28 = vpop.xlane.xlu0 %604  ;;  %v602_v29 = vpop.xlane.xlu1 %601 }
 0x2bf   : > { %8368 = vrsqrt.f32 %v661_v27  ;;  %v647_v30 = vmul.f32 0.03125, %v605_v28  ;;  %v646_v35 = vmul.f32 0.03125, %v602_v29 }
 0x2c1   : > { %v663_v36 = vadd.f32 1e-05, %v647_v30  ;;  %v662_v37 = vadd.f32 1e-05, %v646_v35 }
 0x2c2   : > { %v611_v38 = vpop.xlane.xlu0 %610  ;;  %v608_v41 = vpop.xlane.xlu1 %607 }
 0x2c3   : > { %8370 = vrsqrt.f32 %v663_v36  ;;  %v649_v42 = vmul.f32 0.03125, %v611_v38  ;;  %v648_v43 = vmul.f32 0.03125, %v608_v41 }
 0x2c4   : > { %8372 = vrsqrt.f32 %v662_v37 }
 0x2c5   : > { %v665_v44 = vadd.f32 1e-05, %v649_v42  ;;  %v664_v47 = vadd.f32 1e-05, %v648_v43 }
 0x2c6   : > { %v617_v48 = vpop.xlane.xlu0 %616  ;;  %v614_v51 = vpop.xlane.xlu1 %613 }
 0x2c7   : > { %8374 = vrsqrt.f32 %v665_v44  ;;  %v651_v52 = vmul.f32 0.03125, %v617_v48  ;;  %v650_v53 = vmul.f32 0.03125, %v614_v51 }
 0x2c8   : > { %8376 = vrsqrt.f32 %v664_v47 }
 0x2c9   : > { %v667_v54 = vadd.f32 1e-05, %v651_v52  ;;  %v666_v55 = vadd.f32 1e-05, %v650_v53 }
 0x2ca   : > { %v623_v56 = vpop.xlane.xlu0 %622  ;;  %v620_v61 = vpop.xlane.xlu1 %619 }
 0x2cb   : > { %8378 = vrsqrt.f32 %v667_v54  ;;  %v653_v14 = vmul.f32 0.03125, %v623_v56  ;;  %v652_v15 = vmul.f32 0.03125, %v620_v61 }
 0x2cc   : > { %v8369_v16 = vpop.eup %8368  ;;  %8380 = vrsqrt.f32 %v666_v55 }
 0x2cd   : > { %v669_v18 = vadd.f32 1e-05, %v653_v14  ;;  %v668_v19 = vadd.f32 1e-05, %v652_v15  ;;  %v693_v20 = vmul.f32 %v8369_v16, %v9595_v31 }
 0x2ce   : > { %v629_v23 = vpop.xlane.xlu0 %628  ;;  %v626_v24 = vpop.xlane.xlu1 %625 }
 0x2cf   : > { %8382 = vrsqrt.f32 %v669_v18  ;;  %v655_v26 = vmul.f32 0.03125, %v629_v23  ;;  %v654_v27 = vmul.f32 0.03125, %v626_v24  ;;  %v717_v28 = vmul.f32 %v9698_v17, %v693_v20 }
 0x2d0   : > { %v8371_v29 = vpop.eup %8370  ;;  %8384 = vrsqrt.f32 %v668_v19 }
 0x2d1   : > { %v8373_v30 = vpop.eup %8372  ;;  %v671_v35 = vadd.f32 1e-05, %v655_v26  ;;  %v670_v36 = vadd.f32 1e-05, %v654_v27  ;;  %v741_v37 = vadd.f32 %v9702_v25, %v717_v28  ;;  %v695_v38 = vmul.f32 %v8371_v29, %v9598_v32 }
 0x2d2   : > { %v635_v31 = vpop.xlane.xlu0 %634  ;;  %v632_v41 = vpop.xlane.xlu1 %631  ;;  %v694_v42 = vmul.f32 %v8373_v30, %v9605_v39 }
 0x2d3   : > { %8386 = vrsqrt.f32 %v671_v35  ;;  %v657_v43 = vmul.f32 0.03125, %v635_v31  ;;  %v656_v44 = vmul.f32 0.03125, %v632_v41  ;;  %7344 = vmatprep.mubr.msk.f32.mxu0 %vm499_vm3, %v741_v37  ;;  %v719_v47 = vmul.f32 %v9698_v17, %v695_v38 }
 0x2d4   : > { %v8375_v48 = vpop.eup %8374  ;;  %8388 = vrsqrt.f32 %v670_v36  ;;  %v718_v51 = vmul.f32 %v9698_v17, %v694_v42 }
 0x2d5   : > { %v8377_v52 = vpop.eup %8376  ;;  %v673_v53 = vadd.f32 1e-05, %v657_v43  ;;  %v672_v54 = vadd.f32 1e-05, %v656_v44  ;;  %v743_v32 = vadd.f32 %v9702_v25, %v719_v47  ;;  %v697_v55 = vmul.f32 %v8375_v48, %v9617_v49 }
 0x2d6   : > { %v641_v56 = vpop.xlane.xlu0 %640  ;;  %v638_v39 = vpop.xlane.xlu1 %637  ;;  %v742_v61 = vadd.f32 %v9702_v25, %v718_v51  ;;  %v696_v14 = vmul.f32 %v8377_v52, %v9608_v40 }
 0x2d7   : > { %8390 = vrsqrt.f32 %v673_v53  ;;  %v659_v15 = vmul.f32 0.03125, %v641_v56  ;;  %v658_v16 = vmul.f32 0.03125, %v638_v39  ;;  %v721_v18 = vmul.f32 %v9698_v17, %v697_v55 }
 0x2d8   : > { %v8379_v19 = vpop.eup %8378  ;;  %8392 = vrsqrt.f32 %v672_v54  ;;  %7345 = vmatmul.mubr.msk.f32.vlgmr.msra.gmra.mxu0 %vm499_vm3, %v742_v61  ;;  %v720_v20 = vmul.f32 %v9698_v17, %v696_v14 }
 0x2d9   : > { %v8381_v23 = vpop.eup %8380  ;;  %v675_v24 = vadd.f32 1e-05, %v659_v15  ;;  %v674_v49 = vadd.f32 1e-05, %v658_v16  ;;  %7347 = vmatprep.mubr.msk.f32.mxu0 %vm499_vm3, %v743_v32  ;;  %v745_v26 = vadd.f32 %v9702_v25, %v721_v18  ;;  %v699_v40 = vmul.f32 %v8379_v19, %v9629_v11 }
 0x2da   : > { %v644_v27 = vpop.xlane.xlu1 %643  ;;  %v744_v28 = vadd.f32 %v9702_v25, %v720_v20  ;;  %v698_v29 = vmul.f32 %v8381_v23, %v9620_v50 }
 0x2db   : > { %8394 = vrsqrt.f32 %v675_v24  ;;  %v660_v30 = vmul.f32 0.03125, %v644_v27  ;;  %v723_v35 = vmul.f32 %v9698_v17, %v699_v40 }
 0x2dc   : > { %v8383_v36 = vpop.eup %8382  ;;  %8396 = vrsqrt.f32 %v674_v49  ;;  %7348 = vmatmul.mubr.msk.f32.gmra.mxu0 %vm499_vm3, %v744_v28  ;;  %v722_v37 = vmul.f32 %v9698_v17, %v698_v29  ;;  %v6550_v28 = vld [vmem:[%s763_s27] ss:$0 sm:$0xff] }
 0x2dd   : > { %v8385_v38 = vpop.eup %8384  ;;  %v676_v31 = vadd.f32 1e-05, %v660_v30  ;;  %7350 = vmatprep.mubr.msk.f32.mxu0 %vm499_vm3, %v745_v26  ;;  %v747_v11 = vadd.f32 %v9702_v25, %v723_v35  ;;  %v701_v41 = vmul.f32 %v8383_v36, %v9641_v21 }
 0x2de   : > { %v746_v50 = vadd.f32 %v9702_v25, %v722_v37  ;;  %v700_v42 = vmul.f32 %v8385_v38, %v9632_v12 }
 0x2df   : > { %8398 = vrsqrt.f32 %v676_v31  ;;  %v725_v43 = vmul.f32 %v9698_v17, %v701_v41 }
 0x2e0   : > { %v8387_v44 = vpop.eup %8386  ;;  %7351 = vmatmul.mubr.msk.f32.gmra.mxu0 %vm499_vm3, %v746_v50  ;;  %v724_v47 = vmul.f32 %v9698_v17, %v700_v42 }
 0x2e1   : > { %v8389_v48 = vpop.eup %8388  ;;  %7353 = vmatprep.mubr.msk.f32.mxu0 %vm499_vm3, %v747_v11  ;;  %v749_v51 = vadd.f32 %v9702_v25, %v725_v43  ;;  %v703_v52 = vmul.f32 %v8387_v44, %v9653_v33 }
 0x2e2   : > { %v748_v21 = vadd.f32 %v9702_v25, %v724_v47  ;;  %v702_v53 = vmul.f32 %v8389_v48, %v9644_v22 }
 0x2e3   : > { %v727_v12 = vmul.f32 %v9698_v17, %v703_v52 }
 0x2e4   : > { %v8391_v54 = vpop.eup %8390  ;;  %7354 = vmatmul.mubr.msk.f32.gmra.mxu0 %vm499_vm3, %v748_v21  ;;  %v726_v32 = vmul.f32 %v9698_v17, %v702_v53 }
 0x2e5   : > { %v8393_v55 = vpop.eup %8392  ;;  %7356 = vmatprep.mubr.msk.f32.mxu0 %vm499_vm3, %v749_v51  ;;  %v751_v56 = vadd.f32 %v9702_v25, %v727_v12  ;;  %v705_v39 = vmul.f32 %v8391_v54, %v9665_v45 }
 0x2e6   : > { %v750_v33 = vadd.f32 %v9702_v25, %v726_v32  ;;  %v704_v61 = vmul.f32 %v8393_v55, %v9656_v34 }
 0x2e7   : > { %v729_v22 = vmul.f32 %v9698_v17, %v705_v39 }
 0x2e8   : > { %v8395_v14 = vpop.eup %8394  ;;  %7357 = vmatmul.mubr.msk.f32.gmra.mxu0 %vm499_vm3, %v750_v33  ;;  %v728_v15 = vmul.f32 %v9698_v17, %v704_v61 }
 0x2e9   : > { %v8397_v16 = vpop.eup %8396  ;;  %7359 = vmatprep.mubr.msk.f32.mxu0 %vm499_vm3, %v751_v56  ;;  %v753_v18 = vadd.f32 %v9702_v25, %v729_v22  ;;  %v707_v19 = vmul.f32 %v8395_v14, %v9677_v57 }
 0x2ea   : > { %v752_v45 = vadd.f32 %v9702_v25, %v728_v15  ;;  %v706_v20 = vmul.f32 %v8397_v16, %v9668_v46 }
 0x2eb   : > { %v731_v34 = vmul.f32 %v9698_v17, %v707_v19 }
 0x2ec   : > { %v8399_v23 = vpop.eup %8398  ;;  %7360 = vmatmul.mubr.msk.f32.gmra.mxu0 %vm499_vm3, %v752_v45  ;;  %v730_v24 = vmul.f32 %v9698_v17, %v706_v20 }
 0x2ed   : > { %7362 = vmatprep.mubr.msk.f32.mxu0 %vm499_vm3, %v753_v18  ;;  %v755_v49 = vadd.f32 %v9702_v25, %v731_v34  ;;  %v708_v26 = vmul.f32 %v8399_v23, %v9681_v13 }
 0x2ee   : > { %v754_v57 = vadd.f32 %v9702_v25, %v730_v24 }
 0x2ef   : > { %v732_v40 = vmul.f32 %v9698_v17, %v708_v26 }
 0x2f0   : > { %7363 = vmatmul.mubr.msk.f32.gmra.mxu0 %vm499_vm3, %v754_v57 }
 0x2f1   : > { %7365 = vmatprep.mubr.msk.f32.mxu0 %vm499_vm3, %v755_v49  ;;  %v756_v46 = vadd.f32 %v9702_v25, %v732_v40 }
 0x2f4   : > { %7366 = vmatmul.mubr.msk.f32.gmra.mxu0 %vm499_vm3, %v756_v46 }
 0x398   : > { %v7346_v27 = vpop.f32.mrf.mxu0 }
 0x399   : > { %v9804_v12 = vadd.f32 %v7346_v27, %v6550_v28 }
 0x39a   : > { %v885_v29 = vpop.f32.mrf.mxu0 }
 0x39b   : > { %v9768_v30 = vadd.f32 %v6550_v28, %v885_v29  ;;  %v9897_v16 = vmul.f32 0.35355338, %v9804_v12 }
 0x39c   : > { %v7349_v35 = vpop.f32.mrf.mxu0 }
 0x39d   : > { %v9771_v13 = vmul.f32 0.35355338, %v9768_v30  ;;  %v9781_v50 = vadd.f32 %v7349_v35, %v6550_v28  ;;  %12533 = vst [vmem:[#allocation54_spill] sm:$0xff] %v9897_v16 }
 0x39e   : > { %v895_v17 = vpop.f32.mrf.mxu0 }
 0x39f   : > { %12527 = vst [vmem:[#allocation48_spill] sm:$0xff] %v9771_v13  ;;  %7384 = vmatprep.mubr.msk.f32.mxu1 %vm1038_vm4, %v9771_v13  ;;  %v9791_v48 = vadd.f32 %v6550_v28, %v895_v17 }
 0x3a0   : > { %v7352_v36 = vpop.f32.mrf.mxu0 }
 0x3a1   : > { %v9785_v43 = vadd.f32 %v7352_v36, %v6550_v28  ;;  %v9931_v17 = vmul.f32 0.35355338, %v9791_v48  ;;  %v9940_v36 = vmul.f32 0.35355338, %v9781_v50 }
 0x3a2   : > { %v905_v37 = vpop.f32.mrf.mxu0 }
 0x3a3   : > { %v9798_v21 = vadd.f32 %v6550_v28, %v905_v37 }
 0x3a4   : > { %v7355_v25 = vpop.f32.mrf.mxu0 }
 0x3a5   : > { %v9775_v38 = vadd.f32 %v7355_v25, %v6550_v28  ;;  %v9943_v25 = vmul.f32 0.35355338, %v9798_v21 }
 0x3a6   : > { %v915_v31 = vpop.f32.mrf.mxu0 }
 0x3a7   : > { %v9777_v11 = vadd.f32 %v6550_v28, %v915_v31  ;;  %1036 = vrot.lane.b32.xlu0 %v9775_v38, %s9202_s10 }
 0x3a8   : > { %v7358_v41 = vpop.f32.mrf.mxu0 }
 0x3a9   : > { %1034 = vrot.lane.b32.xlu1 %v9777_v11, %s9202_s10  ;;  %v9824_v61 = vadd.f32 %v7358_v41, %v6550_v28  ;;  %v9952_v41 = vmul.f32 0.35355338, %v9785_v43 }
 0x3aa   : > { %v925_v42 = vpop.f32.mrf.mxu0 }
 0x3ab   : > { %v9787_v44 = vadd.f32 %v6550_v28, %v925_v42  ;;  %1028 = vrot.lane.b32.xlu0 %v9781_v50, %s9202_s10  ;;  %12529 = vst [vmem:[#allocation50_spill] sm:$0xff] %v9824_v61 }
 0x3ac   : > { %v7361_v47 = vpop.f32.mrf.mxu0 }
 0x3ad   : > { %1032 = vrot.lane.b32.xlu1 %v9785_v43, %s9202_s10  ;;  %v9796_v51 = vmul.f32 0.35355338, %v9787_v44  ;;  %v9816_v39 = vadd.f32 %v7361_v47, %v6550_v28  ;;  %v9955_v47 = vmul.f32 0.35355338, %v9777_v11 }
 0x3ae   : > { %v935_v52 = vpop.f32.mrf.mxu0 }
 0x3af   : > { %1026 = vrot.lane.b32.xlu0 %v9791_v48, %s9202_s10  ;;  %7412 = vmatprep.mubr.msk.f32.mxu0 %vm1038_vm4, %v9796_v51  ;;  %12528 = vst [vmem:[#allocation49_spill] sm:$0xff] %v9816_v39  ;;  %v9838_v15 = vadd.f32 %v6550_v28, %v935_v52 }
 0x3b0   : > { %v7364_v53 = vpop.f32.mrf.mxu0 }
 0x3b1   : > { %1030 = vrot.lane.b32.xlu1 %v9798_v21, %s9202_s10  ;;  %v9826_v22 = vadd.f32 %v7364_v53, %v6550_v28  ;;  %12532 = vst [vmem:[#allocation53_spill] sm:$0xff] %v9838_v15 }
 0x3b2   : > { %v945_v54 = vpop.f32.mrf.mxu0 }
 0x3b3   : > { %1024 = vrot.lane.b32.xlu0 %v9804_v12, %s9202_s10  ;;  %12530 = vst [vmem:[#allocation51_spill] sm:$0xff] %v9826_v22  ;;  %v9832_v14 = vadd.f32 %v6550_v28, %v945_v54  ;;  %v9964_v54 = vmul.f32 0.35355338, %v9775_v38 }
 0x3b4   : > { %v7367_v32 = vpop.f32.mrf.mxu0 }
 0x3b5   : > { %v9810_v55 = vadd.f32 %v7367_v32, %v6550_v28  ;;  %12531 = vst [vmem:[#allocation52_spill] sm:$0xff] %v9832_v14 }
 0x3b6   : > { %v955_v56 = vpop.f32.mrf.mxu0 }
 0x3b7   : > { %1022 = vrot.lane.b32.xlu0 %v9768_v30, %s9202_s10  ;;  %1206 = vrot.lane.b32.xlu1 %v9810_v55, %s9202_s10  ;;  %v9818_v33 = vadd.f32 %v6550_v28, %v955_v56  ;;  %v9970_v56 = vmul.f32 0.35355338, %v9824_v61 }
 0x3bb   : > { %1198 = vrot.lane.b32.xlu0 %v9816_v39, %s9202_s10  ;;  %1204 = vrot.lane.b32.xlu1 %v9818_v33, %s9202_s10 }
 0x3bf   : > { %1194 = vrot.lane.b32.xlu0 %v9824_v61, %s9202_s10  ;;  %1202 = vrot.lane.b32.xlu1 %v9826_v22, %s9202_s10 }
 0x3c3   : > { %1543 = vrot.lane.b32.xlu0 %v9775_v38, %s9203_s28  ;;  %1200 = vrot.lane.b32.xlu1 %v9832_v14, %s9202_s10 }
 0x3c7   : > { %1539 = vrot.lane.b32.xlu0 %v9785_v43, %s9203_s28  ;;  %1196 = vrot.lane.b32.xlu1 %v9838_v15, %s9202_s10 }
 0x3cb   : > { %1535 = vrot.lane.b32.xlu0 %v9781_v50, %s9203_s28  ;;  %1192 = vrot.lane.b32.xlu1 %v9787_v44, %s9202_s10  ;;  %s11871_s10 = scalar_lea.vmem %s12439_s15, %s6796_s14 }
 0x3cf   : > { %1529 = vrot.lane.b32.xlu0 %v9768_v30, %s9203_s28  ;;  %1541 = vrot.lane.b32.xlu1 %v9777_v11, %s9203_s28 }
 0x3d3   : > { %1865 = vrot.lane.b32.xlu0 %v9775_v38, %s9204_s4  ;;  %1537 = vrot.lane.b32.xlu1 %v9798_v21, %s9203_s28 }
 0x3d7   : > { %1688 = vrot.lane.b32.xlu0 %v9816_v39, %s9203_s28  ;;  %1533 = vrot.lane.b32.xlu1 %v9791_v48, %s9203_s28 }
 0x3db   : > { %1686 = vrot.lane.b32.xlu0 %v9838_v15, %s9203_s28  ;;  %1531 = vrot.lane.b32.xlu1 %v9804_v12, %s9203_s28 }
 0x3df   : > { %1684 = vrot.lane.b32.xlu0 %v9824_v61, %s9203_s28  ;;  %1696 = vrot.lane.b32.xlu1 %v9810_v55, %s9203_s28 }
 0x3e3   : > { %1857 = vrot.lane.b32.xlu0 %v9781_v50, %s9204_s4  ;;  %1692 = vrot.lane.b32.xlu1 %v9826_v22, %s9203_s28 }
 0x3e7   : > { %1855 = vrot.lane.b32.xlu0 %v9791_v48, %s9204_s4  ;;  %1863 = vrot.lane.b32.xlu1 %v9777_v11, %s9204_s4 }
 0x3eb   : > { %1853 = vrot.lane.b32.xlu0 %v9804_v12, %s9204_s4  ;;  %1690 = vrot.lane.b32.xlu1 %v9832_v14, %s9203_s28 }
 0x3ef   : > { %1851 = vrot.lane.b32.xlu0 %v9768_v30, %s9204_s4  ;;  %1861 = vrot.lane.b32.xlu1 %v9785_v43, %s9204_s4 }
 0x3f3   : > { %1835 = vrot.lane.b32.xlu0 %v9771_v13, %s9205_s11  ;;  %1859 = vrot.lane.b32.xlu1 %v9798_v21, %s9204_s4 }
 0x3f7   : > { %1682 = vrot.lane.b32.xlu1 %v9787_v44, %s9203_s28 }
 0x3fb   : > { %2034 = vrot.lane.b32.xlu1 %v9810_v55, %s9204_s4 }
 0x3ff   : > { %2030 = vrot.lane.b32.xlu1 %v9826_v22, %s9204_s4 }
 0x403   : > { %2028 = vrot.lane.b32.xlu1 %v9832_v14, %s9204_s4 }
 0x407   : > { %1837 = vrot.lane.b32.xlu1 %v9897_v16, %s9205_s11 }
 0x40b   : > { %1694 = vrot.lane.b32.xlu1 %v9818_v33, %s9203_s28  ;;  %s4983_s28 = scalar_lea.vmem [#allocation13], %s9180_s5 }
 0x40f   : > { %2032 = vrot.lane.b32.xlu1 %v9818_v33, %s9204_s4 }
 0x419   : > { %v1037_v18 = vpop.permute.xlu0 %1036 }
 0x41a   : > { %7368 = vmatprep.subr.msk.mxu1 %vm1038_vm4, %v1037_v18 }
 0x41b   : > { %7369 = vmatpush3.xpose.msk.msra.mxu1 %vm1038_vm4, %v1037_v18  ;;  %v1035_v19 = vpop.permute.xlu1 %1034  ;;  %v9973_v18 = vmul.f32 0.35355338, %v9838_v15 }
 0x41c   : > { %7370 = vmatprep.subr.msk.mxu1 %vm1038_vm4, %v1035_v19 }
 0x41d   : > { %v1029_v45 = vpop.permute.xlu0 %1028 }
 0x41f   : > { %7371 = vmatpush3.xpose.msk.msra.mxu1 %vm1038_vm4, %v1035_v19  ;;  %v1033_v20 = vpop.permute.xlu1 %1032 }
 0x420   : > { %7372 = vmatprep.subr.msk.mxu1 %vm1038_vm4, %v1033_v20 }
 0x421   : > { %v1027_v34 = vpop.permute.xlu0 %1026 }
 0x423   : > { %7373 = vmatpush3.xpose.msk.msra.mxu1 %vm1038_vm4, %v1033_v20  ;;  %v1031_v23 = vpop.permute.xlu1 %1030  ;;  %v9980_v20 = vmul.f32 0.35355338, %v9816_v39 }
 0x424   : > { %7374 = vmatprep.subr.msk.mxu1 %vm1038_vm4, %v1031_v23 }
 0x425   : > { %v1025_v24 = vpop.permute.xlu0 %1024 }
 0x427   : > { %7375 = vmatpush3.xpose.msk.msra.mxu1 %vm1038_vm4, %v1031_v23 }
 0x428   : > { %7376 = vmatprep.subr.msk.mxu1 %vm1038_vm4, %v1029_v45 }
 0x429   : > { %v1023_v49 = vpop.permute.xlu0 %1022  ;;  %v1207_v26 = vpop.permute.xlu1 %1206 }
 0x42a   : > { %7396 = vmatprep.subr.msk.mxu0 %vm1038_vm4, %v1207_v26 }
 0x42b   : > { %7377 = vmatpush3.xpose.msk.msra.mxu1 %vm1038_vm4, %v1029_v45  ;;  %7397 = vmatpush3.xpose.msk.msra.mxu0 %vm1038_vm4, %v1207_v26  ;;  %v9997_v26 = vmul.f32 0.35355338, %v9818_v33 }
 0x42c   : > { %7378 = vmatprep.subr.msk.mxu1 %vm1038_vm4, %v1027_v34 }
 0x42d   : > { %v1199_v57 = vpop.permute.xlu0 %1198  ;;  %v1205_v40 = vpop.permute.xlu1 %1204 }
 0x42e   : > { %7398 = vmatprep.subr.msk.mxu0 %vm1038_vm4, %v1205_v40 }
 0x42f   : > { %7379 = vmatpush3.xpose.msk.msra.mxu1 %vm1038_vm4, %v1027_v34  ;;  %7399 = vmatpush3.xpose.msk.msra.mxu0 %vm1038_vm4, %v1205_v40  ;;  %v9983_v34 = vmul.f32 0.35355338, %v9832_v14  ;;  %v10004_v40 = vmul.f32 0.35355338, %v9810_v55 }
 0x430   : > { %7380 = vmatprep.subr.msk.mxu1 %vm1038_vm4, %v1025_v24 }
 0x431   : > { %v1195_v46 = vpop.permute.xlu0 %1194  ;;  %v1203_v27 = vpop.permute.xlu1 %1202 }
 0x432   : > { %7400 = vmatprep.subr.msk.mxu0 %vm1038_vm4, %v1203_v27 }
 0x433   : > { %7381 = vmatpush3.xpose.msk.msra.mxu1 %vm1038_vm4, %v1025_v24  ;;  %7401 = vmatpush3.xpose.msk.msra.mxu0 %vm1038_vm4, %v1203_v27 }
 0x434   : > { %7382 = vmatprep.subr.msk.mxu1 %vm1038_vm4, %v1023_v49 }
 0x435   : > { %v1201_v28 = vpop.permute.xlu1 %1200  ;;  %v1544_v29 = vpop.permute.xlu0 %1543 }
 0x436   : > { %7402 = vmatprep.subr.msk.mxu0 %vm1038_vm4, %v1201_v28 }
 0x437   : > { %7383 = vmatpush3.xpose.msk.msra.mxu1 %vm1038_vm4, %v1023_v49  ;;  %7403 = vmatpush3.xpose.msk.msra.mxu0 %vm1038_vm4, %v1201_v28  ;;  %v9992_v49 = vmul.f32 0.35355338, %v9826_v22 }
 0x438   : > { %7404 = vmatprep.subr.msk.mxu0 %vm1038_vm4, %v1199_v57  ;;  %7424 = vmatprep.subr.mxu1 %v1544_v29 }
 0x439   : > { %v1197_v35 = vpop.permute.xlu1 %1196  ;;  %v1540_v31 = vpop.permute.xlu0 %1539 }
 0x43a   : > { %7385 = vmatmul.mubr.msk.f32.vlgmr.msra.gmra.mxu1 %vm1038_vm4, %v9897_v16 }
 0x43b   : > { %7387 = vmatprep.mubr.msk.f32.mxu1 %vm1038_vm4, %v9931_v17  ;;  %7405 = vmatpush3.xpose.msk.msra.mxu0 %vm1038_vm4, %v1199_v57 }
 0x43c   : > { %7425 = vmatpush3.msra.mxu1 %v1544_v29  ;;  %7406 = vmatprep.subr.msk.mxu0 %vm1038_vm4, %v1197_v35 }
 0x43d   : > { %v1193_v37 = vpop.permute.xlu1 %1192  ;;  %v1536_v52 = vpop.permute.xlu0 %1535 }
 0x43e   : > { %7388 = vmatmul.mubr.msk.f32.gmra.mxu1 %vm1038_vm4, %v9940_v36 }
 0x43f   : > { %7390 = vmatprep.mubr.msk.f32.mxu1 %vm1038_vm4, %v9943_v25  ;;  %7407 = vmatpush3.xpose.msk.msra.mxu0 %vm1038_vm4, %v1197_v35 }
 0x440   : > { %7408 = vmatprep.subr.msk.mxu0 %vm1038_vm4, %v1195_v46 }
 0x441   : > { %v1542_v42 = vpop.permute.xlu1 %1541  ;;  %v1530_v19 = vpop.permute.xlu0 %1529 }
 0x442   : > { %7391 = vmatmul.mubr.msk.f32.gmra.mxu1 %vm1038_vm4, %v9952_v41  ;;  %7426 = vmatprep.subr.mxu1 %v1542_v42 }
 0x443   : > { %7393 = vmatprep.mubr.msk.f32.mxu1 %vm1038_vm4, %v9955_v47  ;;  %7409 = vmatpush3.xpose.msk.msra.mxu0 %vm1038_vm4, %v1195_v46 }
 0x444   : > { %7427 = vmatpush3.msra.mxu1 %v1542_v42  ;;  %7410 = vmatprep.subr.msk.mxu0 %vm1038_vm4, %v1193_v37 }
 0x445   : > { %7428 = vmatprep.subr.mxu1 %v1540_v31  ;;  %v1538_v53 = vpop.permute.xlu1 %1537  ;;  %v9989_v23 = vpop.permute.xlu0 %1865 }
 0x446   : > { %7429 = vmatpush3.msra.mxu1 %v1540_v31 }
 0x447   : > { %7394 = vmatmul.mubr.msk.f32.gmra.mxu1 %vm1038_vm4, %v9964_v54  ;;  %7430 = vmatprep.subr.mxu1 %v1538_v53 }
 0x448   : > { %7411 = vmatpush3.xpose.msk.msra.mxu0 %vm1038_vm4, %v1193_v37  ;;  %7431 = vmatpush3.msra.mxu1 %v1538_v53 }
 0x449   : > { %7432 = vmatprep.subr.mxu1 %v1536_v52  ;;  %v1534_v32 = vpop.permute.xlu1 %1533  ;;  %v1689_v53 = vpop.permute.xlu0 %1688 }
 0x44a   : > { %7433 = vmatpush3.msra.mxu1 %v1536_v52 }
 0x44b   : > { %7413 = vmatmul.mubr.msk.f32.vlgmr.msra.gmra.mxu0 %vm1038_vm4, %v9970_v56  ;;  %7434 = vmatprep.subr.mxu1 %v1534_v32 }
 0x44c   : > { %7415 = vmatprep.mubr.msk.f32.mxu0 %vm1038_vm4, %v9973_v18  ;;  %7435 = vmatpush3.msra.mxu1 %v1534_v32 }
 0x44d   : > { %v1532_v45 = vpop.permute.xlu1 %1531 }
 0x44e   : > { %7436 = vmatprep.subr.mxu1 %v1532_v45 }
 0x44f   : > { %7416 = vmatmul.mubr.msk.f32.gmra.mxu0 %vm1038_vm4, %v9980_v20  ;;  %7437 = vmatpush3.msra.mxu1 %v1532_v45 }
 0x450   : > { %7418 = vmatprep.mubr.msk.f32.mxu0 %vm1038_vm4, %v9983_v34  ;;  %7438 = vmatprep.subr.mxu1 %v1530_v19 }
 0x451   : > { %7439 = vmatpush3.msra.mxu1 %v1530_v19  ;;  %v1697_v24 = vpop.permute.xlu1 %1696  ;;  %v1687_v19 = vpop.permute.xlu0 %1686 }
 0x452   : > { %7452 = vmatprep.subr.mxu0 %v1697_v24  ;;  %7480 = vmatprep.subr.msk.mxu1 %vm1038_vm4, %v9989_v23 }
 0x453   : > { %7419 = vmatmul.mubr.msk.f32.gmra.mxu0 %vm1038_vm4, %v9992_v49 }
 0x454   : > { %7421 = vmatprep.mubr.msk.f32.mxu0 %vm1038_vm4, %v9997_v26  ;;  %7453 = vmatpush3.msra.mxu0 %v1697_v24  ;;  %v967_v24 = vld [vmem:[%s10028_s13 + $0x8] sm:$0xff] }
 0x455   : > { %v1693_v57 = vpop.permute.xlu1 %1692  ;;  %v1685_v45 = vpop.permute.xlu0 %1684 }
 0x457   : > { %7422 = vmatmul.mubr.msk.f32.gmra.mxu0 %vm1038_vm4, %v10004_v40 }
 0x459   : > { %v10008_v46 = vpop.permute.xlu1 %1863 }
 0x45d   : > { %v1691_v27 = vpop.permute.xlu1 %1690 }
 0x461   : > { %v10010_v28 = vpop.permute.xlu1 %1861 }
 0x465   : > { %v10012_v29 = vpop.permute.xlu1 %1859 }
 0x469   : > { %v1683_v35 = vpop.permute.xlu1 %1682 }
 0x46d   : > { %v10014_v37 = vpop.permute.xlu1 %2034 }
 0x46e   : > { %12534 = vst [vmem:[#allocation55_spill] sm:$0xff] %v10014_v37 }
 0x471   : > { %v10016_v31 = vpop.permute.xlu1 %2030 }
 0x472   : > { %12535 = vst [vmem:[#allocation56_spill] sm:$0xff] %v10016_v31 }
 0x475   : > { %v10018_v42 = vpop.permute.xlu1 %2028 }
 0x476   : > { %12536 = vst [vmem:[#allocation57_spill] sm:$0xff] %v10018_v42 }
 0x479   : > { %v10020_v52 = vpop.permute.xlu1 %1837 }
 0x47a   : > { %12537 = vst [vmem:[#allocation58_spill] sm:$0xff] %v10020_v52 }
 0x47d   : > { %v1695_v32 = vpop.permute.xlu1 %1694 }
 0x47e   : > { %7454 = vmatprep.subr.mxu0 %v1695_v32 }
 0x47f   : > { %7455 = vmatpush3.msra.mxu0 %v1695_v32  ;;  %v969_v32 = vld [vmem:[%s10028_s13 + $0x18] sm:$0xff] }
 0x480   : > { %7456 = vmatprep.subr.mxu0 %v1693_v57 }
 0x481   : > { %7457 = vmatpush3.msra.mxu0 %v1693_v57 }
 0x482   : > { %7458 = vmatprep.subr.mxu0 %v1691_v27 }
 0x483   : > { %7459 = vmatpush3.msra.mxu0 %v1691_v27  ;;  %v966_v27 = vld [vmem:[%s10028_s13] sm:$0xff] }
 0x484   : > { %7460 = vmatprep.subr.mxu0 %v1689_v53 }
 0x485   : > { %7461 = vmatpush3.msra.mxu0 %v1689_v53 }
 0x486   : > { %7462 = vmatprep.subr.mxu0 %v1687_v19 }
 0x487   : > { %7463 = vmatpush3.msra.mxu0 %v1687_v19 }
 0x488   : > { %7464 = vmatprep.subr.mxu0 %v1685_v45 }
 0x489   : > { %7465 = vmatpush3.msra.mxu0 %v1685_v45 }
 0x48a   : > { %7466 = vmatprep.subr.mxu0 %v1683_v35 }
 0x48b   : > { %7467 = vmatpush3.msra.mxu0 %v1683_v35 }
 0x48c   : > { %7508 = vmatprep.subr.msk.mxu0 %vm1038_vm4, %v10014_v37 }
 0x4fa   : > { %v7386_v57 = vpop.f32.mrf.mxu1 }
 0x4fb   : > { %v10032_v53 = vadd.f32 %v7386_v57, %v967_v24  ;;  %v971_v57 = vld [vmem:[%s10028_s13 + $0x28] sm:$0xff] }
 0x4fc   : > { %v1145_v35 = vpop.f32.mrf.mxu1 }
 0x4fd   : > { %v10035_v19 = vadd.f32 %v1145_v35, %v966_v27  ;;  %v1356_v45 = vsel %vm248_vm1, %v10032_v53, -inf }
 0x4fe   : > { %1357 = vmax.xlane.f32.xlu1 %v1356_v45  ;;  %v7389_v9 = vpop.f32.mrf.mxu1  ;;  %v970_v45 = vld [vmem:[%s10028_s13 + $0x20] sm:$0xff] }
 0x4ff   : > { %v10040_v7 = vadd.f32 %v7389_v9, %v969_v32  ;;  %v1353_v8 = vsel %vm248_vm1, %v10035_v19, -inf }
 0x500   : > { %v1155_v5 = vpop.f32.mrf.mxu1  ;;  %1354 = vmax.xlane.f32.xlu0 %v1353_v8 }
 0x501   : > { %v10045_v6 = vadd.f32 %v1155_v5, %v968_v10  ;;  %v1362_v35 = vsel %vm248_vm1, %v10040_v7, -inf  ;;  %v973_v5 = vld [vmem:[%s10028_s13 + $0x38] sm:$0xff] }
 0x502   : > { %1363 = vmax.xlane.f32.xlu1 %v1362_v35  ;;  %v7392_v3 = vpop.f32.mrf.mxu1 }
 0x503   : > { %v10050_v4 = vadd.f32 %v7392_v3, %v971_v57  ;;  %v1359_v9 = vsel %vm248_vm1, %v10045_v6, -inf }
 0x504   : > { %v1165_v1 = vpop.f32.mrf.mxu1  ;;  %1360 = vmax.xlane.f32.xlu0 %v1359_v9 }
 0x505   : > { %v10054_v2 = vadd.f32 %v1165_v1, %v970_v45  ;;  %v1368_v8 = vsel %vm248_vm1, %v10050_v4, -inf }
 0x506   : > { %1369 = vmax.xlane.f32.xlu1 %v1368_v8 }
 0x507   : > { %v7395_v63 = vpop.f32.mrf.mxu1  ;;  %v1365_v35 = vsel %vm248_vm1, %v10054_v2, -inf }
 0x508   : > { %v10062_v60 = vadd.f32 %v7395_v63, %v973_v5  ;;  %1366 = vmax.xlane.f32.xlu0 %v1365_v35 }
 0x509   : > { %v1175_v3 = vpop.f32.mrf.mxu1 }
 0x50a   : > { %v10064_v62 = vadd.f32 %v1175_v3, %v972_v0  ;;  %v1374_v1 = vsel %vm248_vm1, %v10062_v60, -inf }
 0x50b   : > { %1375 = vmax.xlane.f32.xlu1 %v1374_v1  ;;  %v7414_v9 = vpop.f32.mrf.mxu0 }
 0x50c   : > { %v10068_v58 = vadd.f32 %v7414_v9, %v967_v24  ;;  %v1371_v8 = vsel %vm248_vm1, %v10064_v62, -inf }
 0x50d   : > { %1372 = vmax.xlane.f32.xlu0 %v1371_v8  ;;  %v1314_v59 = vpop.f32.mrf.mxu0 }
 0x50e   : > { %v10072_v52 = vadd.f32 %v1314_v59, %v966_v27  ;;  %v1380_v35 = vsel %vm248_vm1, %v10068_v58, -inf }
 0x50f   : > { %v7417_v16 = vpop.f32.mrf.mxu0 }
 0x510   : > { %v10074_v63 = vadd.f32 %v7417_v16, %v969_v32  ;;  %v1377_v59 = vsel %vm248_vm1, %v10072_v52, -inf }
 0x511   : > { %1381 = vmax.xlane.f32.xlu0 %v1380_v35  ;;  %v1324_v3 = vpop.f32.mrf.mxu0 }
 0x512   : > { %v1386_v1 = vsel %vm248_vm1, %v10074_v63, -inf  ;;  %v10080_v9 = vadd.f32 %v1324_v3, %v968_v10 }
 0x513   : > { %1387 = vmax.xlane.f32.xlu1 %v1386_v1  ;;  %v7420_v24 = vpop.f32.mrf.mxu0 }
 0x514   : > { %v10082_v42 = vadd.f32 %v7420_v24, %v971_v57  ;;  %v1383_v10 = vsel %vm248_vm1, %v10080_v9, -inf }
 0x515   : > { %v1334_v27 = vpop.f32.mrf.mxu0  ;;  %1378 = vmax.xlane.f32.xlu0 %v1377_v59 }
 0x516   : > { %v1392_v16 = vsel %vm248_vm1, %v10082_v42, -inf  ;;  %v10088_v8 = vadd.f32 %v1334_v27, %v970_v45 }
 0x517   : > { %1393 = vmax.xlane.f32.xlu1 %v1392_v16  ;;  %v7423_v32 = vpop.f32.mrf.mxu0  ;;  %v10114_v16 = vpop.permute.xlu1 %2032 }
 0x518   : > { %v10090_v35 = vadd.f32 %v7423_v32, %v973_v5  ;;  %v1389_v24 = vsel %vm248_vm1, %v10088_v8, -inf  ;;  %v10106_v5 = vpop.permute.xlu0 %1857  ;;  %12542 = vst [vmem:[#allocation63_spill] sm:$0xff] %v10114_v16 }
 0x519   : > { %v1344_v3 = vpop.f32.mrf.mxu0  ;;  %1384 = vmax.xlane.f32.xlu0 %v1383_v10  ;;  %12538 = vst [vmem:[#allocation59_spill] sm:$0xff] %v10106_v5 }
 0x51a   : > { %v1398_v57 = vsel %vm248_vm1, %v10090_v35, -inf  ;;  %v10096_v1 = vadd.f32 %v1344_v3, %v972_v0 }
 0x51b   : > { %1399 = vmax.xlane.f32.xlu1 %v1398_v57 }
 0x51c   : > { %v1395_v45 = vsel %vm248_vm1, %v10096_v1, -inf  ;;  %v10108_v59 = vpop.permute.xlu0 %1855 }
 0x51d   : > { %1390 = vmax.xlane.f32.xlu0 %v1389_v24  ;;  %12539 = vst [vmem:[#allocation60_spill] sm:$0xff] %v10108_v59 }
 0x520   : > { %v10110_v0 = vpop.permute.xlu0 %1853 }
 0x521   : > { %1396 = vmax.xlane.f32.xlu0 %v1395_v45  ;;  %12540 = vst [vmem:[#allocation61_spill] sm:$0xff] %v10110_v0 }
 0x524   : > { %v10112_v27 = vpop.permute.xlu0 %1851 }
 0x525   : > { %12541 = vst [vmem:[#allocation62_spill] sm:$0xff] %v10112_v27 }
 0x528   : > { %v10116_v32 = vpop.permute.xlu0 %1835 }
 0x529   : > { %12543 = vst [vmem:[#allocation64_spill] sm:$0xff] %v10116_v32 }
 0x52c   : > { %2024 = vrot.lane.b32.xlu1 %v9838_v15, %s9204_s4 }
 0x537   : > { %2026 = vrot.lane.b32.xlu0 %v9816_v39, %s9204_s4 }
 0x587   : > { %v1358_v10 = vpop.xlane.xlu1 %1357 }
 0x588   : > { %v1402_v3 = vsub.f32 %v10032_v53, %v1358_v10 }
 0x589   : > { %v1355_v57 = vpop.xlane.xlu0 %1354 }
 0x58a   : > { %v1419_v24 = vmul.f32 1.442695, %v1402_v3  ;;  %v1401_v45 = vsub.f32 %v10035_v19, %v1355_v57 }
 0x58b   : > { %v1364_v31 = vpop.xlane.xlu1 %1363 }
 0x58c   : > { %8400 = vpow2.f32 %v1419_v24  ;;  %v1417_v13 = vmul.f32 1.442695, %v1401_v45  ;;  %v1404_v37 = vsub.f32 %v10040_v7, %v1364_v31 }
 0x58d   : > { %v1361_v59 = vpop.xlane.xlu0 %1360 }
 0x58e   : > { %8402 = vpow2.f32 %v1417_v13  ;;  %v1423_v0 = vmul.f32 1.442695, %v1404_v37  ;;  %v1403_v27 = vsub.f32 %v10045_v6, %v1361_v59 }
 0x58f   : > { %v1370_v16 = vpop.xlane.xlu1 %1369 }
 0x590   : > { %8404 = vpow2.f32 %v1423_v0  ;;  %v1421_v32 = vmul.f32 1.442695, %v1403_v27  ;;  %v1406_v5 = vsub.f32 %v10050_v4, %v1370_v16 }
 0x591   : > { %v1367_v53 = vpop.xlane.xlu0 %1366 }
 0x592   : > { %v1405_v10 = vsub.f32 %v10054_v2, %v1367_v53  ;;  %8406 = vpow2.f32 %v1421_v32  ;;  %v1427_v19 = vmul.f32 1.442695, %v1406_v5 }
 0x594   : > { %v1425_v3 = vmul.f32 1.442695, %v1405_v10  ;;  %v1376_v57 = vpop.xlane.xlu1 %1375 }
 0x595   : > { %v1408_v24 = vsub.f32 %v10062_v60, %v1376_v57 }
 0x596   : > { %8408 = vpow2.f32 %v1425_v3  ;;  %v1373_v7 = vpop.xlane.xlu0 %1372 }
 0x597   : > { %v1407_v13 = vsub.f32 %v10064_v62, %v1373_v7  ;;  %8410 = vpow2.f32 %v1427_v19  ;;  %v1431_v6 = vmul.f32 1.442695, %v1408_v24 }
 0x599   : > { %v10126_v37 = vpop.eup %8400  ;;  %v1429_v31 = vmul.f32 1.442695, %v1407_v13 }
 0x59a   : > { %v1382_v59 = vpop.xlane.xlu0 %1381  ;;  %v1452_v4 = vsel %vm248_vm1, %v10126_v37, 0.0 }
 0x59b   : > { %v10130_v2 = vpop.eup %8402  ;;  %8412 = vpow2.f32 %v1429_v31  ;;  %v1410_v5 = vsub.f32 %v10068_v58, %v1382_v59  ;;  %1453 = vadd.xlane.f32.xlu1 %v1452_v4 }
 0x59c   : > { %8414 = vpow2.f32 %v1431_v6  ;;  %v1449_v60 = vsel %vm248_vm1, %v10130_v2, 0.0 }
 0x59d   : > { %v10135_v62 = vpop.eup %8404  ;;  %v1435_v0 = vmul.f32 1.442695, %v1410_v5  ;;  %1450 = vadd.xlane.f32.xlu0 %v1449_v60  ;;  %v1388_v60 = vpop.xlane.xlu1 %1387 }
 0x59e   : > { %v1379_v27 = vpop.xlane.xlu0 %1378  ;;  %v1458_v32 = vsel %vm248_vm1, %v10135_v62, 0.0 }
 0x59f   : > { %v1409_v16 = vsub.f32 %v10072_v52, %v1379_v27  ;;  %8416 = vpow2.f32 %v1435_v0  ;;  %v10140_v45 = vpop.eup %8406 }
 0x5a0   : > { %v1455_v19 = vsel %vm248_vm1, %v10140_v45, 0.0 }
 0x5a1   : > { %v1433_v53 = vmul.f32 1.442695, %v1409_v16  ;;  %1459 = vadd.xlane.f32.xlu0 %v1458_v32  ;;  %v1394_v27 = vpop.xlane.xlu1 %1393  ;;  %v1412_v32 = vsub.f32 %v10074_v63, %v1388_v60 }
 0x5a2   : > { %v1385_v5 = vpop.xlane.xlu0 %1384 }
 0x5a3   : > { %v10142_v58 = vpop.eup %8408  ;;  %8418 = vpow2.f32 %v1433_v53  ;;  %v1411_v16 = vsub.f32 %v10080_v9, %v1385_v5  ;;  %v1414_v53 = vsub.f32 %v10082_v42, %v1394_v27 }
 0x5a4   : > { %v1461_v10 = vsel %vm248_vm1, %v10142_v58, 0.0  ;;  %v10148_v3 = vpop.eup %8410 }
 0x5a5   : > { %1462 = vadd.xlane.f32.xlu1 %v1461_v10  ;;  %1456 = vadd.xlane.f32.xlu0 %v1455_v19  ;;  %v1464_v57 = vsel %vm248_vm1, %v10148_v3, 0.0  ;;  %v1437_v10 = vmul.f32 1.442695, %v1411_v16  ;;  %v1439_v19 = vmul.f32 1.442695, %v1412_v32 }
 0x5a6   : > { %v1391_v0 = vpop.xlane.xlu0 %1390 }
 0x5a7   : > { %8420 = vpow2.f32 %v1437_v10 }
 0x5a8   : > { %v10150_v52 = vpop.eup %8412  ;;  %8422 = vpow2.f32 %v1439_v19 }
 0x5a9   : > { %v10154_v24 = vpop.eup %8414  ;;  %v1467_v7 = vsel %vm248_vm1, %v10150_v52, 0.0  ;;  %1465 = vadd.xlane.f32.xlu0 %v1464_v57  ;;  %v1413_v57 = vsub.f32 %v10088_v8, %v1391_v0 }
 0x5aa   : > { %1468 = vadd.xlane.f32.xlu1 %v1467_v7  ;;  %v1470_v13 = vsel %vm248_vm1, %v10154_v24, 0.0  ;;  %v1397_v7 = vpop.xlane.xlu0 %1396 }
 0x5ac   : > { %v10160_v6 = vpop.eup %8416 }
 0x5ad   : > { %12544 = vst [vmem:[#allocation65_spill] sm:$0xff] %v10160_v6  ;;  %1471 = vadd.xlane.f32.xlu0 %v1470_v13  ;;  %v1476_v59 = vsel %vm248_vm1, %v10160_v6, 0.0  ;;  %v1400_v13 = vpop.xlane.xlu1 %1399  ;;  %v1441_v6 = vmul.f32 1.442695, %v1413_v57 }
 0x5ae   : > { %v10238_v10 = vpop.permute.xlu0 %2026 }
 0x5b0   : > { %v10162_v31 = vpop.eup %8418 }
 0x5b1   : > { %12545 = vst [vmem:[#allocation66_spill] sm:$0xff] %v10162_v31  ;;  %v1473_v4 = vsel %vm248_vm1, %v10162_v31, 0.0  ;;  %1477 = vadd.xlane.f32.xlu0 %v1476_v59  ;;  %v1443_v59 = vmul.f32 1.442695, %v1414_v53  ;;  %v1416_v31 = vsub.f32 %v10090_v35, %v1400_v13  ;;  %v10232_v53 = vpop.permute.xlu1 %2024 }
 0x5b2   : > { %1474 = vadd.xlane.f32.xlu1 %v1473_v4  ;;  %v1415_v4 = vsub.f32 %v10096_v1, %v1397_v7 }
 0x5b3   : > { %8424 = vpow2.f32 %v1443_v59  ;;  %v1447_v5 = vmul.f32 1.442695, %v1416_v31 }
 0x5b4   : > { %v1445_v9 = vmul.f32 1.442695, %v1415_v4  ;;  %8426 = vpow2.f32 %v1441_v6  ;;  %v10178_v42 = vpop.eup %8420 }
 0x5b5   : > { %v10180_v63 = vpop.eup %8422  ;;  %v1479_v8 = vsel %vm248_vm1, %v10178_v42, 0.0 }
 0x5b6   : > { %8428 = vpow2.f32 %v1445_v9  ;;  %v1482_v35 = vsel %vm248_vm1, %v10180_v63, 0.0 }
 0x5b7   : > { %8430 = vpow2.f32 %v1447_v5 }
 0x5c0   : > { %v10184_v60 = vpop.eup %8424 }
 0x5c1   : > { %v10188_v1 = vpop.eup %8426  ;;  %v1488_v6 = vsel %vm248_vm1, %v10184_v60, 0.0 }
 0x5c2   : > { %v1485_v0 = vsel %vm248_vm1, %v10188_v1, 0.0 }
 0x5c3   : > { %2020 = vrot.lane.b32.xlu1 %v9787_v44, %s9204_s4  ;;  %v10192_v31 = vpop.eup %8428 }
 0x5c4   : > { %v10196_v27 = vpop.eup %8430  ;;  %v1491_v16 = vsel %vm248_vm1, %v10192_v31, 0.0 }
 0x5c5   : > { %v1494_v32 = vsel %vm248_vm1, %v10196_v27, 0.0 }
 0x5c7   : > { %2022 = vrot.lane.b32.xlu0 %v9824_v61, %s9204_s4  ;;  %s5007_s4 = scalar_lea.vmem [#allocation14], %s9180_s5 }
 0x5e6   : > { %1480 = vadd.xlane.f32.xlu0 %v1479_v8 }
 0x5e7   : > { %1483 = vadd.xlane.f32.xlu1 %v1482_v35 }
 0x5ea   : > { %1489 = vadd.xlane.f32.xlu0 %v1488_v6 }
 0x5eb   : > { %1486 = vadd.xlane.f32.xlu1 %v1485_v0 }
 0x5ee   : > { %1492 = vadd.xlane.f32.xlu0 %v1491_v16 }
 0x5ef   : > { %1495 = vadd.xlane.f32.xlu1 %v1494_v32 }
 0x600   : > { %2006 = vrot.lane.b32.xlu1 %v9970_v56, %s9205_s11 }
 0x604   : > { %1841 = vrot.lane.b32.xlu1 %v9940_v36, %s9205_s11  ;;  %2004 = vrot.lane.b32.xlu0 %v9796_v51, %s9205_s11 }
 0x608   : > { %1845 = vrot.lane.b32.xlu1 %v9952_v41, %s9205_s11  ;;  %1839 = vrot.lane.b32.xlu0 %v9931_v17, %s9205_s11 }
 0x60c   : > { %1849 = vrot.lane.b32.xlu1 %v9964_v54, %s9205_s11  ;;  %1843 = vrot.lane.b32.xlu0 %v9943_v25, %s9205_s11 }
 0x610   : > { %2010 = vrot.lane.b32.xlu1 %v9980_v20, %s9205_s11  ;;  %1847 = vrot.lane.b32.xlu0 %v9955_v47, %s9205_s11 }
 0x614   : > { %2014 = vrot.lane.b32.xlu1 %v9992_v49, %s9205_s11  ;;  %2008 = vrot.lane.b32.xlu0 %v9973_v18, %s9205_s11 }
 0x618   : > { %2018 = vrot.lane.b32.xlu1 %v10004_v40, %s9205_s11  ;;  %2012 = vrot.lane.b32.xlu0 %v9983_v34, %s9205_s11 }
 0x61c   : > { %2361 = vrot.lane.b32.xlu1 %v9777_v11, %s9206_s0  ;;  %2016 = vrot.lane.b32.xlu0 %v9997_v26, %s9205_s11  ;;  %s5036_s11 = scalar_lea.vmem [#allocation17], %s9180_s5  ;;  %s482_s5 = sadd.s32 1, %s9180_s5  }
 0x61d   : > { %p12028_p9 = scmp.ge.s32.totalorder %s482_s5, 2  }
 0x61e   :  { %s9216_s30 = smov (%p12028_p9), 32   ;;  %vm5884_vm7 = vcmask (%p12028_p9), 785408  }
 0x620   : > { %2357 = vrot.lane.b32.xlu1 %v9798_v21, %s9206_s0  ;;  %2363 = vrot.lane.b32.xlu0 %v9775_v38, %s9206_s0 }
 0x624   : > { %2353 = vrot.lane.b32.xlu1 %v9791_v48, %s9206_s0  ;;  %2359 = vrot.lane.b32.xlu0 %v9785_v43, %s9206_s0  ;;  %v1454_v19 = vpop.xlane.xlu1 %1453 }
 0x625   : > { %8432 = vrcp.f32 %v1454_v19 }
 0x626   : > { %v1451_v57 = vpop.xlane.xlu0 %1450 }
 0x627   : > { %8434 = vrcp.f32 %v1451_v57 }
 0x628   : > { %2351 = vrot.lane.b32.xlu1 %v9804_v12, %s9206_s0  ;;  %2355 = vrot.lane.b32.xlu0 %v9781_v50, %s9206_s0 }
 0x62a   : > { %v1460_v7 = vpop.xlane.xlu0 %1459 }
 0x62b   : > { %8436 = vrcp.f32 %v1460_v7 }
 0x62c   : > { %2516 = vrot.lane.b32.xlu1 %v9810_v55, %s9206_s0  ;;  %2349 = vrot.lane.b32.xlu0 %v9768_v30, %s9206_s0 }
 0x62e   : > { %v1457_v13 = vpop.xlane.xlu0 %1456  ;;  %v1463_v59 = vpop.xlane.xlu1 %1462 }
 0x62f   : > { %8438 = vrcp.f32 %v1457_v13 }
 0x630   : > { %8440 = vrcp.f32 %v1463_v59  ;;  %2514 = vrot.lane.b32.xlu1 %v9818_v33, %s9206_s0  ;;  %2685 = vrot.lane.b32.xlu0 %v9775_v38, %s9207_s12 }
 0x632   : > { %v1466_v4 = vpop.xlane.xlu0 %1465  ;;  %v8433_v9 = vpop.eup %8432 }
 0x633   : > { %8442 = vrcp.f32 %v1466_v4  ;;  %v1469_v5 = vpop.xlane.xlu1 %1468  ;;  %v1514_v0 = vmul.f32 %v8433_v9, %v10126_v37  ;;  %v12547_v4 = vld [vmem:[#allocation65_spill] sm:$0xff]  ;;  %v12549_v9 = vld [vmem:[#allocation66_spill] sm:$0xff] }
 0x634   : > { %v8435_v8 = vpop.eup %8434  ;;  %8444 = vrcp.f32 %v1469_v5  ;;  %2512 = vrot.lane.b32.xlu1 %v9826_v22, %s9206_s0  ;;  %2508 = vrot.lane.b32.xlu0 %v9816_v39, %s9206_s0 }
 0x635   : > { %v1513_v35 = vmul.f32 %v8435_v8, %v10130_v2  ;;  %v12550_v8 = vld [vmem:[#allocation60_spill] sm:$0xff] }
 0x636   : > { %v1472_v6 = vpop.xlane.xlu0 %1471 }
 0x637   : > { %8446 = vrcp.f32 %v1472_v6  ;;  %7440 = vmatprep.mubr.msk.f32.mxu1 %vm248_vm1, %v1513_v35  ;;  %v12551_v35 = vld [vmem:[#allocation55_spill] sm:$0xff]  ;;  %v12552_v6 = vld [vmem:[#allocation61_spill] sm:$0xff] }
 0x638   : > { %2683 = vrot.lane.b32.xlu1 %v9777_v11, %s9207_s12  ;;  %2506 = vrot.lane.b32.xlu0 %v9838_v15, %s9206_s0  ;;  %v8437_v32 = vpop.eup %8436 }
 0x639   : > { %7441 = vmatmul.mubr.msk.f32.vlgmr.msra.gmra.mxu1 %vm248_vm1, %v1514_v0  ;;  %v12553_v0 = vld [vmem:[#allocation63_spill] sm:$0xff] }
 0x63a   : > { %7481 = vmatpush3.xpose.msk.msra.mxu1 %vm1038_vm4, %v9989_v23  ;;  %v1478_v16 = vpop.xlane.xlu0 %1477  ;;  %v1516_v23 = vmul.f32 %v8437_v32, %v10135_v62  ;;  %v12555_v32 = vld [vmem:[#allocation62_spill] sm:$0xff] }
 0x63b   : > { %7482 = vmatprep.subr.msk.mxu1 %vm1038_vm4, %v10008_v46  ;;  %8448 = vrcp.f32 %v1478_v16  ;;  %v1475_v2 = vpop.xlane.xlu1 %1474  ;;  %v12554_v16 = vld [vmem:[#allocation48_spill] sm:$0xff] }
 0x63c   : > { %v8439_v19 = vpop.eup %8438  ;;  %8450 = vrcp.f32 %v1475_v2  ;;  %2510 = vrot.lane.b32.xlu1 %v9832_v14, %s9206_s0  ;;  %2504 = vrot.lane.b32.xlu0 %v9824_v61, %s9206_s0  ;;  %v12556_v2 = vld [vmem:[#allocation56_spill] sm:$0xff] }
 0x63d   : > { %v8441_v37 = vpop.eup %8440  ;;  %v1515_v57 = vmul.f32 %v8439_v19, %v10140_v45  ;;  %v12557_v19 = vld [vmem:[#allocation57_spill] sm:$0xff] }
 0x63e   : > { %7483 = vmatpush3.xpose.msk.msra.mxu1 %vm1038_vm4, %v10008_v46  ;;  %v1517_v13 = vmul.f32 %v8441_v37, %v10142_v58  ;;  %v12558_v37 = vld [vmem:[#allocation58_spill] sm:$0xff] }
 0x63f   : > { %7484 = vmatprep.subr.msk.mxu1 %vm1038_vm4, %v10010_v28  ;;  %7443 = vmatprep.mubr.msk.f32.mxu1 %vm248_vm1, %v1515_v57  ;;  %v12559_v57 = vld [vmem:[#allocation54_spill] sm:$0xff] }
 0x640   : > { %v8443_v7 = vpop.eup %8442  ;;  %2681 = vrot.lane.b32.xlu1 %v9785_v43, %s9207_s12  ;;  %2677 = vrot.lane.b32.xlu0 %v9781_v50, %s9207_s12 }
 0x641   : > { %v8445_v45 = vpop.eup %8444  ;;  %7444 = vmatmul.mubr.msk.f32.gmra.mxu1 %vm248_vm1, %v1516_v23  ;;  %v1518_v46 = vmul.f32 %v8443_v7, %v10148_v3  ;;  %v2023_v23 = vpop.permute.xlu0 %2022 }
 0x642   : > { %7485 = vmatpush3.xpose.msk.msra.mxu1 %vm1038_vm4, %v10010_v28  ;;  %7446 = vmatprep.mubr.msk.f32.mxu1 %vm248_vm1, %v1517_v13  ;;  %v1519_v58 = vmul.f32 %v8445_v45, %v10150_v52  ;;  %v12546_v28 = vld [vmem:[#allocation59_spill] sm:$0xff]  ;;  %v2021_v7 = vpop.permute.xlu1 %2020 }
 0x643   : > { %7486 = vmatprep.subr.msk.mxu1 %vm1038_vm4, %v10012_v29 }
 0x644   : > { %v8447_v62 = vpop.eup %8446  ;;  %2679 = vrot.lane.b32.xlu1 %v9798_v21, %s9207_s12  ;;  %2675 = vrot.lane.b32.xlu0 %v9791_v48, %s9207_s12 }
 0x645   : > { %7447 = vmatmul.mubr.msk.f32.gmra.mxu1 %vm248_vm1, %v1518_v46  ;;  %v1520_v3 = vmul.f32 %v8447_v62, %v10154_v24 }
 0x646   : > { %7487 = vmatpush3.xpose.msk.msra.mxu1 %vm1038_vm4, %v10012_v29  ;;  %7449 = vmatprep.mubr.msk.f32.mxu1 %vm248_vm1, %v1519_v58  ;;  %v12548_v29 = vld [vmem:[#allocation64_spill] sm:$0xff] }
 0x647   : > { %7488 = vmatprep.subr.msk.mxu1 %vm1038_vm4, %v12546_v28 }
 0x648   : > { %v8449_v59 = vpop.eup %8448  ;;  %2502 = vrot.lane.b32.xlu1 %v9787_v44, %s9206_s0  ;;  %2673 = vrot.lane.b32.xlu0 %v9804_v12, %s9207_s12 }
 0x649   : > { %v8451_v52 = vpop.eup %8450  ;;  %7450 = vmatmul.mubr.msk.f32.gmra.mxu1 %vm248_vm1, %v1520_v3  ;;  %v1522_v24 = vmul.f32 %v8449_v59, %v12547_v4 }
 0x64a   : > { %7489 = vmatpush3.xpose.msk.msra.mxu1 %vm1038_vm4, %v12546_v28  ;;  %7496 = vmatprep.mubr.msk.f32.mxu1 %vm1038_vm4, %v12548_v29  ;;  %v1521_v5 = vmul.f32 %v8451_v52, %v12549_v9 }
 0x64b   : > { %7490 = vmatprep.subr.msk.mxu1 %vm1038_vm4, %v12550_v8 }
 0x64c   : > { %2854 = vrot.lane.b32.xlu1 %v9810_v55, %s9207_s12  ;;  %7468 = vmatprep.mubr.msk.f32.mxu0 %vm248_vm1, %v1521_v5 }
 0x64d   : > { %2671 = vrot.lane.b32.xlu0 %v9768_v30, %s9207_s12  ;;  %7469 = vmatmul.mubr.msk.f32.vlgmr.msra.gmra.mxu0 %vm248_vm1, %v1522_v24 }
 0x64e   : > { %7491 = vmatpush3.xpose.msk.msra.mxu1 %vm1038_vm4, %v12550_v8  ;;  %7509 = vmatpush3.xpose.msk.msra.mxu0 %vm1038_vm4, %v12551_v35 }
 0x64f   : > { %7492 = vmatprep.subr.msk.mxu1 %vm1038_vm4, %v12552_v6  ;;  %7510 = vmatprep.subr.msk.mxu0 %vm1038_vm4, %v12553_v0 }
 0x650   : > { %2852 = vrot.lane.b32.xlu1 %v9818_v33, %s9207_s12 }
 0x651   : > { %2655 = vrot.lane.b32.xlu0 %v12554_v16, %s9208_s16 }
 0x652   : > { %7493 = vmatpush3.xpose.msk.msra.mxu1 %vm1038_vm4, %v12552_v6  ;;  %7511 = vmatpush3.xpose.msk.msra.mxu0 %vm1038_vm4, %v12553_v0 }
 0x653   : > { %7494 = vmatprep.subr.msk.mxu1 %vm1038_vm4, %v12555_v32  ;;  %7512 = vmatprep.subr.msk.mxu0 %vm1038_vm4, %v12556_v2 }
 0x654   : > { %2850 = vrot.lane.b32.xlu1 %v9826_v22, %s9207_s12 }
 0x656   : > { %7495 = vmatpush3.xpose.msk.msra.mxu1 %vm1038_vm4, %v12555_v32  ;;  %7513 = vmatpush3.xpose.msk.msra.mxu0 %vm1038_vm4, %v12556_v2 }
 0x657   : > { %7514 = vmatprep.subr.msk.mxu0 %vm1038_vm4, %v12557_v19 }
 0x658   : > { %2848 = vrot.lane.b32.xlu1 %v9832_v14, %s9207_s12 }
 0x659   : > { %7497 = vmatmul.mubr.msk.f32.vlgmr.msra.gmra.mxu1 %vm1038_vm4, %v12558_v37 }
 0x65a   : > { %7515 = vmatpush3.xpose.msk.msra.mxu0 %vm1038_vm4, %v12557_v19 }
 0x65b   : > { %7516 = vmatprep.subr.msk.mxu0 %vm1038_vm4, %v10238_v10 }
 0x65c   : > { %2657 = vrot.lane.b32.xlu1 %v12559_v57, %s9208_s16 }
 0x65e   : > { %7517 = vmatpush3.xpose.msk.msra.mxu0 %vm1038_vm4, %v10238_v10 }
 0x65f   : > { %7518 = vmatprep.subr.msk.mxu0 %vm1038_vm4, %v10232_v53 }
 0x662   : > { %7519 = vmatpush3.xpose.msk.msra.mxu0 %vm1038_vm4, %v10232_v53 }
 0x663   : > { %7520 = vmatprep.subr.msk.mxu0 %vm1038_vm4, %v2023_v23 }
 0x666   : > { %7521 = vmatpush3.xpose.msk.msra.mxu0 %vm1038_vm4, %v2023_v23 }
 0x667   : > { %7522 = vmatprep.subr.msk.mxu0 %vm1038_vm4, %v2021_v7 }
 0x66a   : > { %7523 = vmatpush3.xpose.msk.msra.mxu0 %vm1038_vm4, %v2021_v7 }
 0x66f   : > { %v1481_v13 = vpop.xlane.xlu0 %1480 }
 0x670   : > { %8452 = vrcp.f32 %v1481_v13  ;;  %v1484_v45 = vpop.xlane.xlu1 %1483 }
 0x671   : > { %8454 = vrcp.f32 %v1484_v45 }
 0x673   : > { %v1490_v10 = vpop.xlane.xlu0 %1489 }
 0x674   : > { %8456 = vrcp.f32 %v1490_v10  ;;  %v1487_v46 = vpop.xlane.xlu1 %1486 }
 0x675   : > { %8458 = vrcp.f32 %v1487_v46 }
 0x677   : > { %v1493_v62 = vpop.xlane.xlu0 %1492 }
 0x678   : > { %8460 = vrcp.f32 %v1493_v62  ;;  %v1496_v53 = vpop.xlane.xlu1 %1495 }
 0x679   : > { %8462 = vrcp.f32 %v1496_v53 }
 0x67b   : > { %v2005_v58 = vpop.permute.xlu0 %2004 }
 0x67c   : > { %v2007_v3 = vpop.permute.xlu1 %2006 }
 0x67d   : > { %v8453_v28 = vpop.eup %8452 }
 0x67e   : > { %v8455_v59 = vpop.eup %8454  ;;  %v1523_v52 = vmul.f32 %v8453_v28, %v10178_v42 }
 0x67f   : > { %v1840_v4 = vpop.permute.xlu0 %1839  ;;  %v1524_v24 = vmul.f32 %v8455_v59, %v10180_v63 }
 0x680   : > { %v1842_v29 = vpop.permute.xlu1 %1841  ;;  %7471 = vmatprep.mubr.msk.f32.mxu0 %vm248_vm1, %v1523_v52  ;;  %7499 = vmatprep.mubr.msk.f32.mxu1 %vm1038_vm4, %v1840_v4 }
 0x681   : > { %v8457_v9 = vpop.eup %8456  ;;  %7472 = vmatmul.mubr.msk.f32.gmra.mxu0 %vm248_vm1, %v1524_v24  ;;  %7500 = vmatmul.mubr.msk.f32.gmra.mxu1 %vm1038_vm4, %v1842_v29 }
 0x682   : > { %v8459_v5 = vpop.eup %8458  ;;  %v1526_v8 = vmul.f32 %v8457_v9, %v10184_v60 }
 0x683   : > { %v1844_v35 = vpop.permute.xlu0 %1843  ;;  %v1525_v6 = vmul.f32 %v8459_v5, %v10188_v1 }
 0x684   : > { %v1846_v42 = vpop.permute.xlu1 %1845  ;;  %7502 = vmatprep.mubr.msk.f32.mxu1 %vm1038_vm4, %v1844_v35 }
 0x685   : > { %v8461_v63 = vpop.eup %8460  ;;  %7474 = vmatprep.mubr.msk.f32.mxu0 %vm248_vm1, %v1525_v6  ;;  %7503 = vmatmul.mubr.msk.f32.gmra.mxu1 %vm1038_vm4, %v1846_v42 }
 0x686   : > { %v8463_v0 = vpop.eup %8462  ;;  %7475 = vmatmul.mubr.msk.f32.gmra.mxu0 %vm248_vm1, %v1526_v8  ;;  %v1527_v32 = vmul.f32 %v8461_v63, %v10192_v31 }
 0x687   : > { %v1848_v2 = vpop.permute.xlu0 %1847  ;;  %v1528_v19 = vmul.f32 %v8463_v0, %v10196_v27 }
 0x688   : > { %v1850_v60 = vpop.permute.xlu1 %1849  ;;  %7477 = vmatprep.mubr.msk.f32.mxu0 %vm248_vm1, %v1527_v32  ;;  %7505 = vmatprep.mubr.msk.f32.mxu1 %vm1038_vm4, %v1848_v2 }
 0x689   : > { %7506 = vmatmul.mubr.msk.f32.gmra.mxu1 %vm1038_vm4, %v1850_v60 }
 0x68a   : > { %7478 = vmatmul.mubr.msk.f32.gmra.mxu0 %vm248_vm1, %v1528_v19 }
 0x68b   : > { %7524 = vmatprep.mubr.msk.f32.mxu0 %vm1038_vm4, %v2005_v58  ;;  %v2009_v1 = vpop.permute.xlu0 %2008 }
 0x68c   : > { %v2011_v37 = vpop.permute.xlu1 %2010 }
 0x68e   : > { %7525 = vmatmul.mubr.msk.f32.vlgmr.msra.gmra.mxu0 %vm1038_vm4, %v2007_v3 }
 0x68f   : > { %7527 = vmatprep.mubr.msk.f32.mxu0 %vm1038_vm4, %v2009_v1  ;;  %v2013_v31 = vpop.permute.xlu0 %2012 }
 0x690   : > { %v2015_v23 = vpop.permute.xlu1 %2014 }
 0x692   : > { %7528 = vmatmul.mubr.msk.f32.gmra.mxu0 %vm1038_vm4, %v2011_v37 }
 0x693   : > { %7530 = vmatprep.mubr.msk.f32.mxu0 %vm1038_vm4, %v2013_v31  ;;  %v2017_v27 = vpop.permute.xlu0 %2016 }
 0x694   : > { %v2019_v7 = vpop.permute.xlu1 %2018 }
 0x696   : > { %7531 = vmatmul.mubr.msk.f32.gmra.mxu0 %vm1038_vm4, %v2015_v23  ;;  %v975_v23 = vld [vmem:[%s10028_s13 + $0x48] sm:$0xff] }
 0x697   : > { %7533 = vmatprep.mubr.msk.f32.mxu0 %vm1038_vm4, %v2017_v27  ;;  %v2364_v13 = vpop.permute.xlu0 %2363 }
 0x698   : > { %v2362_v45 = vpop.permute.xlu1 %2361  ;;  %7536 = vmatprep.subr.mxu1 %v2364_v13 }
 0x699   : > { %7537 = vmatpush3.msra.mxu1 %v2364_v13 }
 0x69a   : > { %7534 = vmatmul.mubr.msk.f32.gmra.mxu0 %vm1038_vm4, %v2019_v7  ;;  %7538 = vmatprep.subr.mxu1 %v2362_v45  ;;  %v974_v7 = vld [vmem:[%s10028_s13 + $0x40] sm:$0xff] }
 0x69b   : > { %v2360_v10 = vpop.permute.xlu0 %2359  ;;  %7539 = vmatpush3.msra.mxu1 %v2362_v45 }
 0x69c   : > { %v2358_v46 = vpop.permute.xlu1 %2357  ;;  %7540 = vmatprep.subr.mxu1 %v2360_v10 }
 0x69d   : > { %7541 = vmatpush3.msra.mxu1 %v2360_v10 }
 0x69e   : > { %7542 = vmatprep.subr.mxu1 %v2358_v46 }
 0x69f   : > { %v2356_v62 = vpop.permute.xlu0 %2355  ;;  %7543 = vmatpush3.msra.mxu1 %v2358_v46 }
 0x6a0   : > { %v2354_v53 = vpop.permute.xlu1 %2353  ;;  %7544 = vmatprep.subr.mxu1 %v2356_v62 }
 0x6a1   : > { %7545 = vmatpush3.msra.mxu1 %v2356_v62 }
 0x6a2   : > { %7546 = vmatprep.subr.mxu1 %v2354_v53 }
 0x6a3   : > { %v2350_v58 = vpop.permute.xlu0 %2349  ;;  %7547 = vmatpush3.msra.mxu1 %v2354_v53 }
 0x6a4   : > { %v2352_v3 = vpop.permute.xlu1 %2351 }
 0x6a5   : > { %7548 = vmatprep.subr.mxu1 %v2352_v3 }
 0x6a6   : > { %7549 = vmatpush3.msra.mxu1 %v2352_v3  ;;  %v977_v3 = vld [vmem:[%s10028_s13 + $0x58] sm:$0xff] }
 0x6a7   : > { %7550 = vmatprep.subr.mxu1 %v2350_v58  ;;  %v10400_v28 = vpop.permute.xlu0 %2685 }
 0x6a8   : > { %7551 = vmatpush3.msra.mxu1 %v2350_v58  ;;  %v2517_v59 = vpop.permute.xlu1 %2516 }
 0x6a9   : > { %7564 = vmatprep.subr.mxu0 %v2517_v59  ;;  %7592 = vmatprep.subr.msk.mxu1 %vm1038_vm4, %v10400_v28 }
 0x6aa   : > { %7565 = vmatpush3.msra.mxu0 %v2517_v59 }
 0x6ab   : > { %v2509_v24 = vpop.permute.xlu0 %2508 }
 0x6ac   : > { %v2515_v52 = vpop.permute.xlu1 %2514 }
 0x6ad   : > { %7566 = vmatprep.subr.mxu0 %v2515_v52 }
 0x6ae   : > { %7567 = vmatpush3.msra.mxu0 %v2515_v52 }
 0x6af   : > { %v2507_v9 = vpop.permute.xlu0 %2506 }
 0x6b0   : > { %v2513_v4 = vpop.permute.xlu1 %2512 }
 0x6b1   : > { %7568 = vmatprep.subr.mxu0 %v2513_v4 }
 0x6b2   : > { %7569 = vmatpush3.msra.mxu0 %v2513_v4  ;;  %v976_v4 = vld [vmem:[%s10028_s13 + $0x50] sm:$0xff] }
 0x6b3   : > { %v2505_v35 = vpop.permute.xlu0 %2504 }
 0x6b4   : > { %v10404_v29 = vpop.permute.xlu1 %2683 }
 0x6b8   : > { %v2511_v5 = vpop.permute.xlu1 %2510 }
 0x6b9   : > { %7570 = vmatprep.subr.mxu0 %v2511_v5 }
 0x6ba   : > { %7571 = vmatpush3.msra.mxu0 %v2511_v5 }
 0x6bb   : > { %7572 = vmatprep.subr.mxu0 %v2509_v24 }
 0x6bc   : > { %7573 = vmatpush3.msra.mxu0 %v2509_v24  ;;  %v10406_v8 = vpop.permute.xlu1 %2681 }
 0x6bd   : > { %7574 = vmatprep.subr.mxu0 %v2507_v9 }
 0x6be   : > { %7575 = vmatpush3.msra.mxu0 %v2507_v9 }
 0x6bf   : > { %7576 = vmatprep.subr.mxu0 %v2505_v35 }
 0x6c0   : > { %7577 = vmatpush3.msra.mxu0 %v2505_v35  ;;  %v10408_v6 = vpop.permute.xlu1 %2679  ;;  %v979_v35 = vld [vmem:[%s10028_s13 + $0x68] sm:$0xff] }
 0x6c4   : > { %v2503_v42 = vpop.permute.xlu1 %2502 }
 0x6c5   : > { %7578 = vmatprep.subr.mxu0 %v2503_v42 }
 0x6c6   : > { %7579 = vmatpush3.msra.mxu0 %v2503_v42 }
 0x6c8   : > { %v10410_v63 = vpop.permute.xlu1 %2854 }
 0x6c9   : > { %12560 = vst [vmem:[#allocation59_spill] sm:$0xff] %v10410_v63  ;;  %7620 = vmatprep.subr.msk.mxu0 %vm1038_vm4, %v10410_v63 }
 0x6f9   : > { %v10414_v0 = vpop.f32.mrf.mxu1 }
 0x6fa   : > { %12561 = vst [vmem:[#allocation65_spill] sm:$0xff] %v10414_v0 }
 0x6fb   : > { %v10416_v32 = vpop.f32.mrf.mxu1 }
 0x6fc   : > { %12562 = vst [vmem:[#allocation64_spill] sm:$0xff] %v10416_v32  ;;  %v980_v32 = vld [vmem:[%s10028_s13 + $0x70] sm:$0xff] }
 0x701   : > { %v10418_v2 = vpop.f32.mrf.mxu1 }
 0x702   : > { %12563 = vst [vmem:[#allocation66_spill] sm:$0xff] %v10418_v2  ;;  %v981_v2 = vld [vmem:[%s10028_s13 + $0x78] sm:$0xff] }
 0x703   : > { %v10420_v19 = vpop.f32.mrf.mxu1 }
 0x704   : > { %12564 = vst [vmem:[#allocation60_spill] sm:$0xff] %v10420_v19 }
 0x705   : > { %v10422_v60 = vpop.f32.mrf.mxu1 }
 0x706   : > { %12565 = vst [vmem:[#allocation55_spill] sm:$0xff] %v10422_v60 }
 0x707   : > { %v10424_v1 = vpop.f32.mrf.mxu1 }
 0x708   : > { %12566 = vst [vmem:[#allocation61_spill] sm:$0xff] %v10424_v1 }
 0x709   : > { %v10426_v37 = vpop.f32.mrf.mxu1 }
 0x70a   : > { %12567 = vst [vmem:[#allocation63_spill] sm:$0xff] %v10426_v37 }
 0x70b   : > { %v10428_v31 = vpop.f32.mrf.mxu1 }
 0x70c   : > { %12568 = vst [vmem:[#allocation62_spill] sm:$0xff] %v10428_v31 }
 0x70d   : > { %v10440_v53 = vpop.f32.mrf.mxu0 }
 0x70e   : > { %12569 = vst [vmem:[#allocation56_spill] sm:$0xff] %v10440_v53 }
 0x70f   : > { %v10442_v58 = vpop.f32.mrf.mxu0 }
 0x710   : > { %12570 = vst [vmem:[#allocation57_spill] sm:$0xff] %v10442_v58 }
 0x719   : > { %v7498_v27 = vpop.f32.mrf.mxu1 }
 0x71a   : > { %v10432_v13 = vadd.f32 %v7498_v27, %v975_v23 }
 0x71b   : > { %v1965_v45 = vpop.f32.mrf.mxu1 }
 0x71c   : > { %v10434_v10 = vadd.f32 %v1965_v45, %v974_v7  ;;  %v2176_v46 = vsel %vm248_vm1, %v10432_v13, -inf }
 0x71d   : > { %2177 = vmax.xlane.f32.xlu1 %v2176_v46  ;;  %v978_v46 = vld [vmem:[%s10028_s13 + $0x60] sm:$0xff] }
 0x71e   : > { %v2173_v62 = vsel %vm248_vm1, %v10434_v10, -inf }
 0x71f   : > { %2174 = vmax.xlane.f32.xlu0 %v2173_v62 }
 0x741   : > { %v10445_v59 = vpop.f32.mrf.mxu0  ;;  %v7501_v52 = vpop.f32.mrf.mxu1 }
 0x742   : > { %12571 = vst [vmem:[#allocation58_spill] sm:$0xff] %v10445_v59  ;;  %v10448_v24 = vadd.f32 %v7501_v52, %v977_v3 }
 0x743   : > { %v10450_v9 = vpop.f32.mrf.mxu0  ;;  %v1975_v5 = vpop.f32.mrf.mxu1 }
 0x744   : > { %12572 = vst [vmem:[#allocation67_spill] sm:$0xff] %v10450_v9  ;;  %v10453_v42 = vadd.f32 %v1975_v5, %v976_v4  ;;  %v2182_v27 = vsel %vm248_vm1, %v10448_v24, -inf }
 0x745   : > { %2183 = vmax.xlane.f32.xlu1 %v2182_v27  ;;  %v7504_v45 = vpop.f32.mrf.mxu1 }
 0x746   : > { %v10458_v62 = vpop.f32.mrf.mxu0  ;;  %v10460_v60 = vadd.f32 %v7504_v45, %v979_v35  ;;  %v2179_v52 = vsel %vm248_vm1, %v10453_v42, -inf }
 0x747   : > { %12573 = vst [vmem:[#allocation68_spill] sm:$0xff] %v10458_v62  ;;  %2180 = vmax.xlane.f32.xlu0 %v2179_v52  ;;  %v1985_v1 = vpop.f32.mrf.mxu1 }
 0x748   : > { %v10465_v19 = vpop.f32.mrf.mxu0  ;;  %v10467_v5 = vadd.f32 %v1985_v1, %v978_v46  ;;  %v2188_v0 = vsel %vm248_vm1, %v10460_v60, -inf }
 0x749   : > { %12574 = vst [vmem:[#allocation69_spill] sm:$0xff] %v10465_v19  ;;  %2189 = vmax.xlane.f32.xlu1 %v2188_v0  ;;  %v7507_v27 = vpop.f32.mrf.mxu1 }
 0x74a   : > { %v10472_v59 = vpop.f32.mrf.mxu0  ;;  %v10474_v45 = vadd.f32 %v7507_v27, %v981_v2  ;;  %v2185_v62 = vsel %vm248_vm1, %v10467_v5, -inf }
 0x74b   : > { %12575 = vst [vmem:[#allocation70_spill] sm:$0xff] %v10472_v59  ;;  %2186 = vmax.xlane.f32.xlu0 %v2185_v62  ;;  %v1995_v52 = vpop.f32.mrf.mxu1 }
 0x74c   : > { %v10478_v9 = vpop.f32.mrf.mxu0  ;;  %v10480_v19 = vadd.f32 %v1995_v52, %v980_v32  ;;  %v2194_v1 = vsel %vm248_vm1, %v10474_v45, -inf }
 0x74d   : > { %12576 = vst [vmem:[#allocation71_spill] sm:$0xff] %v10478_v9  ;;  %2195 = vmax.xlane.f32.xlu1 %v2194_v1 }
 0x74e   : > { %v7526_v0 = vpop.f32.mrf.mxu0  ;;  %v2191_v53 = vsel %vm248_vm1, %v10480_v19, -inf }
 0x74f   : > { %v10486_v59 = vadd.f32 %v7526_v0, %v975_v23  ;;  %2192 = vmax.xlane.f32.xlu0 %v2191_v53 }
 0x750   : > { %v2134_v27 = vpop.f32.mrf.mxu0 }
 0x751   : > { %v10488_v58 = vadd.f32 %v2134_v27, %v974_v7  ;;  %v2200_v9 = vsel %vm248_vm1, %v10486_v59, -inf }
 0x752   : > { %v7529_v62 = vpop.f32.mrf.mxu0 }
 0x753   : > { %v10492_v52 = vadd.f32 %v7529_v62, %v977_v3  ;;  %2201 = vmax.xlane.f32.xlu0 %v2200_v9  ;;  %v2197_v53 = vsel %vm248_vm1, %v10488_v58, -inf }
 0x754   : > { %v2144_v37 = vpop.f32.mrf.mxu0 }
 0x755   : > { %v2206_v1 = vsel %vm248_vm1, %v10492_v52, -inf  ;;  %v10496_v31 = vadd.f32 %v2144_v37, %v976_v4 }
 0x756   : > { %2207 = vmax.xlane.f32.xlu1 %v2206_v1  ;;  %v7532_v23 = vpop.f32.mrf.mxu0 }
 0x757   : > { %v10500_v7 = vadd.f32 %v7532_v23, %v979_v35  ;;  %2198 = vmax.xlane.f32.xlu0 %v2197_v53  ;;  %v2203_v37 = vsel %vm248_vm1, %v10496_v31, -inf  ;;  %v10524_v53 = vpop.permute.xlu1 %2852 }
 0x758   : > { %v2154_v0 = vpop.f32.mrf.mxu0  ;;  %12577 = vst [vmem:[#allocation72_spill] sm:$0xff] %v10524_v53 }
 0x759   : > { %v2212_v3 = vsel %vm248_vm1, %v10500_v7, -inf  ;;  %v10504_v27 = vadd.f32 %v2154_v0, %v978_v46 }
 0x75a   : > { %2213 = vmax.xlane.f32.xlu1 %v2212_v3  ;;  %v7535_v9 = vpop.f32.mrf.mxu0 }
 0x75b   : > { %v10508_v4 = vadd.f32 %v7535_v9, %v981_v2  ;;  %2204 = vmax.xlane.f32.xlu0 %v2203_v37  ;;  %v2209_v23 = vsel %vm248_vm1, %v10504_v27, -inf  ;;  %v10522_v2 = vpop.permute.xlu0 %2677  ;;  %v10528_v0 = vpop.permute.xlu1 %2850 }
 0x75c   : > { %v2164_v62 = vpop.f32.mrf.mxu0  ;;  %12578 = vst [vmem:[#allocation73_spill] sm:$0xff] %v10528_v0 }
 0x75d   : > { %v2218_v35 = vsel %vm248_vm1, %v10508_v4, -inf  ;;  %v10512_v1 = vadd.f32 %v2164_v62, %v980_v32 }
 0x75e   : > { %2219 = vmax.xlane.f32.xlu1 %v2218_v35 }
 0x75f   : > { %2210 = vmax.xlane.f32.xlu0 %v2209_v23  ;;  %v2215_v46 = vsel %vm248_vm1, %v10512_v1, -inf  ;;  %v10526_v32 = vpop.permute.xlu0 %2675  ;;  %v10532_v9 = vpop.permute.xlu1 %2848 }
 0x760   : > { %12579 = vst [vmem:[#allocation74_spill] sm:$0xff] %v10532_v9 }
 0x763   : > { %2216 = vmax.xlane.f32.xlu0 %v2215_v46  ;;  %v10530_v3 = vpop.permute.xlu0 %2673  ;;  %v10536_v62 = vpop.permute.xlu1 %2657 }
 0x764   : > { %12580 = vst [vmem:[#allocation75_spill] sm:$0xff] %v10536_v62 }
 0x767   : > { %v10534_v37 = vpop.permute.xlu0 %2671 }
 0x76b   : > { %v10538_v35 = vpop.permute.xlu0 %2655 }
 0x76c   : > { %12581 = vst [vmem:[#allocation76_spill] sm:$0xff] %v10538_v35 }
 0x76f   : > { %2844 = vrot.lane.b32.xlu1 %v9838_v15, %s9207_s12 }
 0x779   : > { %2846 = vrot.lane.b32.xlu0 %v9816_v39, %s9207_s12 }
 0x7a6   : > { %v2178_v23 = vpop.xlane.xlu1 %2177 }
 0x7a7   : > { %v2222_v46 = vsub.f32 %v10432_v13, %v2178_v23 }
 0x7a8   : > { %v2175_v57 = vpop.xlane.xlu0 %2174 }
 0x7a9   : > { %v2239_v16 = vmul.f32 1.442695, %v2222_v46  ;;  %v2221_v53 = vsub.f32 %v10434_v10, %v2175_v57 }
 0x7ab   : > { %8464 = vpow2.f32 %v2239_v16  ;;  %v2237_v63 = vmul.f32 1.442695, %v2221_v53 }
 0x7ad   : > { %8466 = vpow2.f32 %v2237_v63 }
 0x7b8   : > { %v10542_v0 = vpop.eup %8464 }
 0x7b9   : > { %v2272_v9 = vsel %vm248_vm1, %v10542_v0, 0.0 }
 0x7ba   : > { %v10546_v14 = vpop.eup %8466  ;;  %2273 = vadd.xlane.f32.xlu1 %v2272_v9 }
 0x7bb   : > { %v2269_v62 = vsel %vm248_vm1, %v10546_v14, 0.0 }
 0x7bc   : > { %2270 = vadd.xlane.f32.xlu0 %v2269_v62 }
 0x7ce   : > { %v2184_v13 = vpop.xlane.xlu1 %2183 }
 0x7cf   : > { %v2224_v23 = vsub.f32 %v10448_v24, %v2184_v13 }
 0x7d0   : > { %v2181_v46 = vpop.xlane.xlu0 %2180 }
 0x7d1   : > { %v2243_v57 = vmul.f32 1.442695, %v2224_v23  ;;  %v2223_v16 = vsub.f32 %v10453_v42, %v2181_v46 }
 0x7d2   : > { %v2190_v63 = vpop.xlane.xlu1 %2189 }
 0x7d3   : > { %8468 = vpow2.f32 %v2243_v57  ;;  %v2241_v10 = vmul.f32 1.442695, %v2223_v16  ;;  %v2226_v53 = vsub.f32 %v10460_v60, %v2190_v63 }
 0x7d4   : > { %v2187_v35 = vpop.xlane.xlu0 %2186 }
 0x7d5   : > { %8470 = vpow2.f32 %v2241_v10  ;;  %v2247_v15 = vmul.f32 1.442695, %v2226_v53  ;;  %v2225_v9 = vsub.f32 %v10467_v5, %v2187_v35 }
 0x7d6   : > { %v2196_v22 = vpop.xlane.xlu1 %2195 }
 0x7d7   : > { %v2245_v39 = vmul.f32 1.442695, %v2225_v9  ;;  %v2228_v62 = vsub.f32 %v10474_v45, %v2196_v22  ;;  %8472 = vpow2.f32 %v2247_v15 }
 0x7d8   : > { %v2193_v24 = vpop.xlane.xlu0 %2192 }
 0x7d9   : > { %8474 = vpow2.f32 %v2245_v39  ;;  %v2251_v13 = vmul.f32 1.442695, %v2228_v62  ;;  %v2227_v42 = vsub.f32 %v10480_v19, %v2193_v24 }
 0x7db   : > { %v2249_v23 = vmul.f32 1.442695, %v2227_v42  ;;  %8476 = vpow2.f32 %v2251_v13 }
 0x7dc   : > { %v2202_v46 = vpop.xlane.xlu0 %2201 }
 0x7dd   : > { %8478 = vpow2.f32 %v2249_v23  ;;  %v2230_v60 = vsub.f32 %v10486_v59, %v2202_v46 }
 0x7df   : > { %v2255_v57 = vmul.f32 1.442695, %v2230_v60  ;;  %v2208_v60 = vpop.xlane.xlu1 %2207 }
 0x7e0   : > { %v10557_v16 = vpop.eup %8468  ;;  %v2199_v5 = vpop.xlane.xlu0 %2198 }
 0x7e1   : > { %8480 = vpow2.f32 %v2255_v57  ;;  %v2229_v35 = vsub.f32 %v10488_v58, %v2199_v5  ;;  %v2278_v22 = vsel %vm248_vm1, %v10557_v16, 0.0 }
 0x7e2   : > { %v10562_v39 = vpop.eup %8470  ;;  %2279 = vadd.xlane.f32.xlu0 %v2278_v22  ;;  %v2232_v22 = vsub.f32 %v10492_v52, %v2208_v60 }
 0x7e3   : > { %v2253_v15 = vmul.f32 1.442695, %v2229_v35  ;;  %v2275_v59 = vsel %vm248_vm1, %v10562_v39, 0.0  ;;  %v2214_v35 = vpop.xlane.xlu1 %2213 }
 0x7e4   : > { %v10564_v19 = vpop.eup %8472  ;;  %v2205_v46 = vpop.xlane.xlu0 %2204 }
 0x7e5   : > { %8482 = vpow2.f32 %v2253_v15  ;;  %v2284_v10 = vsel %vm248_vm1, %v10564_v19, 0.0  ;;  %v2231_v5 = vsub.f32 %v10496_v31, %v2205_v46  ;;  %v2234_v15 = vsub.f32 %v10500_v7, %v2214_v35 }
 0x7e6   : > { %v10568_v45 = vpop.eup %8474  ;;  %2276 = vadd.xlane.f32.xlu0 %v2275_v59 }
 0x7e7   : > { %v2281_v63 = vsel %vm248_vm1, %v10568_v45, 0.0  ;;  %v2257_v59 = vmul.f32 1.442695, %v2231_v5 }
 0x7e8   : > { %2282 = vadd.xlane.f32.xlu1 %v2281_v63  ;;  %v10572_v58 = vpop.eup %8476  ;;  %v2211_v57 = vpop.xlane.xlu0 %2210 }
 0x7e9   : > { %v2290_v62 = vsel %vm248_vm1, %v10572_v58, 0.0  ;;  %8484 = vpow2.f32 %v2257_v59 }
 0x7ea   : > { %v10576_v53 = vpop.eup %8478  ;;  %2285 = vadd.xlane.f32.xlu0 %v2284_v10  ;;  %v2259_v10 = vmul.f32 1.442695, %v2232_v22 }
 0x7eb   : > { %v2287_v9 = vsel %vm248_vm1, %v10576_v53, 0.0 }
 0x7ec   : > { %2288 = vadd.xlane.f32.xlu1 %v2287_v9  ;;  %v2217_v63 = vpop.xlane.xlu0 %2216  ;;  %v2233_v9 = vsub.f32 %v10504_v27, %v2211_v57  ;;  %8486 = vpow2.f32 %v2259_v10 }
 0x7ee   : > { %v10582_v24 = vpop.eup %8480  ;;  %2291 = vadd.xlane.f32.xlu0 %v2290_v62  ;;  %v2220_v62 = vpop.xlane.xlu1 %2219 }
 0x7ef   : > { %12582 = vst [vmem:[#allocation77_spill] sm:$0xff] %v10582_v24  ;;  %v2296_v13 = vsel %vm248_vm1, %v10582_v24, 0.0  ;;  %v2236_v24 = vsub.f32 %v10508_v4, %v2220_v62 }
 0x7f0   : > { %v10626_v59 = vpop.permute.xlu0 %2846 }
 0x7f1   : > { %v2267_v46 = vmul.f32 1.442695, %v2236_v24 }
 0x7f2   : > { %v10586_v42 = vpop.eup %8482  ;;  %2297 = vadd.xlane.f32.xlu0 %v2296_v13  ;;  %v2263_v13 = vmul.f32 1.442695, %v2234_v15  ;;  %v10624_v15 = vpop.permute.xlu1 %2844 }
 0x7f3   : > { %12583 = vst [vmem:[#allocation78_spill] sm:$0xff] %v10586_v42  ;;  %v2293_v23 = vsel %vm248_vm1, %v10586_v42, 0.0  ;;  %v2261_v42 = vmul.f32 1.442695, %v2233_v9 }
 0x7f4   : > { %2294 = vadd.xlane.f32.xlu1 %v2293_v23  ;;  %v2235_v23 = vsub.f32 %v10512_v1, %v2217_v63  ;;  %8488 = vpow2.f32 %v2263_v13 }
 0x7f5   : > { %8490 = vpow2.f32 %v2261_v42 }
 0x7f6   : > { %v2265_v31 = vmul.f32 1.442695, %v2235_v23  ;;  %v10600_v52 = vpop.eup %8484 }
 0x7f7   : > { %v2299_v27 = vsel %vm248_vm1, %v10600_v52, 0.0 }
 0x7f8   : > { %8492 = vpow2.f32 %v2265_v31 }
 0x7f9   : > { %8494 = vpow2.f32 %v2267_v46  ;;  %v10602_v7 = vpop.eup %8486 }
 0x7fa   : > { %v2302_v4 = vsel %vm248_vm1, %v10602_v7, 0.0 }
 0x801   : > { %v10606_v60 = vpop.eup %8488 }
 0x802   : > { %v10610_v1 = vpop.eup %8490  ;;  %v2308_v24 = vsel %vm248_vm1, %v10606_v60, 0.0 }
 0x803   : > { %v2305_v57 = vsel %vm248_vm1, %v10610_v1, 0.0 }
 0x805   : > { %2840 = vrot.lane.b32.xlu1 %v9787_v44, %s9207_s12  ;;  %v10614_v42 = vpop.eup %8492 }
 0x806   : > { %v10618_v5 = vpop.eup %8494  ;;  %v2311_v35 = vsel %vm248_vm1, %v10614_v42, 0.0 }
 0x807   : > { %v2314_v22 = vsel %vm248_vm1, %v10618_v5, 0.0 }
 0x808   : > { %2842 = vrot.lane.b32.xlu0 %v9824_v61, %s9207_s12  ;;  %s9217_s12 = smov (%p12028_p9), 64  }
 0x827   : > { %2300 = vadd.xlane.f32.xlu0 %v2299_v27 }
 0x829   : > { %2303 = vadd.xlane.f32.xlu1 %v2302_v4  ;;  %v12587_v4 = vld [vmem:[#allocation52_spill] sm:$0xff] }
 0x82b   : > { %2309 = vadd.xlane.f32.xlu0 %v2308_v24 }
 0x82d   : > { %2306 = vadd.xlane.f32.xlu1 %v2305_v57 }
 0x82f   : > { %2312 = vadd.xlane.f32.xlu0 %v2311_v35 }
 0x831   : > { %2315 = vadd.xlane.f32.xlu1 %v2314_v22 }
 0x842   : > { %2826 = vrot.lane.b32.xlu1 %v9970_v56, %s9208_s16 }
 0x843   : > { %v2274_v63 = vpop.xlane.xlu1 %2273 }
 0x844   : > { %8496 = vrcp.f32 %v2274_v63 }
 0x845   : > { %v2271_v10 = vpop.xlane.xlu0 %2270  ;;  %2824 = vrot.lane.b32.xlu0 %v9796_v51, %s9208_s16 }
 0x846   : > { %8498 = vrcp.f32 %v2271_v10  ;;  %2661 = vrot.lane.b32.xlu1 %v9940_v36, %s9208_s16 }
 0x849   : > { %2659 = vrot.lane.b32.xlu0 %v9931_v17, %s9208_s16 }
 0x84a   : > { %2665 = vrot.lane.b32.xlu1 %v9952_v41, %s9208_s16 }
 0x84d   : > { %2663 = vrot.lane.b32.xlu0 %v9943_v25, %s9208_s16 }
 0x84e   : > { %2669 = vrot.lane.b32.xlu1 %v9964_v54, %s9208_s16 }
 0x851   : > { %2667 = vrot.lane.b32.xlu0 %v9955_v47, %s9208_s16  ;;  %v8497_v9 = vpop.eup %8496 }
 0x852   : > { %2830 = vrot.lane.b32.xlu1 %v9980_v20, %s9208_s16  ;;  %v2334_v23 = vmul.f32 %v8497_v9, %v10542_v0 }
 0x853   : > { %v8499_v62 = vpop.eup %8498 }
 0x854   : > { %v2333_v13 = vmul.f32 %v8499_v62, %v10546_v14 }
 0x855   : > { %2828 = vrot.lane.b32.xlu0 %v9973_v18, %s9208_s16 }
 0x856   : > { %7552 = vmatprep.mubr.msk.f32.mxu1 %vm248_vm1, %v2333_v13  ;;  %2834 = vrot.lane.b32.xlu1 %v9992_v49, %s9208_s16  ;;  %v12589_v13 = vld [vmem:[#allocation78_spill] sm:$0xff] }
 0x857   : > { %7553 = vmatmul.mubr.msk.f32.vlgmr.msra.gmra.mxu1 %vm248_vm1, %v2334_v23 }
 0x858   : > { %7593 = vmatpush3.xpose.msk.msra.mxu1 %vm1038_vm4, %v10400_v28 }
 0x859   : > { %7594 = vmatprep.subr.msk.mxu1 %vm1038_vm4, %v10404_v29  ;;  %2832 = vrot.lane.b32.xlu0 %v9983_v34, %s9208_s16 }
 0x85a   : > { %2838 = vrot.lane.b32.xlu1 %v10004_v40, %s9208_s16 }
 0x85c   : > { %7595 = vmatpush3.xpose.msk.msra.mxu1 %vm1038_vm4, %v10404_v29 }
 0x85d   : > { %7596 = vmatprep.subr.msk.mxu1 %vm1038_vm4, %v10406_v8  ;;  %2836 = vrot.lane.b32.xlu0 %v9997_v26, %s9208_s16  ;;  %s9218_s16 = smov (%p12028_p9), 96  }
 0x85e   : > { %3181 = vrot.lane.b32.xlu1 %v9777_v11, %s9209_s19 }
 0x860   : > { %7597 = vmatpush3.xpose.msk.msra.mxu1 %vm1038_vm4, %v10406_v8 }
 0x861   : > { %7598 = vmatprep.subr.msk.mxu1 %vm1038_vm4, %v10408_v6  ;;  %3183 = vrot.lane.b32.xlu0 %v9775_v38, %s9209_s19 }
 0x862   : > { %3177 = vrot.lane.b32.xlu1 %v9798_v21, %s9209_s19 }
 0x864   : > { %7599 = vmatpush3.xpose.msk.msra.mxu1 %vm1038_vm4, %v10408_v6  ;;  %v12584_v6 = vld [vmem:[#allocation49_spill] sm:$0xff] }
 0x865   : > { %7600 = vmatprep.subr.msk.mxu1 %vm1038_vm4, %v10522_v2  ;;  %3179 = vrot.lane.b32.xlu0 %v9785_v43, %s9209_s19 }
 0x866   : > { %3173 = vrot.lane.b32.xlu1 %v9791_v48, %s9209_s19 }
 0x868   : > { %7601 = vmatpush3.xpose.msk.msra.mxu1 %vm1038_vm4, %v10522_v2 }
 0x869   : > { %7602 = vmatprep.subr.msk.mxu1 %vm1038_vm4, %v10526_v32  ;;  %3175 = vrot.lane.b32.xlu0 %v9781_v50, %s9209_s19 }
 0x86a   : > { %3171 = vrot.lane.b32.xlu1 %v9804_v12, %s9209_s19 }
 0x86b   : > { %v2280_v14 = vpop.xlane.xlu0 %2279 }
 0x86c   : > { %7603 = vmatpush3.xpose.msk.msra.mxu1 %vm1038_vm4, %v10526_v32  ;;  %8500 = vrcp.f32 %v2280_v14  ;;  %v12585_v32 = vld [vmem:[#allocation51_spill] sm:$0xff] }
 0x86d   : > { %7604 = vmatprep.subr.msk.mxu1 %vm1038_vm4, %v10530_v3  ;;  %3169 = vrot.lane.b32.xlu0 %v9768_v30, %s9209_s19  ;;  %v12590_v14 = vld [vmem:[#allocation75_spill] sm:$0xff] }
 0x86e   : > { %3336 = vrot.lane.b32.xlu1 %v9810_v55, %s9209_s19 }
 0x86f   : > { %v2277_v28 = vpop.xlane.xlu0 %2276 }
 0x870   : > { %7605 = vmatpush3.xpose.msk.msra.mxu1 %vm1038_vm4, %v10530_v3  ;;  %8502 = vrcp.f32 %v2277_v28  ;;  %v12586_v3 = vld [vmem:[#allocation53_spill] sm:$0xff] }
 0x871   : > { %7606 = vmatprep.subr.msk.mxu1 %vm1038_vm4, %v10534_v37  ;;  %3505 = vrot.lane.b32.xlu0 %v9775_v38, %s9210_s24  ;;  %v2283_v29 = vpop.xlane.xlu1 %2282 }
 0x872   : > { %8504 = vrcp.f32 %v2283_v29  ;;  %3334 = vrot.lane.b32.xlu1 %v9818_v33, %s9209_s19  ;;  %v12592_v29 = vld [vmem:[#allocation59_spill] sm:$0xff] }
 0x873   : > { %v2286_v8 = vpop.xlane.xlu0 %2285 }
 0x874   : > { %7607 = vmatpush3.xpose.msk.msra.mxu1 %vm1038_vm4, %v10534_v37  ;;  %8506 = vrcp.f32 %v2286_v8  ;;  %v12593_v8 = vld [vmem:[#allocation72_spill] sm:$0xff] }
 0x875   : > { %3328 = vrot.lane.b32.xlu0 %v12584_v6, %s9209_s19  ;;  %v2289_v2 = vpop.xlane.xlu1 %2288 }
 0x876   : > { %8508 = vrcp.f32 %v2289_v2  ;;  %3332 = vrot.lane.b32.xlu1 %v12585_v32, %s9209_s19  ;;  %v12594_v2 = vld [vmem:[#allocation48_spill] sm:$0xff] }
 0x877   : > { %v2292_v0 = vpop.xlane.xlu0 %2291 }
 0x878   : > { %8510 = vrcp.f32 %v2292_v0  ;;  %v12595_v0 = vld [vmem:[#allocation73_spill] sm:$0xff] }
 0x879   : > { %3326 = vrot.lane.b32.xlu0 %v12586_v3, %s9209_s19  ;;  %v8501_v46 = vpop.eup %8500 }
 0x87a   : > { %3503 = vrot.lane.b32.xlu1 %v9777_v11, %s9210_s24  ;;  %v2336_v35 = vmul.f32 %v8501_v46, %v10557_v16  ;;  %v12597_v46 = vld [vmem:[#allocation54_spill] sm:$0xff] }
 0x87b   : > { %v2298_v31 = vpop.xlane.xlu0 %2297 }
 0x87c   : > { %8512 = vrcp.f32 %v2298_v31  ;;  %v12596_v31 = vld [vmem:[#allocation74_spill] sm:$0xff] }
 0x87d   : > { %v8503_v37 = vpop.eup %8502  ;;  %3324 = vrot.lane.b32.xlu0 %v9824_v61, %s9209_s19  ;;  %v2295_v27 = vpop.xlane.xlu1 %2294 }
 0x87e   : > { %8514 = vrcp.f32 %v2295_v27  ;;  %3330 = vrot.lane.b32.xlu1 %v12587_v4, %s9209_s19  ;;  %v2335_v24 = vmul.f32 %v8503_v37, %v10562_v39 }
 0x87f   : > { %v8505_v57 = vpop.eup %8504 }
 0x880   : > { %7555 = vmatprep.mubr.msk.f32.mxu1 %vm248_vm1, %v2335_v24  ;;  %v2337_v22 = vmul.f32 %v8505_v57, %v10568_v45 }
 0x881   : > { %v8507_v63 = vpop.eup %8506  ;;  %3497 = vrot.lane.b32.xlu0 %v9781_v50, %s9210_s24  ;;  %7556 = vmatmul.mubr.msk.f32.gmra.mxu1 %vm248_vm1, %v2336_v35  ;;  %v2841_v37 = vpop.permute.xlu1 %2840 }
 0x882   : > { %3501 = vrot.lane.b32.xlu1 %v9785_v43, %s9210_s24  ;;  %7558 = vmatprep.mubr.msk.f32.mxu1 %vm248_vm1, %v2337_v22  ;;  %v2338_v39 = vmul.f32 %v8507_v63, %v10564_v19 }
 0x883   : > { %v8509_v10 = vpop.eup %8508 }
 0x884   : > { %v2339_v16 = vmul.f32 %v8509_v10, %v10576_v53  ;;  %v12588_v53 = vld [vmem:[#allocation76_spill] sm:$0xff] }
 0x885   : > { %v8511_v9 = vpop.eup %8510  ;;  %3495 = vrot.lane.b32.xlu0 %v9791_v48, %s9210_s24  ;;  %7559 = vmatmul.mubr.msk.f32.gmra.mxu1 %vm248_vm1, %v2338_v39 }
 0x886   : > { %3499 = vrot.lane.b32.xlu1 %v9798_v21, %s9210_s24  ;;  %7561 = vmatprep.mubr.msk.f32.mxu1 %vm248_vm1, %v2339_v16  ;;  %v2340_v45 = vmul.f32 %v8511_v9, %v10572_v58  ;;  %v12591_v58 = vld [vmem:[#allocation77_spill] sm:$0xff] }
 0x889   : > { %3493 = vrot.lane.b32.xlu0 %v9804_v12, %s9210_s24  ;;  %7562 = vmatmul.mubr.msk.f32.gmra.mxu1 %vm248_vm1, %v2340_v45  ;;  %v8513_v19 = vpop.eup %8512 }
 0x88a   : > { %3322 = vrot.lane.b32.xlu1 %v9787_v44, %s9209_s19  ;;  %7608 = vmatprep.mubr.msk.f32.mxu1 %vm1038_vm4, %v12588_v53  ;;  %v2342_v28 = vmul.f32 %v8513_v19, %v12591_v58 }
 0x88b   : > { %v8515_v62 = vpop.eup %8514 }
 0x88c   : > { %v2341_v23 = vmul.f32 %v8515_v62, %v12589_v13 }
 0x88d   : > { %3491 = vrot.lane.b32.xlu0 %v9768_v30, %s9210_s24  ;;  %7609 = vmatmul.mubr.msk.f32.vlgmr.msra.gmra.mxu1 %vm1038_vm4, %v12590_v14 }
 0x88e   : > { %3674 = vrot.lane.b32.xlu1 %v9810_v55, %s9210_s24  ;;  %7580 = vmatprep.mubr.msk.f32.mxu0 %vm248_vm1, %v2341_v23 }
 0x88f   : > { %7581 = vmatmul.mubr.msk.f32.vlgmr.msra.gmra.mxu0 %vm248_vm1, %v2342_v28 }
 0x890   : > { %7621 = vmatpush3.xpose.msk.msra.mxu0 %vm1038_vm4, %v12592_v29 }
 0x891   : > { %7622 = vmatprep.subr.msk.mxu0 %vm1038_vm4, %v12593_v8  ;;  %3475 = vrot.lane.b32.xlu0 %v12594_v2, %s9211_s2 }
 0x892   : > { %3672 = vrot.lane.b32.xlu1 %v9818_v33, %s9210_s24 }
 0x894   : > { %7623 = vmatpush3.xpose.msk.msra.mxu0 %vm1038_vm4, %v12593_v8 }
 0x895   : > { %7624 = vmatprep.subr.msk.mxu0 %vm1038_vm4, %v12595_v0  ;;  %3666 = vrot.lane.b32.xlu0 %v12584_v6, %s9210_s24 }
 0x896   : > { %3670 = vrot.lane.b32.xlu1 %v12585_v32, %s9210_s24 }
 0x898   : > { %7625 = vmatpush3.xpose.msk.msra.mxu0 %vm1038_vm4, %v12595_v0 }
 0x899   : > { %7626 = vmatprep.subr.msk.mxu0 %vm1038_vm4, %v12596_v31  ;;  %3481 = vrot.lane.b32.xlu0 %v9940_v36, %s9211_s2  ;;  %v2843_v36 = vpop.permute.xlu0 %2842 }
 0x89a   : > { %3668 = vrot.lane.b32.xlu1 %v12587_v4, %s9210_s24 }
 0x89c   : > { %7627 = vmatpush3.xpose.msk.msra.mxu0 %vm1038_vm4, %v12596_v31 }
 0x89d   : > { %7628 = vmatprep.subr.msk.mxu0 %vm1038_vm4, %v10626_v59 }
 0x89e   : > { %3477 = vrot.lane.b32.xlu1 %v12597_v46, %s9211_s2 }
 0x8a0   : > { %7629 = vmatpush3.xpose.msk.msra.mxu0 %vm1038_vm4, %v10626_v59 }
 0x8a1   : > { %7630 = vmatprep.subr.msk.mxu0 %vm1038_vm4, %v10624_v15 }
 0x8a2   : > { %3479 = vrot.lane.b32.xlu1 %v9931_v17, %s9211_s2 }
 0x8a4   : > { %7631 = vmatpush3.xpose.msk.msra.mxu0 %vm1038_vm4, %v10624_v15 }
 0x8a5   : > { %7632 = vmatprep.subr.msk.mxu0 %vm1038_vm4, %v2843_v36 }
 0x8a6   : > { %3664 = vrot.lane.b32.xlu1 %v12586_v3, %s9210_s24 }
 0x8a8   : > { %7633 = vmatpush3.xpose.msk.msra.mxu0 %vm1038_vm4, %v2843_v36 }
 0x8a9   : > { %7634 = vmatprep.subr.msk.mxu0 %vm1038_vm4, %v2841_v37 }
 0x8ac   : > { %7635 = vmatpush3.xpose.msk.msra.mxu0 %vm1038_vm4, %v2841_v37 }
 0x8b0   : > { %v2301_v59 = vpop.xlane.xlu0 %2300 }
 0x8b1   : > { %8516 = vrcp.f32 %v2301_v59 }
 0x8b2   : > { %v2304_v27 = vpop.xlane.xlu1 %2303 }
 0x8b3   : > { %8518 = vrcp.f32 %v2304_v27 }
 0x8b4   : > { %v2310_v17 = vpop.xlane.xlu0 %2309 }
 0x8b5   : > { %8520 = vrcp.f32 %v2310_v17 }
 0x8b6   : > { %v2307_v24 = vpop.xlane.xlu1 %2306 }
 0x8b7   : > { %8522 = vrcp.f32 %v2307_v24 }
 0x8b8   : > { %v2313_v15 = vpop.xlane.xlu0 %2312 }
 0x8b9   : > { %8524 = vrcp.f32 %v2313_v15 }
 0x8ba   : > { %v2316_v57 = vpop.xlane.xlu1 %2315 }
 0x8bb   : > { %8526 = vrcp.f32 %v2316_v57 }
 0x8bc   : > { %v2825_v35 = vpop.permute.xlu0 %2824 }
 0x8be   : > { %v8517_v22 = vpop.eup %8516  ;;  %v2827_v63 = vpop.permute.xlu1 %2826 }
 0x8bf   : > { %v2343_v39 = vmul.f32 %v8517_v22, %v10600_v52 }
 0x8c0   : > { %v8519_v10 = vpop.eup %8518  ;;  %v2660_v16 = vpop.permute.xlu0 %2659 }
 0x8c1   : > { %7583 = vmatprep.mubr.msk.f32.mxu0 %vm248_vm1, %v2343_v39  ;;  %7611 = vmatprep.mubr.msk.f32.mxu1 %vm1038_vm4, %v2660_v16  ;;  %v2344_v9 = vmul.f32 %v8519_v10, %v10602_v7 }
 0x8c2   : > { %v2662_v45 = vpop.permute.xlu1 %2661  ;;  %v8521_v19 = vpop.eup %8520 }
 0x8c3   : > { %7584 = vmatmul.mubr.msk.f32.gmra.mxu0 %vm248_vm1, %v2344_v9  ;;  %7612 = vmatmul.mubr.msk.f32.gmra.mxu1 %vm1038_vm4, %v2662_v45  ;;  %v2346_v14 = vmul.f32 %v8521_v19, %v10606_v60 }
 0x8c4   : > { %v8523_v53 = vpop.eup %8522  ;;  %v2664_v62 = vpop.permute.xlu0 %2663 }
 0x8c5   : > { %7614 = vmatprep.mubr.msk.f32.mxu1 %vm1038_vm4, %v2664_v62  ;;  %v2345_v52 = vmul.f32 %v8523_v53, %v10610_v1 }
 0x8c6   : > { %v8525_v13 = vpop.eup %8524  ;;  %v2666_v23 = vpop.permute.xlu1 %2665 }
 0x8c7   : > { %7586 = vmatprep.mubr.msk.f32.mxu0 %vm248_vm1, %v2345_v52  ;;  %7615 = vmatmul.mubr.msk.f32.gmra.mxu1 %vm1038_vm4, %v2666_v23  ;;  %v2347_v7 = vmul.f32 %v8525_v13, %v10614_v42 }
 0x8c8   : > { %v8527_v58 = vpop.eup %8526  ;;  %v2668_v28 = vpop.permute.xlu0 %2667  ;;  %7587 = vmatmul.mubr.msk.f32.gmra.mxu0 %vm248_vm1, %v2346_v14 }
 0x8c9   : > { %7589 = vmatprep.mubr.msk.f32.mxu0 %vm248_vm1, %v2347_v7  ;;  %7617 = vmatprep.mubr.msk.f32.mxu1 %vm1038_vm4, %v2668_v28  ;;  %v2348_v1 = vmul.f32 %v8527_v58, %v10618_v5 }
 0x8ca   : > { %v2670_v29 = vpop.permute.xlu1 %2669 }
 0x8cb   : > { %7618 = vmatmul.mubr.msk.f32.gmra.mxu1 %vm1038_vm4, %v2670_v29  ;;  %v983_v29 = vld [vmem:[%s10028_s13 + $0x88] sm:$0xff] }
 0x8cc   : > { %v2829_v60 = vpop.permute.xlu0 %2828  ;;  %7590 = vmatmul.mubr.msk.f32.gmra.mxu0 %vm248_vm1, %v2348_v1 }
 0x8cd   : > { %7636 = vmatprep.mubr.msk.f32.mxu0 %vm1038_vm4, %v2825_v35 }
 0x8ce   : > { %v2831_v8 = vpop.permute.xlu1 %2830 }
 0x8d0   : > { %v2833_v42 = vpop.permute.xlu0 %2832  ;;  %7637 = vmatmul.mubr.msk.f32.vlgmr.msra.gmra.mxu0 %vm1038_vm4, %v2827_v63 }
 0x8d1   : > { %7639 = vmatprep.mubr.msk.f32.mxu0 %vm1038_vm4, %v2829_v60 }
 0x8d2   : > { %v2835_v2 = vpop.permute.xlu1 %2834 }
 0x8d4   : > { %v2837_v0 = vpop.permute.xlu0 %2836  ;;  %7640 = vmatmul.mubr.msk.f32.gmra.mxu0 %vm1038_vm4, %v2831_v8  ;;  %v982_v8 = vld [vmem:[%s10028_s13 + $0x80] sm:$0xff] }
 0x8d5   : > { %7642 = vmatprep.mubr.msk.f32.mxu0 %vm1038_vm4, %v2833_v42 }
 0x8d6   : > { %v2839_v5 = vpop.permute.xlu1 %2838 }
 0x8d8   : > { %v3184_v31 = vpop.permute.xlu0 %3183  ;;  %7643 = vmatmul.mubr.msk.f32.gmra.mxu0 %vm1038_vm4, %v2835_v2 }
 0x8d9   : > { %7645 = vmatprep.mubr.msk.f32.mxu0 %vm1038_vm4, %v2837_v0  ;;  %7648 = vmatprep.subr.mxu1 %v3184_v31 }
 0x8da   : > { %7649 = vmatpush3.msra.mxu1 %v3184_v31  ;;  %v3182_v46 = vpop.permute.xlu1 %3181 }
 0x8db   : > { %7650 = vmatprep.subr.mxu1 %v3182_v46 }
 0x8dc   : > { %v3180_v36 = vpop.permute.xlu0 %3179  ;;  %7646 = vmatmul.mubr.msk.f32.gmra.mxu0 %vm1038_vm4, %v2839_v5  ;;  %7651 = vmatpush3.msra.mxu1 %v3182_v46 }
 0x8dd   : > { %7652 = vmatprep.subr.mxu1 %v3180_v36 }
 0x8de   : > { %7653 = vmatpush3.msra.mxu1 %v3180_v36  ;;  %v3178_v37 = vpop.permute.xlu1 %3177 }
 0x8df   : > { %7654 = vmatprep.subr.mxu1 %v3178_v37 }
 0x8e0   : > { %v3176_v59 = vpop.permute.xlu0 %3175  ;;  %7655 = vmatpush3.msra.mxu1 %v3178_v37  ;;  %v985_v37 = vld [vmem:[%s10028_s13 + $0x98] sm:$0xff] }
 0x8e1   : > { %7656 = vmatprep.subr.mxu1 %v3176_v59 }
 0x8e2   : > { %7657 = vmatpush3.msra.mxu1 %v3176_v59  ;;  %v3174_v27 = vpop.permute.xlu1 %3173 }
 0x8e3   : > { %7658 = vmatprep.subr.mxu1 %v3174_v27 }
 0x8e4   : > { %v3170_v17 = vpop.permute.xlu0 %3169  ;;  %7659 = vmatpush3.msra.mxu1 %v3174_v27 }
 0x8e6   : > { %v3172_v24 = vpop.permute.xlu1 %3171 }
 0x8e7   : > { %7660 = vmatprep.subr.mxu1 %v3172_v24 }
 0x8e8   : > { %7661 = vmatpush3.msra.mxu1 %v3172_v24  ;;  %v10830_v15 = vpop.permute.xlu0 %3505 }
 0x8e9   : > { %7662 = vmatprep.subr.mxu1 %v3170_v17 }
 0x8ea   : > { %7663 = vmatpush3.msra.mxu1 %v3170_v17  ;;  %v3337_v57 = vpop.permute.xlu1 %3336  ;;  %v984_v17 = vld [vmem:[%s10028_s13 + $0x90] sm:$0xff] }
 0x8eb   : > { %7676 = vmatprep.subr.mxu0 %v3337_v57  ;;  %7704 = vmatprep.subr.msk.mxu1 %vm1038_vm4, %v10830_v15 }
 0x8ec   : > { %7677 = vmatpush3.msra.mxu0 %v3337_v57  ;;  %v3329_v63 = vpop.permute.xlu0 %3328 }
 0x8ee   : > { %v3335_v35 = vpop.permute.xlu1 %3334 }
 0x8ef   : > { %7678 = vmatprep.subr.mxu0 %v3335_v35 }
 0x8f0   : > { %7679 = vmatpush3.msra.mxu0 %v3335_v35  ;;  %v3327_v10 = vpop.permute.xlu0 %3326 }
 0x8f2   : > { %v3333_v22 = vpop.permute.xlu1 %3332 }
 0x8f3   : > { %7680 = vmatprep.subr.mxu0 %v3333_v22 }
 0x8f4   : > { %7681 = vmatpush3.msra.mxu0 %v3333_v22  ;;  %v3325_v45 = vpop.permute.xlu0 %3324  ;;  %v987_v22 = vld [vmem:[%s10028_s13 + $0xa8] sm:$0xff] }
 0x8f6   : > { %v10834_v39 = vpop.permute.xlu1 %3503 }
 0x8fa   : > { %v3331_v16 = vpop.permute.xlu1 %3330 }
 0x8fb   : > { %7682 = vmatprep.subr.mxu0 %v3331_v16 }
 0x8fc   : > { %7683 = vmatpush3.msra.mxu0 %v3331_v16 }
 0x8fd   : > { %7684 = vmatprep.subr.mxu0 %v3329_v63 }
 0x8fe   : > { %7685 = vmatpush3.msra.mxu0 %v3329_v63  ;;  %v10836_v9 = vpop.permute.xlu1 %3501 }
 0x8ff   : > { %7686 = vmatprep.subr.mxu0 %v3327_v10 }
 0x900   : > { %7687 = vmatpush3.msra.mxu0 %v3327_v10 }
 0x901   : > { %7688 = vmatprep.subr.mxu0 %v3325_v45 }
 0x902   : > { %7689 = vmatpush3.msra.mxu0 %v3325_v45  ;;  %v10838_v19 = vpop.permute.xlu1 %3499  ;;  %v986_v45 = vld [vmem:[%s10028_s13 + $0xa0] sm:$0xff] }
 0x906   : > { %v3323_v53 = vpop.permute.xlu1 %3322 }
 0x907   : > { %7690 = vmatprep.subr.mxu0 %v3323_v53 }
 0x908   : > { %7691 = vmatpush3.msra.mxu0 %v3323_v53 }
 0x90a   : > { %v10840_v62 = vpop.permute.xlu1 %3674 }
 0x90b   : > { %12598 = vst [vmem:[#allocation51_spill] sm:$0xff] %v10840_v62  ;;  %7732 = vmatprep.subr.msk.mxu0 %vm1038_vm4, %v10840_v62 }
 0x917   : > { %v10844_v52 = vpop.f32.mrf.mxu1 }
 0x918   : > { %12599 = vst [vmem:[#allocation52_spill] sm:$0xff] %v10844_v52 }
 0x919   : > { %v10846_v13 = vpop.f32.mrf.mxu1 }
 0x91a   : > { %12600 = vst [vmem:[#allocation76_spill] sm:$0xff] %v10846_v13 }
 0x941   : > { %v10848_v23 = vpop.f32.mrf.mxu1 }
 0x942   : > { %12601 = vst [vmem:[#allocation78_spill] sm:$0xff] %v10848_v23 }
 0x943   : > { %v10850_v14 = vpop.f32.mrf.mxu1 }
 0x944   : > { %12602 = vst [vmem:[#allocation75_spill] sm:$0xff] %v10850_v14 }
 0x945   : > { %v10852_v7 = vpop.f32.mrf.mxu1 }
 0x946   : > { %12603 = vst [vmem:[#allocation77_spill] sm:$0xff] %v10852_v7 }
 0x947   : > { %v10854_v58 = vpop.f32.mrf.mxu1 }
 0x948   : > { %12604 = vst [vmem:[#allocation59_spill] sm:$0xff] %v10854_v58 }
 0x949   : > { %v10856_v28 = vpop.f32.mrf.mxu1 }
 0x94a   : > { %12605 = vst [vmem:[#allocation72_spill] sm:$0xff] %v10856_v28 }
 0x94b   : > { %v10858_v1 = vpop.f32.mrf.mxu1 }
 0x94c   : > { %12606 = vst [vmem:[#allocation48_spill] sm:$0xff] %v10858_v1 }
 0x94d   : > { %v7610_v60 = vpop.f32.mrf.mxu1 }
 0x94e   : > { %v10862_v42 = vadd.f32 %v7610_v60, %v983_v29 }
 0x94f   : > { %v2785_v2 = vpop.f32.mrf.mxu1  ;;  %v10870_v46 = vpop.f32.mrf.mxu0 }
 0x950   : > { %v10864_v0 = vadd.f32 %v2785_v2, %v982_v8  ;;  %v2996_v5 = vsel %vm248_vm1, %v10862_v42, -inf  ;;  %12607 = vst [vmem:[#allocation73_spill] sm:$0xff] %v10870_v46 }
 0x951   : > { %2997 = vmax.xlane.f32.xlu1 %v2996_v5  ;;  %v10872_v36 = vpop.f32.mrf.mxu0 }
 0x952   : > { %v2993_v31 = vsel %vm248_vm1, %v10864_v0, -inf  ;;  %12608 = vst [vmem:[#allocation74_spill] sm:$0xff] %v10872_v36 }
 0x953   : > { %2994 = vmax.xlane.f32.xlu0 %v2993_v31  ;;  %v989_v31 = vld [vmem:[%s10028_s13 + $0xb8] sm:$0xff] }
 0x983   : > { %v10875_v59 = vpop.f32.mrf.mxu0  ;;  %v7613_v27 = vpop.f32.mrf.mxu1 }
 0x984   : > { %12609 = vst [vmem:[#allocation54_spill] sm:$0xff] %v10875_v59  ;;  %v10878_v24 = vadd.f32 %v7613_v27, %v985_v37  ;;  %v988_v59 = vld [vmem:[%s10028_s13 + $0xb0] sm:$0xff] }
 0x985   : > { %v10880_v57 = vpop.f32.mrf.mxu0  ;;  %v2795_v35 = vpop.f32.mrf.mxu1 }
 0x986   : > { %12610 = vst [vmem:[#allocation79_spill] sm:$0xff] %v10880_v57  ;;  %v10883_v63 = vadd.f32 %v2795_v35, %v984_v17  ;;  %v3002_v10 = vsel %vm248_vm1, %v10878_v24, -inf }
 0x987   : > { %3003 = vmax.xlane.f32.xlu1 %v3002_v10  ;;  %v7616_v16 = vpop.f32.mrf.mxu1 }
 0x988   : > { %v10888_v53 = vadd.f32 %v7616_v16, %v987_v22  ;;  %v10890_v60 = vpop.f32.mrf.mxu0  ;;  %v2999_v2 = vsel %vm248_vm1, %v10883_v63, -inf }
 0x989   : > { %12611 = vst [vmem:[#allocation80_spill] sm:$0xff] %v10890_v60  ;;  %3000 = vmax.xlane.f32.xlu0 %v2999_v2  ;;  %v2805_v5 = vpop.f32.mrf.mxu1 }
 0x98a   : > { %v10895_v27 = vadd.f32 %v2805_v5, %v986_v45  ;;  %v10897_v35 = vpop.f32.mrf.mxu0  ;;  %v3008_v57 = vsel %vm248_vm1, %v10888_v53, -inf }
 0x98b   : > { %12612 = vst [vmem:[#allocation81_spill] sm:$0xff] %v10897_v35  ;;  %3009 = vmax.xlane.f32.xlu1 %v3008_v57  ;;  %v7619_v10 = vpop.f32.mrf.mxu1 }
 0x98c   : > { %v10902_v16 = vadd.f32 %v7619_v10, %v989_v31  ;;  %v10904_v36 = vpop.f32.mrf.mxu0  ;;  %v3005_v60 = vsel %vm248_vm1, %v10895_v27, -inf }
 0x98d   : > { %12613 = vst [vmem:[#allocation82_spill] sm:$0xff] %v10904_v36  ;;  %3006 = vmax.xlane.f32.xlu0 %v3005_v60  ;;  %v2815_v2 = vpop.f32.mrf.mxu1 }
 0x98e   : > { %v10908_v46 = vadd.f32 %v2815_v2, %v988_v59  ;;  %v10910_v5 = vpop.f32.mrf.mxu0  ;;  %v3014_v35 = vsel %vm248_vm1, %v10902_v16, -inf }
 0x98f   : > { %12614 = vst [vmem:[#allocation83_spill] sm:$0xff] %v10910_v5  ;;  %3015 = vmax.xlane.f32.xlu1 %v3014_v35 }
 0x990   : > { %v7638_v57 = vpop.f32.mrf.mxu0  ;;  %v3011_v10 = vsel %vm248_vm1, %v10908_v46, -inf }
 0x991   : > { %v10916_v1 = vadd.f32 %v7638_v57, %v983_v29  ;;  %3012 = vmax.xlane.f32.xlu0 %v3011_v10 }
 0x992   : > { %v2954_v36 = vpop.f32.mrf.mxu0 }
 0x993   : > { %v3020_v60 = vsel %vm248_vm1, %v10916_v1, -inf  ;;  %v10920_v28 = vadd.f32 %v2954_v36, %v982_v8 }
 0x994   : > { %v7641_v2 = vpop.f32.mrf.mxu0 }
 0x995   : > { %v10922_v58 = vadd.f32 %v7641_v2, %v985_v37  ;;  %3021 = vmax.xlane.f32.xlu0 %v3020_v60  ;;  %v3017_v57 = vsel %vm248_vm1, %v10920_v28, -inf }
 0x996   : > { %v2964_v5 = vpop.f32.mrf.mxu0 }
 0x997   : > { %v3026_v35 = vsel %vm248_vm1, %v10922_v58, -inf  ;;  %v10926_v7 = vadd.f32 %v2964_v5, %v984_v17 }
 0x998   : > { %3027 = vmax.xlane.f32.xlu1 %v3026_v35  ;;  %v7644_v29 = vpop.f32.mrf.mxu0 }
 0x999   : > { %v10930_v10 = vadd.f32 %v7644_v29, %v987_v22  ;;  %3018 = vmax.xlane.f32.xlu0 %v3017_v57  ;;  %v3023_v17 = vsel %vm248_vm1, %v10926_v7, -inf  ;;  %v10952_v57 = vpop.permute.xlu1 %3672 }
 0x99a   : > { %v2974_v8 = vpop.f32.mrf.mxu0  ;;  %12615 = vst [vmem:[#allocation84_spill] sm:$0xff] %v10952_v57 }
 0x99b   : > { %v3032_v36 = vsel %vm248_vm1, %v10930_v10, -inf  ;;  %v10934_v37 = vadd.f32 %v2974_v8, %v986_v45 }
 0x99c   : > { %3033 = vmax.xlane.f32.xlu1 %v3032_v36  ;;  %v7647_v60 = vpop.f32.mrf.mxu0 }
 0x99d   : > { %v10938_v5 = vadd.f32 %v7647_v60, %v989_v31  ;;  %3024 = vmax.xlane.f32.xlu0 %v3023_v17  ;;  %v3029_v29 = vsel %vm248_vm1, %v10934_v37, -inf  ;;  %v10950_v31 = vpop.permute.xlu0 %3497 }
 0x99e   : > { %v2984_v2 = vpop.f32.mrf.mxu0 }
 0x99f   : > { %v3038_v22 = vsel %vm248_vm1, %v10938_v5, -inf  ;;  %v10942_v35 = vadd.f32 %v2984_v2, %v988_v59  ;;  %v10958_v59 = vpop.permute.xlu1 %3670 }
 0x9a0   : > { %3039 = vmax.xlane.f32.xlu1 %v3038_v22  ;;  %12616 = vst [vmem:[#allocation85_spill] sm:$0xff] %v10958_v59 }
 0x9a1   : > { %3030 = vmax.xlane.f32.xlu0 %v3029_v29  ;;  %v3035_v45 = vsel %vm248_vm1, %v10942_v35, -inf  ;;  %v10954_v8 = vpop.permute.xlu0 %3495 }
 0x9a3   : > { %v10962_v60 = vpop.permute.xlu1 %3668 }
 0x9a4   : > { %12617 = vst [vmem:[#allocation86_spill] sm:$0xff] %v10962_v60 }
 0x9a5   : > { %3036 = vmax.xlane.f32.xlu0 %v3035_v45  ;;  %v10960_v36 = vpop.permute.xlu0 %3493 }
 0x9a7   : > { %v10966_v2 = vpop.permute.xlu1 %3477 }
 0x9a9   : > { %v10964_v17 = vpop.permute.xlu0 %3491 }
 0x9ab   : > { %v10970_v22 = vpop.permute.xlu1 %3479 }
 0x9ac   : > { %12618 = vst [vmem:[#allocation87_spill] sm:$0xff] %v10970_v22 }
 0x9af   : > { %v10974_v45 = vpop.permute.xlu1 %3664 }
 0x9b0   : > { %12620 = vst [vmem:[#allocation89_spill] sm:$0xff] %v10974_v45 }
 0x9b1   : > { %3485 = vrot.lane.b32.xlu1 %v9952_v41, %s9211_s2  ;;  %v10968_v41 = vpop.permute.xlu0 %3475 }
 0x9b5   : > { %v10972_v29 = vpop.permute.xlu0 %3666 }
 0x9b6   : > { %12619 = vst [vmem:[#allocation88_spill] sm:$0xff] %v10972_v29 }
 0x9b9   : > { %v10976_v14 = vpop.permute.xlu0 %3481 }
 0x9ba   : > { %12621 = vst [vmem:[#allocation90_spill] sm:$0xff] %v10976_v14 }
 0x9bb   : > { %3483 = vrot.lane.b32.xlu0 %v9943_v25, %s9211_s2 }
 0x9da   : > { %v2998_v25 = vpop.xlane.xlu1 %2997 }
 0x9db   : > { %v3042_v23 = vsub.f32 %v10862_v42, %v2998_v25 }
 0x9dc   : > { %v2995_v13 = vpop.xlane.xlu0 %2994 }
 0x9dd   : > { %v3059_v52 = vmul.f32 1.442695, %v3042_v23  ;;  %v3041_v6 = vsub.f32 %v10864_v0, %v2995_v13 }
 0x9df   : > { %8528 = vpow2.f32 %v3059_v52  ;;  %v3057_v3 = vmul.f32 1.442695, %v3041_v6 }
 0x9e1   : > { %8530 = vpow2.f32 %v3057_v3 }
 0x9ec   : > { %v10980_v60 = vpop.eup %8528 }
 0x9ed   : > { %v3092_v59 = vsel %vm248_vm1, %v10980_v60, 0.0 }
 0x9ee   : > { %v10984_v29 = vpop.eup %8530  ;;  %3093 = vadd.xlane.f32.xlu1 %v3092_v59 }
 0x9ef   : > { %v3089_v45 = vsel %vm248_vm1, %v10984_v29, 0.0 }
 0x9f0   : > { %3090 = vadd.xlane.f32.xlu0 %v3089_v45 }
 0xa10   : > { %v3004_v42 = vpop.xlane.xlu1 %3003 }
 0xa11   : > { %v3044_v23 = vsub.f32 %v10878_v24, %v3004_v42 }
 0xa12   : > { %v3001_v25 = vpop.xlane.xlu0 %3000 }
 0xa13   : > { %v3063_v13 = vmul.f32 1.442695, %v3044_v23  ;;  %v3043_v6 = vsub.f32 %v10883_v63, %v3001_v25 }
 0xa14   : > { %v3010_v3 = vpop.xlane.xlu1 %3009 }
 0xa15   : > { %8532 = vpow2.f32 %v3063_v13  ;;  %v3061_v52 = vmul.f32 1.442695, %v3043_v6  ;;  %v3046_v0 = vsub.f32 %v10888_v53, %v3010_v3 }
 0xa16   : > { %v3007_v14 = vpop.xlane.xlu0 %3006 }
 0xa17   : > { %8534 = vpow2.f32 %v3061_v52  ;;  %v3067_v57 = vmul.f32 1.442695, %v3046_v0  ;;  %v3045_v59 = vsub.f32 %v10895_v27, %v3007_v14 }
 0xa18   : > { %v3016_v62 = vpop.xlane.xlu1 %3015 }
 0xa19   : > { %v3065_v22 = vmul.f32 1.442695, %v3045_v59  ;;  %v3048_v45 = vsub.f32 %v10902_v16, %v3016_v62  ;;  %8536 = vpow2.f32 %v3067_v57 }
 0xa1a   : > { %v3013_v24 = vpop.xlane.xlu0 %3012 }
 0xa1b   : > { %8538 = vpow2.f32 %v3065_v22  ;;  %v3071_v42 = vmul.f32 1.442695, %v3048_v45  ;;  %v3047_v63 = vsub.f32 %v10908_v46, %v3013_v24 }
 0xa1d   : > { %v3069_v23 = vmul.f32 1.442695, %v3047_v63  ;;  %8540 = vpow2.f32 %v3071_v42 }
 0xa1e   : > { %v3022_v25 = vpop.xlane.xlu0 %3021 }
 0xa1f   : > { %8542 = vpow2.f32 %v3069_v23  ;;  %v3050_v53 = vsub.f32 %v10916_v1, %v3022_v25 }
 0xa21   : > { %v3075_v13 = vmul.f32 1.442695, %v3050_v53  ;;  %v3028_v53 = vpop.xlane.xlu1 %3027 }
 0xa22   : > { %v10995_v6 = vpop.eup %8532  ;;  %v3019_v14 = vpop.xlane.xlu0 %3018 }
 0xa23   : > { %8544 = vpow2.f32 %v3075_v13  ;;  %v3049_v27 = vsub.f32 %v10920_v28, %v3019_v14  ;;  %v3098_v62 = vsel %vm248_vm1, %v10995_v6, 0.0 }
 0xa24   : > { %v11000_v16 = vpop.eup %8534  ;;  %3099 = vadd.xlane.f32.xlu0 %v3098_v62  ;;  %v3052_v62 = vsub.f32 %v10922_v58, %v3028_v53 }
 0xa25   : > { %v3073_v46 = vmul.f32 1.442695, %v3049_v27  ;;  %v3095_v1 = vsel %vm248_vm1, %v11000_v16, 0.0  ;;  %v3034_v27 = vpop.xlane.xlu1 %3033 }
 0xa26   : > { %v11002_v57 = vpop.eup %8536  ;;  %v3025_v25 = vpop.xlane.xlu0 %3024 }
 0xa27   : > { %8546 = vpow2.f32 %v3073_v46  ;;  %v3104_v52 = vsel %vm248_vm1, %v11002_v57, 0.0  ;;  %v3051_v14 = vsub.f32 %v10926_v7, %v3025_v25  ;;  %v3054_v46 = vsub.f32 %v10930_v10, %v3034_v27 }
 0xa28   : > { %v11006_v22 = vpop.eup %8538  ;;  %3096 = vadd.xlane.f32.xlu0 %v3095_v1 }
 0xa29   : > { %v3101_v3 = vsel %vm248_vm1, %v11006_v22, 0.0  ;;  %v3077_v1 = vmul.f32 1.442695, %v3051_v14 }
 0xa2a   : > { %3102 = vadd.xlane.f32.xlu1 %v3101_v3  ;;  %v11010_v28 = vpop.eup %8540  ;;  %v3031_v13 = vpop.xlane.xlu0 %3030 }
 0xa2b   : > { %v3110_v45 = vsel %vm248_vm1, %v11010_v28, 0.0  ;;  %8548 = vpow2.f32 %v3077_v1 }
 0xa2c   : > { %v11014_v0 = vpop.eup %8542  ;;  %3105 = vadd.xlane.f32.xlu0 %v3104_v52  ;;  %v3079_v52 = vmul.f32 1.442695, %v3052_v62 }
 0xa2d   : > { %v3107_v59 = vsel %vm248_vm1, %v11014_v0, 0.0 }
 0xa2e   : > { %3108 = vadd.xlane.f32.xlu1 %v3107_v59  ;;  %v3037_v3 = vpop.xlane.xlu0 %3036  ;;  %v3053_v59 = vsub.f32 %v10934_v37, %v3031_v13  ;;  %8550 = vpow2.f32 %v3079_v52 }
 0xa30   : > { %v11020_v24 = vpop.eup %8544  ;;  %3111 = vadd.xlane.f32.xlu0 %v3110_v45  ;;  %v3040_v45 = vpop.xlane.xlu1 %3039 }
 0xa31   : > { %v3116_v42 = vsel %vm248_vm1, %v11020_v24, 0.0 }
 0xa34   : > { %v11024_v63 = vpop.eup %8546  ;;  %3117 = vadd.xlane.f32.xlu0 %v3116_v42  ;;  %v3055_v42 = vsub.f32 %v10942_v35, %v3037_v3  ;;  %v11062_v1 = vpop.permute.xlu1 %3485 }
 0xa35   : > { %v3113_v23 = vsel %vm248_vm1, %v11024_v63, 0.0  ;;  %v11064_v3 = vpop.permute.xlu0 %3483 }
 0xa36   : > { %3114 = vadd.xlane.f32.xlu1 %v3113_v23  ;;  %v3056_v23 = vsub.f32 %v10938_v5, %v3040_v45  ;;  %v3085_v7 = vmul.f32 1.442695, %v3055_v42 }
 0xa38   : > { %v3087_v25 = vmul.f32 1.442695, %v3056_v23  ;;  %v11038_v58 = vpop.eup %8548 }
 0xa39   : > { %v3119_v37 = vsel %vm248_vm1, %v11038_v58, 0.0 }
 0xa3b   : > { %v11040_v10 = vpop.eup %8550 }
 0xa3c   : > { %v3122_v5 = vsel %vm248_vm1, %v11040_v10, 0.0 }
 0xa47   : > { %3487 = vrot.lane.b32.xlu1 %v9955_v47, %s9211_s2  ;;  %v3083_v47 = vmul.f32 1.442695, %v3054_v46 }
 0xa49   : > { %8552 = vpow2.f32 %v3083_v47 }
 0xa4a   : > { %3662 = vrot.lane.b32.xlu0 %v9824_v61, %s9210_s24  ;;  %v3081_v61 = vmul.f32 1.442695, %v3053_v59 }
 0xa4c   : > { %8554 = vpow2.f32 %v3081_v61 }
 0xa4d   : > { %8556 = vpow2.f32 %v3085_v7 }
 0xa4e   : > { %8558 = vpow2.f32 %v3087_v25 }
 0xa56   : > { %v11044_v53 = vpop.eup %8552 }
 0xa57   : > { %v3128_v61 = vsel %vm248_vm1, %v11044_v53, 0.0 }
 0xa59   : > { %v11048_v35 = vpop.eup %8554 }
 0xa5a   : > { %v11052_v13 = vpop.eup %8556  ;;  %v3125_v14 = vsel %vm248_vm1, %v11048_v35, 0.0 }
 0xa5b   : > { %v11056_v27 = vpop.eup %8558  ;;  %v3131_v62 = vsel %vm248_vm1, %v11052_v13, 0.0 }
 0xa5c   : > { %v3134_v46 = vsel %vm248_vm1, %v11056_v27, 0.0 }
 0xa69   : > { %3120 = vadd.xlane.f32.xlu0 %v3119_v37 }
 0xa6b   : > { %3123 = vadd.xlane.f32.xlu1 %v3122_v5 }
 0xa6d   : > { %3129 = vadd.xlane.f32.xlu0 %v3128_v61 }
 0xa6f   : > { %3126 = vadd.xlane.f32.xlu1 %v3125_v14 }
 0xa71   : > { %3132 = vadd.xlane.f32.xlu0 %v3131_v62 }
 0xa73   : > { %3135 = vadd.xlane.f32.xlu1 %v3134_v46 }
 0xa77   : > { %v3094_v52 = vpop.xlane.xlu1 %3093 }
 0xa78   : > { %8560 = vrcp.f32 %v3094_v52 }
 0xa79   : > { %v3091_v59 = vpop.xlane.xlu0 %3090 }
 0xa7a   : > { %8562 = vrcp.f32 %v3091_v59 }
 0xa84   : > { %3660 = vrot.lane.b32.xlu1 %v9787_v44, %s9210_s24 }
 0xa85   : > { %v8561_v45 = vpop.eup %8560 }
 0xa86   : > { %v3154_v23 = vmul.f32 %v8561_v45, %v10980_v60 }
 0xa87   : > { %v8563_v47 = vpop.eup %8562  ;;  %3489 = vrot.lane.b32.xlu0 %v9964_v54, %s9211_s2 }
 0xa88   : > { %3646 = vrot.lane.b32.xlu1 %v9970_v56, %s9211_s2  ;;  %v3153_v42 = vmul.f32 %v8563_v47, %v10984_v29  ;;  %v12629_v29 = vld [vmem:[#allocation89_spill] sm:$0xff] }
 0xa8a   : > { %7664 = vmatprep.mubr.msk.f32.mxu1 %vm248_vm1, %v3153_v42 }
 0xa8b   : > { %3644 = vrot.lane.b32.xlu0 %v9796_v51, %s9211_s2  ;;  %7665 = vmatmul.mubr.msk.f32.vlgmr.msra.gmra.mxu1 %vm248_vm1, %v3154_v23 }
 0xa8c   : > { %7705 = vmatpush3.xpose.msk.msra.mxu1 %vm1038_vm4, %v10830_v15  ;;  %3650 = vrot.lane.b32.xlu1 %v9980_v20, %s9211_s2 }
 0xa8d   : > { %7706 = vmatprep.subr.msk.mxu1 %vm1038_vm4, %v10834_v39 }
 0xa8f   : > { %3648 = vrot.lane.b32.xlu0 %v9973_v18, %s9211_s2 }
 0xa90   : > { %7707 = vmatpush3.xpose.msk.msra.mxu1 %vm1038_vm4, %v10834_v39  ;;  %3654 = vrot.lane.b32.xlu1 %v9992_v49, %s9211_s2 }
 0xa91   : > { %7708 = vmatprep.subr.msk.mxu1 %vm1038_vm4, %v10836_v9 }
 0xa93   : > { %3652 = vrot.lane.b32.xlu0 %v9983_v34, %s9211_s2 }
 0xa94   : > { %7709 = vmatpush3.xpose.msk.msra.mxu1 %vm1038_vm4, %v10836_v9  ;;  %3658 = vrot.lane.b32.xlu1 %v10004_v40, %s9211_s2 }
 0xa95   : > { %7710 = vmatprep.subr.msk.mxu1 %vm1038_vm4, %v10838_v19 }
 0xa97   : > { %3656 = vrot.lane.b32.xlu0 %v9997_v26, %s9211_s2 }
 0xa98   : > { %7711 = vmatpush3.xpose.msk.msra.mxu1 %vm1038_vm4, %v10838_v19  ;;  %4001 = vrot.lane.b32.xlu1 %v9777_v11, %s9212_s22  ;;  %v12622_v19 = vld [vmem:[#allocation87_spill] sm:$0xff] }
 0xa99   : > { %7712 = vmatprep.subr.msk.mxu1 %vm1038_vm4, %v10950_v31 }
 0xa9b   : > { %4003 = vrot.lane.b32.xlu0 %v9775_v38, %s9212_s22 }
 0xa9c   : > { %7713 = vmatpush3.xpose.msk.msra.mxu1 %vm1038_vm4, %v10950_v31  ;;  %3997 = vrot.lane.b32.xlu1 %v9798_v21, %s9212_s22  ;;  %v12623_v31 = vld [vmem:[#allocation51_spill] sm:$0xff] }
 0xa9d   : > { %7714 = vmatprep.subr.msk.mxu1 %vm1038_vm4, %v10954_v8 }
 0xa9f   : > { %3999 = vrot.lane.b32.xlu0 %v9785_v43, %s9212_s22 }
 0xaa0   : > { %7715 = vmatpush3.xpose.msk.msra.mxu1 %vm1038_vm4, %v10954_v8  ;;  %3993 = vrot.lane.b32.xlu1 %v9791_v48, %s9212_s22  ;;  %v12624_v8 = vld [vmem:[#allocation84_spill] sm:$0xff] }
 0xaa1   : > { %7716 = vmatprep.subr.msk.mxu1 %vm1038_vm4, %v10960_v36 }
 0xaa3   : > { %3995 = vrot.lane.b32.xlu0 %v9781_v50, %s9212_s22 }
 0xaa4   : > { %7717 = vmatpush3.xpose.msk.msra.mxu1 %vm1038_vm4, %v10960_v36  ;;  %3989 = vrot.lane.b32.xlu1 %v9768_v30, %s9212_s22  ;;  %v12625_v36 = vld [vmem:[#allocation90_spill] sm:$0xff] }
 0xaa5   : > { %7718 = vmatprep.subr.msk.mxu1 %vm1038_vm4, %v10964_v17 }
 0xaa7   : > { %3991 = vrot.lane.b32.xlu0 %v9804_v12, %s9212_s22 }
 0xaa8   : > { %7719 = vmatpush3.xpose.msk.msra.mxu1 %vm1038_vm4, %v10964_v17  ;;  %4154 = vrot.lane.b32.xlu1 %v9818_v33, %s9212_s22  ;;  %v12626_v17 = vld [vmem:[#allocation85_spill] sm:$0xff] }
 0xaab   : > { %4156 = vrot.lane.b32.xlu0 %v9810_v55, %s9212_s22 }
 0xaac   : > { %4152 = vrot.lane.b32.xlu1 %v12585_v32, %s9212_s22 }
 0xaad   : > { %v3100_v38 = vpop.xlane.xlu0 %3099 }
 0xaae   : > { %8564 = vrcp.f32 %v3100_v38 }
 0xab0   : > { %4150 = vrot.lane.b32.xlu1 %v12587_v4, %s9212_s22 }
 0xab1   : > { %v3097_v30 = vpop.xlane.xlu0 %3096 }
 0xab2   : > { %8566 = vrcp.f32 %v3097_v30 }
 0xab3   : > { %v3103_v11 = vpop.xlane.xlu1 %3102 }
 0xab4   : > { %8568 = vrcp.f32 %v3103_v11 }
 0xab5   : > { %v3106_v50 = vpop.xlane.xlu0 %3105 }
 0xab6   : > { %8570 = vrcp.f32 %v3106_v50 }
 0xab7   : > { %v3109_v43 = vpop.xlane.xlu1 %3108 }
 0xab8   : > { %8572 = vrcp.f32 %v3109_v43 }
 0xab9   : > { %v3112_v48 = vpop.xlane.xlu0 %3111 }
 0xaba   : > { %8574 = vrcp.f32 %v3112_v48 }
 0xabb   : > { %v8565_v21 = vpop.eup %8564 }
 0xabc   : > { %v3156_v56 = vmul.f32 %v8565_v21, %v10995_v6 }
 0xabd   : > { %v3118_v51 = vpop.xlane.xlu0 %3117 }
 0xabe   : > { %8576 = vrcp.f32 %v3118_v51 }
 0xabf   : > { %v8567_v12 = vpop.eup %8566  ;;  %v3115_v55 = vpop.xlane.xlu1 %3114 }
 0xac0   : > { %8578 = vrcp.f32 %v3115_v55  ;;  %v3155_v33 = vmul.f32 %v8567_v12, %v11000_v16 }
 0xac1   : > { %v8569_v54 = vpop.eup %8568  ;;  %v3663_v6 = vpop.permute.xlu0 %3662 }
 0xac2   : > { %7667 = vmatprep.mubr.msk.f32.mxu1 %vm248_vm1, %v3155_v33  ;;  %v3157_v18 = vmul.f32 %v8569_v54, %v11006_v22 }
 0xac3   : > { %v8571_v20 = vpop.eup %8570  ;;  %7668 = vmatmul.mubr.msk.f32.gmra.mxu1 %vm248_vm1, %v3156_v56  ;;  %v3488_v60 = vpop.permute.xlu1 %3487 }
 0xac4   : > { %7670 = vmatprep.mubr.msk.f32.mxu1 %vm248_vm1, %v3157_v18  ;;  %v3158_v34 = vmul.f32 %v8571_v20, %v11002_v57 }
 0xac5   : > { %v8573_v49 = vpop.eup %8572 }
 0xac6   : > { %v3159_v26 = vmul.f32 %v8573_v49, %v11014_v0 }
 0xac7   : > { %v8575_v40 = vpop.eup %8574  ;;  %7671 = vmatmul.mubr.msk.f32.gmra.mxu1 %vm248_vm1, %v3158_v34 }
 0xac8   : > { %7673 = vmatprep.mubr.msk.f32.mxu1 %vm248_vm1, %v3159_v26  ;;  %v3160_v32 = vmul.f32 %v8575_v40, %v11010_v28 }
 0xacb   : > { %7674 = vmatmul.mubr.msk.f32.gmra.mxu1 %vm248_vm1, %v3160_v32  ;;  %v8577_v4 = vpop.eup %8576  ;;  %v991_v32 = vld [vmem:[%s10028_s13 + $0xc8] sm:$0xff] }
 0xacc   : > { %7720 = vmatprep.mubr.msk.f32.mxu1 %vm1038_vm4, %v10968_v41  ;;  %v3162_v9 = vmul.f32 %v8577_v4, %v11020_v24  ;;  %v12628_v41 = vld [vmem:[#allocation88_spill] sm:$0xff] }
 0xacd   : > { %v8579_v15 = vpop.eup %8578 }
 0xace   : > { %v3161_v39 = vmul.f32 %v8579_v15, %v11024_v63  ;;  %v990_v15 = vld [vmem:[%s10028_s13 + $0xc0] sm:$0xff] }
 0xacf   : > { %7721 = vmatmul.mubr.msk.f32.vlgmr.msra.gmra.mxu1 %vm1038_vm4, %v10966_v2  ;;  %v12627_v2 = vld [vmem:[#allocation86_spill] sm:$0xff] }
 0xad0   : > { %7692 = vmatprep.mubr.msk.f32.mxu0 %vm248_vm1, %v3161_v39  ;;  %7723 = vmatprep.mubr.msk.f32.mxu1 %vm1038_vm4, %v12622_v19  ;;  %v993_v19 = vld [vmem:[%s10028_s13 + $0xd8] sm:$0xff] }
 0xad1   : > { %7693 = vmatmul.mubr.msk.f32.vlgmr.msra.gmra.mxu0 %vm248_vm1, %v3162_v9 }
 0xad2   : > { %7733 = vmatpush3.xpose.msk.msra.mxu0 %vm1038_vm4, %v12623_v31 }
 0xad3   : > { %7734 = vmatprep.subr.msk.mxu0 %vm1038_vm4, %v12624_v8  ;;  %7724 = vmatmul.mubr.msk.f32.gmra.mxu1 %vm1038_vm4, %v12625_v36 }
 0xad4   : > { %7726 = vmatprep.mubr.msk.f32.mxu1 %vm1038_vm4, %v11064_v3 }
 0xad6   : > { %7735 = vmatpush3.xpose.msk.msra.mxu0 %vm1038_vm4, %v12624_v8 }
 0xad7   : > { %7736 = vmatprep.subr.msk.mxu0 %vm1038_vm4, %v12626_v17  ;;  %7727 = vmatmul.mubr.msk.f32.gmra.mxu1 %vm1038_vm4, %v11062_v1 }
 0xad8   : > { %7729 = vmatprep.mubr.msk.f32.mxu1 %vm1038_vm4, %v3488_v60 }
 0xada   : > { %7737 = vmatpush3.xpose.msk.msra.mxu0 %vm1038_vm4, %v12626_v17 }
 0xadb   : > { %7738 = vmatprep.subr.msk.mxu0 %vm1038_vm4, %v12627_v2 }
 0xade   : > { %7739 = vmatpush3.xpose.msk.msra.mxu0 %vm1038_vm4, %v12627_v2 }
 0xadf   : > { %7740 = vmatprep.subr.msk.mxu0 %vm1038_vm4, %v12628_v41 }
 0xae2   : > { %7741 = vmatpush3.xpose.msk.msra.mxu0 %vm1038_vm4, %v12628_v41  ;;  %v992_v41 = vld [vmem:[%s10028_s13 + $0xd0] sm:$0xff] }
 0xae3   : > { %7742 = vmatprep.subr.msk.mxu0 %vm1038_vm4, %v12629_v29 }
 0xae6   : > { %7743 = vmatpush3.xpose.msk.msra.mxu0 %vm1038_vm4, %v12629_v29  ;;  %v995_v29 = vld [vmem:[%s10028_s13 + $0xe8] sm:$0xff] }
 0xae7   : > { %7744 = vmatprep.subr.msk.mxu0 %vm1038_vm4, %v3663_v6 }
 0xaea   : > { %7745 = vmatpush3.xpose.msk.msra.mxu0 %vm1038_vm4, %v3663_v6 }
 0xaf2   : > { %v3121_v16 = vpop.xlane.xlu0 %3120 }
 0xaf3   : > { %8580 = vrcp.f32 %v3121_v16 }
 0xaf4   : > { %v3124_v57 = vpop.xlane.xlu1 %3123 }
 0xaf5   : > { %8582 = vrcp.f32 %v3124_v57 }
 0xaf6   : > { %v3130_v22 = vpop.xlane.xlu0 %3129 }
 0xaf7   : > { %8584 = vrcp.f32 %v3130_v22 }
 0xaf8   : > { %v3127_v28 = vpop.xlane.xlu1 %3126 }
 0xaf9   : > { %8586 = vrcp.f32 %v3127_v28 }
 0xafa   : > { %v3133_v0 = vpop.xlane.xlu0 %3132 }
 0xafb   : > { %8588 = vrcp.f32 %v3133_v0  ;;  %v994_v0 = vld [vmem:[%s10028_s13 + $0xe0] sm:$0xff] }
 0xafc   : > { %v3136_v24 = vpop.xlane.xlu1 %3135 }
 0xafd   : > { %8590 = vrcp.f32 %v3136_v24 }
 0xafe   : > { %v3490_v63 = vpop.permute.xlu0 %3489 }
 0xaff   : > { %7730 = vmatmul.mubr.msk.f32.gmra.mxu1 %vm1038_vm4, %v3490_v63 }
 0xb00   : > { %v8581_v7 = vpop.eup %8580  ;;  %v3661_v25 = vpop.permute.xlu1 %3660 }
 0xb01   : > { %7746 = vmatprep.subr.msk.mxu0 %vm1038_vm4, %v3661_v25  ;;  %v3163_v37 = vmul.f32 %v8581_v7, %v11038_v58 }
 0xb02   : > { %v8583_v5 = vpop.eup %8582  ;;  %v3645_v61 = vpop.permute.xlu0 %3644  ;;  %7747 = vmatpush3.xpose.msk.msra.mxu0 %vm1038_vm4, %v3661_v25 }
 0xb03   : > { %7695 = vmatprep.mubr.msk.f32.mxu0 %vm248_vm1, %v3163_v37  ;;  %v3164_v14 = vmul.f32 %v8583_v5, %v11040_v10  ;;  %v997_v37 = vld [vmem:[%s10028_s13 + $0xf8] sm:$0xff] }
 0xb04   : > { %v3647_v62 = vpop.permute.xlu1 %3646  ;;  %v8585_v46 = vpop.eup %8584 }
 0xb05   : > { %7696 = vmatmul.mubr.msk.f32.gmra.mxu0 %vm248_vm1, %v3164_v14  ;;  %v3166_v58 = vmul.f32 %v8585_v46, %v11044_v53  ;;  %v996_v14 = vld [vmem:[%s10028_s13 + $0xf0] sm:$0xff] }
 0xb06   : > { %v8587_v1 = vpop.eup %8586  ;;  %v3649_v3 = vpop.permute.xlu0 %3648 }
 0xb07   : > { %v3165_v52 = vmul.f32 %v8587_v1, %v11048_v35 }
 0xb08   : > { %v8589_v59 = vpop.eup %8588  ;;  %v3651_v45 = vpop.permute.xlu1 %3650 }
 0xb09   : > { %7698 = vmatprep.mubr.msk.f32.mxu0 %vm248_vm1, %v3165_v52  ;;  %v3167_v47 = vmul.f32 %v8589_v59, %v11052_v13 }
 0xb0a   : > { %v8591_v42 = vpop.eup %8590  ;;  %v3653_v23 = vpop.permute.xlu0 %3652  ;;  %7699 = vmatmul.mubr.msk.f32.gmra.mxu0 %vm248_vm1, %v3166_v58 }
 0xb0b   : > { %7701 = vmatprep.mubr.msk.f32.mxu0 %vm248_vm1, %v3167_v47  ;;  %v3168_v10 = vmul.f32 %v8591_v42, %v11056_v27 }
 0xb0c   : > { %v3655_v38 = vpop.permute.xlu1 %3654 }
 0xb0e   : > { %v3657_v30 = vpop.permute.xlu0 %3656  ;;  %7702 = vmatmul.mubr.msk.f32.gmra.mxu0 %vm248_vm1, %v3168_v10 }
 0xb0f   : > { %7748 = vmatprep.mubr.msk.f32.mxu0 %vm1038_vm4, %v3645_v61 }
 0xb10   : > { %v3659_v35 = vpop.permute.xlu1 %3658 }
 0xb12   : > { %v4004_v53 = vpop.permute.xlu0 %4003  ;;  %7749 = vmatmul.mubr.msk.f32.vlgmr.msra.gmra.mxu0 %vm1038_vm4, %v3647_v62 }
 0xb13   : > { %7751 = vmatprep.mubr.msk.f32.mxu0 %vm1038_vm4, %v3649_v3  ;;  %7760 = vmatprep.subr.mxu1 %v4004_v53 }
 0xb14   : > { %7761 = vmatpush3.msra.mxu1 %v4004_v53  ;;  %v4002_v13 = vpop.permute.xlu1 %4001 }
 0xb15   : > { %7762 = vmatprep.subr.mxu1 %v4002_v13 }
 0xb16   : > { %v4000_v11 = vpop.permute.xlu0 %3999  ;;  %7752 = vmatmul.mubr.msk.f32.gmra.mxu0 %vm1038_vm4, %v3651_v45  ;;  %7763 = vmatpush3.msra.mxu1 %v4002_v13 }
 0xb17   : > { %7754 = vmatprep.mubr.msk.f32.mxu0 %vm1038_vm4, %v3653_v23  ;;  %7764 = vmatprep.subr.mxu1 %v4000_v11 }
 0xb18   : > { %7765 = vmatpush3.msra.mxu1 %v4000_v11  ;;  %v3998_v27 = vpop.permute.xlu1 %3997 }
 0xb19   : > { %7766 = vmatprep.subr.mxu1 %v3998_v27 }
 0xb1a   : > { %v3996_v50 = vpop.permute.xlu0 %3995  ;;  %7755 = vmatmul.mubr.msk.f32.gmra.mxu0 %vm1038_vm4, %v3655_v38  ;;  %7767 = vmatpush3.msra.mxu1 %v3998_v27 }
 0xb1b   : > { %7757 = vmatprep.mubr.msk.f32.mxu0 %vm1038_vm4, %v3657_v30  ;;  %7768 = vmatprep.subr.mxu1 %v3996_v50 }
 0xb1c   : > { %7769 = vmatpush3.msra.mxu1 %v3996_v50  ;;  %v3994_v43 = vpop.permute.xlu1 %3993 }
 0xb1d   : > { %7770 = vmatprep.subr.mxu1 %v3994_v43 }
 0xb1e   : > { %v3992_v48 = vpop.permute.xlu0 %3991  ;;  %7758 = vmatmul.mubr.msk.f32.gmra.mxu0 %vm1038_vm4, %v3659_v35  ;;  %7771 = vmatpush3.msra.mxu1 %v3994_v43 }
 0xb1f   : > { %7772 = vmatprep.subr.mxu1 %v3992_v48 }
 0xb20   : > { %7773 = vmatpush3.msra.mxu1 %v3992_v48  ;;  %v3990_v51 = vpop.permute.xlu1 %3989 }
 0xb21   : > { %7774 = vmatprep.subr.mxu1 %v3990_v51 }
 0xb22   : > { %v4157_v21 = vpop.permute.xlu0 %4156  ;;  %7775 = vmatpush3.msra.mxu1 %v3990_v51 }
 0xb23   : > { %7788 = vmatprep.subr.mxu0 %v4157_v21 }
 0xb24   : > { %7789 = vmatpush3.msra.mxu0 %v4157_v21  ;;  %v4155_v12 = vpop.permute.xlu1 %4154 }
 0xb25   : > { %7790 = vmatprep.subr.mxu0 %v4155_v12 }
 0xb26   : > { %7791 = vmatpush3.msra.mxu0 %v4155_v12 }
 0xb28   : > { %v4153_v55 = vpop.permute.xlu1 %4152 }
 0xb29   : > { %7792 = vmatprep.subr.mxu0 %v4153_v55 }
 0xb2a   : > { %7793 = vmatpush3.msra.mxu0 %v4153_v55 }
 0xb2c   : > { %v4151_v33 = vpop.permute.xlu1 %4150 }
 0xb2d   : > { %7794 = vmatprep.subr.mxu0 %v4151_v33 }
 0xb2e   : > { %7795 = vmatpush3.msra.mxu0 %v4151_v33 }
 0xb4b   : > { %v11220_v54 = vpop.f32.mrf.mxu1 }
 0xb4d   : > { %v11222_v56 = vpop.f32.mrf.mxu1 }
 0xb83   : > { %v11224_v18 = vpop.f32.mrf.mxu1 }
 0xb85   : > { %v11226_v20 = vpop.f32.mrf.mxu1 }
 0xb87   : > { %v11228_v34 = vpop.f32.mrf.mxu1 }
 0xb89   : > { %v11230_v49 = vpop.f32.mrf.mxu1 }
 0xb8b   : > { %v11232_v26 = vpop.f32.mrf.mxu1 }
 0xb8d   : > { %v11234_v40 = vpop.f32.mrf.mxu1 }
 0xb8f   : > { %v7722_v4 = vpop.f32.mrf.mxu1 }
 0xb90   : > { %v11238_v39 = vadd.f32 %v7722_v4, %v991_v32 }
 0xb91   : > { %v3605_v9 = vpop.f32.mrf.mxu1  ;;  %v11267_v5 = vpop.f32.mrf.mxu0 }
 0xb92   : > { %v11241_v31 = vadd.f32 %v3605_v9, %v990_v15  ;;  %v3816_v8 = vsel %vm248_vm1, %v11238_v39, -inf }
 0xb93   : > { %3817 = vmax.xlane.f32.xlu1 %v3816_v8  ;;  %v7725_v36 = vpop.f32.mrf.mxu1  ;;  %v11276_v52 = vpop.f32.mrf.mxu0 }
 0xb94   : > { %v11245_v60 = vadd.f32 %v7725_v36, %v993_v19  ;;  %v3813_v17 = vsel %vm248_vm1, %v11241_v31, -inf }
 0xb95   : > { %v3615_v2 = vpop.f32.mrf.mxu1  ;;  %3814 = vmax.xlane.f32.xlu0 %v3813_v17 }
 0xb96   : > { %v11251_v16 = vadd.f32 %v3615_v2, %v992_v41  ;;  %v3822_v22 = vsel %vm248_vm1, %v11245_v60, -inf }
 0xb97   : > { %v7728_v6 = vpop.f32.mrf.mxu1 }
 0xb98   : > { %v11253_v57 = vadd.f32 %v7728_v6, %v995_v29  ;;  %v3819_v7 = vsel %vm248_vm1, %v11251_v16, -inf }
 0xb99   : > { %v3625_v28 = vpop.f32.mrf.mxu1  ;;  %3823 = vmax.xlane.f32.xlu0 %v3822_v22 }
 0xb9a   : > { %v3828_v24 = vsel %vm248_vm1, %v11253_v57, -inf  ;;  %v11260_v63 = vadd.f32 %v3625_v28, %v994_v0 }
 0xb9b   : > { %3829 = vmax.xlane.f32.xlu1 %v3828_v24 }
 0xb9c   : > { %v3825_v25 = vsel %vm248_vm1, %v11260_v63, -inf }
 0xb9d   : > { %3820 = vmax.xlane.f32.xlu0 %v3819_v7 }
 0xba1   : > { %3826 = vmax.xlane.f32.xlu0 %v3825_v25 }
 0xbbf   : > { %v7731_v61 = vpop.f32.mrf.mxu1 }
 0xbc0   : > { %v11270_v62 = vadd.f32 %v7731_v61, %v997_v37 }
 0xbc1   : > { %v3635_v46 = vpop.f32.mrf.mxu1 }
 0xbc2   : > { %v11272_v1 = vadd.f32 %v3635_v46, %v996_v14  ;;  %v3834_v3 = vsel %vm248_vm1, %v11270_v62, -inf }
 0xbc3   : > { %3835 = vmax.xlane.f32.xlu1 %v3834_v3 }
 0xbc4   : > { %v3831_v59 = vsel %vm248_vm1, %v11272_v1, -inf }
 0xbc5   : > { %3832 = vmax.xlane.f32.xlu0 %v3831_v59  ;;  %v11280_v45 = vpop.f32.mrf.mxu0 }
 0xbc7   : > { %v11282_v58 = vpop.f32.mrf.mxu0 }
 0xbca   : > { %v11284_v47 = vpop.f32.mrf.mxu0 }
 0xbcc   : > { %v11286_v42 = vpop.f32.mrf.mxu0 }
 0xbce   : > { %v11288_v23 = vpop.f32.mrf.mxu0 }
 0xbd0   : > { %v11290_v10 = vpop.f32.mrf.mxu0 }
 0xbd2   : > { %v7750_v38 = vpop.f32.mrf.mxu0 }
 0xbd3   : > { %v11292_v30 = vadd.f32 %v7750_v38, %v991_v32 }
 0xbd4   : > { %v3774_v35 = vpop.f32.mrf.mxu0 }
 0xbd5   : > { %v11294_v53 = vadd.f32 %v3774_v35, %v990_v15  ;;  %v3840_v13 = vsel %vm248_vm1, %v11292_v30, -inf }
 0xbd6   : > { %3841 = vmax.xlane.f32.xlu1 %v3840_v13  ;;  %v7753_v11 = vpop.f32.mrf.mxu0 }
 0xbd7   : > { %v11298_v27 = vadd.f32 %v7753_v11, %v993_v19  ;;  %v3837_v50 = vsel %vm248_vm1, %v11294_v53, -inf }
 0xbd8   : > { %3838 = vmax.xlane.f32.xlu0 %v3837_v50  ;;  %v3784_v43 = vpop.f32.mrf.mxu0 }
 0xbd9   : > { %v11302_v48 = vadd.f32 %v3784_v43, %v992_v41  ;;  %v3846_v51 = vsel %vm248_vm1, %v11298_v27, -inf  ;;  %v12630_v41 = vld [vmem:[#allocation53_spill] sm:$0xff] }
 0xbda   : > { %3847 = vmax.xlane.f32.xlu1 %v3846_v51  ;;  %v7756_v21 = vpop.f32.mrf.mxu0 }
 0xbdb   : > { %v11306_v12 = vadd.f32 %v7756_v21, %v995_v29  ;;  %v3843_v55 = vsel %vm248_vm1, %v11302_v48, -inf  ;;  %v12631_v29 = vld [vmem:[#allocation49_spill] sm:$0xff] }
 0xbdc   : > { %3844 = vmax.xlane.f32.xlu0 %v3843_v55  ;;  %v3794_v33 = vpop.f32.mrf.mxu0 }
 0xbdd   : > { %v11310_v32 = vadd.f32 %v3794_v33, %v994_v0  ;;  %v3852_v4 = vsel %vm248_vm1, %v11306_v12, -inf }
 0xbde   : > { %3853 = vmax.xlane.f32.xlu1 %v3852_v4  ;;  %v7759_v15 = vpop.f32.mrf.mxu0 }
 0xbdf   : > { %v11314_v9 = vadd.f32 %v7759_v15, %v997_v37  ;;  %v3849_v19 = vsel %vm248_vm1, %v11310_v32, -inf }
 0xbe0   : > { %3850 = vmax.xlane.f32.xlu0 %v3849_v19  ;;  %v3804_v8 = vpop.f32.mrf.mxu0 }
 0xbe1   : > { %v11318_v36 = vadd.f32 %v3804_v8, %v996_v14  ;;  %v3858_v17 = vsel %vm248_vm1, %v11314_v9, -inf }
 0xbe2   : > { %3859 = vmax.xlane.f32.xlu1 %v3858_v17 }
 0xbe3   : > { %v3855_v2 = vsel %vm248_vm1, %v11318_v36, -inf }
 0xbe4   : > { %3856 = vmax.xlane.f32.xlu0 %v3855_v2 }
 0xbf3   : > { %4146 = vrot.lane.b32.xlu1 %v12630_v41, %s9212_s22 }
 0xbfa   : > { %4148 = vrot.lane.b32.xlu0 %v12631_v29, %s9212_s22 }
 0xc1c   : > { %v3818_v6 = vpop.xlane.xlu1 %3817 }
 0xc1d   : > { %v3862_v22 = vsub.f32 %v11238_v39, %v3818_v6 }
 0xc1e   : > { %v3815_v28 = vpop.xlane.xlu0 %3814 }
 0xc1f   : > { %v3879_v0 = vmul.f32 1.442695, %v3862_v22  ;;  %v3861_v24 = vsub.f32 %v11241_v31, %v3815_v28 }
 0xc21   : > { %8592 = vpow2.f32 %v3879_v0  ;;  %v3877_v7 = vmul.f32 1.442695, %v3861_v24 }
 0xc22   : > { %v3824_v25 = vpop.xlane.xlu0 %3823 }
 0xc23   : > { %8594 = vpow2.f32 %v3877_v7  ;;  %v3864_v37 = vsub.f32 %v11245_v60, %v3824_v25 }
 0xc24   : > { %v3830_v61 = vpop.xlane.xlu1 %3829 }
 0xc25   : > { %v3883_v14 = vmul.f32 1.442695, %v3864_v37  ;;  %v3866_v46 = vsub.f32 %v11253_v57, %v3830_v61 }
 0xc26   : > { %v3821_v3 = vpop.xlane.xlu0 %3820 }
 0xc27   : > { %8596 = vpow2.f32 %v3883_v14  ;;  %v3887_v59 = vmul.f32 1.442695, %v3866_v46  ;;  %v3863_v38 = vsub.f32 %v11251_v16, %v3821_v3 }
 0xc29   : > { %8598 = vpow2.f32 %v3887_v59  ;;  %v3881_v39 = vmul.f32 1.442695, %v3863_v38 }
 0xc2a   : > { %v3827_v35 = vpop.xlane.xlu0 %3826 }
 0xc2b   : > { %8600 = vpow2.f32 %v3881_v39  ;;  %v3865_v31 = vsub.f32 %v11260_v63, %v3827_v35 }
 0xc2d   : > { %v3885_v13 = vmul.f32 1.442695, %v3865_v31 }
 0xc2e   : > { %v11334_v11 = vpop.eup %8592 }
 0xc2f   : > { %8602 = vpow2.f32 %v3885_v13  ;;  %v3912_v60 = vsel %vm248_vm1, %v11334_v11, 0.0 }
 0xc30   : > { %v11338_v50 = vpop.eup %8594  ;;  %3913 = vadd.xlane.f32.xlu1 %v3912_v60 }
 0xc31   : > { %v3909_v57 = vsel %vm248_vm1, %v11338_v50, 0.0 }
 0xc32   : > { %3910 = vadd.xlane.f32.xlu0 %v3909_v57 }
 0xc34   : > { %v11342_v16 = vpop.eup %8596 }
 0xc35   : > { %v3918_v43 = vsel %vm248_vm1, %v11342_v16, 0.0 }
 0xc36   : > { %v11346_v63 = vpop.eup %8598  ;;  %3919 = vadd.xlane.f32.xlu1 %v3918_v43 }
 0xc37   : > { %v3924_v55 = vsel %vm248_vm1, %v11346_v63, 0.0 }
 0xc38   : > { %v11348_v51 = vpop.eup %8600 }
 0xc39   : > { %v3915_v21 = vsel %vm248_vm1, %v11348_v51, 0.0 }
 0xc3a   : > { %3916 = vadd.xlane.f32.xlu0 %v3915_v21  ;;  %3925 = vadd.xlane.f32.xlu1 %v3924_v55 }
 0xc3c   : > { %v11354_v33 = vpop.eup %8602 }
 0xc3d   : > { %v3921_v4 = vsel %vm248_vm1, %v11354_v33, 0.0 }
 0xc3e   : > { %3922 = vadd.xlane.f32.xlu0 %v3921_v4 }
 0xc4c   : > { %v3836_v15 = vpop.xlane.xlu1 %3835 }
 0xc4d   : > { %v3868_v19 = vsub.f32 %v11270_v62, %v3836_v15 }
 0xc4e   : > { %v3833_v8 = vpop.xlane.xlu0 %3832 }
 0xc4f   : > { %v3891_v17 = vmul.f32 1.442695, %v3868_v19  ;;  %v3867_v2 = vsub.f32 %v11272_v1, %v3833_v8 }
 0xc51   : > { %8604 = vpow2.f32 %v3891_v17  ;;  %v3889_v41 = vmul.f32 1.442695, %v3867_v2 }
 0xc53   : > { %8606 = vpow2.f32 %v3889_v41 }
 0xc5e   : > { %v11360_v29 = vpop.eup %8604 }
 0xc5f   : > { %v3842_v6 = vpop.xlane.xlu1 %3841  ;;  %v3930_v22 = vsel %vm248_vm1, %v11360_v29, 0.0 }
 0xc60   : > { %v11364_v28 = vpop.eup %8606  ;;  %v3870_v0 = vsub.f32 %v11292_v30, %v3842_v6  ;;  %3931 = vadd.xlane.f32.xlu1 %v3930_v22 }
 0xc61   : > { %v3839_v24 = vpop.xlane.xlu0 %3838  ;;  %v3927_v62 = vsel %vm248_vm1, %v11364_v28, 0.0 }
 0xc62   : > { %v3895_v7 = vmul.f32 1.442695, %v3870_v0  ;;  %v3869_v1 = vsub.f32 %v11294_v53, %v3839_v24  ;;  %3928 = vadd.xlane.f32.xlu0 %v3927_v62 }
 0xc63   : > { %v3848_v25 = vpop.xlane.xlu1 %3847 }
 0xc64   : > { %8608 = vpow2.f32 %v3895_v7  ;;  %v3893_v37 = vmul.f32 1.442695, %v3869_v1  ;;  %v3872_v61 = vsub.f32 %v11298_v27, %v3848_v25  ;;  %v12632_v7 = vld [vmem:[#allocation50_spill] sm:$0xff]  ;;  %v12633_v1 = vld [vmem:[#allocation52_spill] sm:$0xff] }
 0xc65   : > { %v3845_v14 = vpop.xlane.xlu0 %3844  ;;  %v12634_v25 = vld [vmem:[#allocation76_spill] sm:$0xff] }
 0xc66   : > { %8610 = vpow2.f32 %v3893_v37  ;;  %v3899_v46 = vmul.f32 1.442695, %v3872_v61  ;;  %v3871_v3 = vsub.f32 %v11302_v48, %v3845_v14  ;;  %v12635_v37 = vld [vmem:[#allocation78_spill] sm:$0xff]  ;;  %v12637_v61 = vld [vmem:[#allocation77_spill] sm:$0xff] }
 0xc67   : > { %v3854_v30 = vpop.xlane.xlu1 %3853 }
 0xc68   : > { %8612 = vpow2.f32 %v3899_v46  ;;  %v3897_v59 = vmul.f32 1.442695, %v3871_v3  ;;  %v3874_v38 = vsub.f32 %v11306_v12, %v3854_v30  ;;  %v12644_v46 = vld [vmem:[#allocation79_spill] sm:$0xff]  ;;  %v12645_v30 = vld [vmem:[#allocation80_spill] sm:$0xff] }
 0xc69   : > { %v3851_v39 = vpop.xlane.xlu0 %3850 }
 0xc6a   : > { %8614 = vpow2.f32 %v3897_v59  ;;  %v3903_v35 = vmul.f32 1.442695, %v3874_v38  ;;  %v3873_v53 = vsub.f32 %v11310_v32, %v3851_v39  ;;  %v12646_v39 = vld [vmem:[#allocation81_spill] sm:$0xff] }
 0xc6b   : > { %v3860_v31 = vpop.xlane.xlu1 %3859 }
 0xc6c   : > { %8616 = vpow2.f32 %v3903_v35  ;;  %v3901_v13 = vmul.f32 1.442695, %v3873_v53  ;;  %v3876_v27 = vsub.f32 %v11314_v9, %v3860_v31 }
 0xc6d   : > { %v3857_v60 = vpop.xlane.xlu0 %3856 }
 0xc6e   : > { %8618 = vpow2.f32 %v3901_v13  ;;  %v3907_v57 = vmul.f32 1.442695, %v3876_v27  ;;  %v3875_v48 = vsub.f32 %v11318_v36, %v3857_v60  ;;  %v12648_v13 = vld [vmem:[#allocation83_spill] sm:$0xff] }
 0xc6f   : > { %v4147_v4 = vpop.permute.xlu1 %4146 }
 0xc70   : > { %8620 = vpow2.f32 %v3907_v57  ;;  %v3905_v43 = vmul.f32 1.442695, %v3875_v48 }
 0xc71   : > { %v11376_v21 = vpop.eup %8608  ;;  %v4149_v12 = vpop.permute.xlu0 %4148 }
 0xc72   : > { %8622 = vpow2.f32 %v3905_v43  ;;  %7796 = vmatprep.subr.mxu0 %v4149_v12  ;;  %v3936_v32 = vsel %vm248_vm1, %v11376_v21, 0.0 }
 0xc73   : > { %v11380_v55 = vpop.eup %8610  ;;  %7797 = vmatpush3.msra.mxu0 %v4149_v12  ;;  %3937 = vadd.xlane.f32.xlu0 %v3936_v32 }
 0xc74   : > { %7798 = vmatprep.subr.mxu0 %v4147_v4  ;;  %v3933_v9 = vsel %vm248_vm1, %v11380_v55, 0.0 }
 0xc75   : > { %v11384_v36 = vpop.eup %8612  ;;  %3934 = vadd.xlane.f32.xlu1 %v3933_v9  ;;  %7799 = vmatpush3.msra.mxu0 %v4147_v4 }
 0xc76   : > { %v3942_v15 = vsel %vm248_vm1, %v11384_v36, 0.0 }
 0xc77   : > { %v11388_v19 = vpop.eup %8614  ;;  %3943 = vadd.xlane.f32.xlu0 %v3942_v15 }
 0xc78   : > { %v3939_v8 = vsel %vm248_vm1, %v11388_v19, 0.0 }
 0xc79   : > { %v11392_v17 = vpop.eup %8616  ;;  %3940 = vadd.xlane.f32.xlu1 %v3939_v8 }
 0xc7a   : > { %v3948_v2 = vsel %vm248_vm1, %v11392_v17, 0.0 }
 0xc7b   : > { %v11396_v41 = vpop.eup %8618  ;;  %3949 = vadd.xlane.f32.xlu0 %v3948_v2 }
 0xc7c   : > { %v3945_v6 = vsel %vm248_vm1, %v11396_v41, 0.0 }
 0xc7d   : > { %v11400_v22 = vpop.eup %8620  ;;  %3946 = vadd.xlane.f32.xlu1 %v3945_v6 }
 0xc7e   : > { %v3954_v0 = vsel %vm248_vm1, %v11400_v22, 0.0 }
 0xc7f   : > { %v11404_v24 = vpop.eup %8622  ;;  %3955 = vadd.xlane.f32.xlu0 %v3954_v0 }
 0xc80   : > { %v3951_v62 = vsel %vm248_vm1, %v11404_v24, 0.0 }
 0xc81   : > { %3952 = vadd.xlane.f32.xlu1 %v3951_v62 }
 0xc92   : > { %4142 = vrot.lane.b32.xlu1 %v9787_v44, %s9212_s22  ;;  %v12636_v44 = vld [vmem:[#allocation75_spill] sm:$0xff] }
 0xc95   : > { %4144 = vrot.lane.b32.xlu0 %v12632_v7, %s9212_s22 }
 0xc96   : > { %4313 = vrot.lane.b32.xlu1 %v12633_v1, %s9213_s23 }
 0xc99   : > { %4311 = vrot.lane.b32.xlu0 %v12634_v25, %s9213_s23 }
 0xc9a   : > { %4377 = vrot.lane.b32.xlu1 %v11220_v54, %s9214_s6  ;;  %v12638_v54 = vld [vmem:[#allocation59_spill] sm:$0xff] }
 0xc9d   : > { %4375 = vrot.lane.b32.xlu0 %v11222_v56, %s9214_s6  ;;  %v12639_v56 = vld [vmem:[#allocation72_spill] sm:$0xff] }
 0xc9e   : > { %4317 = vrot.lane.b32.xlu1 %v12635_v37, %s9213_s23 }
 0xca1   : > { %4315 = vrot.lane.b32.xlu0 %v12636_v44, %s9213_s23 }
 0xca2   : > { %4381 = vrot.lane.b32.xlu1 %v11224_v18, %s9214_s6  ;;  %v12640_v18 = vld [vmem:[#allocation48_spill] sm:$0xff] }
 0xca5   : > { %4379 = vrot.lane.b32.xlu0 %v11226_v20, %s9214_s6  ;;  %v12641_v20 = vld [vmem:[#allocation73_spill] sm:$0xff] }
 0xca6   : > { %4321 = vrot.lane.b32.xlu1 %v12637_v61, %s9213_s23 }
 0xca9   : > { %4319 = vrot.lane.b32.xlu0 %v12638_v54, %s9213_s23 }
 0xcaa   : > { %4385 = vrot.lane.b32.xlu1 %v11228_v34, %s9214_s6  ;;  %v12642_v34 = vld [vmem:[#allocation74_spill] sm:$0xff] }
 0xcad   : > { %4383 = vrot.lane.b32.xlu0 %v11230_v49, %s9214_s6 }
 0xcae   : > { %4325 = vrot.lane.b32.xlu1 %v12639_v56, %s9213_s23 }
 0xcb1   : > { %4323 = vrot.lane.b32.xlu0 %v12640_v18, %s9213_s23 }
 0xcb2   : > { %4389 = vrot.lane.b32.xlu1 %v11232_v26, %s9214_s6  ;;  %v12643_v26 = vld [vmem:[#allocation54_spill] sm:$0xff] }
 0xcb5   : > { %4387 = vrot.lane.b32.xlu0 %v11234_v40, %s9214_s6 }
 0xcb6   : > { %4329 = vrot.lane.b32.xlu1 %v12641_v20, %s9213_s23 }
 0xcb9   : > { %4327 = vrot.lane.b32.xlu0 %v12642_v34, %s9213_s23  ;;  %v3914_v14 = vpop.xlane.xlu1 %3913 }
 0xcba   : > { %4393 = vrot.lane.b32.xlu1 %v11267_v5, %s9214_s6  ;;  %8624 = vrcp.f32 %v3914_v14 }
 0xcbb   : > { %v3911_v49 = vpop.xlane.xlu0 %3910 }
 0xcbc   : > { %8626 = vrcp.f32 %v3911_v49 }
 0xcbd   : > { %4391 = vrot.lane.b32.xlu0 %v11276_v52, %s9214_s6 }
 0xcbe   : > { %4333 = vrot.lane.b32.xlu1 %v12643_v26, %s9213_s23 }
 0xcbf   : > { %v3920_v40 = vpop.xlane.xlu1 %3919 }
 0xcc0   : > { %8628 = vrcp.f32 %v3920_v40 }
 0xcc1   : > { %4331 = vrot.lane.b32.xlu0 %v12644_v46, %s9213_s23 }
 0xcc2   : > { %4397 = vrot.lane.b32.xlu1 %v11280_v45, %s9214_s6 }
 0xcc3   : > { %v3917_v3 = vpop.xlane.xlu0 %3916  ;;  %v3926_v5 = vpop.xlane.xlu1 %3925 }
 0xcc4   : > { %8630 = vrcp.f32 %v3917_v3 }
 0xcc5   : > { %4395 = vrot.lane.b32.xlu0 %v11282_v58, %s9214_s6  ;;  %8632 = vrcp.f32 %v3926_v5  ;;  %v12647_v58 = vld [vmem:[#allocation82_spill] sm:$0xff] }
 0xcc6   : > { %4337 = vrot.lane.b32.xlu1 %v12645_v30, %s9213_s23  ;;  %v12649_v30 = vld [vmem:[#allocation62_spill] sm:$0xff] }
 0xcc7   : > { %v3923_v52 = vpop.xlane.xlu0 %3922  ;;  %v8625_v59 = vpop.eup %8624 }
 0xcc8   : > { %8634 = vrcp.f32 %v3923_v52  ;;  %v3974_v35 = vmul.f32 %v8625_v59, %v11334_v11 }
 0xcc9   : > { %v8627_v38 = vpop.eup %8626  ;;  %4335 = vrot.lane.b32.xlu0 %v12646_v39, %s9213_s23 }
 0xcca   : > { %4401 = vrot.lane.b32.xlu1 %v11284_v47, %s9214_s6  ;;  %v3973_v45 = vmul.f32 %v8627_v38, %v11338_v50  ;;  %v12650_v38 = vld [vmem:[#allocation63_spill] sm:$0xff] }
 0xccc   : > { %7776 = vmatprep.mubr.msk.f32.mxu1 %vm248_vm1, %v3973_v45 }
 0xccd   : > { %4399 = vrot.lane.b32.xlu0 %v11286_v42, %s9214_s6  ;;  %7777 = vmatmul.mubr.msk.f32.vlgmr.msra.gmra.mxu1 %vm248_vm1, %v3974_v35  ;;  %v8629_v53 = vpop.eup %8628 }
 0xcce   : > { %4341 = vrot.lane.b32.xlu1 %v12647_v58, %s9213_s23  ;;  %v3976_v11 = vmul.f32 %v8629_v53, %v11342_v16 }
 0xcd1   : > { %v8631_v31 = vpop.eup %8630  ;;  %4339 = vrot.lane.b32.xlu0 %v12648_v13, %s9213_s23 }
 0xcd2   : > { %4405 = vrot.lane.b32.xlu1 %v11288_v23, %s9214_s6  ;;  %v3975_v47 = vmul.f32 %v8631_v31, %v11348_v51  ;;  %v8633_v50 = vpop.eup %8632  ;;  %v12651_v31 = vld [vmem:[#allocation57_spill] sm:$0xff] }
 0xcd3   : > { %v3978_v60 = vmul.f32 %v8633_v50, %v11346_v63  ;;  %v12652_v50 = vld [vmem:[#allocation56_spill] sm:$0xff] }
 0xcd4   : > { %7779 = vmatprep.mubr.msk.f32.mxu1 %vm248_vm1, %v3975_v47 }
 0xcd5   : > { %v8635_v42 = vpop.eup %8634  ;;  %4403 = vrot.lane.b32.xlu0 %v11290_v10, %s9214_s6  ;;  %7780 = vmatmul.mubr.msk.f32.gmra.mxu1 %vm248_vm1, %v3976_v11 }
 0xcd6   : > { %v3977_v27 = vmul.f32 %v8635_v42, %v11354_v33 }
 0xcd8   : > { %7782 = vmatprep.mubr.msk.f32.mxu1 %vm248_vm1, %v3977_v27 }
 0xcd9   : > { %7783 = vmatmul.mubr.msk.f32.gmra.mxu1 %vm248_vm1, %v3978_v60 }
 0xce9   : > { %v3932_v23 = vpop.xlane.xlu1 %3931 }
 0xcea   : > { %8636 = vrcp.f32 %v3932_v23 }
 0xceb   : > { %v3929_v16 = vpop.xlane.xlu0 %3928 }
 0xcec   : > { %8638 = vrcp.f32 %v3929_v16 }
 0xcf7   : > { %v8637_v51 = vpop.eup %8636 }
 0xcf8   : > { %v3980_v10 = vmul.f32 %v8637_v51, %v11360_v29  ;;  %v12653_v51 = vld [vmem:[#allocation67_spill] sm:$0xff] }
 0xcf9   : > { %v8639_v57 = vpop.eup %8638 }
 0xcfa   : > { %v3979_v48 = vmul.f32 %v8639_v57, %v11364_v28 }
 0xcfc   : > { %v3938_v43 = vpop.xlane.xlu0 %3937  ;;  %7785 = vmatprep.mubr.msk.f32.mxu1 %vm248_vm1, %v3979_v48 }
 0xcfd   : > { %7786 = vmatmul.mubr.msk.f32.gmra.mxu1 %vm248_vm1, %v3980_v10  ;;  %8640 = vrcp.f32 %v3938_v43  ;;  %v12654_v43 = vld [vmem:[#allocation58_spill] sm:$0xff] }
 0xcfe   : > { %v3935_v63 = vpop.xlane.xlu1 %3934 }
 0xcff   : > { %8642 = vrcp.f32 %v3935_v63 }
 0xd00   : > { %v3944_v33 = vpop.xlane.xlu0 %3943 }
 0xd01   : > { %8644 = vrcp.f32 %v3944_v33 }
 0xd02   : > { %v3941_v12 = vpop.xlane.xlu1 %3940 }
 0xd03   : > { %8646 = vrcp.f32 %v3941_v12 }
 0xd04   : > { %v3950_v32 = vpop.xlane.xlu0 %3949 }
 0xd05   : > { %8648 = vrcp.f32 %v3950_v32 }
 0xd06   : > { %v3947_v4 = vpop.xlane.xlu1 %3946 }
 0xd07   : > { %8650 = vrcp.f32 %v3947_v4 }
 0xd08   : > { %v3956_v9 = vpop.xlane.xlu0 %3955 }
 0xd09   : > { %8652 = vrcp.f32 %v3956_v9  ;;  %v12655_v9 = vld [vmem:[#allocation69_spill] sm:$0xff] }
 0xd0a   : > { %v3953_v28 = vpop.xlane.xlu1 %3952  ;;  %v8641_v29 = vpop.eup %8640 }
 0xd0b   : > { %8654 = vrcp.f32 %v3953_v28  ;;  %v3982_v62 = vmul.f32 %v8641_v29, %v11376_v21 }
 0xd0c   : > { %v8643_v15 = vpop.eup %8642  ;;  %v4145_v8 = vpop.permute.xlu0 %4144 }
 0xd0d   : > { %7800 = vmatprep.subr.mxu0 %v4145_v8  ;;  %v3981_v2 = vmul.f32 %v8643_v15, %v11380_v55 }
 0xd0e   : > { %7801 = vmatpush3.msra.mxu0 %v4145_v8  ;;  %v4143_v6 = vpop.permute.xlu1 %4142  ;;  %v8645_v0 = vpop.eup %8644  ;;  %v12656_v8 = vld [vmem:[#allocation68_spill] sm:$0xff] }
 0xd0f   : > { %7802 = vmatprep.subr.mxu0 %v4143_v6  ;;  %7804 = vmatprep.mubr.msk.f32.mxu0 %vm248_vm1, %v3981_v2  ;;  %v3984_v55 = vmul.f32 %v8645_v0, %v11384_v36 }
 0xd10   : > { %v8647_v7 = vpop.eup %8646  ;;  %v11495_v1 = vpop.permute.xlu0 %4311  ;;  %7803 = vmatpush3.msra.mxu0 %v4143_v6 }
 0xd11   : > { %7805 = vmatmul.mubr.msk.f32.vlgmr.msra.gmra.mxu0 %vm248_vm1, %v3982_v62  ;;  %v3983_v25 = vmul.f32 %v8647_v7, %v11388_v19 }
 0xd12   : > { %v11499_v37 = vpop.permute.xlu1 %4313  ;;  %v8649_v44 = vpop.eup %8648 }
 0xd13   : > { %7807 = vmatprep.mubr.msk.f32.mxu0 %vm248_vm1, %v3983_v25  ;;  %v3986_v19 = vmul.f32 %v8649_v44, %v11392_v17  ;;  %v12657_v25 = vld [vmem:[#allocation71_spill] sm:$0xff] }
 0xd14   : > { %v8651_v61 = vpop.eup %8650  ;;  %v11503_v54 = vpop.permute.xlu0 %4375 }
 0xd15   : > { %7808 = vmatmul.mubr.msk.f32.gmra.mxu0 %vm248_vm1, %v3984_v55  ;;  %v3985_v21 = vmul.f32 %v8651_v61, %v11396_v41 }
 0xd16   : > { %v11507_v56 = vpop.permute.xlu1 %4377  ;;  %v8653_v18 = vpop.eup %8652 }
 0xd17   : > { %7810 = vmatprep.mubr.msk.f32.mxu0 %vm248_vm1, %v3985_v21  ;;  %v3988_v41 = vmul.f32 %v8653_v18, %v11400_v22  ;;  %v12658_v21 = vld [vmem:[#allocation70_spill] sm:$0xff] }
 0xd18   : > { %v8655_v20 = vpop.eup %8654  ;;  %v11511_v34 = vpop.permute.xlu0 %4315 }
 0xd19   : > { %7811 = vmatmul.mubr.msk.f32.gmra.mxu0 %vm248_vm1, %v3986_v19  ;;  %v3987_v36 = vmul.f32 %v8655_v20, %v11404_v24 }
 0xd1a   : > { %v11515_v14 = vpop.permute.xlu1 %4317 }
 0xd1b   : > { %7813 = vmatprep.mubr.msk.f32.mxu0 %vm248_vm1, %v3987_v36  ;;  %v4541_v36 = vld [vmem:[%s4537_s25 + $0x18] sm:$0xff] }
 0xd1c   : > { %v11519_v49 = vpop.permute.xlu0 %4379  ;;  %7816 = vmatprep.subr.mxu1 %v4541_v36 }
 0xd1d   : > { %7814 = vmatmul.mubr.msk.f32.gmra.mxu0 %vm248_vm1, %v3988_v41  ;;  %v4540_v41 = vld [vmem:[%s4537_s25 + $0x10] sm:$0xff]  ;;  %7817 = vmatpush3.msra.mxu1 %v4541_v36 }
 0xd1e   : > { %v11522_v26 = vpop.permute.xlu1 %4381  ;;  %7818 = vmatprep.subr.mxu1 %v4540_v41 }
 0xd1f   : > { %7819 = vmatpush3.msra.mxu1 %v4540_v41 }
 0xd20   : > { %v11524_v17 = vpop.permute.xlu0 %4319 }
 0xd22   : > { %v11526_v40 = vpop.permute.xlu1 %4321 }
 0xd24   : > { %v11528_v46 = vpop.permute.xlu0 %4383 }
 0xd26   : > { %v11530_v3 = vpop.permute.xlu1 %4385 }
 0xd28   : > { %v4324_v24 = vpop.permute.xlu0 %4323 }
 0xd29   : > { %v4493_v22 = vsel %vm1038_vm4, %v12649_v30, %v4324_v24  ;;  %v4539_v24 = vld [vmem:[%s4537_s25 + $0x8] sm:$0xff] }
 0xd2a   : > { %v4326_v5 = vpop.permute.xlu1 %4325  ;;  %7820 = vmatprep.subr.mxu1 %v4539_v24 }
 0xd2b   : > { %v4494_v39 = vsel %vm1038_vm4, %v12650_v38, %v4326_v5  ;;  %7821 = vmatpush3.msra.mxu1 %v4539_v24  ;;  %v4538_v5 = vld [vmem:[%s4537_s25] sm:$0xff] }
 0xd2c   : > { %v4388_v52 = vpop.permute.xlu0 %4387  ;;  %7822 = vmatprep.subr.mxu1 %v4538_v5 }
 0xd2d   : > { %v11535_v59 = vsel %vm4503_vm5, %v4493_v22, %v4388_v52  ;;  %7823 = vmatpush3.msra.mxu1 %v4538_v5 }
 0xd2e   : > { %v4390_v45 = vpop.permute.xlu1 %4389 }
 0xd2f   : > { %v11540_v35 = vsel %vm4503_vm5, %v4494_v39, %v4390_v45 }
 0xd30   : > { %v4328_v58 = vpop.permute.xlu0 %4327 }
 0xd31   : > { %v4495_v13 = vsel %vm1038_vm4, %v12651_v31, %v4328_v58 }
 0xd32   : > { %v4330_v53 = vpop.permute.xlu1 %4329 }
 0xd33   : > { %v4496_v42 = vsel %vm1038_vm4, %v12652_v50, %v4330_v53 }
 0xd34   : > { %v4392_v47 = vpop.permute.xlu0 %4391 }
 0xd35   : > { %v11545_v11 = vsel %vm4503_vm5, %v4495_v13, %v4392_v47 }
 0xd36   : > { %v4394_v27 = vpop.permute.xlu1 %4393 }
 0xd37   : > { %v11550_v60 = vsel %vm4503_vm5, %v4496_v42, %v4394_v27 }
 0xd38   : > { %v4332_v23 = vpop.permute.xlu0 %4331 }
 0xd39   : > { %v4497_v57 = vsel %vm1038_vm4, %v12653_v51, %v4332_v23  ;;  %v12659_v51 = vld [vmem:[#allocation64_spill] sm:$0xff] }
 0xd3a   : > { %v4334_v16 = vpop.permute.xlu1 %4333 }
 0xd3b   : > { %v4498_v63 = vsel %vm1038_vm4, %v12654_v43, %v4334_v16  ;;  %v12660_v43 = vld [vmem:[#allocation65_spill] sm:$0xff] }
 0xd3c   : > { %v4396_v48 = vpop.permute.xlu0 %4395 }
 0xd3d   : > { %v11555_v10 = vsel %vm4503_vm5, %v4497_v57, %v4396_v48  ;;  %v4487_v57 = vsel %vm1038_vm4, %v12659_v51, %v11495_v1 }
 0xd3e   : > { %v4398_v33 = vpop.permute.xlu1 %4397 }
 0xd3f   : > { %v11560_v12 = vsel %vm4503_vm5, %v4498_v63, %v4398_v33  ;;  %v4488_v63 = vsel %vm1038_vm4, %v12660_v43, %v11499_v37  ;;  %v4504_v33 = vsel %vm4503_vm5, %v4487_v57, %v11503_v54 }
 0xd40   : > { %v4336_v32 = vpop.permute.xlu0 %4335 }
 0xd41   : > { %v4499_v28 = vsel %vm1038_vm4, %v12655_v9, %v4336_v32 }
 0xd42   : > { %v4338_v4 = vpop.permute.xlu1 %4337 }
 0xd43   : > { %v4500_v2 = vsel %vm1038_vm4, %v12656_v8, %v4338_v4  ;;  %v4505_v4 = vsel %vm4503_vm5, %v4488_v63, %v11507_v56  ;;  %v12662_v8 = vld [vmem:[#allocation66_spill] sm:$0xff] }
 0xd44   : > { %v4400_v29 = vpop.permute.xlu0 %4399  ;;  %v4490_v54 = vsel %vm1038_vm4, %v12662_v8, %v11515_v14  ;;  %v12664_v14 = vld [vmem:[#allocation55_spill] sm:$0xff] }
 0xd45   : > { %v11565_v15 = vsel %vm4503_vm5, %v4499_v28, %v4400_v29  ;;  %v12661_v29 = vld [vmem:[#allocation60_spill] sm:$0xff] }
 0xd46   : > { %v4402_v6 = vpop.permute.xlu1 %4401  ;;  %v4489_v37 = vsel %vm1038_vm4, %v12661_v29, %v11511_v34  ;;  %v12670_v29 = vld [vmem:[#allocation43_spill] sm:$0xff] }
 0xd47   : > { %v11570_v0 = vsel %vm4503_vm5, %v4500_v2, %v4402_v6  ;;  %v4506_v56 = vsel %vm4503_vm5, %v4489_v37, %v11519_v49  ;;  %v4507_v6 = vsel %vm4503_vm5, %v4490_v54, %v11522_v26  ;;  %v4492_v49 = vsel %vm1038_vm4, %v12664_v14, %v11526_v40 }
 0xd48   : > { %v4340_v62 = vpop.permute.xlu0 %4339 }
 0xd49   : > { %v4501_v44 = vsel %vm1038_vm4, %v12657_v25, %v4340_v62  ;;  %v12663_v25 = vld [vmem:[#allocation61_spill] sm:$0xff] }
 0xd4a   : > { %v4342_v7 = vpop.permute.xlu1 %4341  ;;  %v4491_v34 = vsel %vm1038_vm4, %v12663_v25, %v11524_v17 }
 0xd4b   : > { %v4502_v18 = vsel %vm1038_vm4, %v12658_v21, %v4342_v7  ;;  %v4508_v26 = vsel %vm4503_vm5, %v4491_v34, %v11528_v46  ;;  %v4509_v21 = vsel %vm4503_vm5, %v4492_v49, %v11530_v3 }
 0xd4c   : > { %v4404_v55 = vpop.permute.xlu0 %4403 }
 0xd4d   : > { %v11575_v61 = vsel %vm4503_vm5, %v4501_v44, %v4404_v55 }
 0xd4e   : > { %v4406_v19 = vpop.permute.xlu1 %4405 }
 0xd4f   : > { %v11580_v20 = vsel %vm4503_vm5, %v4502_v18, %v4406_v19 }
 0xd8d   : > { %v7778_v30 = vpop.f32.mrf.mxu1 }
 0xd8e   : > { %4441 = vrot.lane.b32.xlu1 %v7778_v30, %s9215_s7 }
 0xd8f   : > { %v4103_v22 = vpop.f32.mrf.mxu1 }
 0xd90   : > { %4439 = vrot.lane.b32.xlu0 %v4103_v22, %s9215_s7 }
 0xd95   : > { %v7781_v52 = vpop.f32.mrf.mxu1 }
 0xd96   : > { %4445 = vrot.lane.b32.xlu1 %v7781_v52, %s9215_s7 }
 0xd97   : > { %v4113_v38 = vpop.f32.mrf.mxu1 }
 0xd98   : > { %4443 = vrot.lane.b32.xlu0 %v4113_v38, %s9215_s7 }
 0xd99   : > { %v7784_v39 = vpop.f32.mrf.mxu1 }
 0xd9a   : > { %4449 = vrot.lane.b32.xlu1 %v7784_v39, %s9215_s7 }
 0xd9b   : > { %v4123_v45 = vpop.f32.mrf.mxu1 }
 0xd9c   : > { %4447 = vrot.lane.b32.xlu0 %v4123_v45, %s9215_s7 }
 0xdbd   : > { %v7787_v58 = vpop.f32.mrf.mxu1 }
 0xdbe   : > { %4453 = vrot.lane.b32.xlu1 %v7787_v58, %s9215_s7  ;;  %v11672_v58 = vld [vmem:[%s4751_s3] ss:$0 sm:$0xff] }
 0xdbf   : > { %v4133_v53 = vpop.f32.mrf.mxu1 }
 0xdc0   : > { %4451 = vrot.lane.b32.xlu0 %v4133_v53, %s9215_s7 }
 0xdd1   : > { %v7806_v31 = vpop.f32.mrf.mxu0 }
 0xdd2   : > { %4457 = vrot.lane.b32.xlu1 %v7806_v31, %s9215_s7 }
 0xdd3   : > { %v4256_v13 = vpop.f32.mrf.mxu0 }
 0xdd4   : > { %4455 = vrot.lane.b32.xlu0 %v4256_v13, %s9215_s7 }
 0xdd5   : > { %v7809_v47 = vpop.f32.mrf.mxu0 }
 0xdd6   : > { %4461 = vrot.lane.b32.xlu1 %v7809_v47, %s9215_s7  ;;  %v12666_v47 = vld [vmem:[#allocation47_spill] sm:$0xff] }
 0xdd7   : > { %v4266_v50 = vpop.f32.mrf.mxu0 }
 0xdd8   : > { %4459 = vrot.lane.b32.xlu0 %v4266_v50, %s9215_s7 }
 0xdd9   : > { %v7812_v42 = vpop.f32.mrf.mxu0 }
 0xdda   : > { %4465 = vrot.lane.b32.xlu1 %v7812_v42, %s9215_s7 }
 0xddb   : > { %v4276_v27 = vpop.f32.mrf.mxu0 }
 0xddc   : > { %4463 = vrot.lane.b32.xlu0 %v4276_v27, %s9215_s7 }
 0xddd   : > { %v7815_v23 = vpop.f32.mrf.mxu0 }
 0xdde   : > { %4469 = vrot.lane.b32.xlu1 %v7815_v23, %s9215_s7  ;;  %v12667_v23 = vld [vmem:[#allocation44_spill] sm:$0xff] }
 0xddf   : > { %v4286_v16 = vpop.f32.mrf.mxu0 }
 0xde0   : > { %4467 = vrot.lane.b32.xlu0 %v4286_v16, %s9215_s7 }
 0xe00   : > { %v4442_v48 = vpop.permute.xlu1 %4441 }
 0xe01   : > { %v4522_v28 = vsel %vm4520_vm6, %v4505_v4, %v4442_v48  ;;  %v12668_v48 = vld [vmem:[#allocation45_spill] sm:$0xff] }
 0xe02   : > { %v4440_v32 = vpop.permute.xlu0 %4439 }
 0xe03   : > { %v4521_v9 = vsel %vm4520_vm6, %v4504_v33, %v4440_v32  ;;  %v12669_v32 = vld [vmem:[#allocation42_spill] sm:$0xff] }
 0xe04   : > { %7824 = vmatprep.mubr.msk.f32.mxu1 %vm499_vm3, %v4521_v9 }
 0xe05   : > { %7825 = vmatmul.mubr.msk.f32.vlgmr.msra.gmra.mxu1 %vm499_vm3, %v4522_v28 }
 0xe08   : > { %v4446_v1 = vpop.permute.xlu1 %4445 }
 0xe09   : > { %v4524_v7 = vsel %vm4520_vm6, %v4507_v6, %v4446_v1 }
 0xe0a   : > { %v4444_v2 = vpop.permute.xlu0 %4443 }
 0xe0b   : > { %v4523_v62 = vsel %vm4520_vm6, %v4506_v56, %v4444_v2 }
 0xe0c   : > { %7827 = vmatprep.mubr.msk.f32.mxu1 %vm499_vm3, %v4523_v62  ;;  %v4450_v44 = vpop.permute.xlu1 %4449  ;;  %v12671_v62 = vld [vmem:[#allocation40_spill] sm:$0xff] }
 0xe0d   : > { %7828 = vmatmul.mubr.msk.f32.gmra.mxu1 %vm499_vm3, %v4524_v7  ;;  %v4526_v19 = vsel %vm4520_vm6, %v4509_v21, %v4450_v44  ;;  %v12672_v44 = vld [vmem:[#allocation41_spill] sm:$0xff] }
 0xe0e   : > { %v4448_v55 = vpop.permute.xlu0 %4447 }
 0xe0f   : > { %v4525_v18 = vsel %vm4520_vm6, %v4508_v26, %v4448_v55 }
 0xe10   : > { %7830 = vmatprep.mubr.msk.f32.mxu1 %vm499_vm3, %v4525_v18  ;;  %v12673_v18 = vld [vmem:[#allocation38_spill] sm:$0xff] }
 0xe11   : > { %7831 = vmatmul.mubr.msk.f32.gmra.mxu1 %vm499_vm3, %v4526_v19 }
 0xe30   : > { %v4454_v17 = vpop.permute.xlu1 %4453 }
 0xe31   : > { %v4528_v46 = vsel %vm4520_vm6, %v11540_v35, %v4454_v17 }
 0xe32   : > { %v4452_v36 = vpop.permute.xlu0 %4451 }
 0xe33   : > { %v4527_v40 = vsel %vm4520_vm6, %v11535_v59, %v4452_v36 }
 0xe34   : > { %7833 = vmatprep.mubr.msk.f32.mxu1 %vm499_vm3, %v4527_v40  ;;  %v12674_v40 = vld [vmem:[#allocation39_spill] sm:$0xff] }
 0xe35   : > { %7834 = vmatmul.mubr.msk.f32.gmra.mxu1 %vm499_vm3, %v4528_v46 }
 0xe44   : > { %v4458_v3 = vpop.permute.xlu1 %4457 }
 0xe45   : > { %v4530_v5 = vsel %vm4520_vm6, %v11550_v60, %v4458_v3 }
 0xe46   : > { %v4456_v41 = vpop.permute.xlu0 %4455 }
 0xe47   : > { %v4529_v24 = vsel %vm4520_vm6, %v11545_v11, %v4456_v41 }
 0xe48   : > { %7836 = vmatprep.mubr.msk.f32.mxu1 %vm499_vm3, %v4529_v24  ;;  %v4462_v30 = vpop.permute.xlu1 %4461  ;;  %v12675_v24 = vld [vmem:[#allocation36_spill] sm:$0xff] }
 0xe49   : > { %7837 = vmatmul.mubr.msk.f32.gmra.mxu1 %vm499_vm3, %v4530_v5  ;;  %v4532_v22 = vsel %vm4520_vm6, %v11560_v12, %v4462_v30 }
 0xe4a   : > { %v4460_v59 = vpop.permute.xlu0 %4459 }
 0xe4b   : > { %v4531_v35 = vsel %vm4520_vm6, %v11555_v10, %v4460_v59 }
 0xe4c   : > { %7839 = vmatprep.mubr.msk.f32.mxu1 %vm499_vm3, %v4531_v35  ;;  %v4466_v52 = vpop.permute.xlu1 %4465 }
 0xe4d   : > { %7840 = vmatmul.mubr.msk.f32.gmra.mxu1 %vm499_vm3, %v4532_v22  ;;  %v4534_v38 = vsel %vm4520_vm6, %v11570_v0, %v4466_v52  ;;  %v12665_v0 = vld [vmem:[#allocation46_spill] sm:$0xff]  ;;  %v12676_v22 = vld [vmem:[#allocation37_spill] sm:$0xff] }
 0xe4e   : > { %v4464_v11 = vpop.permute.xlu0 %4463 }
 0xe4f   : > { %v4533_v60 = vsel %vm4520_vm6, %v11565_v15, %v4464_v11 }
 0xe50   : > { %7842 = vmatprep.mubr.msk.f32.mxu1 %vm499_vm3, %v4533_v60  ;;  %v4470_v39 = vpop.permute.xlu1 %4469 }
 0xe51   : > { %7843 = vmatmul.mubr.msk.f32.gmra.mxu1 %vm499_vm3, %v4534_v38  ;;  %v4536_v45 = vsel %vm4520_vm6, %v11580_v20, %v4470_v39  ;;  %v12677_v39 = vld [vmem:[#allocation34_spill] sm:$0xff] }
 0xe52   : > { %v4468_v10 = vpop.permute.xlu0 %4467 }
 0xe53   : > { %v4535_v12 = vsel %vm4520_vm6, %v11575_v61, %v4468_v10 }
 0xe54   : > { %7845 = vmatprep.mubr.msk.f32.mxu1 %vm499_vm3, %v4535_v12 }
 0xe55   : > { %7846 = vmatmul.mubr.msk.f32.gmra.mxu1 %vm499_vm3, %v4536_v45 }
 0xec5   : > { %v7826_v15 = vpop.f32.mrf.mxu1 }
 0xec6   : > { %v4736_v53 = vadd.f32 %v12665_v0, %v7826_v15  ;;  %v12678_v0 = vld [vmem:[#allocation35_spill] sm:$0xff] }
 0xec7   : > { %v4656_v31 = vpop.f32.mrf.mxu1 }
 0xec8   : > { %v11676_v13 = vadd.f32 %v11672_v58, %v4736_v53  ;;  %v4735_v50 = vadd.f32 %v12666_v47, %v4656_v31 }
 0xeca   : > { %v11680_v61 = vadd.f32 %v11672_v58, %v4735_v50  ;;  %v4778_v20 = vsel %vm499_vm3, %v11676_v13, 0.0 }
 0xecb   : > { %4779 = vadd.xlane.f32.xlu1 %v4778_v20  ;;  %v12679_v20 = vld [vmem:[#allocation32_spill] sm:$0xff] }
 0xecc   : > { %v4775_v42 = vsel %vm499_vm3, %v11680_v61, 0.0 }
 0xecd   : > { %4776 = vadd.xlane.f32.xlu0 %v4775_v42  ;;  %v7829_v27 = vpop.f32.mrf.mxu1 }
 0xece   : > { %v4738_v16 = vadd.f32 %v12667_v23, %v7829_v27 }
 0xecf   : > { %v4666_v51 = vpop.f32.mrf.mxu1 }
 0xed0   : > { %v11688_v57 = vadd.f32 %v11672_v58, %v4738_v16  ;;  %v4737_v43 = vadd.f32 %v12668_v48, %v4666_v51  ;;  %v12680_v51 = vld [vmem:[#allocation33_spill] sm:$0xff] }
 0xed1   : > { %v7832_v63 = vpop.f32.mrf.mxu1 }
 0xed2   : > { %v11692_v33 = vadd.f32 %v11672_v58, %v4737_v43  ;;  %v4740_v4 = vadd.f32 %v12669_v32, %v7832_v63  ;;  %v4784_v9 = vsel %vm499_vm3, %v11688_v57, 0.0 }
 0xed3   : > { %4785 = vadd.xlane.f32.xlu0 %v4784_v9  ;;  %v4676_v28 = vpop.f32.mrf.mxu1 }
 0xed4   : > { %v11698_v1 = vadd.f32 %v11672_v58, %v4740_v4  ;;  %v4739_v37 = vadd.f32 %v12670_v29, %v4676_v28  ;;  %v4781_v54 = vsel %vm499_vm3, %v11692_v33, 0.0 }
 0xed6   : > { %v11702_v8 = vadd.f32 %v11672_v58, %v4739_v37  ;;  %v4790_v56 = vsel %vm499_vm3, %v11698_v1, 0.0 }
 0xed7   : > { %4782 = vadd.xlane.f32.xlu0 %v4781_v54  ;;  %4791 = vadd.xlane.f32.xlu1 %v4790_v56 }
 0xed8   : > { %v4787_v2 = vsel %vm499_vm3, %v11702_v8, 0.0 }
 0xedb   : > { %4788 = vadd.xlane.f32.xlu0 %v4787_v2 }
 0xef5   : > { %v7835_v6 = vpop.f32.mrf.mxu1 }
 0xef6   : > { %v4742_v7 = vadd.f32 %v12671_v62, %v7835_v6 }
 0xef7   : > { %v4686_v25 = vpop.f32.mrf.mxu1 }
 0xef8   : > { %v11712_v34 = vadd.f32 %v11672_v58, %v4742_v7  ;;  %v4741_v14 = vadd.f32 %v12672_v44, %v4686_v25 }
 0xefa   : > { %v11716_v49 = vadd.f32 %v11672_v58, %v4741_v14  ;;  %v4796_v26 = vsel %vm499_vm3, %v11712_v34, 0.0 }
 0xefb   : > { %4797 = vadd.xlane.f32.xlu1 %v4796_v26 }
 0xefc   : > { %v4793_v55 = vsel %vm499_vm3, %v11716_v49, 0.0 }
 0xefd   : > { %4794 = vadd.xlane.f32.xlu0 %v4793_v55 }
 0xf09   : > { %v7838_v21 = vpop.f32.mrf.mxu1 }
 0xf0a   : > { %v4744_v19 = vadd.f32 %v12673_v18, %v7838_v21 }
 0xf0b   : > { %v4696_v17 = vpop.f32.mrf.mxu1 }
 0xf0c   : > { %v11724_v36 = vadd.f32 %v11672_v58, %v4744_v19  ;;  %v4743_v46 = vadd.f32 %v12674_v40, %v4696_v17 }
 0xf0d   : > { %v7841_v3 = vpop.f32.mrf.mxu1 }
 0xf0e   : > { %v11728_v41 = vadd.f32 %v11672_v58, %v4743_v46  ;;  %v4746_v5 = vadd.f32 %v12675_v24, %v7841_v3  ;;  %v4802_v30 = vsel %vm499_vm3, %v11724_v36, 0.0 }
 0xf0f   : > { %4803 = vadd.xlane.f32.xlu1 %v4802_v30  ;;  %v4706_v59 = vpop.f32.mrf.mxu1 }
 0xf10   : > { %v11734_v35 = vadd.f32 %v11672_v58, %v4746_v5  ;;  %v4745_v52 = vadd.f32 %v12676_v22, %v4706_v59  ;;  %v4799_v11 = vsel %vm499_vm3, %v11728_v41, 0.0 }
 0xf11   : > { %4800 = vadd.xlane.f32.xlu0 %v4799_v11  ;;  %v7844_v60 = vpop.f32.mrf.mxu1 }
 0xf12   : > { %v11740_v38 = vadd.f32 %v11672_v58, %v4745_v52  ;;  %v4748_v10 = vadd.f32 %v12677_v39, %v7844_v60  ;;  %v4808_v12 = vsel %vm499_vm3, %v11734_v35, 0.0  ;;  %v5035_v60 = vld [vmem:[%s5031_s9 + $0x18] sm:$0xff]  ;;  %v5034_v39 = vld [vmem:[%s5031_s9 + $0x10] sm:$0xff] }
 0xf13   : > { %4809 = vadd.xlane.f32.xlu1 %v4808_v12  ;;  %v4716_v45 = vpop.f32.mrf.mxu1  ;;  %7848 = vmatprep.subr.mxu0 %v5035_v60  ;;  %v5032_v12 = vld [vmem:[%s5031_s9] sm:$0xff] }
 0xf14   : > { %v11746_v15 = vadd.f32 %v11672_v58, %v4748_v10  ;;  %v4747_v53 = vadd.f32 %v12678_v0, %v4716_v45  ;;  %v4805_v31 = vsel %vm499_vm3, %v11740_v38, 0.0  ;;  %7849 = vmatpush3.msra.mxu0 %v5035_v60  ;;  %v5033_v10 = vld [vmem:[%s5031_s9 + $0x8] sm:$0xff] }
 0xf15   : > { %4806 = vadd.xlane.f32.xlu0 %v4805_v31  ;;  %v7847_v47 = vpop.f32.mrf.mxu1  ;;  %7850 = vmatprep.subr.mxu0 %v5034_v39 }
 0xf16   : > { %v11752_v50 = vadd.f32 %v11672_v58, %v4747_v53  ;;  %v4750_v42 = vadd.f32 %v12679_v20, %v7847_v47  ;;  %v4814_v27 = vsel %vm499_vm3, %v11746_v15, 0.0  ;;  %7851 = vmatpush3.msra.mxu0 %v5034_v39 }
 0xf17   : > { %4815 = vadd.xlane.f32.xlu1 %v4814_v27  ;;  %v4726_v23 = vpop.f32.mrf.mxu1  ;;  %7852 = vmatprep.subr.mxu0 %v5033_v10 }
 0xf18   : > { %v11758_v16 = vadd.f32 %v11672_v58, %v4750_v42  ;;  %v4749_v48 = vadd.f32 %v12680_v51, %v4726_v23  ;;  %v4811_v43 = vsel %vm499_vm3, %v11752_v50, 0.0  ;;  %7853 = vmatpush3.msra.mxu0 %v5033_v10 }
 0xf19   : > { %4812 = vadd.xlane.f32.xlu0 %v4811_v43  ;;  %7854 = vmatprep.subr.mxu0 %v5032_v12 }
 0xf1a   : > { %v11764_v63 = vadd.f32 %v11672_v58, %v4749_v48  ;;  %v4820_v32 = vsel %vm499_vm3, %v11758_v16, 0.0  ;;  %7855 = vmatpush3.msra.mxu0 %v5032_v12 }
 0xf1b   : > { %4821 = vadd.xlane.f32.xlu1 %v4820_v32 }
 0xf1c   : > { %v4817_v4 = vsel %vm499_vm3, %v11764_v63, 0.0 }
 0xf1d   : > { %4818 = vadd.xlane.f32.xlu0 %v4817_v4 }
 0xf54   : > { %v4780_v9 = vpop.xlane.xlu1 %4779 }
 0xf55   : > { %v4824_v28 = vmul.f32 0.03125, %v4780_v9 }
 0xf56   : > { %v4777_v29 = vpop.xlane.xlu0 %4776 }
 0xf57   : > { %v11771_v37 = vsub.f32 %v11676_v13, %v4824_v28  ;;  %v4823_v54 = vmul.f32 0.03125, %v4777_v29 }
 0xf59   : > { %v11774_v56 = vsub.f32 %v11680_v61, %v4823_v54  ;;  %v4856_v58 = vmul.f32 %v11771_v37, %v11771_v37 }
 0xf5b   : > { %v4874_v2 = vsel %vm499_vm3, %v4856_v58, 0.0  ;;  %v4855_v6 = vmul.f32 %v11774_v56, %v11774_v56 }
 0xf5c   : > { %v4786_v62 = vpop.xlane.xlu0 %4785  ;;  %4875 = vadd.xlane.f32.xlu1 %v4874_v2 }
 0xf5d   : > { %v4826_v7 = vmul.f32 0.03125, %v4786_v62  ;;  %v4871_v25 = vsel %vm499_vm3, %v4855_v6, 0.0 }
 0xf5e   : > { %4872 = vadd.xlane.f32.xlu0 %v4871_v25 }
 0xf5f   : > { %v11783_v44 = vsub.f32 %v11688_v57, %v4826_v7 }
 0xf60   : > { %v4783_v14 = vpop.xlane.xlu0 %4782  ;;  %v4792_v26 = vpop.xlane.xlu1 %4791 }
 0xf61   : > { %v4825_v55 = vmul.f32 0.03125, %v4783_v14  ;;  %v4828_v21 = vmul.f32 0.03125, %v4792_v26  ;;  %v4858_v18 = vmul.f32 %v11783_v44, %v11783_v44 }
 0xf63   : > { %v11788_v19 = vsub.f32 %v11692_v33, %v4825_v55  ;;  %v11791_v17 = vsub.f32 %v11698_v1, %v4828_v21  ;;  %v4880_v40 = vsel %vm499_vm3, %v4858_v18, 0.0 }
 0xf64   : > { %v4789_v46 = vpop.xlane.xlu0 %4788  ;;  %4881 = vadd.xlane.f32.xlu1 %v4880_v40 }
 0xf65   : > { %v4827_v3 = vmul.f32 0.03125, %v4789_v46  ;;  %v4857_v24 = vmul.f32 %v11788_v19, %v11788_v19  ;;  %v4860_v5 = vmul.f32 %v11791_v17, %v11791_v17 }
 0xf67   : > { %v11799_v30 = vsub.f32 %v11702_v8, %v4827_v3  ;;  %v4877_v59 = vsel %vm499_vm3, %v4857_v24, 0.0  ;;  %v4886_v22 = vsel %vm499_vm3, %v4860_v5, 0.0 }
 0xf68   : > { %4878 = vadd.xlane.f32.xlu0 %v4877_v59  ;;  %4887 = vadd.xlane.f32.xlu1 %v4886_v22 }
 0xf69   : > { %v4859_v52 = vmul.f32 %v11799_v30, %v11799_v30 }
 0xf6b   : > { %v4883_v11 = vsel %vm499_vm3, %v4859_v52, 0.0 }
 0xf6c   : > { %4884 = vadd.xlane.f32.xlu0 %v4883_v11 }
 0xf84   : > { %v4798_v45 = vpop.xlane.xlu1 %4797 }
 0xf85   : > { %v4830_v0 = vmul.f32 0.03125, %v4798_v45 }
 0xf86   : > { %v4795_v53 = vpop.xlane.xlu0 %4794 }
 0xf87   : > { %v11808_v31 = vsub.f32 %v11712_v34, %v4830_v0  ;;  %v4829_v47 = vmul.f32 0.03125, %v4795_v53 }
 0xf89   : > { %v11811_v20 = vsub.f32 %v11716_v49, %v4829_v47  ;;  %v4862_v42 = vmul.f32 %v11808_v31, %v11808_v31 }
 0xf8b   : > { %v4892_v27 = vsel %vm499_vm3, %v4862_v42, 0.0  ;;  %v4861_v23 = vmul.f32 %v11811_v20, %v11811_v20 }
 0xf8c   : > { %4893 = vadd.xlane.f32.xlu1 %v4892_v27 }
 0xf8d   : > { %v4889_v51 = vsel %vm499_vm3, %v4861_v23, 0.0 }
 0xf8e   : > { %4890 = vadd.xlane.f32.xlu0 %v4889_v51 }
 0xf98   : > { %v4804_v48 = vpop.xlane.xlu1 %4803 }
 0xf99   : > { %v4832_v43 = vmul.f32 0.03125, %v4804_v48  ;;  %v5334_v48 = vld [vmem:[%s11871_s10 + $0x78] sm:$0xff] }
 0xf9a   : > { %v4801_v32 = vpop.xlane.xlu0 %4800  ;;  %7880 = vmatprep.subr.mxu0 %v5334_v48  ;;  %8158 = vmatprep.subr.mxu1 %v5334_v48 }
 0xf9b   : > { %v11820_v4 = vsub.f32 %v11724_v36, %v4832_v43  ;;  %v4831_v9 = vmul.f32 0.03125, %v4801_v32  ;;  %v5333_v43 = vld [vmem:[%s11871_s10 + $0x70] sm:$0xff]  ;;  %8174 = vmatpush3.msra.mxu1 %v5334_v48  ;;  %v5332_v32 = vld [vmem:[%s11871_s10 + $0x68] sm:$0xff] }
 0xf9c   : > { %v4810_v28 = vpop.xlane.xlu1 %4809  ;;  %8159 = vmatprep.subr.mxu1 %v5333_v43 }
 0xf9d   : > { %v11823_v29 = vsub.f32 %v11728_v41, %v4831_v9  ;;  %v4834_v54 = vmul.f32 0.03125, %v4810_v28  ;;  %v4864_v58 = vmul.f32 %v11820_v4, %v11820_v4  ;;  %8175 = vmatpush3.msra.mxu1 %v5333_v43 }
 0xf9e   : > { %v4807_v2 = vpop.xlane.xlu0 %4806  ;;  %8160 = vmatprep.subr.mxu1 %v5332_v32 }
 0xf9f   : > { %v11828_v6 = vsub.f32 %v11734_v35, %v4834_v54  ;;  %v4833_v62 = vmul.f32 0.03125, %v4807_v2  ;;  %v4898_v7 = vsel %vm499_vm3, %v4864_v58, 0.0  ;;  %v4863_v25 = vmul.f32 %v11823_v29, %v11823_v29  ;;  %8176 = vmatpush3.msra.mxu1 %v5332_v32 }
 0xfa0   : > { %4899 = vadd.xlane.f32.xlu1 %v4898_v7  ;;  %v4816_v14 = vpop.xlane.xlu1 %4815 }
 0xfa1   : > { %v11834_v26 = vsub.f32 %v11740_v38, %v4833_v62  ;;  %v4836_v55 = vmul.f32 0.03125, %v4816_v14  ;;  %v4895_v21 = vsel %vm499_vm3, %v4863_v25, 0.0  ;;  %v4866_v18 = vmul.f32 %v11828_v6, %v11828_v6 }
 0xfa2   : > { %v4813_v40 = vpop.xlane.xlu0 %4812  ;;  %4896 = vadd.xlane.f32.xlu0 %v4895_v21 }
 0xfa3   : > { %v11840_v46 = vsub.f32 %v11746_v15, %v4836_v55  ;;  %v4835_v3 = vmul.f32 0.03125, %v4813_v40  ;;  %v4904_v24 = vsel %vm499_vm3, %v4866_v18, 0.0  ;;  %v4865_v5 = vmul.f32 %v11834_v26, %v11834_v26 }
 0xfa4   : > { %4905 = vadd.xlane.f32.xlu1 %v4904_v24  ;;  %v4822_v59 = vpop.xlane.xlu1 %4821 }
 0xfa5   : > { %v11846_v22 = vsub.f32 %v11752_v50, %v4835_v3  ;;  %v4838_v52 = vmul.f32 0.03125, %v4822_v59  ;;  %v4901_v11 = vsel %vm499_vm3, %v4865_v5, 0.0  ;;  %v4868_v60 = vmul.f32 %v11840_v46, %v11840_v46 }
 0xfa6   : > { %4902 = vadd.xlane.f32.xlu0 %v4901_v11  ;;  %v4819_v39 = vpop.xlane.xlu0 %4818  ;;  %v11877_v11 = vld [vmem:[%s4983_s28] ss:$0 sm:$0xff] }
 0xfa7   : > { %v11852_v10 = vsub.f32 %v11758_v16, %v4838_v52  ;;  %v4837_v12 = vmul.f32 0.03125, %v4819_v39  ;;  %v4910_v45 = vsel %vm499_vm3, %v4868_v60, 0.0  ;;  %v4867_v0 = vmul.f32 %v11846_v22, %v11846_v22 }
 0xfa8   : > { %4911 = vadd.xlane.f32.xlu1 %v4910_v45 }
 0xfa9   : > { %v11858_v53 = vsub.f32 %v11764_v63, %v4837_v12  ;;  %v4907_v47 = vsel %vm499_vm3, %v4867_v0, 0.0  ;;  %v4870_v42 = vmul.f32 %v11852_v10, %v11852_v10 }
 0xfaa   : > { %4908 = vadd.xlane.f32.xlu0 %v4907_v47  ;;  %v11883_v47 = vld [vmem:[%s5007_s4] ss:$0 sm:$0xff] }
 0xfab   : > { %v4916_v27 = vsel %vm499_vm3, %v4870_v42, 0.0  ;;  %v4869_v23 = vmul.f32 %v11858_v53, %v11858_v53 }
 0xfac   : > { %4917 = vadd.xlane.f32.xlu1 %v4916_v27 }
 0xfad   : > { %v4913_v51 = vsel %vm499_vm3, %v4869_v23, 0.0 }
 0xfae   : > { %4914 = vadd.xlane.f32.xlu0 %v4913_v51 }
 0xfe5   : > { %v4876_v9 = vpop.xlane.xlu1 %4875 }
 0xfe6   : > { %v4920_v28 = vmul.f32 0.03125, %v4876_v9 }
 0xfe7   : > { %v4873_v54 = vpop.xlane.xlu0 %4872 }
 0xfe8   : > { %v4936_v58 = vadd.f32 1e-05, %v4920_v28  ;;  %v4919_v2 = vmul.f32 0.03125, %v4873_v54 }
 0xfea   : > { %8656 = vrsqrt.f32 %v4936_v58  ;;  %v4935_v62 = vadd.f32 1e-05, %v4919_v2 }
 0xfec   : > { %8658 = vrsqrt.f32 %v4935_v62 }
 0xfed   : > { %v4882_v7 = vpop.xlane.xlu1 %4881 }
 0xfee   : > { %v4922_v25 = vmul.f32 0.03125, %v4882_v7 }
 0xff0   : > { %v4938_v14 = vadd.f32 1e-05, %v4922_v25 }
 0xff1   : > { %v4879_v55 = vpop.xlane.xlu0 %4878  ;;  %v4888_v21 = vpop.xlane.xlu1 %4887 }
 0xff2   : > { %8660 = vrsqrt.f32 %v4938_v14  ;;  %v4921_v18 = vmul.f32 0.03125, %v4879_v55  ;;  %v4924_v40 = vmul.f32 0.03125, %v4888_v21 }
 0xff4   : > { %v4937_v3 = vadd.f32 1e-05, %v4921_v18  ;;  %v4940_v24 = vadd.f32 1e-05, %v4924_v40 }
 0xff5   : > { %v4885_v5 = vpop.xlane.xlu0 %4884 }
 0xff6   : > { %8662 = vrsqrt.f32 %v4937_v3  ;;  %v4923_v59 = vmul.f32 0.03125, %v4885_v5 }
 0xff7   : > { %v8657_v52 = vpop.eup %8656  ;;  %8664 = vrsqrt.f32 %v4940_v24 }
 0xff8   : > { %v4968_v60 = vmul.f32 %v8657_v52, %v11771_v37  ;;  %v4939_v39 = vadd.f32 1e-05, %v4923_v59 }
 0xff9   : > { %v8659_v12 = vpop.eup %8658 }
 0xffa   : > { %8666 = vrsqrt.f32 %v4939_v39  ;;  %v4967_v45 = vmul.f32 %v8659_v12, %v11774_v56  ;;  %v4992_v0 = vmul.f32 %v11877_v11, %v4968_v60 }
 0xffc   : > { %v4991_v42 = vmul.f32 %v11877_v11, %v4967_v45  ;;  %v5016_v51 = vadd.f32 %v11883_v47, %v4992_v0 }
 0xffe   : > { %v5015_v27 = vadd.f32 %v11883_v47, %v4991_v42 }
 0xfff   : > { %v8661_v23 = vpop.eup %8660 }
0x1000   : > { %7856 = vmatprep.mubr.msk.f32.mxu0 %vm499_vm3, %v5015_v27  ;;  %v4970_v37 = vmul.f32 %v8661_v23, %v11783_v44 }
0x1001   : > { %7857 = vmatmul.mubr.msk.f32.vlgmr.msra.gmra.mxu0 %vm499_vm3, %v5016_v51 }
0x1002   : > { %7881 = vmatpush3.msra.mxu0 %v5334_v48  ;;  %v4994_v54 = vmul.f32 %v11877_v11, %v4970_v37 }
0x1003   : > { %v8663_v56 = vpop.eup %8662  ;;  %7882 = vmatprep.subr.mxu0 %v5333_v43 }
0x1004   : > { %v8665_v9 = vpop.eup %8664  ;;  %v4969_v28 = vmul.f32 %v8663_v56, %v11788_v19  ;;  %7883 = vmatpush3.msra.mxu0 %v5333_v43  ;;  %v5018_v48 = vadd.f32 %v11883_v47, %v4994_v54 }
0x1005   : > { %v4972_v58 = vmul.f32 %v8665_v9, %v11791_v17  ;;  %7884 = vmatprep.subr.mxu0 %v5332_v32 }
0x1006   : > { %v4993_v2 = vmul.f32 %v11877_v11, %v4969_v28  ;;  %7885 = vmatpush3.msra.mxu0 %v5332_v32 }
0x1007   : > { %v8667_v62 = vpop.eup %8666  ;;  %v4996_v25 = vmul.f32 %v11877_v11, %v4972_v58 }
0x1008   : > { %v5017_v7 = vadd.f32 %v11883_v47, %v4993_v2  ;;  %v4971_v44 = vmul.f32 %v8667_v62, %v11799_v30 }
0x1009   : > { %v5020_v43 = vadd.f32 %v11883_v47, %v4996_v25 }
0x100a   : > { %7859 = vmatprep.mubr.msk.f32.mxu0 %vm499_vm3, %v5017_v7  ;;  %v4995_v19 = vmul.f32 %v11877_v11, %v4971_v44 }
0x100b   : > { %7860 = vmatmul.mubr.msk.f32.gmra.mxu0 %vm499_vm3, %v5018_v48 }
0x100c   : > { %v5019_v17 = vadd.f32 %v11883_v47, %v4995_v19 }
0x100e   : > { %7862 = vmatprep.mubr.msk.f32.mxu0 %vm499_vm3, %v5019_v17 }
0x100f   : > { %7863 = vmatmul.mubr.msk.f32.gmra.mxu0 %vm499_vm3, %v5020_v43 }
0x1015   : > { %v4894_v32 = vpop.xlane.xlu1 %4893 }
0x1016   : > { %v4926_v30 = vmul.f32 0.03125, %v4894_v32 }
0x1017   : > { %v4891_v14 = vpop.xlane.xlu0 %4890 }
0x1018   : > { %v4942_v55 = vadd.f32 1e-05, %v4926_v30  ;;  %v4925_v21 = vmul.f32 0.03125, %v4891_v14 }
0x101a   : > { %8668 = vrsqrt.f32 %v4942_v55  ;;  %v4941_v18 = vadd.f32 1e-05, %v4925_v21 }
0x101c   : > { %8670 = vrsqrt.f32 %v4941_v18 }
0x1027   : > { %v8669_v40 = vpop.eup %8668 }
0x1028   : > { %v4974_v3 = vmul.f32 %v8669_v40, %v11808_v31 }
0x1029   : > { %v8671_v24 = vpop.eup %8670  ;;  %v4900_v5 = vpop.xlane.xlu1 %4899 }
0x102a   : > { %v4928_v59 = vmul.f32 0.03125, %v4900_v5  ;;  %v4973_v52 = vmul.f32 %v8671_v24, %v11811_v20  ;;  %v4998_v39 = vmul.f32 %v11877_v11, %v4974_v3 }
0x102b   : > { %v4897_v60 = vpop.xlane.xlu0 %4896 }
0x102c   : > { %v4944_v12 = vadd.f32 1e-05, %v4928_v59  ;;  %v4927_v45 = vmul.f32 0.03125, %v4897_v60  ;;  %v4997_v0 = vmul.f32 %v11877_v11, %v4973_v52  ;;  %v5022_v31 = vadd.f32 %v11883_v47, %v4998_v39  ;;  %v5331_v39 = vld [vmem:[%s11871_s10 + $0x60] sm:$0xff] }
0x102d   : > { %v4906_v42 = vpop.xlane.xlu1 %4905  ;;  %7886 = vmatprep.subr.mxu0 %v5331_v39  ;;  %8161 = vmatprep.subr.mxu1 %v5331_v39 }
0x102e   : > { %8672 = vrsqrt.f32 %v4944_v12  ;;  %v4943_v27 = vadd.f32 1e-05, %v4927_v45  ;;  %v4930_v23 = vmul.f32 0.03125, %v4906_v42  ;;  %v5021_v51 = vadd.f32 %v11883_v47, %v4997_v0  ;;  %v5330_v45 = vld [vmem:[%s11871_s10 + $0x58] sm:$0xff]  ;;  %7887 = vmatpush3.msra.mxu0 %v5331_v39  ;;  %8177 = vmatpush3.msra.mxu1 %v5331_v39 }
0x102f   : > { %v4903_v37 = vpop.xlane.xlu0 %4902  ;;  %7888 = vmatprep.subr.mxu0 %v5330_v45  ;;  %8162 = vmatprep.subr.mxu1 %v5330_v45 }
0x1030   : > { %8674 = vrsqrt.f32 %v4943_v27  ;;  %v4946_v56 = vadd.f32 1e-05, %v4930_v23  ;;  %v4929_v9 = vmul.f32 0.03125, %v4903_v37  ;;  %7865 = vmatprep.mubr.msk.f32.mxu0 %vm499_vm3, %v5021_v51  ;;  %7889 = vmatpush3.msra.mxu0 %v5330_v45 }
0x1031   : > { %7866 = vmatmul.mubr.msk.f32.gmra.mxu0 %vm499_vm3, %v5022_v31  ;;  %v4912_v20 = vpop.xlane.xlu1 %4911  ;;  %v5328_v31 = vld [vmem:[%s11871_s10 + $0x48] sm:$0xff]  ;;  %8178 = vmatpush3.msra.mxu1 %v5330_v45 }
0x1032   : > { %8676 = vrsqrt.f32 %v4946_v56  ;;  %v4945_v28 = vadd.f32 1e-05, %v4929_v9  ;;  %v4932_v54 = vmul.f32 0.03125, %v4912_v20 }
0x1033   : > { %v4909_v58 = vpop.xlane.xlu0 %4908 }
0x1034   : > { %8678 = vrsqrt.f32 %v4945_v28  ;;  %v4948_v2 = vadd.f32 1e-05, %v4932_v54  ;;  %v4931_v62 = vmul.f32 0.03125, %v4909_v58 }
0x1035   : > { %v4918_v7 = vpop.xlane.xlu1 %4917 }
0x1036   : > { %8680 = vrsqrt.f32 %v4948_v2  ;;  %v4947_v44 = vadd.f32 1e-05, %v4931_v62  ;;  %v4934_v48 = vmul.f32 0.03125, %v4918_v7  ;;  %v5325_v62 = vld [vmem:[%s11871_s10 + $0x30] sm:$0xff]  ;;  %v5323_v7 = vld [vmem:[%s11871_s10 + $0x20] sm:$0xff] }
0x1037   : > { %v4915_v25 = vpop.xlane.xlu0 %4914 }
0x1038   : > { %8682 = vrsqrt.f32 %v4947_v44  ;;  %v4950_v19 = vadd.f32 1e-05, %v4934_v48  ;;  %v4933_v17 = vmul.f32 0.03125, %v4915_v25  ;;  %v5321_v44 = vld [vmem:[%s11871_s10 + $0x10] sm:$0xff]  ;;  %v5320_v48 = vld [vmem:[%s11871_s10 + $0x8] sm:$0xff]  ;;  %v5319_v25 = vld [vmem:[%s11871_s10] sm:$0xff] }
0x103a   : > { %8684 = vrsqrt.f32 %v4950_v19  ;;  %v4949_v43 = vadd.f32 1e-05, %v4933_v17  ;;  %v11960_v19 = vld [vmem:[%s5036_s11] ss:$0 sm:$0xff] }
0x103b   : > { %v8673_v32 = vpop.eup %8672 }
0x103c   : > { %8686 = vrsqrt.f32 %v4949_v43  ;;  %v4976_v30 = vmul.f32 %v8673_v32, %v11820_v4 }
0x103d   : > { %v8675_v14 = vpop.eup %8674 }
0x103e   : > { %v4975_v55 = vmul.f32 %v8675_v14, %v11823_v29  ;;  %v5000_v18 = vmul.f32 %v11877_v11, %v4976_v30 }
0x103f   : > { %v8677_v21 = vpop.eup %8676 }
0x1040   : > { %v4999_v40 = vmul.f32 %v11877_v11, %v4975_v55  ;;  %v4978_v3 = vmul.f32 %v8677_v21, %v11828_v6  ;;  %v5024_v60 = vadd.f32 %v11883_v47, %v5000_v18 }
0x1041   : > { %v8679_v24 = vpop.eup %8678 }
0x1042   : > { %v5023_v5 = vadd.f32 %v11883_v47, %v4999_v40  ;;  %v4977_v59 = vmul.f32 %v8679_v24, %v11834_v26  ;;  %v5002_v4 = vmul.f32 %v11877_v11, %v4978_v3 }
0x1043   : > { %v8681_v52 = vpop.eup %8680 }
0x1044   : > { %7868 = vmatprep.mubr.msk.f32.mxu0 %vm499_vm3, %v5023_v5  ;;  %v5001_v29 = vmul.f32 %v11877_v11, %v4977_v59  ;;  %v4980_v12 = vmul.f32 %v8681_v52, %v11840_v46  ;;  %v5026_v27 = vadd.f32 %v11883_v47, %v5002_v4  ;;  %v5329_v46 = vld [vmem:[%s11871_s10 + $0x50] sm:$0xff] }
0x1045   : > { %v8683_v6 = vpop.eup %8682  ;;  %7869 = vmatmul.mubr.msk.f32.gmra.mxu0 %vm499_vm3, %v5024_v60  ;;  %7890 = vmatprep.subr.mxu0 %v5329_v46 }
0x1046   : > { %v5025_v26 = vadd.f32 %v11883_v47, %v5001_v29  ;;  %v4979_v0 = vmul.f32 %v8683_v6, %v11846_v22  ;;  %v5004_v23 = vmul.f32 %v11877_v11, %v4980_v12  ;;  %7891 = vmatpush3.msra.mxu0 %v5329_v46  ;;  %8163 = vmatprep.subr.mxu1 %v5329_v46 }
0x1047   : > { %v8685_v42 = vpop.eup %8684  ;;  %7892 = vmatprep.subr.mxu0 %v5328_v31  ;;  %8179 = vmatpush3.msra.mxu1 %v5329_v46 }
0x1048   : > { %7871 = vmatprep.mubr.msk.f32.mxu0 %vm499_vm3, %v5025_v26  ;;  %v5003_v51 = vmul.f32 %v11877_v11, %v4979_v0  ;;  %v4982_v37 = vmul.f32 %v8685_v42, %v11852_v10  ;;  %v5028_v20 = vadd.f32 %v11883_v47, %v5004_v23  ;;  %v5327_v10 = vld [vmem:[%s11871_s10 + $0x40] sm:$0xff]  ;;  %7893 = vmatpush3.msra.mxu0 %v5328_v31 }
0x1049   : > { %v8687_v22 = vpop.eup %8686  ;;  %7872 = vmatmul.mubr.msk.f32.gmra.mxu0 %vm499_vm3, %v5026_v27  ;;  %7894 = vmatprep.subr.mxu0 %v5327_v10 }
0x104a   : > { %v5027_v56 = vadd.f32 %v11883_v47, %v5003_v51  ;;  %v4981_v9 = vmul.f32 %v8687_v22, %v11858_v53  ;;  %v5006_v28 = vmul.f32 %v11877_v11, %v4982_v37  ;;  %v5326_v53 = vld [vmem:[%s11871_s10 + $0x38] sm:$0xff]  ;;  %7895 = vmatpush3.msra.mxu0 %v5327_v10  ;;  %8164 = vmatprep.subr.mxu1 %v5328_v31 }
0x104b   : > { %7896 = vmatprep.subr.mxu0 %v5326_v53  ;;  %8180 = vmatpush3.msra.mxu1 %v5328_v31 }
0x104c   : > { %7874 = vmatprep.mubr.msk.f32.mxu0 %vm499_vm3, %v5027_v56  ;;  %v5005_v54 = vmul.f32 %v11877_v11, %v4981_v9  ;;  %v5030_v2 = vadd.f32 %v11883_v47, %v5006_v28  ;;  %7897 = vmatpush3.msra.mxu0 %v5326_v53  ;;  %v5324_v11 = vld [vmem:[%s11871_s10 + $0x28] sm:$0xff] }
0x104d   : > { %7875 = vmatmul.mubr.msk.f32.gmra.mxu0 %vm499_vm3, %v5028_v20  ;;  %7898 = vmatprep.subr.mxu0 %v5325_v62 }
0x104e   : > { %v5029_v58 = vadd.f32 %v11883_v47, %v5005_v54  ;;  %7899 = vmatpush3.msra.mxu0 %v5325_v62  ;;  %8165 = vmatprep.subr.mxu1 %v5327_v10  ;;  %v5322_v47 = vld [vmem:[%s11871_s10 + $0x18] sm:$0xff] }
0x104f   : > { %7900 = vmatprep.subr.mxu0 %v5324_v11  ;;  %8181 = vmatpush3.msra.mxu1 %v5327_v10 }
0x1050   : > { %7877 = vmatprep.mubr.msk.f32.mxu0 %vm499_vm3, %v5029_v58  ;;  %7901 = vmatpush3.msra.mxu0 %v5324_v11 }
0x1051   : > { %7878 = vmatmul.mubr.msk.f32.gmra.mxu0 %vm499_vm3, %v5030_v2  ;;  %7902 = vmatprep.subr.mxu0 %v5323_v7 }
0x1052   : > { %8166 = vmatprep.subr.mxu1 %v5326_v53  ;;  %7903 = vmatpush3.msra.mxu0 %v5323_v7 }
0x1053   : > { %8182 = vmatpush3.msra.mxu1 %v5326_v53  ;;  %7904 = vmatprep.subr.mxu0 %v5322_v47 }
0x1054   : > { %8167 = vmatprep.subr.mxu1 %v5325_v62  ;;  %7905 = vmatpush3.msra.mxu0 %v5322_v47 }
0x1055   : > { %8183 = vmatpush3.msra.mxu1 %v5325_v62  ;;  %7906 = vmatprep.subr.mxu0 %v5321_v44 }
0x1056   : > { %8168 = vmatprep.subr.mxu1 %v5324_v11  ;;  %7907 = vmatpush3.msra.mxu0 %v5321_v44 }
0x1057   : > { %8184 = vmatpush3.msra.mxu1 %v5324_v11  ;;  %7908 = vmatprep.subr.mxu0 %v5320_v48 }
0x1058   : > { %8169 = vmatprep.subr.mxu1 %v5323_v7  ;;  %7909 = vmatpush3.msra.mxu0 %v5320_v48 }
0x1059   : > { %8185 = vmatpush3.msra.mxu1 %v5323_v7  ;;  %7910 = vmatprep.subr.mxu0 %v5319_v25 }
0x105a   : > { %8170 = vmatprep.subr.mxu1 %v5322_v47  ;;  %7911 = vmatpush3.msra.mxu0 %v5319_v25 }
0x105b   : > { %8186 = vmatpush3.msra.mxu1 %v5322_v47 }
0x105c   : > { %8171 = vmatprep.subr.mxu1 %v5321_v44 }
0x105d   : > { %8187 = vmatpush3.msra.mxu1 %v5321_v44 }
0x105e   : > { %8172 = vmatprep.subr.mxu1 %v5320_v48 }
0x105f   : > { %8188 = vmatpush3.msra.mxu1 %v5320_v48 }
0x1060   : > { %8173 = vmatprep.subr.mxu1 %v5319_v25 }
0x1061   : > { %8189 = vmatpush3.msra.mxu1 %v5319_v25 }
0x10c1   : > { %v7858_v17 = vpop.f32.mrf.mxu0 }
0x10c2   : > { %v5164_v43 = vadd.f32 %v7858_v17, %v11960_v19 }
0x10c3   : > { %v5158_v32 = vpop.f32.mrf.mxu0 }
0x10c4   : > { %v5254_v30 = vmul.f32 0.70710677, %v5164_v43  ;;  %v5159_v14 = vadd.f32 %v11960_v19, %v5158_v32  ;;  %v5238_v42 = vmul.f32 0.5, %v5164_v43 }
0x10c6   : > { %8688 = verf.f32 %v5254_v30  ;;  %v5253_v55 = vmul.f32 0.70710677, %v5159_v14  ;;  %v5237_v26 = vmul.f32 0.5, %v5159_v14 }
0x10c8   : > { %8690 = verf.f32 %v5253_v55 }
0x10cb   : > { %v7861_v21 = vpop.f32.mrf.mxu0 }
0x10cc   : > { %v5174_v18 = vadd.f32 %v7861_v21, %v11960_v19 }
0x10cd   : > { %v5168_v40 = vpop.f32.mrf.mxu0 }
0x10ce   : > { %v5256_v3 = vmul.f32 0.70710677, %v5174_v18  ;;  %v5169_v24 = vadd.f32 %v11960_v19, %v5168_v40  ;;  %v5240_v9 = vmul.f32 0.5, %v5174_v18 }
0x10cf   : > { %v7864_v5 = vpop.f32.mrf.mxu0 }
0x10d0   : > { %8692 = verf.f32 %v5256_v3  ;;  %v5255_v59 = vmul.f32 0.70710677, %v5169_v24  ;;  %v5184_v52 = vadd.f32 %v7864_v5, %v11960_v19  ;;  %v5239_v22 = vmul.f32 0.5, %v5169_v24 }
0x10d1   : > { %v5178_v60 = vpop.f32.mrf.mxu0 }
0x10d2   : > { %8694 = verf.f32 %v5255_v59  ;;  %v5258_v4 = vmul.f32 0.70710677, %v5184_v52  ;;  %v5179_v39 = vadd.f32 %v11960_v19, %v5178_v60  ;;  %v5242_v2 = vmul.f32 0.5, %v5184_v52 }
0x10d3   : > { %v8689_v29 = vpop.eup %8688 }
0x10d4   : > { %8696 = verf.f32 %v5258_v4  ;;  %v5257_v12 = vmul.f32 0.70710677, %v5179_v39  ;;  %v5286_v45 = vadd.f32 1.0, %v8689_v29  ;;  %v5241_v53 = vmul.f32 0.5, %v5179_v39 }
0x10d5   : > { %v8691_v6 = vpop.eup %8690 }
0x10d6   : > { %8698 = verf.f32 %v5257_v12  ;;  %v5285_v0 = vadd.f32 1.0, %v8691_v6  ;;  %v5302_v23 = vmul.f32 %v5286_v45, %v5238_v42 }
0x10d8   : > { %v5301_v27 = vmul.f32 %v5285_v0, %v5237_v26 }
0x10da   : > { %7912 = vmatprep.mubr.f32.mxu0 %v5301_v27 }
0x10db   : > { %7913 = vmatmul.mubr.f32.vlgmr.msra.gmra.mxu0 %v5302_v23 }
0x10dd   : > { %v8693_v46 = vpop.eup %8692 }
0x10de   : > { %v5288_v37 = vadd.f32 1.0, %v8693_v46 }
0x10df   : > { %v8695_v51 = vpop.eup %8694 }
0x10e0   : > { %v5287_v31 = vadd.f32 1.0, %v8695_v51  ;;  %v5304_v10 = vmul.f32 %v5288_v37, %v5240_v9 }
0x10e1   : > { %v8697_v56 = vpop.eup %8696 }
0x10e2   : > { %v5303_v20 = vmul.f32 %v5287_v31, %v5239_v22  ;;  %v5290_v54 = vadd.f32 1.0, %v8697_v56 }
0x10e3   : > { %v8699_v28 = vpop.eup %8698 }
0x10e4   : > { %7915 = vmatprep.mubr.f32.mxu0 %v5303_v20  ;;  %v5289_v58 = vadd.f32 1.0, %v8699_v28  ;;  %v5306_v11 = vmul.f32 %v5290_v54, %v5242_v2 }
0x10e5   : > { %7916 = vmatmul.mubr.f32.gmra.mxu0 %v5304_v10 }
0x10e6   : > { %v5305_v62 = vmul.f32 %v5289_v58, %v5241_v53 }
0x10e8   : > { %7918 = vmatprep.mubr.f32.mxu0 %v5305_v62 }
0x10e9   : > { %7919 = vmatmul.mubr.f32.gmra.mxu0 %v5306_v11 }
0x10f1   : > { %v7867_v7 = vpop.f32.mrf.mxu0 }
0x10f2   : > { %v5194_v47 = vadd.f32 %v7867_v7, %v11960_v19 }
0x10f3   : > { %v5188_v44 = vpop.f32.mrf.mxu0 }
0x10f4   : > { %v5260_v48 = vmul.f32 0.70710677, %v5194_v47  ;;  %v5189_v25 = vadd.f32 %v11960_v19, %v5188_v44  ;;  %v5244_v40 = vmul.f32 0.5, %v5194_v47 }
0x10f6   : > { %8700 = verf.f32 %v5260_v48  ;;  %v5259_v17 = vmul.f32 0.70710677, %v5189_v25  ;;  %v5243_v55 = vmul.f32 0.5, %v5189_v25 }
0x10f8   : > { %8702 = verf.f32 %v5259_v17 }
0x1103   : > { %v8701_v43 = vpop.eup %8700 }
0x1104   : > { %v5292_v30 = vadd.f32 1.0, %v8701_v43 }
0x1105   : > { %v8703_v32 = vpop.eup %8702  ;;  %v7870_v14 = vpop.f32.mrf.mxu0 }
0x1106   : > { %v5204_v21 = vadd.f32 %v7870_v14, %v11960_v19  ;;  %v5291_v18 = vadd.f32 1.0, %v8703_v32  ;;  %v5308_v52 = vmul.f32 %v5292_v30, %v5244_v40 }
0x1107   : > { %v5198_v3 = vpop.f32.mrf.mxu0 }
0x1108   : > { %v5262_v24 = vmul.f32 0.70710677, %v5204_v21  ;;  %v5199_v5 = vadd.f32 %v11960_v19, %v5198_v3  ;;  %v5307_v59 = vmul.f32 %v5291_v18, %v5243_v55  ;;  %v5246_v2 = vmul.f32 0.5, %v5204_v21 }
0x1109   : > { %v7873_v60 = vpop.f32.mrf.mxu0 }
0x110a   : > { %8704 = verf.f32 %v5262_v24  ;;  %v5261_v4 = vmul.f32 0.70710677, %v5199_v5  ;;  %v5214_v39 = vadd.f32 %v7873_v60, %v11960_v19  ;;  %7921 = vmatprep.mubr.f32.mxu1 %v5307_v59  ;;  %v5245_v54 = vmul.f32 0.5, %v5199_v5 }
0x110b   : > { %v5208_v29 = vpop.f32.mrf.mxu0  ;;  %7922 = vmatmul.mubr.f32.vlgmr.msra.gmra.mxu1 %v5308_v52 }
0x110c   : > { %8706 = verf.f32 %v5261_v4  ;;  %v5264_v12 = vmul.f32 0.70710677, %v5214_v39  ;;  %v5209_v6 = vadd.f32 %v11960_v19, %v5208_v29  ;;  %v5248_v17 = vmul.f32 0.5, %v5214_v39 }
0x110d   : > { %v7876_v45 = vpop.f32.mrf.mxu0 }
0x110e   : > { %8708 = verf.f32 %v5264_v12  ;;  %v5263_v26 = vmul.f32 0.70710677, %v5209_v6  ;;  %v5224_v0 = vadd.f32 %v7876_v45, %v11960_v19  ;;  %v5247_v44 = vmul.f32 0.5, %v5209_v6  ;;  %v6797_v12 = vld [vmem:[%s5496_s29] ss:$0 sm:$0xff] }
0x110f   : > { %v5218_v42 = vpop.f32.mrf.mxu0 }
0x1110   : > { %8710 = verf.f32 %v5263_v26  ;;  %v5266_v27 = vmul.f32 0.70710677, %v5224_v0  ;;  %v5219_v23 = vadd.f32 %v11960_v19, %v5218_v42  ;;  %v5250_v40 = vmul.f32 0.5, %v5224_v0 }
0x1111   : > { %v7879_v46 = vpop.f32.mrf.mxu0 }
0x1112   : > { %8712 = verf.f32 %v5266_v27  ;;  %v5265_v51 = vmul.f32 0.70710677, %v5219_v23  ;;  %v5234_v37 = vadd.f32 %v7879_v46, %v11960_v19  ;;  %v5249_v14 = vmul.f32 0.5, %v5219_v23 }
0x1113   : > { %v5228_v22 = vpop.f32.mrf.mxu0 }
0x1114   : > { %8714 = verf.f32 %v5265_v51  ;;  %v5268_v31 = vmul.f32 0.70710677, %v5234_v37  ;;  %v5229_v56 = vadd.f32 %v11960_v19, %v5228_v22  ;;  %v5252_v60 = vmul.f32 0.5, %v5234_v37 }
0x1116   : > { %8716 = verf.f32 %v5268_v31  ;;  %v5267_v9 = vmul.f32 0.70710677, %v5229_v56  ;;  %v5251_v59 = vmul.f32 0.5, %v5229_v56 }
0x1117   : > { %v8705_v20 = vpop.eup %8704 }
0x1118   : > { %8718 = verf.f32 %v5267_v9  ;;  %v5294_v10 = vadd.f32 1.0, %v8705_v20 }
0x1119   : > { %v8707_v28 = vpop.eup %8706 }
0x111a   : > { %v5293_v53 = vadd.f32 1.0, %v8707_v28  ;;  %v5310_v7 = vmul.f32 %v5294_v10, %v5246_v2 }
0x111b   : > { %v8709_v58 = vpop.eup %8708 }
0x111c   : > { %v5309_v62 = vmul.f32 %v5293_v53, %v5245_v54  ;;  %v5296_v47 = vadd.f32 1.0, %v8709_v58 }
0x111d   : > { %v8711_v11 = vpop.eup %8710 }
0x111e   : > { %7924 = vmatprep.mubr.f32.mxu1 %v5309_v62  ;;  %v5295_v48 = vadd.f32 1.0, %v8711_v11  ;;  %v5312_v32 = vmul.f32 %v5296_v47, %v5248_v17 }
0x111f   : > { %v8713_v25 = vpop.eup %8712  ;;  %7925 = vmatmul.mubr.f32.gmra.mxu1 %v5310_v7 }
0x1120   : > { %v5311_v19 = vmul.f32 %v5295_v48, %v5247_v44  ;;  %v5298_v30 = vadd.f32 1.0, %v8713_v25 }
0x1121   : > { %v8715_v43 = vpop.eup %8714 }
0x1122   : > { %7927 = vmatprep.mubr.f32.mxu1 %v5311_v19  ;;  %v5297_v55 = vadd.f32 1.0, %v8715_v43  ;;  %v5314_v24 = vmul.f32 %v5298_v30, %v5250_v40  ;;  %v12131_v40 = vld [vmem:[#allocation20 + $0x28] sm:$0xff] (%p12028_p9) }
0x1123   : > { %v8717_v18 = vpop.eup %8716  ;;  %7928 = vmatmul.mubr.f32.gmra.mxu1 %v5312_v32 }
0x1124   : > { %v5313_v21 = vmul.f32 %v5297_v55, %v5249_v14  ;;  %v5300_v5 = vadd.f32 1.0, %v8717_v18 }
0x1125   : > { %v8719_v3 = vpop.eup %8718 }
0x1126   : > { %7930 = vmatprep.mubr.f32.mxu1 %v5313_v21  ;;  %v5299_v52 = vadd.f32 1.0, %v8719_v3  ;;  %v5316_v39 = vmul.f32 %v5300_v5, %v5252_v60  ;;  %v5605_v21 = vld [vmem:[#allocation20 + $0x18] sm:$0xff] (%p12028_p9) }
0x1127   : > { %7931 = vmatmul.mubr.f32.gmra.mxu1 %v5314_v24  ;;  %v5773_v24 = vld [vmem:[#allocation20 + $0x38] sm:$0xff] (%p12028_p9) }
0x1128   : > { %v5315_v4 = vmul.f32 %v5299_v52, %v5251_v59  ;;  %v12243_v52 = vld [vmem:[%s12442_s18 + $0x68] sm:$0xff] (%p12028_p9) }
0x112a   : > { %7933 = vmatprep.mubr.f32.mxu1 %v5315_v4 }
0x112b   : > { %7934 = vmatmul.mubr.f32.gmra.mxu1 %v5316_v39  ;;  %v12264_v39 = vld [vmem:[%s12442_s18 + $0x50] sm:$0xff] (%p12028_p9) }
0x119b   : > { %v7914_v29 = vpop.f32.mrf.mxu0 }
0x119c   : > { %v5481_v6 = vadd.f32 %v7914_v29, %v11676_v13  ;;  %v12271_v29 = vld [vmem:[%s12442_s18 + $0x48] sm:$0xff] (%p12028_p9) }
0x119d   : > { %v5401_v45 = vpop.f32.mrf.mxu0 }
0x119e   : > { %v11980_v59 = vadd.f32 %v6797_v12, %v5481_v6   ;;  %v5480_v0 = vadd.f32 %v5401_v45, %v11680_v61  ;;  %v12287_v45 = vld [vmem:[%s12442_s18 + $0x38] sm:$0xff] (%p12028_p9) }
0x11a0   : > { %v12681_v26 = vmov %v11980_v59  ;;  %v11983_v58 = vadd.f32 %v6797_v12, %v5480_v0  }
0x11a1   : > { %v12712_v59 = vmov %v12681_v26 }
0x11a2   : > { %v12682_v42 = vmov %v11983_v58  ;;  %v12236_v59 = vld [vmem:[%s12442_s18 + $0x70] sm:$0xff] (%p12028_p9) }
0x11a5   : > { %v7917_v27 = vpop.f32.mrf.mxu0 }
0x11a6   : > { %v5483_v23 = vadd.f32 %v7917_v27, %v11688_v57  ;;  %v12301_v27 = vld [vmem:[%s12442_s18 + $0x28] sm:$0xff] (%p12028_p9) }
0x11a7   : > { %v5411_v46 = vpop.f32.mrf.mxu0 }
0x11a8   : > { %v11986_v62 = vadd.f32 %v6797_v12, %v5483_v23   ;;  %v5482_v37 = vadd.f32 %v5411_v46, %v11692_v33  ;;  %v12306_v23 = vld [vmem:[%s12442_s18 + $0x20] sm:$0xff] (%p12028_p9) }
0x11a9   : > { %v7920_v22 = vpop.f32.mrf.mxu0 }
0x11aa   : > { %v12683_v51 = vmov %v11986_v62  ;;  %v11989_v60 = vadd.f32 %v6797_v12, %v5482_v37   ;;  %v5485_v13 = vadd.f32 %v7920_v22, %v11698_v1 }
0x11ab   : > { %v5421_v56 = vpop.f32.mrf.mxu0 }
0x11ac   : > { %v12684_v31 = vmov %v11989_v60  ;;  %v11992_v0 = vadd.f32 %v6797_v12, %v5485_v13   ;;  %v5484_v61 = vadd.f32 %v5421_v56, %v11702_v8  ;;  %v12327_v56 = vld [vmem:[%s12442_s18 + $0x8] sm:$0xff] (%p12028_p9) }
0x11ad   : > { %v12711_v60 = vmov %v12684_v31 }
0x11ae   : > { %v12685_v20 = vmov %v11992_v0  ;;  %v11995_v9 = vadd.f32 %v6797_v12, %v5484_v61   ;;  %v12250_v60 = vld [vmem:[%s12442_s18 + $0x60] sm:$0xff] (%p12028_p9) }
0x11af   : > { %v12708_v0 = vmov %v12685_v20  ;;  %v12336_v61 = vld [vmem:[%s12442_s18] sm:$0xff] (%p12028_p9) }
0x11b0   : > { %v12686_v28 = vmov %v11995_v9 }
0x11cb   : > { %v7923_v10 = vpop.f32.mrf.mxu1 }
0x11cc   : > { %v5487_v57 = vadd.f32 %v7923_v10, %v11712_v34 }
0x11cd   : > { %v5431_v54 = vpop.f32.mrf.mxu1 }
0x11ce   : > { %v11998_v2 = vadd.f32 %v6797_v12, %v5487_v57   ;;  %v5486_v33 = vadd.f32 %v5431_v54, %v11716_v49 }
0x11d0   : > { %v12687_v53 = vmov %v11998_v2  ;;  %v12001_v1 = vadd.f32 %v6797_v12, %v5486_v33  }
0x11d1   :  { %7936 = vmatprep.subr.mxu1 (%p12028_p9), %v12687_v53  ;;  %7974 = vmatprep.subr.mxu0 (%p12028_p9), %v12687_v53 }
0x11d2   : > { %v12688_v11 = vmov %v12001_v1  ;;  %7937 = vmatpush3.msra.mxu1 (%p12028_p9), %v12687_v53  ;;  %7975 = vmatpush3.msra.mxu0 (%p12028_p9), %v12687_v53 }
0x11d3   :  { %7938 = vmatprep.subr.mxu1 (%p12028_p9), %v12688_v11  ;;  %7976 = vmatprep.subr.mxu0 (%p12028_p9), %v12688_v11 }
0x11d4   :  { %7939 = vmatpush3.msra.mxu1 (%p12028_p9), %v12688_v11  ;;  %7977 = vmatpush3.msra.mxu0 (%p12028_p9), %v12688_v11 }
0x11d5   :  { %7940 = vmatprep.subr.mxu1 (%p12028_p9), %v12685_v20  ;;  %7978 = vmatprep.subr.mxu0 (%p12028_p9), %v12685_v20 }
0x11d6   :  { %7941 = vmatpush3.msra.mxu1 (%p12028_p9), %v12685_v20  ;;  %7979 = vmatpush3.msra.mxu0 (%p12028_p9), %v12685_v20 }
0x11d7   :  { %7942 = vmatprep.subr.mxu1 (%p12028_p9), %v12686_v28  ;;  %7980 = vmatprep.subr.mxu0 (%p12028_p9), %v12686_v28 }
0x11d8   :  { %7943 = vmatpush3.msra.mxu1 (%p12028_p9), %v12686_v28  ;;  %7981 = vmatpush3.msra.mxu0 (%p12028_p9), %v12686_v28 }
0x11d9   :  { %7944 = vmatprep.subr.mxu1 (%p12028_p9), %v12683_v51  ;;  %7982 = vmatprep.subr.mxu0 (%p12028_p9), %v12683_v51 }
0x11da   :  { %7945 = vmatpush3.msra.mxu1 (%p12028_p9), %v12683_v51  ;;  %7983 = vmatpush3.msra.mxu0 (%p12028_p9), %v12683_v51 }
0x11db   :  { %7946 = vmatprep.subr.mxu1 (%p12028_p9), %v12684_v31  ;;  %7984 = vmatprep.subr.mxu0 (%p12028_p9), %v12684_v31 }
0x11dc   :  { %7947 = vmatpush3.msra.mxu1 (%p12028_p9), %v12684_v31  ;;  %7985 = vmatpush3.msra.mxu0 (%p12028_p9), %v12684_v31 }
0x11dd   :  { %7948 = vmatprep.subr.mxu1 (%p12028_p9), %v12681_v26  ;;  %7986 = vmatprep.subr.mxu0 (%p12028_p9), %v12681_v26 }
0x11de   :  { %7949 = vmatpush3.msra.mxu1 (%p12028_p9), %v12681_v26  ;;  %7987 = vmatpush3.msra.mxu0 (%p12028_p9), %v12681_v26 }
0x11df   : > { %v7926_v58 = vpop.f32.mrf.mxu1  ;;  %7950 = vmatprep.subr.mxu1 (%p12028_p9), %v12682_v42  ;;  %7988 = vmatprep.subr.mxu0 (%p12028_p9), %v12682_v42 }
0x11e0   : > { %v5489_v62 = vadd.f32 %v7926_v58, %v11724_v36  ;;  %v12713_v58 = vmov %v12682_v42  ;;  %7951 = vmatpush3.msra.mxu1 (%p12028_p9), %v12682_v42  ;;  %7989 = vmatpush3.msra.mxu0 (%p12028_p9), %v12682_v42 }
0x11e1   : > { %v5441_v7 = vpop.f32.mrf.mxu1  ;;  %7955 = vmatprep.subr.mxu1 (%p12028_p9), %v12687_v53 }
0x11e2   : > { %v12004_v4 = vadd.f32 %v6797_v12, %v5489_v62   ;;  %v5488_v8 = vadd.f32 %v5441_v7, %v11728_v41  ;;  %v12710_v62 = vmov %v12683_v51 }
0x11e3   : > { %v7929_v44 = vpop.f32.mrf.mxu1 }
0x11e4   : > { %v12689_v47 = vmov %v12004_v4  ;;  %v12007_v3 = vadd.f32 %v6797_v12, %v5488_v8   ;;  %v5491_v34 = vadd.f32 %v7929_v44, %v11734_v35 }
0x11e5   : > { %v5451_v25 = vpop.f32.mrf.mxu1  ;;  %v12704_v4 = vmov %v12689_v47 }
0x11e6   : > { %v12690_v48 = vmov %v12007_v3  ;;  %v12010_v6 = vadd.f32 %v6797_v12, %v5491_v34   ;;  %v5490_v49 = vadd.f32 %v5451_v25, %v11740_v38  ;;  %v12257_v4 = vld [vmem:[%s12442_s18 + $0x58] sm:$0xff] (%p12028_p9) }
0x11e7   : > { %v7932_v2 = vpop.f32.mrf.mxu1  ;;  %v12705_v3 = vmov %v12690_v48 }
0x11e8   : > { %v12691_v17 = vmov %v12010_v6  ;;  %v12013_v5 = vadd.f32 %v6797_v12, %v5490_v49   ;;  %v5493_v1 = vadd.f32 %v7932_v2, %v11746_v15  ;;  %v12706_v2 = vmov %v12687_v53  ;;  %v12085_v15 = vld [vmem:[#allocation20] sm:$0xff] (%p12028_p9)  ;;  %v5772_v3 = vld [vmem:[#allocation20 + $0x30] sm:$0xff] (%p12028_p9) }
0x11e9   : > { %v5461_v36 = vpop.f32.mrf.mxu1  ;;  %v12702_v6 = vmov %v12691_v17  ;;  %7952 = vmatprep.mubr.msk.f32.mxu1 (%p12028_p9), %vm248_vm1, %v12085_v15 }
0x11ea   : > { %v12692_v19 = vmov %v12013_v5  ;;  %v12016_v8 = vadd.f32 %v6797_v12, %v5493_v1   ;;  %v5492_v41 = vadd.f32 %v5461_v36, %v11752_v50  ;;  %v12707_v1 = vmov %v12688_v11  ;;  %v12114_v50 = vld [vmem:[#allocation20 + $0x8] sm:$0xff] (%p12028_p9) }
0x11eb   : > { %v7935_v32 = vpop.f32.mrf.mxu1  ;;  %v12703_v5 = vmov %v12692_v19  ;;  %7953 = vmatmul.mubr.msk.f32.vlgmr.msra.gmra.mxu1 (%p12028_p9), %vm248_vm1, %v12114_v50 }
0x11ec   : > { %v12693_v43 = vmov %v12016_v8  ;;  %v12019_v7 = vadd.f32 %v6797_v12, %v5492_v41   ;;  %v5495_v35 = vadd.f32 %v7935_v32, %v11758_v16  ;;  %v12118_v16 = vld [vmem:[#allocation20 + $0x10] sm:$0xff] (%p12028_p9)  ;;  %7956 = vmatpush3.msra.mxu1 (%p12028_p9), %v12687_v53  ;;  %v12231_v5 = vld [vmem:[%s12442_s18 + $0x78] sm:$0xff] (%p12028_p9) }
0x11ed   : > { %v5471_v14 = vpop.f32.mrf.mxu1  ;;  %v12700_v8 = vmov %v12693_v43  ;;  %7971 = vmatprep.mubr.msk.f32.mxu1 (%p12028_p9), %vm248_vm1, %v12118_v16  ;;  %7957 = vmatprep.subr.mxu1 (%p12028_p9), %v12688_v11 }
0x11ee   : > { %v12694_v30 = vmov %v12019_v7  ;;  %v12022_v10 = vadd.f32 %v6797_v12, %v5495_v35   ;;  %v5494_v38 = vadd.f32 %v5471_v14, %v11764_v63  ;;  %v12709_v63 = vmov %v12686_v28  ;;  %7958 = vmatpush3.msra.mxu1 (%p12028_p9), %v12688_v11  ;;  %8012 = vmatprep.subr.mxu0 (%p12028_p9), %v12231_v5 }
0x11ef   : > { %v12701_v7 = vmov %v12694_v30  ;;  %481 = sbr.rel (!%p12028_p9) target bundleno = 414 (0x19e), region = 177  ;;  %v12126_v63 = vld [vmem:[#allocation20 + $0x20] sm:$0xff] (%p12028_p9)  ;;  %7959 = vmatprep.subr.mxu1 (%p12028_p9), %v12685_v20 }
0x11f0   : > { %v12695_v55 = vmov %v12022_v10  ;;  %v12025_v9 = vadd.f32 %v6797_v12, %v5494_v38   ;;  %7990 = vmatprep.mubr.msk.f32.mxu0 (%p12028_p9), %vm248_vm1, %v12126_v63  ;;  %7960 = vmatpush3.msra.mxu1 (%p12028_p9), %v12685_v20  ;;  %v12280_v12 = vld [vmem:[%s12442_s18 + $0x40] sm:$0xff] (%p12028_p9) }
0x11f1   : > { %v12698_v10 = vmov %v12695_v55  ;;  %7991 = vmatmul.mubr.msk.f32.vlgmr.msra.gmra.mxu0 (%p12028_p9), %vm248_vm1, %v12131_v40  ;;  %7961 = vmatprep.subr.mxu1 (%p12028_p9), %v12686_v28 }
0x11f2   : > { %v12696_v18 = vmov %v12025_v9  ;;  %7962 = vmatpush3.msra.mxu1 (%p12028_p9), %v12686_v28  ;;  %8013 = vmatpush3.msra.mxu0 (%p12028_p9), %v12231_v5 }
0x11f3   : > { %v12699_v9 = vmov %v12696_v18  ;;  %7963 = vmatprep.subr.mxu1 (%p12028_p9), %v12683_v51  ;;  %8014 = vmatprep.subr.mxu0 (%p12028_p9), %v12236_v59 }
0x11f4   :  { %7964 = vmatpush3.msra.mxu1 %v12683_v51  ;;  %8015 = vmatpush3.msra.mxu0 %v12236_v59 }
0x11f5   :  { %7965 = vmatprep.subr.mxu1 %v12684_v31  ;;  %8016 = vmatprep.subr.mxu0 %v12243_v52 }
0x11f6   :  { %7966 = vmatpush3.msra.mxu1 %v12684_v31  ;;  %8017 = vmatpush3.msra.mxu0 %v12243_v52 }
0x11f7   :  { %7967 = vmatprep.subr.mxu1 %v12681_v26  ;;  %8018 = vmatprep.subr.mxu0 %v12250_v60 }
0x11f8   :  { %7968 = vmatpush3.msra.mxu1 %v12681_v26  ;;  %8019 = vmatpush3.msra.mxu0 %v12250_v60 }
0x11f9   :  { %7969 = vmatprep.subr.mxu1 %v12682_v42  ;;  %8020 = vmatprep.subr.mxu0 %v12257_v4 }
0x11fa   :  { %7970 = vmatpush3.msra.mxu1 %v12682_v42  ;;  %8021 = vmatpush3.msra.mxu0 %v12257_v4 }
0x11fb   :  { %7972 = vmatmul.mubr.msk.f32.vlgmr.msra.gmra.mxu1 %vm248_vm1, %v5605_v21  ;;  %7993 = vmatprep.subr.mxu1 %v12687_v53 }
0x11fc   :  { %7994 = vmatpush3.msra.mxu1 %v12687_v53  ;;  %8009 = vmatprep.mubr.msk.f32.mxu1 %vm248_vm1, %v5772_v3 }
0x11fd   :  { %7995 = vmatprep.subr.mxu1 %v12688_v11  ;;  %8022 = vmatprep.subr.mxu0 %v12264_v39 }
0x11fe   :  { %7996 = vmatpush3.msra.mxu1 %v12688_v11  ;;  %8023 = vmatpush3.msra.mxu0 %v12264_v39 }
0x11ff   :  { %7997 = vmatprep.subr.mxu1 %v12685_v20  ;;  %8024 = vmatprep.subr.mxu0 %v12271_v29 }
0x1200   :  { %7998 = vmatpush3.msra.mxu1 %v12685_v20  ;;  %8025 = vmatpush3.msra.mxu0 %v12271_v29 }
0x1201   :  { %7999 = vmatprep.subr.mxu1 %v12686_v28  ;;  %8026 = vmatprep.subr.mxu0 %v12280_v12 }
0x1202   :  { %8000 = vmatpush3.msra.mxu1 %v12686_v28  ;;  %8027 = vmatpush3.msra.mxu0 %v12280_v12 }
0x1203   :  { %8001 = vmatprep.subr.mxu1 %v12683_v51  ;;  %8028 = vmatprep.subr.mxu0 %v12287_v45 }
0x1204   :  { %8002 = vmatpush3.msra.mxu1 %v12683_v51  ;;  %8029 = vmatpush3.msra.mxu0 %v12287_v45  ;;  %v12313_v51 = vld [vmem:[%s12442_s18 + $0x18] sm:$0xff] }
0x1205   :  { %8003 = vmatprep.subr.mxu1 %v12684_v31 }
0x1206   :  { %8004 = vmatpush3.msra.mxu1 %v12684_v31  ;;  %v12320_v31 = vld [vmem:[%s12442_s18 + $0x10] sm:$0xff] }
0x1207   :  { %8005 = vmatprep.subr.mxu1 %v12681_v26 }
0x1208   :  { %8006 = vmatpush3.msra.mxu1 %v12681_v26  ;;  %v12294_v26 = vld [vmem:[%s12442_s18 + $0x30] sm:$0xff]  ;;  %s9219_s18 = smov [#allocation23]  }
0x1209   :  { %8007 = vmatprep.subr.mxu1 %v12682_v42  ;;  %8030 = vmatprep.subr.mxu0 %v12294_v26  ;;  %s6455_s19 = sshll.u32 %s9219_s18, 4  ;;  %s6456_s19 = int_to_ptr.vmem [resolvable:$true] %s6455_s19 }
0x120a   :  { %8008 = vmatpush3.msra.mxu1 %v12682_v42  ;;  %8031 = vmatpush3.msra.mxu0 %v12294_v26  ;;  %s9010_s24 = scalar_lea.vmem %s6456_s19, 512  ;;  %p9015_p11 = scmp.lt.s32.totalorder %s6456_s19, %s6456_s19 }
0x120b   :  { %8010 = vmatmul.mubr.msk.f32.vlgmr.msra.gmra.mxu1 %vm248_vm1, %v5773_v24  ;;  %8047 = vmatprep.subr.mxu1 %v12695_v55  ;;  %p9011_p10 = scmp.ne.s32.totalorder %s6456_s19, %s9010_s24  ;;  %p9016_p12 = scmp.lt.s32.totalorder %s9010_s24, %s9010_s24 }
0x120c   :  { %8048 = vmatpush3.msra.mxu1 %v12695_v55  ;;  %8063 = vmatprep.mubr.msk.f32.mxu1 %vm248_vm1, %v12085_v15 }
0x120d   :  { %8049 = vmatprep.subr.mxu1 %v12696_v18  ;;  %8032 = vmatprep.subr.mxu0 %v12301_v27  ;;  %p9017_p13 = por %p9016_p12, %p9015_p11 }
0x120e   :  { %8050 = vmatpush3.msra.mxu1 %v12696_v18  ;;  %8033 = vmatpush3.msra.mxu0 %v12301_v27 }
0x120f   :  { %8051 = vmatprep.subr.mxu1 %v12693_v43  ;;  %8034 = vmatprep.subr.mxu0 %v12306_v23  ;;  %p9018_p0 = pnand %p9017_p13, %p9011_p10 }
0x1210   :  { %8052 = vmatpush3.msra.mxu1 %v12693_v43  ;;  %8035 = vmatpush3.msra.mxu0 %v12306_v23 }
0x1211   :  { %8053 = vmatprep.subr.mxu1 %v12694_v30  ;;  %8036 = vmatprep.subr.mxu0 %v12313_v51 }
0x1212   :  { %8054 = vmatpush3.msra.mxu1 %v12694_v30  ;;  %8037 = vmatpush3.msra.mxu0 %v12313_v51 }
0x1213   :  { %8055 = vmatprep.subr.mxu1 %v12691_v17  ;;  %8038 = vmatprep.subr.mxu0 %v12320_v31 }
0x1214   :  { %8056 = vmatpush3.msra.mxu1 %v12691_v17  ;;  %8039 = vmatpush3.msra.mxu0 %v12320_v31 }
0x1215   :  { %8057 = vmatprep.subr.mxu1 %v12692_v19  ;;  %8040 = vmatprep.subr.mxu0 %v12327_v56 }
0x1216   :  { %8058 = vmatpush3.msra.mxu1 %v12692_v19  ;;  %8041 = vmatpush3.msra.mxu0 %v12327_v56 }
0x1217   :  { %8059 = vmatprep.subr.mxu1 %v12689_v47  ;;  %8042 = vmatprep.subr.mxu0 %v12336_v61 }
0x1218   :  { %8060 = vmatpush3.msra.mxu1 %v12689_v47  ;;  %8043 = vmatpush3.msra.mxu0 %v12336_v61 }
0x1219   :  { %8061 = vmatprep.subr.mxu1 %v12690_v48  ;;  %8085 = vmatprep.subr.mxu0 %v12695_v55 }
0x121a   :  { %8062 = vmatpush3.msra.mxu1 %v12690_v48 }
0x121b   :  { %8066 = vmatprep.subr.mxu1 %v12695_v55  ;;  %8064 = vmatmul.mubr.msk.f32.vlgmr.msra.gmra.mxu1 %vm248_vm1, %v12114_v50 }
0x121c   :  { %8067 = vmatpush3.msra.mxu1 %v12695_v55  ;;  %8082 = vmatprep.mubr.msk.f32.mxu1 %vm248_vm1, %v12118_v16 }
0x121d   :  { %8068 = vmatprep.subr.mxu1 %v12696_v18 }
0x121e   :  { %8069 = vmatpush3.msra.mxu1 %v12696_v18 }
0x121f   :  { %8070 = vmatprep.subr.mxu1 %v12693_v43 }
0x1220   :  { %8071 = vmatpush3.msra.mxu1 %v12693_v43 }
0x1221   :  { %8072 = vmatprep.subr.mxu1 %v12694_v30 }
0x1222   :  { %8073 = vmatpush3.msra.mxu1 %v12694_v30 }
0x1223   :  { %8074 = vmatprep.subr.mxu1 %v12691_v17 }
0x1224   :  { %8075 = vmatpush3.msra.mxu1 %v12691_v17 }
0x1225   :  { %8076 = vmatprep.subr.mxu1 %v12692_v19 }
0x1226   :  { %8077 = vmatpush3.msra.mxu1 %v12692_v19 }
0x1227   :  { %8078 = vmatprep.subr.mxu1 %v12689_v47 }
0x1228   :  { %8079 = vmatpush3.msra.mxu1 %v12689_v47 }
0x1229   :  { %8080 = vmatprep.subr.mxu1 %v12690_v48 }
0x122a   :  { %8081 = vmatpush3.msra.mxu1 %v12690_v48 }
0x122b   :  { %8083 = vmatmul.mubr.msk.f32.vlgmr.msra.gmra.mxu1 %vm248_vm1, %v5605_v21  ;;  %8104 = vmatprep.subr.mxu1 %v12695_v55 }
0x122c   :  { %8105 = vmatpush3.msra.mxu1 %v12695_v55  ;;  %8120 = vmatprep.mubr.msk.f32.mxu1 %vm248_vm1, %v5772_v3 }
0x122d   :  { %8106 = vmatprep.subr.mxu1 %v12696_v18 }
0x122e   :  { %8107 = vmatpush3.msra.mxu1 %v12696_v18 }
0x122f   :  { %8108 = vmatprep.subr.mxu1 %v12693_v43 }
0x1230   :  { %8109 = vmatpush3.msra.mxu1 %v12693_v43 }
0x1231   :  { %8110 = vmatprep.subr.mxu1 %v12694_v30 }
0x1232   :  { %8111 = vmatpush3.msra.mxu1 %v12694_v30 }
0x1233   :  { %8112 = vmatprep.subr.mxu1 %v12691_v17 }
0x1234   :  { %8113 = vmatpush3.msra.mxu1 %v12691_v17 }
0x1235   :  { %8114 = vmatprep.subr.mxu1 %v12692_v19 }
0x1236   :  { %8115 = vmatpush3.msra.mxu1 %v12692_v19 }
0x1237   :  { %8116 = vmatprep.subr.mxu1 %v12689_v47 }
0x1238   :  { %8117 = vmatpush3.msra.mxu1 %v12689_v47 }
0x1239   :  { %8118 = vmatprep.subr.mxu1 %v12690_v48 }
0x123a   :  { %8119 = vmatpush3.msra.mxu1 %v12690_v48 }
0x123b   :  { %8121 = vmatmul.mubr.msk.f32.vlgmr.msra.gmra.mxu1 %vm248_vm1, %v5773_v24 }
0x12ab   :  { %v7954_v6 = vpop.f32.mrf.mxu1 }
0x12ad   :  { %v5594_v0 = vpop.f32.mrf.mxu1 }
0x12b1   :  { %v7992_v42 = vpop.f32.mrf.mxu0 }
0x12b3   :  { %v5762_v22 = vpop.f32.mrf.mxu0 }
0x12b4   :  { %v8725_v20 = vpack.i.bf16 %v7992_v42, %v5762_v22 }
0x12bb   :  { %v7973_v46 = vpop.f32.mrf.mxu1 }
0x12bd   :  { %v5678_v37 = vpop.f32.mrf.mxu1 }
0x12be   :  { %v8720_v13 = vpack.i.bf16 %v7973_v46, %v5678_v37 }
0x12c0   :  { %8721 = vrot.lane.b32.xlu0 %v8720_v13, %s9216_s30 }
0x12c4   :  { %8726 = vrot.lane.b32.xlu0 %v8725_v20, %s9217_s12 }
0x12cb   :  { %v8011_v9 = vpop.f32.mrf.mxu1 }
0x12cd   :  { %v5846_v28 = vpop.f32.mrf.mxu1 }
0x12ce   :  { %v8730_v10 = vpack.i.bf16 %v8011_v9, %v5846_v28 }
0x12d0   :  { %8731 = vrot.lane.b32.xlu1 %v8730_v10, %s9218_s16 }
0x12db   :  { %v12343_v57 = vpop.f32.mrf.mxu1 }
0x12dd   :  { %v12345_v54 = vpop.f32.mrf.mxu1 }
0x12eb   :  { %v8084_v53 = vpop.f32.mrf.mxu1 }
0x12ed   :  { %v6144_v33 = vpop.f32.mrf.mxu1 }
0x12ee   :  { %v8735_v11 = vpack.i.bf16 %v8084_v53, %v6144_v33 }
0x12f0   :  { %8736 = vrot.lane.b32.xlu1 %v8735_v11, %s9216_s30 }
0x1332   :  { %v8722_v58 = vpop.permute.xlu0 %8721 }
0x1333   :  { %v8724_v7 = vunpack.i.h.bf16 %v8722_v58  ;;  %v8723_v8 = vunpack.i.l.bf16 %v8722_v58 }
0x1335   :  { %v5881_v49 = vsel %vm499_vm3, %v7954_v6, %v8724_v7  ;;  %v5880_v2 = vsel %vm499_vm3, %v5594_v0, %v8723_v8 }
0x1336   :  { %v8727_v62 = vpop.permute.xlu0 %8726 }
0x1337   :  { %v8729_v44 = vunpack.i.h.bf16 %v8727_v62  ;;  %v8728_v34 = vunpack.i.l.bf16 %v8727_v62 }
0x1339   :  { %v5882_v41 = vsel %vm248_vm1, %v5880_v2, %v8728_v34  ;;  %v5883_v32 = vsel %vm248_vm1, %v5881_v49, %v8729_v44 }
0x1342   :  { %v8732_v25 = vpop.permute.xlu1 %8731 }
0x1343   :  { %v8734_v1 = vunpack.i.h.bf16 %v8732_v25  ;;  %v8733_v36 = vunpack.i.l.bf16 %v8732_v25 }
0x1345   :  { %v5885_v35 = vsel %vm5884_vm7, %v5882_v41, %v8733_v36  ;;  %v5886_v14 = vsel %vm5884_vm7, %v5883_v32, %v8734_v1 }
0x1346   :  { %8044 = vmatprep.mubr.f32.mxu0 %v5885_v35 }
0x1347   :  { %8045 = vmatmul.mubr.f32.vlgmr.msra.gmra.mxu0 %v5886_v14 }
0x1348   :  { %8086 = vmatpush3.msra.mxu0 %v12695_v55  ;;  %8101 = vmatprep.mubr.msk.f32.mxu0 %vm248_vm1, %v12126_v63 }
0x1349   :  { %8087 = vmatprep.subr.mxu0 %v12696_v18 }
0x134a   :  { %8088 = vmatpush3.msra.mxu0 %v12696_v18 }
0x134b   :  { %8089 = vmatprep.subr.mxu0 %v12693_v43 }
0x134c   :  { %8090 = vmatpush3.msra.mxu0 %v12693_v43 }
0x134d   :  { %8091 = vmatprep.subr.mxu0 %v12694_v30 }
0x134e   :  { %8092 = vmatpush3.msra.mxu0 %v12694_v30 }
0x134f   :  { %8093 = vmatprep.subr.mxu0 %v12691_v17 }
0x1350   :  { %8094 = vmatpush3.msra.mxu0 %v12691_v17 }
0x1351   :  { %8095 = vmatprep.subr.mxu0 %v12692_v19 }
0x1352   :  { %8096 = vmatpush3.msra.mxu0 %v12692_v19  ;;  %v6806_v19 = vld [vmem:[#allocation22] ss:$0 sm:$0xff] }
0x1353   :  { %8097 = vmatprep.subr.mxu0 %v12689_v47 }
0x1354   :  { %8098 = vmatpush3.msra.mxu0 %v12689_v47  ;;  %v8122_v47 = vpop.f32.mrf.mxu1 }
0x1355   :  { %8099 = vmatprep.subr.mxu0 %v12690_v48 }
0x1356   :  { %8100 = vmatpush3.msra.mxu0 %v12690_v48  ;;  %v6310_v48 = vpop.f32.mrf.mxu1 }
0x1357   :  { %8102 = vmatmul.mubr.msk.f32.vlgmr.msra.gmra.mxu0 %vm248_vm1, %v12131_v40  ;;  %8123 = vmatprep.subr.mxu0 %v12231_v5  ;;  %v8745_v17 = vpack.i.bf16 %v8122_v47, %v6310_v48 }
0x1358   :  { %8124 = vmatpush3.msra.mxu0 %v12231_v5 }
0x1359   :  { %8125 = vmatprep.subr.mxu0 %v12236_v59  ;;  %8746 = vrot.lane.b32.xlu1 %v8745_v17, %s9218_s16 }
0x135a   :  { %8126 = vmatpush3.msra.mxu0 %v12236_v59 }
0x135b   :  { %8127 = vmatprep.subr.mxu0 %v12243_v52 }
0x135c   :  { %8128 = vmatpush3.msra.mxu0 %v12243_v52 }
0x135d   :  { %8129 = vmatprep.subr.mxu0 %v12250_v60 }
0x135e   :  { %8130 = vmatpush3.msra.mxu0 %v12250_v60 }
0x135f   :  { %8131 = vmatprep.subr.mxu0 %v12257_v4 }
0x1360   :  { %8132 = vmatpush3.msra.mxu0 %v12257_v4 }
0x1361   :  { %8133 = vmatprep.subr.mxu0 %v12264_v39 }
0x1362   :  { %8134 = vmatpush3.msra.mxu0 %v12264_v39  ;;  %v8737_v16 = vpop.permute.xlu1 %8736 }
0x1363   :  { %8135 = vmatprep.subr.mxu0 %v12271_v29  ;;  %v8739_v63 = vunpack.i.h.bf16 %v8737_v16  ;;  %v8738_v40 = vunpack.i.l.bf16 %v8737_v16 }
0x1364   :  { %8136 = vmatpush3.msra.mxu0 %v12271_v29 }
0x1365   :  { %8137 = vmatprep.subr.mxu0 %v12280_v12  ;;  %v6343_v60 = vsel %vm499_vm3, %v12345_v54, %v8738_v40  ;;  %v6344_v4 = vsel %vm499_vm3, %v12343_v57, %v8739_v63 }
0x1366   :  { %8138 = vmatpush3.msra.mxu0 %v12280_v12 }
0x1367   :  { %8139 = vmatprep.subr.mxu0 %v12287_v45 }
0x1368   :  { %8140 = vmatpush3.msra.mxu0 %v12287_v45 }
0x1369   :  { %8141 = vmatprep.subr.mxu0 %v12294_v26 }
0x136a   :  { %8142 = vmatpush3.msra.mxu0 %v12294_v26 }
0x136b   :  { %8143 = vmatprep.subr.mxu0 %v12301_v27 }
0x136c   :  { %8144 = vmatpush3.msra.mxu0 %v12301_v27 }
0x136d   :  { %8145 = vmatprep.subr.mxu0 %v12306_v23 }
0x136e   :  { %8146 = vmatpush3.msra.mxu0 %v12306_v23 }
0x136f   :  { %8147 = vmatprep.subr.mxu0 %v12313_v51 }
0x1370   :  { %8148 = vmatpush3.msra.mxu0 %v12313_v51 }
0x1371   :  { %8149 = vmatprep.subr.mxu0 %v12320_v31 }
0x1372   :  { %8150 = vmatpush3.msra.mxu0 %v12320_v31 }
0x1373   :  { %8151 = vmatprep.subr.mxu0 %v12327_v56 }
0x1374   :  { %8152 = vmatpush3.msra.mxu0 %v12327_v56 }
0x1375   :  { %8153 = vmatprep.subr.mxu0 %v12336_v61 }
0x1376   :  { %8154 = vmatpush3.msra.mxu0 %v12336_v61 }
0x13cb   :  { %v8747_v21 = vpop.permute.xlu1 %8746 }
0x13cc   :  { %v8749_v59 = vunpack.i.h.bf16 %v8747_v21  ;;  %v8748_v52 = vunpack.i.l.bf16 %v8747_v21 }
0x1407   :  { %v8046_v43 = vpop.f32.mrf.mxu0 }
0x1408   :  { %v5982_v30 = vadd.f32 %v8046_v43, %v6806_v19 }
0x1409   :  { %v5976_v55 = vpop.f32.mrf.mxu0 }
0x140a   :  { %5986 = vst.msk [vmem:[#allocation23 + $0x8] sm:$0xff] %vm248_vm1, %v5982_v30  ;;  %v5977_v38 = vadd.f32 %v6806_v19, %v5976_v55 }
0x140c   :  { %5985 = vst.msk [vmem:[#allocation23] sm:$0xff] %vm248_vm1, %v5977_v38 }
0x1417   :  { %v8103_v18 = vpop.f32.mrf.mxu0 }
0x1419   :  { %v6227_v15 = vpop.f32.mrf.mxu0 }
0x141a   :  { %v8740_v50 = vpack.i.bf16 %v8103_v18, %v6227_v15 }
0x141c   :  { %8741 = vrot.lane.b32.xlu0 %v8740_v50, %s9217_s12 }
0x148e   :  { %v8742_v3 = vpop.permute.xlu0 %8741 }
0x148f   :  { %v8744_v24 = vunpack.i.h.bf16 %v8742_v3  ;;  %v8743_v5 = vunpack.i.l.bf16 %v8742_v3 }
0x1491   :  { %v6345_v39 = vsel %vm248_vm1, %v6343_v60, %v8743_v5  ;;  %v6346_v29 = vsel %vm248_vm1, %v6344_v4, %v8744_v24 }
0x1492   :  { %v6347_v12 = vsel %vm5884_vm7, %v6345_v39, %v8748_v52  ;;  %v6348_v6 = vsel %vm5884_vm7, %v6346_v29, %v8749_v59 }
0x1493   :  { %8155 = vmatprep.mubr.f32.mxu0 %v6347_v12 }
0x1494   :  { %8156 = vmatmul.mubr.f32.vlgmr.msra.gmra.mxu0 %v6348_v6 }
0x1554   :  { %v8157_v45 = vpop.f32.mrf.mxu0 }
0x1555   :  { %v6444_v26 = vadd.f32 %v8157_v45, %v6806_v19 }
0x1556   :  { %v6438_v0 = vpop.f32.mrf.mxu0 }
0x1557   :  { %6449 = vst.msk [vmem:[#allocation23 + $0x18] sm:$0xff] %vm248_vm1, %v6444_v26  ;;  %v6439_v42 = vadd.f32 %v6806_v19, %v6438_v0 }
0x1559   :  { %6448 = vst.msk [vmem:[#allocation23 + $0x10] sm:$0xff] %vm248_vm1, %v6439_v42 }
0x155a   :  { %9021 = shalt.err (!%p9018_p0)
}
0x155b   :  { %6461 = dma.vmem_to_hbm [thread:$0]  %s6456_s19, 512, %s12444_s20, [#allocation4], %s9191_s21, %s9191_s21, %s9192_s1  }
0x155c   :  { %9112 = dma.done.wait [#allocation4], 512  }
0x155d   :  { %9113 = vsyncadd [#allocation4], 4294966784 }
0x155e   :  { %6465 = vsyncpa [#allocation3], 1 }
0x155f   :  { %6466 = vsyncpa [#allocation6], 1 }
0x1560   :  { %6467 = vsyncpa [#allocation9], 1 }
0x1561   :  { %6468 = vsyncpa [#allocation12], 1 }
0x1562   :  { %6469 = vsyncpa [#allocation15], 1 }
0x1563   :  { %6470 = vsyncpa [#allocation18], 1 }
0x1564   :  { %6471 = vsyncpa [#allocation21], 1 }
0x1565   :  { %6472 = vsyncpa [#allocation4], 1 }

</bundles_post_ra>
